<compile_context>
chip_gen: v7x
topology: tpu7x:2x2x1
jax: 0.10.0
libtpu: 0.0.40
codegen_flags: <defaults>
</compile_context>

<pallas_src>
import functools

import jax
import jax.numpy as jnp
from jax.experimental import pallas as pl
from jax.experimental.pallas import tpu as pltpu

KTAPS = 5
PAD = 2


# ---------------------------------------------------------------------------
# Kernel: one separable-conv GRU half step on a (T1, T2, C) block.
# ---------------------------------------------------------------------------
def _gru_half_kernel(h_ref, x_ref, wf_ref, bf_ref, wqh_ref, out_ref,
                     *, hidden_dim, conv_axis):
    """h_ref   : (T1, T2, Ch)    current hidden state
       x_ref   : (T1, T2, Cx)    conditioning input
       wf_ref  : (5, Cin, 3*Ch)  fused [z | r | q_x] taps (h->q rows are zero)
       bf_ref  : (1, 3*Ch)       fused [bz | br | bq] bias
       wqh_ref : (5, Ch, Ch)     q taps applied to (r * h)
       out_ref : (T1, T2, Ch)    new hidden state
       conv_axis: 0 -> conv over block axis 0 (vertical (5,1) pass)
                  1 -> conv over block axis 1 (horizontal (1,5) pass)
    """
    ch = hidden_dim
    length = h_ref.shape[conv_axis]

    def contract(a3, w2):
        # (T1, T2, K) x (K, N) -> (T1, T2, N), f32 accumulation on the MXU.
        return jax.lax.dot_general(
            a3, w2, (((2,), (0,)), ((), ())),
            preferred_element_type=jnp.float32)

    def pad_conv_axis(v):
        zshape = list(v.shape)
        zshape[conv_axis] = PAD
        zpad = jnp.zeros(tuple(zshape), v.dtype)
        return jnp.concatenate([zpad, v, zpad], axis=conv_axis)

    def window(v, k):
        if conv_axis == 0:
            return v[k:k + length]
        return v[:, k:k + length]

    h = h_ref[...]
    x = x_ref[...]

    # --- fused z / r / q_x convolution: one MXU contract per tap, N = 3*Ch ---
    hx_pad = pad_conv_axis(jnp.concatenate([h, x], axis=-1))
    acc = contract(window(hx_pad, 0), wf_ref[0])
    for k in range(1, KTAPS):
        acc = acc + contract(window(hx_pad, k), wf_ref[k])
    acc = acc + bf_ref[...]

    z = jax.nn.sigmoid(acc[..., :ch])
    r = jax.nn.sigmoid(acc[..., ch:2 * ch])
    acc_q = acc[..., 2 * ch:]            # conv(x, wq_x) + bq already included

    # --- remaining q convolution over r*h -----------------------------------
    rh_pad = pad_conv_axis(r * h)
    for k in range(KTAPS):
        acc_q = acc_q + contract(window(rh_pad, k), wqh_ref[k])

    q = jnp.tanh(acc_q)
    out_ref[...] = ((1.0 - z) * h + z * q).astype(out_ref.dtype)


# ---------------------------------------------------------------------------
# Wrapper: tiling / BlockSpecs for one half step (no transposes, NHWC layout).
# ---------------------------------------------------------------------------
def _lanes(c):
    return -(-c // 128) * 128


def _pick_tile(extent, per_unit_bytes, budget_bytes, *, multiple=1, batch=1):
    """Largest tile that divides `extent`, is a multiple of `multiple` (unless
    it equals the full extent), and keeps the VMEM footprint under budget."""
    cap = max(1, int(budget_bytes) // max(int(per_unit_bytes), 1))
    cap = min(cap, extent)
    if batch == 1 and extent >= 2:
        cap = min(cap, max(1, extent // 2))     # keep >=2 grid steps (megacore)
    best = None
    for cand in range(cap, 0, -1):
        if extent % cand:
            continue
        if cand != extent and multiple > 1 and cand % multiple:
            continue
        best = cand
        break
    if best is None or (best < min(8, extent)
                        and extent * per_unit_bytes <= 4 * budget_bytes):
        best = extent
    return best


def _gru_half_step(h_nhwc, x_nhwc, wf, bf, wqh, *, conv_axis,
                   vmem_block_budget=6 << 20):
    """conv_axis=1: (1,5) conv over W, tiling H.  conv_axis=0: (5,1) conv over
    H, tiling W.  Input/output layout is NHWC."""
    b, hh, ww, ch = h_nhwc.shape
    cx = x_nhwc.shape[-1]
    cin = ch + cx
    nf = 3 * ch

    if conv_axis == 1:            # conv over W, tile over H (no multiple rule)
        conv_len, tile_extent, tile_multiple = ww, hh, 1
    else:                         # conv over H, tile over W (2nd-minor: 8-mult)
        conv_len, tile_extent, tile_multiple = hh, ww, 8

    # f32 VMEM bytes per unit of the tiled spatial axis (lane padded; in/out
    # double-buffered; in-kernel padded temporaries + fused accumulator).
    per_unit = 4 * (
        2 * conv_len * (2 * _lanes(ch) + _lanes(cx))
        + (conv_len + 2 * PAD) * (_lanes(cin) + _lanes(ch))
        + conv_len * _lanes(nf))
    tile = _pick_tile(tile_extent, per_unit, vmem_block_budget,
                      multiple=tile_multiple, batch=b)
    n_tiles = tile_extent // tile

    if conv_axis == 1:
        data_block = lambda c: (None, tile, ww, c)
        data_map = lambda bi, ti: (bi, ti, 0, 0)
    else:
        data_block = lambda c: (None, hh, tile, c)
        data_map = lambda bi, ti: (bi, 0, ti, 0)

    kernel = functools.partial(_gru_half_kernel, hidden_dim=ch,
                               conv_axis=conv_axis)

    return pl.pallas_call(
        kernel,
        out_shape=jax.ShapeDtypeStruct((b, hh, ww, ch), jnp.float32),
        grid_spec=pltpu.PrefetchScalarGridSpec(
            num_scalar_prefetch=0,
            grid=(b, n_tiles),
            in_specs=[
                pl.BlockSpec(data_block(ch), data_map),                    # h
                pl.BlockSpec(data_block(cx), data_map),                    # x
                pl.BlockSpec((KTAPS, cin, nf), lambda bi, ti: (0, 0, 0)),  # wf
                pl.BlockSpec((1, nf), lambda bi, ti: (0, 0)),              # bf
                pl.BlockSpec((KTAPS, ch, ch), lambda bi, ti: (0, 0, 0)),   # wqh
            ],
            out_specs=pl.BlockSpec(data_block(ch), data_map),
        ),
        compiler_params=pltpu.CompilerParams(
            dimension_semantics=("parallel", "parallel"),
            vmem_limit_bytes=32 * 1024 * 1024),
    )(h_nhwc, x_nhwc, wf, bf, wqh)


# ---------------------------------------------------------------------------
# Weight preparation.
# ---------------------------------------------------------------------------
def _taps_from_torch_1x5(w_oihw):
    # (Cout, Cin, 1, 5) -> (5, Cin, Cout), cross-correlation tap order.
    return jnp.transpose(w_oihw[:, :, 0, :], (2, 1, 0))


def _taps_from_torch_5x1(w_oihw):
    # (Cout, Cin, 5, 1) -> (5, Cin, Cout)
    return jnp.transpose(w_oihw[:, :, :, 0], (2, 1, 0))


def _fuse_gate_weights(tz, tr, tq, bz, br, bq, hidden_dim):
    """Fuse z / r / q_x taps along the output-channel axis.

    tz/tr/tq: (5, Cin, Ch).  q's h-input rows are zeroed in the fused tensor
    (that contribution flows through wq_h applied to r*h) and returned
    separately as (5, Ch, Ch)."""
    ch = hidden_dim
    tq_x_only = tq.at[:, :ch, :].set(0.0)
    wf = jnp.concatenate([tz, tr, tq_x_only], axis=-1)        # (5, Cin, 3*Ch)
    bf = jnp.concatenate([bz, br, bq])[None, :]               # (1, 3*Ch)
    wqh = tq[:, :ch, :]                                       # (5, Ch, Ch)
    return wf, bf, wqh


class SepConvGRUPallas:
    """JAX/Pallas port of DEFOMStereo SepConvGRU (deterministic init)."""

    def __init__(self, hidden_dim=32, input_dim=48, key=jax.random.PRNGKey(0)):
        self.hidden_dim = hidden_dim
        self.input_dim = input_dim
        cin = hidden_dim + input_dim
        keys = jax.random.split(key, 12)

        def mk(kw, kb, shape):
            w = 0.05 * jax.random.normal(kw, shape, jnp.float32)
            b = 0.05 * jax.random.normal(kb, (shape[0],), jnp.float32)
            return w, b

        # Torch-layout weights (Cout, Cin, kh, kw), kept for the reference conv.
        self.wz1, self.bz1 = mk(keys[0], keys[1], (hidden_dim, cin, 1, 5))
        self.wr1, self.br1 = mk(keys[2], keys[3], (hidden_dim, cin, 1, 5))
        self.wq1, self.bq1 = mk(keys[4], keys[5], (hidden_dim, cin, 1, 5))
        self.wz2, self.bz2 = mk(keys[6], keys[7], (hidden_dim, cin, 5, 1))
        self.wr2, self.br2 = mk(keys[8], keys[9], (hidden_dim, cin, 5, 1))
        self.wq2, self.bq2 = mk(keys[10], keys[11], (hidden_dim, cin, 5, 1))

        # Fused kernel-layout weights.
        self.wf1, self.bf1, self.wqh1 = _fuse_gate_weights(
            _taps_from_torch_1x5(self.wz1), _taps_from_torch_1x5(self.wr1),
            _taps_from_torch_1x5(self.wq1), self.bz1, self.br1, self.bq1,
            hidden_dim)
        self.wf2, self.bf2, self.wqh2 = _fuse_gate_weights(
            _taps_from_torch_5x1(self.wz2), _taps_from_torch_5x1(self.wr2),
            _taps_from_torch_5x1(self.wq2), self.bz2, self.br2, self.bq2,
            hidden_dim)

    def __call__(self, h_nchw, *x_nchw):
        """h: (B, Ch, H, W); x parts concat to (B, Cx, H, W).  Returns NCHW."""
        x = jnp.concatenate(x_nchw, axis=1)
        h_nhwc = jnp.transpose(h_nchw, (0, 2, 3, 1))
        x_nhwc = jnp.transpose(x, (0, 2, 3, 1))

        # Horizontal half step: (1,5) conv over W (tiles H).
        h_nhwc = _gru_half_step(h_nhwc, x_nhwc, self.wf1, self.bf1, self.wqh1,
                                conv_axis=1)
        # Vertical half step: (5,1) conv over H (tiles W) — same NHWC layout,
        # no intermediate transpose in HBM.
        h_nhwc = _gru_half_step(h_nhwc, x_nhwc, self.wf2, self.bf2, self.wqh2,
                                conv_axis=0)

        return jnp.transpose(h_nhwc, (0, 3, 1, 2))  # back to NCHW


# ---------------------------------------------------------------------------
# Pure-JAX NCHW reference (mirrors the PyTorch forward exactly).
# ---------------------------------------------------------------------------
def _conv_ref(x, w, b, pad_hw):
    out = jax.lax.conv_general_dilated(
        x, w, window_strides=(1, 1),
        padding=[(pad_hw[0], pad_hw[0]), (pad_hw[1], pad_hw[1])],
        dimension_numbers=("NCHW", "OIHW", "NCHW"))
    return out + b[None, :, None, None]


def _reference_forward(m, h, *xs):
    x = jnp.concatenate(xs, axis=1)
    hx = jnp.concatenate([h, x], axis=1)
    z = jax.nn.sigmoid(_conv_ref(hx, m.wz1, m.bz1, (0, 2)))
    r = jax.nn.sigmoid(_conv_ref(hx, m.wr1, m.br1, (0, 2)))
    q = jnp.tanh(_conv_ref(jnp.concatenate([r * h, x], axis=1), m.wq1, m.bq1, (0, 2)))
    h = (1 - z) * h + z * q
    hx = jnp.concatenate([h, x], axis=1)
    z = jax.nn.sigmoid(_conv_ref(hx, m.wz2, m.bz2, (2, 0)))
    r = jax.nn.sigmoid(_conv_ref(hx, m.wr2, m.br2, (2, 0)))
    q = jnp.tanh(_conv_ref(jnp.concatenate([r * h, x], axis=1), m.wq2, m.bq2, (2, 0)))
    h = (1 - z) * h + z * q
    return h


if __name__ == "__main__":
    key = jax.random.PRNGKey(0)
    k_h, k_x1, k_x2, k_params = jax.random.split(key, 4)

    B, HID, CIN_X1, CIN_X2, H, W = 2, 32, 16, 32, 16, 16  # input_dim = 48
    h0 = jax.random.normal(k_h, (B, HID, H, W), jnp.float32)
    x1 = jax.random.normal(k_x1, (B, CIN_X1, H, W), jnp.float32)
    x2 = jax.random.normal(k_x2, (B, CIN_X2, H, W), jnp.float32)

    model = SepConvGRUPallas(hidden_dim=HID, input_dim=CIN_X1 + CIN_X2, key=k_params)

    out = jax.jit(lambda h, a, b_: model(h, a, b_))(h0, x1, x2)
    out = jax.block_until_ready(out)

    ref = jax.block_until_ready(_reference_forward(model, h0, x1, x2))
    assert out.shape == ref.shape == (B, HID, H, W)
    assert jnp.allclose(out, ref, atol=1e-4, rtol=1e-4), (
        float(jnp.max(jnp.abs(out - ref))))

    print("KERNEL_OK")
</pallas_src>

<mosaic_0001>
module attributes {stable_mosaic.version = 11 : i64} {
  func.func @_gru_half_kernel(%arg0: i32, %arg1: i32, %arg2: memref<1x16x16x32xf32, #tpu.memory_space<vmem>>, %arg3: memref<1x16x16x48xf32, #tpu.memory_space<vmem>>, %arg4: memref<5x80x96xf32, #tpu.memory_space<vmem>>, %arg5: memref<1x96xf32, #tpu.memory_space<vmem>>, %arg6: memref<5x32x32xf32, #tpu.memory_space<vmem>>, %arg7: memref<1x16x16x32xf32, #tpu.memory_space<vmem>>) attributes {dimension_semantics = [#tpu.dimension_semantics<parallel>, #tpu.dimension_semantics<parallel>], iteration_bounds = array<i64: 2, 1>, scalar_prefetch = 0 : i64, scratch_operands = 0 : i64, tpu.core_type = #tpu.core_type<tc>, window_params = [{transform_indices = @transform_0, window_bounds = array<i64: 1, 16, 16, 32>}, {transform_indices = @transform_1, window_bounds = array<i64: 1, 16, 16, 48>}, {pipeline_mode = #tpu.pipeline_mode<synchronous>, transform_indices = @transform_2, window_bounds = array<i64: 5, 80, 96>}, {pipeline_mode = #tpu.pipeline_mode<synchronous>, transform_indices = @transform_3, window_bounds = array<i64: 1, 96>}, {pipeline_mode = #tpu.pipeline_mode<synchronous>, transform_indices = @transform_4, window_bounds = array<i64: 5, 32, 32>}, {transform_indices = @transform_5, window_bounds = array<i64: 1, 16, 16, 32>}]} {
    %c0 = arith.constant 0 : index
    %c0_0 = arith.constant 0 : index
    %c0_1 = arith.constant 0 : index
    %c0_2 = arith.constant 0 : index
    %0 = vector.load %arg2[%c0, %c0_0, %c0_1, %c0_2] : memref<1x16x16x32xf32, #tpu.memory_space<vmem>>, vector<1x16x16x32xf32>
    %1 = vector.shape_cast %0 : vector<1x16x16x32xf32> to vector<16x16x32xf32>
    %c0_3 = arith.constant 0 : index
    %c0_4 = arith.constant 0 : index
    %c0_5 = arith.constant 0 : index
    %c0_6 = arith.constant 0 : index
    %2 = vector.load %arg3[%c0_3, %c0_4, %c0_5, %c0_6] : memref<1x16x16x48xf32, #tpu.memory_space<vmem>>, vector<1x16x16x48xf32>
    %3 = vector.shape_cast %2 : vector<1x16x16x48xf32> to vector<16x16x48xf32>
    %4 = tpu.concatenate %1, %3 in 2 : vector<16x16x32xf32>, vector<16x16x48xf32> -> vector<16x16x80xf32>
    %cst = arith.constant 0.000000e+00 : f32
    %5 = vector.broadcast %cst : f32 to vector<2x16x80xf32>
    %6 = tpu.concatenate %5, %4, %5 in 0 : vector<2x16x80xf32>, vector<16x16x80xf32>, vector<2x16x80xf32> -> vector<20x16x80xf32>
    %7 = vector.extract_strided_slice %6 {offsets = [0, 0, 0], sizes = [16, 16, 80], strides = [1, 1, 1]} : vector<20x16x80xf32> to vector<16x16x80xf32>
    %c0_7 = arith.constant 0 : index
    %c0_8 = arith.constant 0 : index
    %c0_9 = arith.constant 0 : index
    %8 = vector.load %arg4[%c0_7, %c0_8, %c0_9] : memref<5x80x96xf32, #tpu.memory_space<vmem>>, vector<1x80x96xf32>
    %9 = vector.shape_cast %8 : vector<1x80x96xf32> to vector<80x96xf32>
    %cst_10 = arith.constant dense<0.000000e+00> : vector<16x16x96xf32>
    %10 = tpu.matmul %7, %9, %cst_10 {dimension_numbers = #tpu.dot_dimension_numbers<[2], [0], [0, 1], [1], [0, 0, 0, 1, 1, 1], [], []>} : vector<16x16x80xf32>, vector<80x96xf32>, vector<16x16x96xf32> -> vector<16x16x96xf32>
    %11 = vector.extract_strided_slice %6 {offsets = [1, 0, 0], sizes = [16, 16, 80], strides = [1, 1, 1]} : vector<20x16x80xf32> to vector<16x16x80xf32>
    %c1 = arith.constant 1 : index
    %c0_11 = arith.constant 0 : index
    %c0_12 = arith.constant 0 : index
    %12 = vector.load %arg4[%c1, %c0_11, %c0_12] : memref<5x80x96xf32, #tpu.memory_space<vmem>>, vector<1x80x96xf32>
    %13 = vector.shape_cast %12 : vector<1x80x96xf32> to vector<80x96xf32>
    %cst_13 = arith.constant dense<0.000000e+00> : vector<16x16x96xf32>
    %14 = tpu.matmul %11, %13, %cst_13 {dimension_numbers = #tpu.dot_dimension_numbers<[2], [0], [0, 1], [1], [0, 0, 0, 1, 1, 1], [], []>} : vector<16x16x80xf32>, vector<80x96xf32>, vector<16x16x96xf32> -> vector<16x16x96xf32>
    %15 = arith.addf %10, %14 : vector<16x16x96xf32>
    %16 = vector.extract_strided_slice %6 {offsets = [2, 0, 0], sizes = [16, 16, 80], strides = [1, 1, 1]} : vector<20x16x80xf32> to vector<16x16x80xf32>
    %c2 = arith.constant 2 : index
    %c0_14 = arith.constant 0 : index
    %c0_15 = arith.constant 0 : index
    %17 = vector.load %arg4[%c2, %c0_14, %c0_15] : memref<5x80x96xf32, #tpu.memory_space<vmem>>, vector<1x80x96xf32>
    %18 = vector.shape_cast %17 : vector<1x80x96xf32> to vector<80x96xf32>
    %cst_16 = arith.constant dense<0.000000e+00> : vector<16x16x96xf32>
    %19 = tpu.matmul %16, %18, %cst_16 {dimension_numbers = #tpu.dot_dimension_numbers<[2], [0], [0, 1], [1], [0, 0, 0, 1, 1, 1], [], []>} : vector<16x16x80xf32>, vector<80x96xf32>, vector<16x16x96xf32> -> vector<16x16x96xf32>
    %20 = arith.addf %15, %19 : vector<16x16x96xf32>
    %21 = vector.extract_strided_slice %6 {offsets = [3, 0, 0], sizes = [16, 16, 80], strides = [1, 1, 1]} : vector<20x16x80xf32> to vector<16x16x80xf32>
    %c3 = arith.constant 3 : index
    %c0_17 = arith.constant 0 : index
    %c0_18 = arith.constant 0 : index
    %22 = vector.load %arg4[%c3, %c0_17, %c0_18] : memref<5x80x96xf32, #tpu.memory_space<vmem>>, vector<1x80x96xf32>
    %23 = vector.shape_cast %22 : vector<1x80x96xf32> to vector<80x96xf32>
    %cst_19 = arith.constant dense<0.000000e+00> : vector<16x16x96xf32>
    %24 = tpu.matmul %21, %23, %cst_19 {dimension_numbers = #tpu.dot_dimension_numbers<[2], [0], [0, 1], [1], [0, 0, 0, 1, 1, 1], [], []>} : vector<16x16x80xf32>, vector<80x96xf32>, vector<16x16x96xf32> -> vector<16x16x96xf32>
    %25 = arith.addf %20, %24 : vector<16x16x96xf32>
    %26 = vector.extract_strided_slice %6 {offsets = [4, 0, 0], sizes = [16, 16, 80], strides = [1, 1, 1]} : vector<20x16x80xf32> to vector<16x16x80xf32>
    %c4 = arith.constant 4 : index
    %c0_20 = arith.constant 0 : index
    %c0_21 = arith.constant 0 : index
    %27 = vector.load %arg4[%c4, %c0_20, %c0_21] : memref<5x80x96xf32, #tpu.memory_space<vmem>>, vector<1x80x96xf32>
    %28 = vector.shape_cast %27 : vector<1x80x96xf32> to vector<80x96xf32>
    %cst_22 = arith.constant dense<0.000000e+00> : vector<16x16x96xf32>
    %29 = tpu.matmul %26, %28, %cst_22 {dimension_numbers = #tpu.dot_dimension_numbers<[2], [0], [0, 1], [1], [0, 0, 0, 1, 1, 1], [], []>} : vector<16x16x80xf32>, vector<80x96xf32>, vector<16x16x96xf32> -> vector<16x16x96xf32>
    %30 = arith.addf %25, %29 : vector<16x16x96xf32>
    %c0_23 = arith.constant 0 : index
    %c0_24 = arith.constant 0 : index
    %31 = vector.load %arg5[%c0_23, %c0_24] : memref<1x96xf32, #tpu.memory_space<vmem>>, vector<1x96xf32>
    %32 = vector.shape_cast %31 : vector<1x96xf32> to vector<1x1x96xf32>
    %33 = vector.broadcast %32 : vector<1x1x96xf32> to vector<16x16x96xf32>
    %34 = arith.addf %30, %33 : vector<16x16x96xf32>
    %35 = vector.extract_strided_slice %34 {offsets = [0, 0, 0], sizes = [16, 16, 32], strides = [1, 1, 1]} : vector<16x16x96xf32> to vector<16x16x32xf32>
    %36 = arith.negf %35 : vector<16x16x32xf32>
    %37 = math.exp %36 : vector<16x16x32xf32>
    %cst_25 = arith.constant 1.000000e+00 : f32
    %38 = vector.broadcast %cst_25 : f32 to vector<16x16x32xf32>
    %39 = arith.addf %38, %37 : vector<16x16x32xf32>
    %40 = arith.divf %38, %39 : vector<16x16x32xf32>
    %41 = vector.extract_strided_slice %34 {offsets = [0, 0, 32], sizes = [16, 16, 32], strides = [1, 1, 1]} : vector<16x16x96xf32> to vector<16x16x32xf32>
    %42 = arith.negf %41 : vector<16x16x32xf32>
    %43 = math.exp %42 : vector<16x16x32xf32>
    %cst_26 = arith.constant 1.000000e+00 : f32
    %44 = vector.broadcast %cst_26 : f32 to vector<16x16x32xf32>
    %45 = arith.addf %44, %43 : vector<16x16x32xf32>
    %46 = arith.divf %44, %45 : vector<16x16x32xf32>
    %47 = vector.extract_strided_slice %34 {offsets = [0, 0, 64], sizes = [16, 16, 32], strides = [1, 1, 1]} : vector<16x16x96xf32> to vector<16x16x32xf32>
    %48 = arith.mulf %46, %1 : vector<16x16x32xf32>
    %cst_27 = arith.constant 0.000000e+00 : f32
    %49 = vector.broadcast %cst_27 : f32 to vector<2x16x32xf32>
    %50 = tpu.concatenate %49, %48, %49 in 0 : vector<2x16x32xf32>, vector<16x16x32xf32>, vector<2x16x32xf32> -> vector<20x16x32xf32>
    %51 = vector.extract_strided_slice %50 {offsets = [0, 0, 0], sizes = [16, 16, 32], strides = [1, 1, 1]} : vector<20x16x32xf32> to vector<16x16x32xf32>
    %c0_28 = arith.constant 0 : index
    %c0_29 = arith.constant 0 : index
    %c0_30 = arith.constant 0 : index
    %52 = vector.load %arg6[%c0_28, %c0_29, %c0_30] : memref<5x32x32xf32, #tpu.memory_space<vmem>>, vector<1x32x32xf32>
    %53 = vector.shape_cast %52 : vector<1x32x32xf32> to vector<32x32xf32>
    %cst_31 = arith.constant dense<0.000000e+00> : vector<16x16x32xf32>
    %54 = tpu.matmul %51, %53, %cst_31 {dimension_numbers = #tpu.dot_dimension_numbers<[2], [0], [0, 1], [1], [0, 0, 0, 1, 1, 1], [], []>} : vector<16x16x32xf32>, vector<32x32xf32>, vector<16x16x32xf32> -> vector<16x16x32xf32>
    %55 = arith.addf %47, %54 : vector<16x16x32xf32>
    %56 = vector.extract_strided_slice %50 {offsets = [1, 0, 0], sizes = [16, 16, 32], strides = [1, 1, 1]} : vector<20x16x32xf32> to vector<16x16x32xf32>
    %c1_32 = arith.constant 1 : index
    %c0_33 = arith.constant 0 : index
    %c0_34 = arith.constant 0 : index
    %57 = vector.load %arg6[%c1_32, %c0_33, %c0_34] : memref<5x32x32xf32, #tpu.memory_space<vmem>>, vector<1x32x32xf32>
    %58 = vector.shape_cast %57 : vector<1x32x32xf32> to vector<32x32xf32>
    %cst_35 = arith.constant dense<0.000000e+00> : vector<16x16x32xf32>
    %59 = tpu.matmul %56, %58, %cst_35 {dimension_numbers = #tpu.dot_dimension_numbers<[2], [0], [0, 1], [1], [0, 0, 0, 1, 1, 1], [], []>} : vector<16x16x32xf32>, vector<32x32xf32>, vector<16x16x32xf32> -> vector<16x16x32xf32>
    %60 = arith.addf %55, %59 : vector<16x16x32xf32>
    %61 = vector.extract_strided_slice %50 {offsets = [2, 0, 0], sizes = [16, 16, 32], strides = [1, 1, 1]} : vector<20x16x32xf32> to vector<16x16x32xf32>
    %c2_36 = arith.constant 2 : index
    %c0_37 = arith.constant 0 : index
    %c0_38 = arith.constant 0 : index
    %62 = vector.load %arg6[%c2_36, %c0_37, %c0_38] : memref<5x32x32xf32, #tpu.memory_space<vmem>>, vector<1x32x32xf32>
    %63 = vector.shape_cast %62 : vector<1x32x32xf32> to vector<32x32xf32>
    %cst_39 = arith.constant dense<0.000000e+00> : vector<16x16x32xf32>
    %64 = tpu.matmul %61, %63, %cst_39 {dimension_numbers = #tpu.dot_dimension_numbers<[2], [0], [0, 1], [1], [0, 0, 0, 1, 1, 1], [], []>} : vector<16x16x32xf32>, vector<32x32xf32>, vector<16x16x32xf32> -> vector<16x16x32xf32>
    %65 = arith.addf %60, %64 : vector<16x16x32xf32>
    %66 = vector.extract_strided_slice %50 {offsets = [3, 0, 0], sizes = [16, 16, 32], strides = [1, 1, 1]} : vector<20x16x32xf32> to vector<16x16x32xf32>
    %c3_40 = arith.constant 3 : index
    %c0_41 = arith.constant 0 : index
    %c0_42 = arith.constant 0 : index
    %67 = vector.load %arg6[%c3_40, %c0_41, %c0_42] : memref<5x32x32xf32, #tpu.memory_space<vmem>>, vector<1x32x32xf32>
    %68 = vector.shape_cast %67 : vector<1x32x32xf32> to vector<32x32xf32>
    %cst_43 = arith.constant dense<0.000000e+00> : vector<16x16x32xf32>
    %69 = tpu.matmul %66, %68, %cst_43 {dimension_numbers = #tpu.dot_dimension_numbers<[2], [0], [0, 1], [1], [0, 0, 0, 1, 1, 1], [], []>} : vector<16x16x32xf32>, vector<32x32xf32>, vector<16x16x32xf32> -> vector<16x16x32xf32>
    %70 = arith.addf %65, %69 : vector<16x16x32xf32>
    %71 = vector.extract_strided_slice %50 {offsets = [4, 0, 0], sizes = [16, 16, 32], strides = [1, 1, 1]} : vector<20x16x32xf32> to vector<16x16x32xf32>
    %c4_44 = arith.constant 4 : index
    %c0_45 = arith.constant 0 : index
    %c0_46 = arith.constant 0 : index
    %72 = vector.load %arg6[%c4_44, %c0_45, %c0_46] : memref<5x32x32xf32, #tpu.memory_space<vmem>>, vector<1x32x32xf32>
    %73 = vector.shape_cast %72 : vector<1x32x32xf32> to vector<32x32xf32>
    %cst_47 = arith.constant dense<0.000000e+00> : vector<16x16x32xf32>
    %74 = tpu.matmul %71, %73, %cst_47 {dimension_numbers = #tpu.dot_dimension_numbers<[2], [0], [0, 1], [1], [0, 0, 0, 1, 1, 1], [], []>} : vector<16x16x32xf32>, vector<32x32xf32>, vector<16x16x32xf32> -> vector<16x16x32xf32>
    %75 = arith.addf %70, %74 : vector<16x16x32xf32>
    %76 = math.tanh %75 : vector<16x16x32xf32>
    %cst_48 = arith.constant 1.000000e+00 : f32
    %77 = vector.broadcast %cst_48 : f32 to vector<16x16x32xf32>
    %78 = arith.subf %77, %40 : vector<16x16x32xf32>
    %79 = arith.mulf %78, %1 : vector<16x16x32xf32>
    %80 = arith.mulf %40, %76 : vector<16x16x32xf32>
    %81 = arith.addf %79, %80 : vector<16x16x32xf32>
    %c0_49 = arith.constant 0 : index
    %c0_50 = arith.constant 0 : index
    %c0_51 = arith.constant 0 : index
    %c0_52 = arith.constant 0 : index
    %82 = vector.load %arg7[%c0_49, %c0_50, %c0_51, %c0_52] : memref<1x16x16x32xf32, #tpu.memory_space<vmem>>, vector<1x16x16x32xf32>
    %83 = vector.shape_cast %82 : vector<1x16x16x32xf32> to vector<16x16x32xf32>
    %84 = vector.shape_cast %81 : vector<16x16x32xf32> to vector<1x16x16x32xf32>
    tpu.vector_store %arg7[%c0_49, %c0_50, %c0_51, %c0_52], %84 {strides = array<i32>} : memref<1x16x16x32xf32, #tpu.memory_space<vmem>>, vector<1x16x16x32xf32>,
    return
  }
  func.func @transform_0(%arg0: i32, %arg1: i32) -> (i32, i32, i32, i32) {
    %c0_i32 = arith.constant 0 : i32
    %c0_i32_0 = arith.constant 0 : i32
    %c0_i32_1 = arith.constant 0 : i32
    return %arg0, %c0_i32, %arg1, %c0_i32_0 : i32, i32, i32, i32
  }
  func.func @transform_1(%arg0: i32, %arg1: i32) -> (i32, i32, i32, i32) {
    %c0_i32 = arith.constant 0 : i32
    %c0_i32_0 = arith.constant 0 : i32
    %c0_i32_1 = arith.constant 0 : i32
    return %arg0, %c0_i32, %arg1, %c0_i32_0 : i32, i32, i32, i32
  }
  func.func @transform_2(%arg0: i32, %arg1: i32) -> (i32, i32, i32) {
    %c0_i32 = arith.constant 0 : i32
    %c0_i32_0 = arith.constant 0 : i32
    %c0_i32_1 = arith.constant 0 : i32
    %c0_i32_2 = arith.constant 0 : i32
    return %c0_i32, %c0_i32_0, %c0_i32_1 : i32, i32, i32
  }
  func.func @transform_3(%arg0: i32, %arg1: i32) -> (i32, i32) {
    %c0_i32 = arith.constant 0 : i32
    %c0_i32_0 = arith.constant 0 : i32
    %c0_i32_1 = arith.constant 0 : i32
    return %c0_i32, %c0_i32_0 : i32, i32
  }
  func.func @transform_4(%arg0: i32, %arg1: i32) -> (i32, i32, i32) {
    %c0_i32 = arith.constant 0 : i32
    %c0_i32_0 = arith.constant 0 : i32
    %c0_i32_1 = arith.constant 0 : i32
    %c0_i32_2 = arith.constant 0 : i32
    return %c0_i32, %c0_i32_0, %c0_i32_1 : i32, i32, i32
  }
  func.func @transform_5(%arg0: i32, %arg1: i32) -> (i32, i32, i32, i32) {
    %c0_i32 = arith.constant 0 : i32
    %c0_i32_0 = arith.constant 0 : i32
    %c0_i32_1 = arith.constant 0 : i32
    return %arg0, %c0_i32, %arg1, %c0_i32_0 : i32, i32, i32, i32
  }
}

module attributes {stable_mosaic.version = 11 : i64} {
  func.func @_gru_half_kernel(%arg0: i32, %arg1: i32, %arg2: memref<1x16x16x32xf32, #tpu.memory_space<vmem>>, %arg3: memref<1x16x16x48xf32, #tpu.memory_space<vmem>>, %arg4: memref<5x80x96xf32, #tpu.memory_space<vmem>>, %arg5: memref<1x96xf32, #tpu.memory_space<vmem>>, %arg6: memref<5x32x32xf32, #tpu.memory_space<vmem>>, %arg7: memref<1x16x16x32xf32, #tpu.memory_space<vmem>>) attributes {dimension_semantics = [#tpu.dimension_semantics<parallel>, #tpu.dimension_semantics<parallel>], iteration_bounds = array<i64: 2, 1>, scalar_prefetch = 0 : i64, scratch_operands = 0 : i64, tpu.core_type = #tpu.core_type<tc>, window_params = [{transform_indices = @transform_0, window_bounds = array<i64: 1, 16, 16, 32>}, {transform_indices = @transform_1, window_bounds = array<i64: 1, 16, 16, 48>}, {pipeline_mode = #tpu.pipeline_mode<synchronous>, transform_indices = @transform_2, window_bounds = array<i64: 5, 80, 96>}, {pipeline_mode = #tpu.pipeline_mode<synchronous>, transform_indices = @transform_3, window_bounds = array<i64: 1, 96>}, {pipeline_mode = #tpu.pipeline_mode<synchronous>, transform_indices = @transform_4, window_bounds = array<i64: 5, 32, 32>}, {transform_indices = @transform_5, window_bounds = array<i64: 1, 16, 16, 32>}]} {
    %c0 = arith.constant 0 : index
    %c0_0 = arith.constant 0 : index
    %c0_1 = arith.constant 0 : index
    %c0_2 = arith.constant 0 : index
    %0 = vector.load %arg2[%c0, %c0_0, %c0_1, %c0_2] : memref<1x16x16x32xf32, #tpu.memory_space<vmem>>, vector<1x16x16x32xf32>
    %1 = vector.shape_cast %0 : vector<1x16x16x32xf32> to vector<16x16x32xf32>
    %c0_3 = arith.constant 0 : index
    %c0_4 = arith.constant 0 : index
    %c0_5 = arith.constant 0 : index
    %c0_6 = arith.constant 0 : index
    %2 = vector.load %arg3[%c0_3, %c0_4, %c0_5, %c0_6] : memref<1x16x16x48xf32, #tpu.memory_space<vmem>>, vector<1x16x16x48xf32>
    %3 = vector.shape_cast %2 : vector<1x16x16x48xf32> to vector<16x16x48xf32>
    %4 = tpu.concatenate %1, %3 in 2 : vector<16x16x32xf32>, vector<16x16x48xf32> -> vector<16x16x80xf32>
    %cst = arith.constant 0.000000e+00 : f32
    %5 = vector.broadcast %cst : f32 to vector<16x2x80xf32>
    %6 = tpu.concatenate %5, %4, %5 in 1 : vector<16x2x80xf32>, vector<16x16x80xf32>, vector<16x2x80xf32> -> vector<16x20x80xf32>
    %7 = vector.extract_strided_slice %6 {offsets = [0, 0, 0], sizes = [16, 16, 80], strides = [1, 1, 1]} : vector<16x20x80xf32> to vector<16x16x80xf32>
    %c0_7 = arith.constant 0 : index
    %c0_8 = arith.constant 0 : index
    %c0_9 = arith.constant 0 : index
    %8 = vector.load %arg4[%c0_7, %c0_8, %c0_9] : memref<5x80x96xf32, #tpu.memory_space<vmem>>, vector<1x80x96xf32>
    %9 = vector.shape_cast %8 : vector<1x80x96xf32> to vector<80x96xf32>
    %cst_10 = arith.constant dense<0.000000e+00> : vector<16x16x96xf32>
    %10 = tpu.matmul %7, %9, %cst_10 {dimension_numbers = #tpu.dot_dimension_numbers<[2], [0], [0, 1], [1], [0, 0, 0, 1, 1, 1], [], []>} : vector<16x16x80xf32>, vector<80x96xf32>, vector<16x16x96xf32> -> vector<16x16x96xf32>
    %11 = vector.extract_strided_slice %6 {offsets = [0, 1, 0], sizes = [16, 16, 80], strides = [1, 1, 1]} : vector<16x20x80xf32> to vector<16x16x80xf32>
    %c1 = arith.constant 1 : index
    %c0_11 = arith.constant 0 : index
    %c0_12 = arith.constant 0 : index
    %12 = vector.load %arg4[%c1, %c0_11, %c0_12] : memref<5x80x96xf32, #tpu.memory_space<vmem>>, vector<1x80x96xf32>
    %13 = vector.shape_cast %12 : vector<1x80x96xf32> to vector<80x96xf32>
    %cst_13 = arith.constant dense<0.000000e+00> : vector<16x16x96xf32>
    %14 = tpu.matmul %11, %13, %cst_13 {dimension_numbers = #tpu.dot_dimension_numbers<[2], [0], [0, 1], [1], [0, 0, 0, 1, 1, 1], [], []>} : vector<16x16x80xf32>, vector<80x96xf32>, vector<16x16x96xf32> -> vector<16x16x96xf32>
    %15 = arith.addf %10, %14 : vector<16x16x96xf32>
    %16 = vector.extract_strided_slice %6 {offsets = [0, 2, 0], sizes = [16, 16, 80], strides = [1, 1, 1]} : vector<16x20x80xf32> to vector<16x16x80xf32>
    %c2 = arith.constant 2 : index
    %c0_14 = arith.constant 0 : index
    %c0_15 = arith.constant 0 : index
    %17 = vector.load %arg4[%c2, %c0_14, %c0_15] : memref<5x80x96xf32, #tpu.memory_space<vmem>>, vector<1x80x96xf32>
    %18 = vector.shape_cast %17 : vector<1x80x96xf32> to vector<80x96xf32>
    %cst_16 = arith.constant dense<0.000000e+00> : vector<16x16x96xf32>
    %19 = tpu.matmul %16, %18, %cst_16 {dimension_numbers = #tpu.dot_dimension_numbers<[2], [0], [0, 1], [1], [0, 0, 0, 1, 1, 1], [], []>} : vector<16x16x80xf32>, vector<80x96xf32>, vector<16x16x96xf32> -> vector<16x16x96xf32>
    %20 = arith.addf %15, %19 : vector<16x16x96xf32>
    %21 = vector.extract_strided_slice %6 {offsets = [0, 3, 0], sizes = [16, 16, 80], strides = [1, 1, 1]} : vector<16x20x80xf32> to vector<16x16x80xf32>
    %c3 = arith.constant 3 : index
    %c0_17 = arith.constant 0 : index
    %c0_18 = arith.constant 0 : index
    %22 = vector.load %arg4[%c3, %c0_17, %c0_18] : memref<5x80x96xf32, #tpu.memory_space<vmem>>, vector<1x80x96xf32>
    %23 = vector.shape_cast %22 : vector<1x80x96xf32> to vector<80x96xf32>
    %cst_19 = arith.constant dense<0.000000e+00> : vector<16x16x96xf32>
    %24 = tpu.matmul %21, %23, %cst_19 {dimension_numbers = #tpu.dot_dimension_numbers<[2], [0], [0, 1], [1], [0, 0, 0, 1, 1, 1], [], []>} : vector<16x16x80xf32>, vector<80x96xf32>, vector<16x16x96xf32> -> vector<16x16x96xf32>
    %25 = arith.addf %20, %24 : vector<16x16x96xf32>
    %26 = vector.extract_strided_slice %6 {offsets = [0, 4, 0], sizes = [16, 16, 80], strides = [1, 1, 1]} : vector<16x20x80xf32> to vector<16x16x80xf32>
    %c4 = arith.constant 4 : index
    %c0_20 = arith.constant 0 : index
    %c0_21 = arith.constant 0 : index
    %27 = vector.load %arg4[%c4, %c0_20, %c0_21] : memref<5x80x96xf32, #tpu.memory_space<vmem>>, vector<1x80x96xf32>
    %28 = vector.shape_cast %27 : vector<1x80x96xf32> to vector<80x96xf32>
    %cst_22 = arith.constant dense<0.000000e+00> : vector<16x16x96xf32>
    %29 = tpu.matmul %26, %28, %cst_22 {dimension_numbers = #tpu.dot_dimension_numbers<[2], [0], [0, 1], [1], [0, 0, 0, 1, 1, 1], [], []>} : vector<16x16x80xf32>, vector<80x96xf32>, vector<16x16x96xf32> -> vector<16x16x96xf32>
    %30 = arith.addf %25, %29 : vector<16x16x96xf32>
    %c0_23 = arith.constant 0 : index
    %c0_24 = arith.constant 0 : index
    %31 = vector.load %arg5[%c0_23, %c0_24] : memref<1x96xf32, #tpu.memory_space<vmem>>, vector<1x96xf32>
    %32 = vector.shape_cast %31 : vector<1x96xf32> to vector<1x1x96xf32>
    %33 = vector.broadcast %32 : vector<1x1x96xf32> to vector<16x16x96xf32>
    %34 = arith.addf %30, %33 : vector<16x16x96xf32>
    %35 = vector.extract_strided_slice %34 {offsets = [0, 0, 0], sizes = [16, 16, 32], strides = [1, 1, 1]} : vector<16x16x96xf32> to vector<16x16x32xf32>
    %36 = arith.negf %35 : vector<16x16x32xf32>
    %37 = math.exp %36 : vector<16x16x32xf32>
    %cst_25 = arith.constant 1.000000e+00 : f32
    %38 = vector.broadcast %cst_25 : f32 to vector<16x16x32xf32>
    %39 = arith.addf %38, %37 : vector<16x16x32xf32>
    %40 = arith.divf %38, %39 : vector<16x16x32xf32>
    %41 = vector.extract_strided_slice %34 {offsets = [0, 0, 32], sizes = [16, 16, 32], strides = [1, 1, 1]} : vector<16x16x96xf32> to vector<16x16x32xf32>
    %42 = arith.negf %41 : vector<16x16x32xf32>
    %43 = math.exp %42 : vector<16x16x32xf32>
    %cst_26 = arith.constant 1.000000e+00 : f32
    %44 = vector.broadcast %cst_26 : f32 to vector<16x16x32xf32>
    %45 = arith.addf %44, %43 : vector<16x16x32xf32>
    %46 = arith.divf %44, %45 : vector<16x16x32xf32>
    %47 = vector.extract_strided_slice %34 {offsets = [0, 0, 64], sizes = [16, 16, 32], strides = [1, 1, 1]} : vector<16x16x96xf32> to vector<16x16x32xf32>
    %48 = arith.mulf %46, %1 : vector<16x16x32xf32>
    %cst_27 = arith.constant 0.000000e+00 : f32
    %49 = vector.broadcast %cst_27 : f32 to vector<16x2x32xf32>
    %50 = tpu.concatenate %49, %48, %49 in 1 : vector<16x2x32xf32>, vector<16x16x32xf32>, vector<16x2x32xf32> -> vector<16x20x32xf32>
    %51 = vector.extract_strided_slice %50 {offsets = [0, 0, 0], sizes = [16, 16, 32], strides = [1, 1, 1]} : vector<16x20x32xf32> to vector<16x16x32xf32>
    %c0_28 = arith.constant 0 : index
    %c0_29 = arith.constant 0 : index
    %c0_30 = arith.constant 0 : index
    %52 = vector.load %arg6[%c0_28, %c0_29, %c0_30] : memref<5x32x32xf32, #tpu.memory_space<vmem>>, vector<1x32x32xf32>
    %53 = vector.shape_cast %52 : vector<1x32x32xf32> to vector<32x32xf32>
    %cst_31 = arith.constant dense<0.000000e+00> : vector<16x16x32xf32>
    %54 = tpu.matmul %51, %53, %cst_31 {dimension_numbers = #tpu.dot_dimension_numbers<[2], [0], [0, 1], [1], [0, 0, 0, 1, 1, 1], [], []>} : vector<16x16x32xf32>, vector<32x32xf32>, vector<16x16x32xf32> -> vector<16x16x32xf32>
    %55 = arith.addf %47, %54 : vector<16x16x32xf32>
    %56 = vector.extract_strided_slice %50 {offsets = [0, 1, 0], sizes = [16, 16, 32], strides = [1, 1, 1]} : vector<16x20x32xf32> to vector<16x16x32xf32>
    %c1_32 = arith.constant 1 : index
    %c0_33 = arith.constant 0 : index
    %c0_34 = arith.constant 0 : index
    %57 = vector.load %arg6[%c1_32, %c0_33, %c0_34] : memref<5x32x32xf32, #tpu.memory_space<vmem>>, vector<1x32x32xf32>
    %58 = vector.shape_cast %57 : vector<1x32x32xf32> to vector<32x32xf32>
    %cst_35 = arith.constant dense<0.000000e+00> : vector<16x16x32xf32>
    %59 = tpu.matmul %56, %58, %cst_35 {dimension_numbers = #tpu.dot_dimension_numbers<[2], [0], [0, 1], [1], [0, 0, 0, 1, 1, 1], [], []>} : vector<16x16x32xf32>, vector<32x32xf32>, vector<16x16x32xf32> -> vector<16x16x32xf32>
    %60 = arith.addf %55, %59 : vector<16x16x32xf32>
    %61 = vector.extract_strided_slice %50 {offsets = [0, 2, 0], sizes = [16, 16, 32], strides = [1, 1, 1]} : vector<16x20x32xf32> to vector<16x16x32xf32>
    %c2_36 = arith.constant 2 : index
    %c0_37 = arith.constant 0 : index
    %c0_38 = arith.constant 0 : index
    %62 = vector.load %arg6[%c2_36, %c0_37, %c0_38] : memref<5x32x32xf32, #tpu.memory_space<vmem>>, vector<1x32x32xf32>
    %63 = vector.shape_cast %62 : vector<1x32x32xf32> to vector<32x32xf32>
    %cst_39 = arith.constant dense<0.000000e+00> : vector<16x16x32xf32>
    %64 = tpu.matmul %61, %63, %cst_39 {dimension_numbers = #tpu.dot_dimension_numbers<[2], [0], [0, 1], [1], [0, 0, 0, 1, 1, 1], [], []>} : vector<16x16x32xf32>, vector<32x32xf32>, vector<16x16x32xf32> -> vector<16x16x32xf32>
    %65 = arith.addf %60, %64 : vector<16x16x32xf32>
    %66 = vector.extract_strided_slice %50 {offsets = [0, 3, 0], sizes = [16, 16, 32], strides = [1, 1, 1]} : vector<16x20x32xf32> to vector<16x16x32xf32>
    %c3_40 = arith.constant 3 : index
    %c0_41 = arith.constant 0 : index
    %c0_42 = arith.constant 0 : index
    %67 = vector.load %arg6[%c3_40, %c0_41, %c0_42] : memref<5x32x32xf32, #tpu.memory_space<vmem>>, vector<1x32x32xf32>
    %68 = vector.shape_cast %67 : vector<1x32x32xf32> to vector<32x32xf32>
    %cst_43 = arith.constant dense<0.000000e+00> : vector<16x16x32xf32>
    %69 = tpu.matmul %66, %68, %cst_43 {dimension_numbers = #tpu.dot_dimension_numbers<[2], [0], [0, 1], [1], [0, 0, 0, 1, 1, 1], [], []>} : vector<16x16x32xf32>, vector<32x32xf32>, vector<16x16x32xf32> -> vector<16x16x32xf32>
    %70 = arith.addf %65, %69 : vector<16x16x32xf32>
    %71 = vector.extract_strided_slice %50 {offsets = [0, 4, 0], sizes = [16, 16, 32], strides = [1, 1, 1]} : vector<16x20x32xf32> to vector<16x16x32xf32>
    %c4_44 = arith.constant 4 : index
    %c0_45 = arith.constant 0 : index
    %c0_46 = arith.constant 0 : index
    %72 = vector.load %arg6[%c4_44, %c0_45, %c0_46] : memref<5x32x32xf32, #tpu.memory_space<vmem>>, vector<1x32x32xf32>
    %73 = vector.shape_cast %72 : vector<1x32x32xf32> to vector<32x32xf32>
    %cst_47 = arith.constant dense<0.000000e+00> : vector<16x16x32xf32>
    %74 = tpu.matmul %71, %73, %cst_47 {dimension_numbers = #tpu.dot_dimension_numbers<[2], [0], [0, 1], [1], [0, 0, 0, 1, 1, 1], [], []>} : vector<16x16x32xf32>, vector<32x32xf32>, vector<16x16x32xf32> -> vector<16x16x32xf32>
    %75 = arith.addf %70, %74 : vector<16x16x32xf32>
    %76 = math.tanh %75 : vector<16x16x32xf32>
    %cst_48 = arith.constant 1.000000e+00 : f32
    %77 = vector.broadcast %cst_48 : f32 to vector<16x16x32xf32>
    %78 = arith.subf %77, %40 : vector<16x16x32xf32>
    %79 = arith.mulf %78, %1 : vector<16x16x32xf32>
    %80 = arith.mulf %40, %76 : vector<16x16x32xf32>
    %81 = arith.addf %79, %80 : vector<16x16x32xf32>
    %c0_49 = arith.constant 0 : index
    %c0_50 = arith.constant 0 : index
    %c0_51 = arith.constant 0 : index
    %c0_52 = arith.constant 0 : index
    %82 = vector.load %arg7[%c0_49, %c0_50, %c0_51, %c0_52] : memref<1x16x16x32xf32, #tpu.memory_space<vmem>>, vector<1x16x16x32xf32>
    %83 = vector.shape_cast %82 : vector<1x16x16x32xf32> to vector<16x16x32xf32>
    %84 = vector.shape_cast %81 : vector<16x16x32xf32> to vector<1x16x16x32xf32>
    tpu.vector_store %arg7[%c0_49, %c0_50, %c0_51, %c0_52], %84 {strides = array<i32>} : memref<1x16x16x32xf32, #tpu.memory_space<vmem>>, vector<1x16x16x32xf32>,
    return
  }
  func.func @transform_0(%arg0: i32, %arg1: i32) -> (i32, i32, i32, i32) {
    %c0_i32 = arith.constant 0 : i32
    %c0_i32_0 = arith.constant 0 : i32
    %c0_i32_1 = arith.constant 0 : i32
    return %arg0, %arg1, %c0_i32, %c0_i32_0 : i32, i32, i32, i32
  }
  func.func @transform_1(%arg0: i32, %arg1: i32) -> (i32, i32, i32, i32) {
    %c0_i32 = arith.constant 0 : i32
    %c0_i32_0 = arith.constant 0 : i32
    %c0_i32_1 = arith.constant 0 : i32
    return %arg0, %arg1, %c0_i32, %c0_i32_0 : i32, i32, i32, i32
  }
  func.func @transform_2(%arg0: i32, %arg1: i32) -> (i32, i32, i32) {
    %c0_i32 = arith.constant 0 : i32
    %c0_i32_0 = arith.constant 0 : i32
    %c0_i32_1 = arith.constant 0 : i32
    %c0_i32_2 = arith.constant 0 : i32
    return %c0_i32, %c0_i32_0, %c0_i32_1 : i32, i32, i32
  }
  func.func @transform_3(%arg0: i32, %arg1: i32) -> (i32, i32) {
    %c0_i32 = arith.constant 0 : i32
    %c0_i32_0 = arith.constant 0 : i32
    %c0_i32_1 = arith.constant 0 : i32
    return %c0_i32, %c0_i32_0 : i32, i32
  }
  func.func @transform_4(%arg0: i32, %arg1: i32) -> (i32, i32, i32) {
    %c0_i32 = arith.constant 0 : i32
    %c0_i32_0 = arith.constant 0 : i32
    %c0_i32_1 = arith.constant 0 : i32
    %c0_i32_2 = arith.constant 0 : i32
    return %c0_i32, %c0_i32_0, %c0_i32_1 : i32, i32, i32
  }
  func.func @transform_5(%arg0: i32, %arg1: i32) -> (i32, i32, i32, i32) {
    %c0_i32 = arith.constant 0 : i32
    %c0_i32_0 = arith.constant 0 : i32
    %c0_i32_1 = arith.constant 0 : i32
    return %arg0, %arg1, %c0_i32, %c0_i32_0 : i32, i32, i32, i32
  }
}

</mosaic_0001>

<bundles_post_ra>
// kernel: _lambda_.3
= control target key start
LH: loop header
LB: loop body
LE: loop exit
PB: predicated region body
PF: predicated region fallthrough
CT: control target
= control target key end

     0   :  { %10 = vsyncpa [#allocation3], 0  ;;  %s9362_s0 = inlined_call_operand.vmem [shape: f32[2,16,16,32], index: 0, kind: input, shape index: {}]   ;;  %s9363_s1 = inlined_call_operand.vmem [shape: f32[2,16,16,48], index: 1, kind: input, shape index: {}]   ;;  %s9364_s2 = inlined_call_operand.vmem [shape: f32[5,80,96], index: 2, kind: input, shape index: {}]   ;;  %s9365_s3 = inlined_call_operand.vmem [shape: f32[1,96], index: 3, kind: input, shape index: {}]   ;;  %s9366_s4 = inlined_call_operand.vmem [shape: f32[5,32,32], index: 4, kind: input, shape index: {}]   ;;  %s9367_s5 = inlined_call_operand.hbm [shape: f32[2,16,16,32], index: 5, kind: output, shape index: {}]  }
   0x1   :  { %12 = vsyncpa [#allocation3 + $0x1], 0  ;;  %s6912_s18 = smov 0   ;;  %s6914_s19 = smov 0  }
   0x2   :  { %s6916_s20 = smov 0   ;;  %s6918_s21 = smov 0  }
   0x3   :  { %s6920_s22 = smov 0   ;;  %s6922_s23 = smov 0  }
   0x4 LB: > { %s4825_s24 = sadd.s32 4294967295, %s6873_s23   ;;  %s4826_s25 = sadd.s32 4294967294, %s6873_s23   ;;  %s6873_s23 = sphi %s6922_s23, %s18_s23   ;;  %s6869_s22 = sphi %s6920_s22, %s9729_s22   ;;  %s6865_s21 = sphi %s6918_s21, %s9728_s21   ;;  %s6861_s20 = sphi %s6916_s20, %s9727_s20   ;;  %s6857_s19 = sphi %s6914_s19, %s9726_s19   ;;  %s6853_s18 = sphi %s6912_s18, %s9725_s18  }
   0x5   : > { %s30_s26 = sadd.s32 1, %s6869_s22  ;;  %s158_s27 = sadd.s32 1, %s6861_s20 }
   0x6   : > { %p32_p0 = scmp.ge.s32.totalorder %s30_s26, 2  ;;  %p168_p1 = scmp.ne.s32.totalorder %s6861_s20, %s6857_s19 }
   0x7   : > { %p169_p2 = scmp.eq.s32.totalorder %s4825_s24, 1  ;;  %p174_p3 = scmp.ne.s32.totalorder %s6857_s19, %s6853_s18 }
   0x8   : > { %s9731_s26 = smov (%p32_p0, %s30_s26), 0  ;;  %p175_p5 = scmp.eq.s32.totalorder %s4826_s25, 1 }
   0x9   : > { %p6952_p4 = por %p169_p2, %p168_p1  ;;  %s153_s29 = ssub.s32 %s6869_s22, %s9731_s26 }
   0xa   : > { %p4829_p6 = scmp.ge.s32.totalorder %s6873_s23, 1  ;;  %p156_p7 = scmp.eq.s32.totalorder %s153_s29, 0 }
   0xb   : > { %p6959_p8 = por %p175_p5, %p174_p3  ;;  %p228_p9 = scmp.lt.s32.totalorder %s6873_s23, 3 }
   0xc   : > { %s6965_s6 = scalar_select %p156_p7, %s6861_s20, %s158_s27  }
   0xd   : > { %p229_p10 = pnand %p4829_p6, %p228_p9 }
   0xf   : > { %232 = sbr.rel (%p229_p10) target bundleno = 1660 (0x67c), region = 40 }
  0x16   : > { %p270_p11 = scmp.lt.s32.totalorder %s6865_s21, 1  ;;  %v4835_v0 = vld [vmem:[%s9364_s2 + $0x50] sm:$0xff]  ;;  %v4836_v1 = vld [vmem:[%s9364_s2 + $0x58] sm:$0xff]  ;;  %v4837_v2 = vld [vmem:[%s9364_s2 + $0x60] sm:$0xff]  ;;  %v9368_v5 = vmov 0.0   ;;  %s6876_s13 = smov 32  }
  0x17   : > { %v6238_v3 = vpack.c.bf16 %v4836_v1, %v4835_v0  ;;  %v4838_v4 = vld [vmem:[%s9364_s2 + $0x68] sm:$0xff]  ;;  %5638 = vmatprep.mubr.f32.mxu0 %v9368_v5  ;;  %5966 = vmatprep.mubr.f32.mxu1 %v9368_v5  ;;  %v4839_v7 = vld [vmem:[%s9364_s2 + $0x70] sm:$0xff]  ;;  %v4840_v8 = vld [vmem:[%s9364_s2 + $0x78] sm:$0xff]  ;;  %vm482_vm0 = vcmask 261120   ;;  %vm536_vm1 = vcmask 654336   ;;  %s6878_s14 = smov 64  }
  0x18   : > { %s6983_s15 = scalar_select %p270_p11, %s6865_s21, 1  ;;  %v6242_v6 = vpack.c.bf16 %v4838_v4, %v4837_v2  ;;  %v6246_v9 = vpack.c.bf16 %v4840_v8, %v4839_v7  ;;  %v4841_v10 = vld [vmem:[%s9364_s2 + $0x80] sm:$0xff]  ;;  %v4842_v13 = vld [vmem:[%s9364_s2 + $0x88] sm:$0xff]  ;;  %v4843_v17 = vld [vmem:[%s9364_s2 + $0x90] sm:$0xff] }
  0x19   : > { %6239 = vmatprep.subr.bf16.mxu0 %v6238_v3  ;;  %v6250_v16 = vpack.c.bf16 %v4842_v13, %v4841_v10  ;;  %v4844_v18 = vld [vmem:[%s9364_s2 + $0x98] sm:$0xff]  ;;  %v515_v22 = vld [vmem:[%s9364_s2] sm:$0xff]  ;;  %v516_v23 = vld [vmem:[%s9364_s2 + $0x8] sm:$0xff]  ;;  %s266_s24 = sand.u32 1, %s6857_s19   ;;  %s5227_s7 = sshll.u32 %s6865_s21, 12 }
  0x1a   : > { %s5225_s27 = sshll.u32 %s6983_s15, 8  ;;  %6241 = vmatpush3.bf16.msra.mxu0 %v6238_v3  ;;  %v6254_v21 = vpack.c.bf16 %v4844_v18, %v4843_v17  ;;  %v6258_v26 = vpack.c.bf16 %v516_v23, %v515_v22  ;;  %v517_v27 = vld [vmem:[%s9364_s2 + $0x10] sm:$0xff]  ;;  %v518_v28 = vld [vmem:[%s9364_s2 + $0x18] sm:$0xff]  ;;  %v519_v32 = vld [vmem:[%s9364_s2 + $0x20] sm:$0xff]  ;;  %s4830_s25 = sshll.u32 %s266_s24, 8 }
  0x1b   : > { %s6997_s8 = scalar_lea.vmem %s9363_s1, %s5225_s27  ;;  %6243 = vmatprep.subr.bf16.mxu0 %v6242_v6  ;;  %v6262_v31 = vpack.c.bf16 %v518_v28, %v517_v27  ;;  %v520_v33 = vld [vmem:[%s9364_s2 + $0x28] sm:$0xff]  ;;  %v521_v39 = vld [vmem:[%s9364_s2 + $0x30] sm:$0xff]  ;;  %v522_v42 = vld [vmem:[%s9364_s2 + $0x38] sm:$0xff]  ;;  %s7118_s10 = scalar_lea.vmem %s9362_s0, %s5225_s27 }
  0x1c   : > { %v322_v11 = vld [vmem:[%s6997_s8] sm:$0xff]  ;;  %v324_v12 = vld [vmem:[%s6997_s8 + $0x10] sm:$0xff]  ;;  %v323_v14 = vld [vmem:[%s6997_s8 + $0x8] sm:$0xff]  ;;  %v6266_v36 = vpack.c.bf16 %v520_v33, %v519_v32  ;;  %v6270_v43 = vpack.c.bf16 %v522_v42, %v521_v39  ;;  %s6877_s27 = smov 96   ;;  %s9151_s29 = scalar_lea.vmem [#allocation2], %s4830_s25 }
  0x1d   : > { %386 = vrot.lane.b32.xlu0 %v322_v11, %s6876_s13  ;;  %390 = vrot.lane.b32.xlu1 %v324_v12, %s6876_s13  ;;  %v325_v15 = vld [vmem:[%s6997_s8 + $0x18] sm:$0xff]  ;;  %v326_v19 = vld [vmem:[%s6997_s8 + $0x20] sm:$0xff]  ;;  %s4728_s9 = sshll.u32 %s9151_s29, 4  ;;  %s6879_s12 = smov [#allocation2]   ;;  %s9308_s9 = int_to_ptr.vmem [resolvable:$true] %s4728_s9 }
  0x1e   : > { %6245 = vmatpush3.bf16.msra.mxu0 %v6242_v6  ;;  %v327_v20 = vld [vmem:[%s6997_s8 + $0x28] sm:$0xff]  ;;  %v328_v24 = vld [vmem:[%s6997_s8 + $0x30] sm:$0xff]  ;;  %v329_v25 = vld [vmem:[%s6997_s8 + $0x38] sm:$0xff]  ;;  %s6795_s11 = scalar_lea.vmem %s9308_s9, 4096 }
  0x1f   : > { %6247 = vmatprep.subr.bf16.mxu0 %v6246_v9  ;;  %v330_v29 = vld [vmem:[%s6997_s8 + $0x40] sm:$0xff]  ;;  %v331_v30 = vld [vmem:[%s6997_s8 + $0x48] sm:$0xff]  ;;  %v332_v34 = vld [vmem:[%s6997_s8 + $0x50] sm:$0xff]  ;;  %p6796_p12 = scmp.ne.s32.totalorder %s9308_s9, %s6795_s11 }
  0x20   : > { %v333_v35 = vld [vmem:[%s6997_s8 + $0x58] sm:$0xff]  ;;  %v334_v37 = vld [vmem:[%s6997_s8 + $0x60] sm:$0xff]  ;;  %v335_v38 = vld [vmem:[%s6997_s8 + $0x68] sm:$0xff] }
  0x21   : > { %388 = vrot.lane.b32.xlu0 %v323_v14, %s6876_s13  ;;  %392 = vrot.lane.b32.xlu1 %v325_v15, %s6876_s13  ;;  %v336_v40 = vld [vmem:[%s6997_s8 + $0x70] sm:$0xff]  ;;  %v337_v41 = vld [vmem:[%s6997_s8 + $0x78] sm:$0xff]  ;;  %p6797_p13 = pnand %p6796_p12, %p6952_p4 }
  0x22   : > { %6249 = vmatpush3.bf16.msra.mxu0 %v6246_v9  ;;  %v338_v44 = vld [vmem:[%s6997_s8 + $0x80] sm:$0xff]  ;;  %v339_v45 = vld [vmem:[%s6997_s8 + $0x88] sm:$0xff]  ;;  %v340_v46 = vld [vmem:[%s6997_s8 + $0x90] sm:$0xff] }
  0x23   : > { %6251 = vmatprep.subr.bf16.mxu0 %v6250_v16  ;;  %v341_v47 = vld [vmem:[%s6997_s8 + $0x98] sm:$0xff]  ;;  %v342_v48 = vld [vmem:[%s6997_s8 + $0xa0] sm:$0xff]  ;;  %v343_v49 = vld [vmem:[%s6997_s8 + $0xa8] sm:$0xff]  ;;  %p6798_p0 = pneg %p6797_p13 }
  0x24   : > { %v523_v50 = vld [vmem:[%s9364_s2 + $0x40] sm:$0xff]  ;;  %v524_v51 = vld [vmem:[%s9364_s2 + $0x48] sm:$0xff]  ;;  %v344_v53 = vld [vmem:[%s6997_s8 + $0xb0] sm:$0xff] }
  0x25   : > { %394 = vrot.lane.b32.xlu0 %v326_v19, %s6876_s13  ;;  %396 = vrot.lane.b32.xlu1 %v327_v20, %s6876_s13  ;;  %v6274_v52 = vpack.c.bf16 %v524_v51, %v523_v50  ;;  %v345_v54 = vld [vmem:[%s6997_s8 + $0xb8] sm:$0xff]  ;;  %v346_v55 = vld [vmem:[%s6997_s8 + $0xc0] sm:$0xff] }
  0x26   : > { %6253 = vmatpush3.bf16.msra.mxu0 %v6250_v16  ;;  %v347_v56 = vld [vmem:[%s6997_s8 + $0xc8] sm:$0xff]  ;;  %v348_v57 = vld [vmem:[%s6997_s8 + $0xd0] sm:$0xff]  ;;  %v349_v58 = vld [vmem:[%s6997_s8 + $0xd8] sm:$0xff] }
  0x27   : > { %6255 = vmatprep.subr.bf16.mxu0 %v6254_v21  ;;  %v4903_v59 = vld [vmem:[%s9364_s2 + $0xa0] sm:$0xff]  ;;  %v4904_v60 = vld [vmem:[%s9364_s2 + $0xa8] sm:$0xff]  ;;  %v352_v0 = vld [vmem:[%s6997_s8 + $0xf0] sm:$0xff] }
  0x28   : > { %v7102_v61 = vpack.c.bf16 %v4904_v60, %v4903_v59  ;;  %v350_v62 = vld [vmem:[%s6997_s8 + $0xe0] sm:$0xff]  ;;  %v351_v63 = vld [vmem:[%s6997_s8 + $0xe8] sm:$0xff]  ;;  %v353_v1 = vld [vmem:[%s6997_s8 + $0xf8] sm:$0xff]  ;;  %s9306_s8 = scalar_lea.hbm %s9367_s5, %s5227_s7 }
  0x29   : > { %398 = vrot.lane.b32.xlu0 %v328_v24, %s6876_s13  ;;  %400 = vrot.lane.b32.xlu1 %v329_v25, %s6876_s13  ;;  %v290_v2 = vld [vmem:[%s7118_s10] sm:$0xff]  ;;  %v7124_v3 = vld [vmem:[%s7118_s10 + $0x8] sm:$0xff] }
  0x2a   : > { %6257 = vmatpush3.bf16.msra.mxu0 %v6254_v21  ;;  %v292_v4 = vld [vmem:[%s7118_s10 + $0x10] sm:$0xff]  ;;  %v7131_v6 = vld [vmem:[%s7118_s10 + $0x18] sm:$0xff]  ;;  %v7137_v7 = vld [vmem:[%s7118_s10 + $0x20] sm:$0xff] }
  0x2b   : > { %6259 = vmatprep.subr.bf16.mxu0 %v6258_v26  ;;  %v7140_v8 = vld [vmem:[%s7118_s10 + $0x28] sm:$0xff]  ;;  %v7147_v9 = vld [vmem:[%s7118_s10 + $0x30] sm:$0xff]  ;;  %v7150_v10 = vld [vmem:[%s7118_s10 + $0x38] sm:$0xff] }
  0x2c   : > { %v7157_v11 = vld [vmem:[%s7118_s10 + $0x40] sm:$0xff]  ;;  %v7160_v12 = vld [vmem:[%s7118_s10 + $0x48] sm:$0xff]  ;;  %v7167_v13 = vld [vmem:[%s7118_s10 + $0x50] sm:$0xff] }
  0x2d   : > { %402 = vrot.lane.b32.xlu0 %v330_v29, %s6876_s13  ;;  %404 = vrot.lane.b32.xlu1 %v331_v30, %s6876_s13  ;;  %v7170_v14 = vld [vmem:[%s7118_s10 + $0x58] sm:$0xff]  ;;  %v7177_v15 = vld [vmem:[%s7118_s10 + $0x60] sm:$0xff] }
  0x2e   : > { %5639 = vmatmul.mubr.f32.vlgmr.msra.gmra.mrb[0].mxu0 %v9368_v5  ;;  %v7180_v16 = vld [vmem:[%s7118_s10 + $0x68] sm:$0xff]  ;;  %v7187_v17 = vld [vmem:[%s7118_s10 + $0x70] sm:$0xff]  ;;  %v7190_v18 = vld [vmem:[%s7118_s10 + $0x78] sm:$0xff] }
  0x2f   : > { %6261 = vmatpush3.bf16.msra.mxu0 %v6258_v26  ;;  %v7197_v19 = vld [vmem:[%s7118_s10 + $0x80] sm:$0xff]  ;;  %v7200_v20 = vld [vmem:[%s7118_s10 + $0x88] sm:$0xff]  ;;  %v7207_v21 = vld [vmem:[%s7118_s10 + $0x90] sm:$0xff] }
  0x30   : > { %6263 = vmatprep.subr.bf16.mxu0 %v6262_v31  ;;  %v7210_v22 = vld [vmem:[%s7118_s10 + $0x98] sm:$0xff]  ;;  %v7217_v23 = vld [vmem:[%s7118_s10 + $0xa0] sm:$0xff]  ;;  %v7220_v24 = vld [vmem:[%s7118_s10 + $0xa8] sm:$0xff] }
  0x31   : > { %406 = vrot.lane.b32.xlu0 %v332_v34, %s6876_s13  ;;  %408 = vrot.lane.b32.xlu1 %v333_v35, %s6876_s13  ;;  %v7227_v25 = vld [vmem:[%s7118_s10 + $0xb0] sm:$0xff]  ;;  %v7230_v26 = vld [vmem:[%s7118_s10 + $0xb8] sm:$0xff] }
  0x32   : > { %v7237_v27 = vld [vmem:[%s7118_s10 + $0xc0] sm:$0xff]  ;;  %v7240_v28 = vld [vmem:[%s7118_s10 + $0xc8] sm:$0xff]  ;;  %v7250_v32 = vld [vmem:[%s7118_s10 + $0xd8] sm:$0xff] }
  0x33   : > { %6265 = vmatpush3.bf16.msra.mxu0 %v6262_v31  ;;  %v7255_v33 = vld [vmem:[%s7118_s10 + $0xd0] sm:$0xff] }
  0x34   : > { %6267 = vmatprep.subr.bf16.mxu0 %v6266_v36 }
  0x35   : > { %410 = vrot.lane.b32.xlu0 %v334_v37, %s6876_s13  ;;  %412 = vrot.lane.b32.xlu1 %v335_v38, %s6876_s13 }
  0x37   : > { %6269 = vmatpush3.bf16.msra.mxu0 %v6266_v36 }
  0x38   : > { %6271 = vmatprep.subr.bf16.mxu0 %v6270_v43 }
  0x39   : > { %414 = vrot.lane.b32.xlu0 %v336_v40, %s6876_s13  ;;  %416 = vrot.lane.b32.xlu1 %v337_v41, %s6876_s13 }
  0x3b   : > { %6273 = vmatpush3.bf16.msra.mxu0 %v6270_v43 }
  0x3c   : > { %6275 = vmatprep.subr.bf16.mxu0 %v6274_v52 }
  0x3d   : > { %418 = vrot.lane.b32.xlu0 %v338_v44, %s6876_s13  ;;  %420 = vrot.lane.b32.xlu1 %v339_v45, %s6876_s13 }
  0x3f   : > { %6277 = vmatpush3.bf16.msra.mxu0 %v6274_v52 }
  0x40   : > { %6279 = vmatprep.subr.bf16.mxu0 %v7102_v61 }
  0x41   : > { %422 = vrot.lane.b32.xlu0 %v340_v46, %s6876_s13  ;;  %424 = vrot.lane.b32.xlu1 %v341_v47, %s6876_s13 }
  0x45   : > { %426 = vrot.lane.b32.xlu0 %v342_v48, %s6876_s13  ;;  %428 = vrot.lane.b32.xlu1 %v343_v49, %s6876_s13 }
  0x49   : > { %430 = vrot.lane.b32.xlu0 %v344_v53, %s6876_s13  ;;  %432 = vrot.lane.b32.xlu1 %v345_v54, %s6876_s13 }
  0x4d   : > { %434 = vrot.lane.b32.xlu0 %v346_v55, %s6876_s13  ;;  %436 = vrot.lane.b32.xlu1 %v347_v56, %s6876_s13 }
  0x51   : > { %438 = vrot.lane.b32.xlu0 %v348_v57, %s6876_s13  ;;  %440 = vrot.lane.b32.xlu1 %v349_v58, %s6876_s13 }
  0x55   : > { %442 = vrot.lane.b32.xlu0 %v350_v62, %s6876_s13  ;;  %444 = vrot.lane.b32.xlu1 %v351_v63, %s6876_s13 }
  0x59   : > { %446 = vrot.lane.b32.xlu0 %v352_v0, %s6876_s13  ;;  %448 = vrot.lane.b32.xlu1 %v353_v1, %s6876_s13 }
  0x5d   : > { %2155 = vrot.lane.b32.xlu1 %v7124_v3, %s6876_s13  ;;  %2153 = vrot.lane.b32.xlu0 %v290_v2, %s6876_s13 }
  0x61   : > { %2159 = vrot.lane.b32.xlu1 %v7131_v6, %s6876_s13  ;;  %2157 = vrot.lane.b32.xlu0 %v292_v4, %s6876_s13 }
  0x65   : > { %2163 = vrot.lane.b32.xlu1 %v7140_v8, %s6876_s13  ;;  %2161 = vrot.lane.b32.xlu0 %v7137_v7, %s6876_s13 }
  0x69   : > { %2167 = vrot.lane.b32.xlu1 %v7150_v10, %s6876_s13  ;;  %2165 = vrot.lane.b32.xlu0 %v7147_v9, %s6876_s13 }
  0x6d   : > { %2171 = vrot.lane.b32.xlu1 %v7160_v12, %s6876_s13  ;;  %2169 = vrot.lane.b32.xlu0 %v7157_v11, %s6876_s13 }
  0x71   : > { %2175 = vrot.lane.b32.xlu1 %v7170_v14, %s6876_s13  ;;  %2173 = vrot.lane.b32.xlu0 %v7167_v13, %s6876_s13 }
  0x75   : > { %2179 = vrot.lane.b32.xlu1 %v7180_v16, %s6876_s13  ;;  %2177 = vrot.lane.b32.xlu0 %v7177_v15, %s6876_s13 }
  0x79   : > { %2183 = vrot.lane.b32.xlu1 %v7190_v18, %s6876_s13  ;;  %2181 = vrot.lane.b32.xlu0 %v7187_v17, %s6876_s13 }
  0x7d   : > { %2187 = vrot.lane.b32.xlu1 %v7200_v20, %s6876_s13  ;;  %2185 = vrot.lane.b32.xlu0 %v7197_v19, %s6876_s13 }
  0x81   : > { %2191 = vrot.lane.b32.xlu1 %v7210_v22, %s6876_s13  ;;  %2189 = vrot.lane.b32.xlu0 %v7207_v21, %s6876_s13 }
  0x85   : > { %2195 = vrot.lane.b32.xlu1 %v7220_v24, %s6876_s13  ;;  %2193 = vrot.lane.b32.xlu0 %v7217_v23, %s6876_s13 }
  0x89   : > { %2199 = vrot.lane.b32.xlu1 %v7230_v26, %s6876_s13  ;;  %2197 = vrot.lane.b32.xlu0 %v7227_v25, %s6876_s13 }
  0x8d   : > { %2203 = vrot.lane.b32.xlu1 %v7240_v28, %s6876_s13  ;;  %2201 = vrot.lane.b32.xlu0 %v7237_v27, %s6876_s13 }
  0x8f   : > { %v387_v29 = vpop.permute.xlu0 %386  ;;  %v391_v30 = vpop.permute.xlu1 %390 }
  0x90   : > { %v7247_v31 = vsel %vm482_vm0, %v290_v2, %v387_v29  ;;  %v7262_v34 = vsel %vm482_vm0, %v292_v4, %v391_v30 }
  0x91   : > { %5641 = vmatprep.mubr.msk.f32.mxu0 %vm536_vm1, %v7247_v31  ;;  %2207 = vrot.lane.b32.xlu1 %v7250_v32, %s6876_s13 }
  0x92   : > { %2205 = vrot.lane.b32.xlu0 %v7255_v33, %s6876_s13 }
  0x93   : > { %v389_v35 = vpop.permute.xlu0 %388  ;;  %v393_v36 = vpop.permute.xlu1 %392 }
  0x94   : > { %v7266_v37 = vsel %vm482_vm0, %v7124_v3, %v389_v35  ;;  %v7274_v38 = vsel %vm482_vm0, %v7131_v6, %v393_v36  ;;  %v4907_v36 = vld [vmem:[%s9364_s2 + $0xc0] sm:$0xff] }
  0x95   : > { %5642 = vmatmul.mubr.msk.f32.gmra.mrb[2].mxu0 %vm536_vm1, %v7266_v37 }
  0x96   : > { %5644 = vmatprep.mubr.msk.f32.mxu0 %vm536_vm1, %v7262_v34 }
  0x97   : > { %v395_v39 = vpop.permute.xlu0 %394  ;;  %v397_v40 = vpop.permute.xlu1 %396 }
  0x98   : > { %v7278_v41 = vsel %vm482_vm0, %v7137_v7, %v395_v39  ;;  %v7284_v42 = vsel %vm482_vm0, %v7140_v8, %v397_v40  ;;  %v4908_v39 = vld [vmem:[%s9364_s2 + $0xc8] sm:$0xff] }
  0x99   : > { %5645 = vmatmul.mubr.msk.f32.gmra.mrb[4].mxu0 %vm536_vm1, %v7274_v38  ;;  %v6286_v40 = vpack.c.bf16 %v4908_v39, %v4907_v36  ;;  %v4989_v39 = vld [vmem:[%s9364_s2 + $0x160] sm:$0xff] }
  0x9a   : > { %5647 = vmatprep.mubr.msk.f32.mxu0 %vm536_vm1, %v7278_v41 }
  0x9b   : > { %v399_v43 = vpop.permute.xlu0 %398  ;;  %v401_v44 = vpop.permute.xlu1 %400 }
  0x9c   : > { %v7290_v45 = vsel %vm482_vm0, %v7147_v9, %v399_v43  ;;  %v7296_v46 = vsel %vm482_vm0, %v7150_v10, %v401_v44  ;;  %v4909_v43 = vld [vmem:[%s9364_s2 + $0xd0] sm:$0xff]  ;;  %v4910_v44 = vld [vmem:[%s9364_s2 + $0xd8] sm:$0xff] }
  0x9d   : > { %5648 = vmatmul.mubr.msk.f32.gmra.mrb[6].mxu0 %vm536_vm1, %v7284_v42 }
  0x9e   : > { %5650 = vmatprep.mubr.msk.f32.mxu0 %vm536_vm1, %v7290_v45 }
  0x9f   : > { %v403_v47 = vpop.permute.xlu0 %402  ;;  %v405_v48 = vpop.permute.xlu1 %404 }
  0xa0   : > { %v7302_v49 = vsel %vm482_vm0, %v7157_v11, %v403_v47  ;;  %v7308_v50 = vsel %vm482_vm0, %v7160_v12, %v405_v48  ;;  %v4911_v47 = vld [vmem:[%s9364_s2 + $0xe0] sm:$0xff]  ;;  %v4912_v48 = vld [vmem:[%s9364_s2 + $0xe8] sm:$0xff] }
  0xa1   : > { %5651 = vmatmul.mubr.msk.f32.gmra.mrb[8].mxu0 %vm536_vm1, %v7296_v46 }
  0xa2   : > { %5653 = vmatprep.mubr.msk.f32.mxu0 %vm536_vm1, %v7302_v49 }
  0xa3   : > { %v407_v51 = vpop.permute.xlu0 %406  ;;  %v409_v52 = vpop.permute.xlu1 %408 }
  0xa4   : > { %v7314_v53 = vsel %vm482_vm0, %v7167_v13, %v407_v51  ;;  %v7320_v54 = vsel %vm482_vm0, %v7170_v14, %v409_v52  ;;  %v6294_v51 = vpack.c.bf16 %v4912_v48, %v4911_v47  ;;  %v4945_v52 = vld [vmem:[%s9364_s2 + $0xf0] sm:$0xff]  ;;  %v4994_v47 = vld [vmem:[%s9364_s2 + $0x188] sm:$0xff] }
  0xa5   : > { %5654 = vmatmul.mubr.msk.f32.gmra.mrb[10].mxu0 %vm536_vm1, %v7308_v50 }
  0xa6   : > { %5656 = vmatprep.mubr.msk.f32.mxu0 %vm536_vm1, %v7314_v53 }
  0xa7   : > { %v411_v55 = vpop.permute.xlu0 %410  ;;  %v413_v56 = vpop.permute.xlu1 %412 }
  0xa8   : > { %v7326_v57 = vsel %vm482_vm0, %v7177_v15, %v411_v55  ;;  %v7332_v58 = vsel %vm482_vm0, %v7180_v16, %v413_v56  ;;  %v4946_v55 = vld [vmem:[%s9364_s2 + $0xf8] sm:$0xff] }
  0xa9   : > { %5657 = vmatmul.mubr.msk.f32.gmra.mrb[12].mxu0 %vm536_vm1, %v7320_v54  ;;  %v6298_v56 = vpack.c.bf16 %v4946_v55, %v4945_v52 }
  0xaa   : > { %5659 = vmatprep.mubr.msk.f32.mxu0 %vm536_vm1, %v7326_v57 }
  0xab   : > { %v415_v59 = vpop.permute.xlu0 %414  ;;  %v417_v60 = vpop.permute.xlu1 %416 }
  0xac   : > { %v7338_v62 = vsel %vm482_vm0, %v7187_v17, %v415_v59  ;;  %v7344_v63 = vsel %vm482_vm0, %v7190_v18, %v417_v60  ;;  %v4947_v59 = vld [vmem:[%s9364_s2 + $0x100] sm:$0xff]  ;;  %v4948_v60 = vld [vmem:[%s9364_s2 + $0x108] sm:$0xff] }
  0xad   : > { %5660 = vmatmul.mubr.msk.f32.gmra.mrb[14].mxu0 %vm536_vm1, %v7332_v58 }
  0xae   : > { %5662 = vmatprep.mubr.msk.f32.mxu0 %vm536_vm1, %v7338_v62 }
  0xaf   : > { %v419_v0 = vpop.permute.xlu0 %418  ;;  %v421_v1 = vpop.permute.xlu1 %420 }
  0xb0   : > { %v7350_v2 = vsel %vm482_vm0, %v7197_v19, %v419_v0  ;;  %v7356_v3 = vsel %vm482_vm0, %v7200_v20, %v421_v1  ;;  %v6302_v0 = vpack.c.bf16 %v4948_v60, %v4947_v59  ;;  %v4949_v1 = vld [vmem:[%s9364_s2 + $0x110] sm:$0xff] }
  0xb1   : > { %5663 = vmatmul.mubr.msk.f32.gmra.mrb[16].mxu0 %vm536_vm1, %v7344_v63 }
  0xb2   : > { %5665 = vmatprep.mubr.msk.f32.mxu0 %vm536_vm1, %v7350_v2 }
  0xb3   : > { %v423_v4 = vpop.permute.xlu0 %422  ;;  %v425_v6 = vpop.permute.xlu1 %424 }
  0xb4   : > { %v7362_v7 = vsel %vm482_vm0, %v7207_v21, %v423_v4  ;;  %v7368_v8 = vsel %vm482_vm0, %v7210_v22, %v425_v6  ;;  %v4950_v4 = vld [vmem:[%s9364_s2 + $0x118] sm:$0xff] }
  0xb5   : > { %5666 = vmatmul.mubr.msk.f32.gmra.mrb[18].mxu0 %vm536_vm1, %v7356_v3  ;;  %v6306_v6 = vpack.c.bf16 %v4950_v4, %v4949_v1 }
  0xb6   : > { %5668 = vmatprep.mubr.msk.f32.mxu0 %vm536_vm1, %v7362_v7 }
  0xb7   : > { %v427_v9 = vpop.permute.xlu0 %426  ;;  %v429_v10 = vpop.permute.xlu1 %428 }
  0xb8   : > { %v7374_v11 = vsel %vm482_vm0, %v7217_v23, %v427_v9  ;;  %v7380_v12 = vsel %vm482_vm0, %v7220_v24, %v429_v10  ;;  %v318_v24 = vld [vmem:[%s7118_s10 + $0xe0] sm:$0xff]  ;;  %v4952_v9 = vld [vmem:[%s9364_s2 + $0x128] sm:$0xff]  ;;  %v4953_v10 = vld [vmem:[%s9364_s2 + $0x130] sm:$0xff] }
  0xb9   : > { %5669 = vmatmul.mubr.msk.f32.gmra.mrb[20].mxu0 %vm536_vm1, %v7368_v8 }
  0xba   : > { %5671 = vmatprep.mubr.msk.f32.mxu0 %vm536_vm1, %v7374_v11 }
  0xbb   : > { %v431_v13 = vpop.permute.xlu0 %430  ;;  %v433_v14 = vpop.permute.xlu1 %432 }
  0xbc   : > { %v7386_v15 = vsel %vm482_vm0, %v7227_v25, %v431_v13  ;;  %v7392_v16 = vsel %vm482_vm0, %v7230_v26, %v433_v14  ;;  %v4954_v13 = vld [vmem:[%s9364_s2 + $0x138] sm:$0xff] }
  0xbd   : > { %5672 = vmatmul.mubr.msk.f32.gmra.mrb[22].mxu0 %vm536_vm1, %v7380_v12  ;;  %v6314_v14 = vpack.c.bf16 %v4954_v13, %v4953_v10 }
  0xbe   : > { %5674 = vmatprep.mubr.msk.f32.mxu0 %vm536_vm1, %v7386_v15 }
  0xbf   : > { %v435_v17 = vpop.permute.xlu0 %434  ;;  %v437_v18 = vpop.permute.xlu1 %436 }
  0xc0   : > { %v7398_v19 = vsel %vm482_vm0, %v7237_v27, %v435_v17  ;;  %v7404_v20 = vsel %vm482_vm0, %v7240_v28, %v437_v18  ;;  %v319_v28 = vld [vmem:[%s7118_s10 + $0xe8] sm:$0xff]  ;;  %v4985_v17 = vld [vmem:[%s9364_s2 + $0x140] sm:$0xff] }
  0xc1   : > { %5675 = vmatmul.mubr.msk.f32.gmra.mrb[24].mxu0 %vm536_vm1, %v7392_v16  ;;  %v4986_v18 = vld [vmem:[%s9364_s2 + $0x148] sm:$0xff] }
  0xc2   : > { %5677 = vmatprep.mubr.msk.f32.mxu0 %vm536_vm1, %v7398_v19 }
  0xc3   : > { %v439_v21 = vpop.permute.xlu0 %438  ;;  %v441_v22 = vpop.permute.xlu1 %440 }
  0xc4   : > { %v7410_v23 = vsel %vm482_vm0, %v7255_v33, %v439_v21  ;;  %v7417_v25 = vsel %vm482_vm0, %v7250_v32, %v441_v22  ;;  %v4905_v32 = vld [vmem:[%s9364_s2 + $0xb0] sm:$0xff]  ;;  %v4906_v33 = vld [vmem:[%s9364_s2 + $0xb8] sm:$0xff]  ;;  %v6318_v21 = vpack.c.bf16 %v4986_v18, %v4985_v17 }
  0xc5   : > { %5678 = vmatmul.mubr.msk.f32.gmra.mrb[26].mxu0 %vm536_vm1, %v7404_v20  ;;  %v6282_v35 = vpack.c.bf16 %v4906_v33, %v4905_v32  ;;  %v4987_v33 = vld [vmem:[%s9364_s2 + $0x150] sm:$0xff] }
  0xc6   : > { %5680 = vmatprep.mubr.msk.f32.mxu0 %vm536_vm1, %v7410_v23 }
  0xc7   : > { %v443_v26 = vpop.permute.xlu0 %442  ;;  %v445_v27 = vpop.permute.xlu1 %444 }
  0xc8   : > { %v7423_v29 = vsel %vm482_vm0, %v318_v24, %v443_v26  ;;  %v7428_v30 = vsel %vm482_vm0, %v319_v28, %v445_v27  ;;  %v320_v24 = vld [vmem:[%s7118_s10 + $0xf0] sm:$0xff]  ;;  %v321_v28 = vld [vmem:[%s7118_s10 + $0xf8] sm:$0xff] }
  0xc9   : > { %5681 = vmatmul.mubr.msk.f32.gmra.mrb[28].mxu0 %vm536_vm1, %v7417_v25 }
  0xca   : > { %5683 = vmatprep.mubr.msk.f32.mxu0 %vm536_vm1, %v7423_v29 }
  0xcb   : > { %v447_v22 = vpop.permute.xlu0 %446  ;;  %v449_v27 = vpop.permute.xlu1 %448 }
  0xcc   : > { %v7615_v26 = vsel %vm482_vm0, %v320_v24, %v447_v22  ;;  %v7621_v32 = vsel %vm482_vm0, %v321_v28, %v449_v27 }
  0xcd   : > { %5684 = vmatmul.mubr.msk.f32.gmra.mrb[30].mxu0 %vm536_vm1, %v7428_v30 }
  0xce   : > { %5706 = vmatprep.mubr.f32.mxu0 %v9368_v5 }
  0xd1   : > { %5707 = vmatmul.mubr.f32.vlgmr.msra.gmra.mrb[0].mxu0 %v9368_v5 }
  0xd2   : > { %6281 = vmatpush3.bf16.msra.mxu0 %v7102_v61  ;;  %5709 = vmatprep.mubr.f32.mxu0 %v9368_v5  ;;  %v6290_v61 = vpack.c.bf16 %v4910_v44, %v4909_v43  ;;  %v4992_v44 = vld [vmem:[%s9364_s2 + $0x178] sm:$0xff] }
  0xd3   : > { %6283 = vmatprep.subr.bf16.mxu0 %v6282_v35 }
  0xd5   : > { %5710 = vmatmul.mubr.f32.gmra.mrb[2].mxu0 %v9368_v5 }
  0xd6   : > { %5712 = vmatprep.mubr.msk.f32.mxu0 %vm536_vm1, %v7247_v31  ;;  %6285 = vmatpush3.bf16.msra.mxu0 %v6282_v35  ;;  %v4988_v35 = vld [vmem:[%s9364_s2 + $0x158] sm:$0xff] }
  0xd7   : > { %6287 = vmatprep.subr.bf16.mxu0 %v6286_v40  ;;  %v6322_v36 = vpack.c.bf16 %v4988_v35, %v4987_v33 }
  0xd9   : > { %5713 = vmatmul.mubr.msk.f32.gmra.mrb[4].mxu0 %vm536_vm1, %v7266_v37 }
  0xda   : > { %5715 = vmatprep.mubr.msk.f32.mxu0 %vm536_vm1, %v7262_v34  ;;  %6289 = vmatpush3.bf16.msra.mxu0 %v6286_v40  ;;  %v4990_v40 = vld [vmem:[%s9364_s2 + $0x168] sm:$0xff] }
  0xdb   : > { %6291 = vmatprep.subr.bf16.mxu0 %v6290_v61  ;;  %v6326_v43 = vpack.c.bf16 %v4990_v40, %v4989_v39 }
  0xdd   : > { %5716 = vmatmul.mubr.msk.f32.gmra.mrb[6].mxu0 %vm536_vm1, %v7274_v38 }
  0xde   : > { %5718 = vmatprep.mubr.msk.f32.mxu0 %vm536_vm1, %v7278_v41  ;;  %6293 = vmatpush3.bf16.msra.mxu0 %v6290_v61  ;;  %v4993_v61 = vld [vmem:[%s9364_s2 + $0x180] sm:$0xff] }
  0xdf   : > { %6295 = vmatprep.subr.bf16.mxu0 %v6294_v51  ;;  %v6334_v48 = vpack.c.bf16 %v4994_v47, %v4993_v61 }
  0xe1   : > { %5719 = vmatmul.mubr.msk.f32.gmra.mrb[8].mxu0 %vm536_vm1, %v7284_v42 }
  0xe2   : > { %5721 = vmatprep.mubr.msk.f32.mxu0 %vm536_vm1, %v7290_v45  ;;  %6297 = vmatpush3.bf16.msra.mxu0 %v6294_v51 }
  0xe3   : > { %6299 = vmatprep.subr.bf16.mxu0 %v6298_v56 }
  0xe5   : > { %5722 = vmatmul.mubr.msk.f32.gmra.mrb[10].mxu0 %vm536_vm1, %v7296_v46 }
  0xe6   : > { %5724 = vmatprep.mubr.msk.f32.mxu0 %vm536_vm1, %v7302_v49 }
  0xe9   : > { %5725 = vmatmul.mubr.msk.f32.gmra.mrb[12].mxu0 %vm536_vm1, %v7308_v50 }
  0xea   : > { %5727 = vmatprep.mubr.msk.f32.mxu0 %vm536_vm1, %v7314_v53 }
  0xed   : > { %5728 = vmatmul.mubr.msk.f32.gmra.mrb[14].mxu0 %vm536_vm1, %v7320_v54 }
  0xee   : > { %5730 = vmatprep.mubr.msk.f32.mxu0 %vm536_vm1, %v7326_v57 }
  0xf1   : > { %5731 = vmatmul.mubr.msk.f32.gmra.mrb[16].mxu0 %vm536_vm1, %v7332_v58 }
  0xf2   : > { %5733 = vmatprep.mubr.msk.f32.mxu0 %vm536_vm1, %v7338_v62 }
  0xf5   : > { %5734 = vmatmul.mubr.msk.f32.gmra.mrb[18].mxu0 %vm536_vm1, %v7344_v63 }
  0xf6   : > { %5736 = vmatprep.mubr.msk.f32.mxu0 %vm536_vm1, %v7350_v2 }
  0xf9   : > { %5737 = vmatmul.mubr.msk.f32.gmra.mrb[20].mxu0 %vm536_vm1, %v7356_v3 }
  0xfa   : > { %5739 = vmatprep.mubr.msk.f32.mxu0 %vm536_vm1, %v7362_v7 }
  0xfd   : > { %5740 = vmatmul.mubr.msk.f32.gmra.mrb[22].mxu0 %vm536_vm1, %v7368_v8 }
  0xfe   : > { %5742 = vmatprep.mubr.msk.f32.mxu0 %vm536_vm1, %v7374_v11 }
 0x101   : > { %5743 = vmatmul.mubr.msk.f32.gmra.mrb[24].mxu0 %vm536_vm1, %v7380_v12 }
 0x102   : > { %5745 = vmatprep.mubr.msk.f32.mxu0 %vm536_vm1, %v7386_v15 }
 0x105   : > { %5746 = vmatmul.mubr.msk.f32.gmra.mrb[26].mxu0 %vm536_vm1, %v7392_v16 }
 0x106   : > { %5748 = vmatprep.mubr.msk.f32.mxu0 %vm536_vm1, %v7398_v19 }
 0x109   : > { %5749 = vmatmul.mubr.msk.f32.gmra.mrb[28].mxu0 %vm536_vm1, %v7404_v20 }
 0x10a   : > { %5751 = vmatprep.mubr.msk.f32.mxu0 %vm536_vm1, %v7410_v23 }
 0x10d   : > { %5752 = vmatmul.mubr.msk.f32.gmra.mrb[30].mxu0 %vm536_vm1, %v7417_v25 }
 0x10e   : > { %5774 = vmatprep.mubr.msk.f32.mxu0 %vm536_vm1, %v7247_v31  ;;  %v4951_v31 = vld [vmem:[%s9364_s2 + $0x120] sm:$0xff] }
 0x111   : > { %5775 = vmatmul.mubr.msk.f32.vlgmr.msra.gmra.mrb[0].mxu0 %vm536_vm1, %v7266_v37  ;;  %v6310_v37 = vpack.c.bf16 %v4952_v9, %v4951_v31 }
 0x112   : > { %6301 = vmatpush3.bf16.msra.mxu0 %v6298_v56  ;;  %5777 = vmatprep.mubr.msk.f32.mxu0 %vm536_vm1, %v7262_v34 }
 0x113   : > { %6303 = vmatprep.subr.bf16.mxu0 %v6302_v0 }
 0x115   : > { %5778 = vmatmul.mubr.msk.f32.gmra.mrb[2].mxu0 %vm536_vm1, %v7274_v38 }
 0x116   : > { %5780 = vmatprep.mubr.msk.f32.mxu0 %vm536_vm1, %v7278_v41  ;;  %6305 = vmatpush3.bf16.msra.mxu0 %v6302_v0 }
 0x117   : > { %6307 = vmatprep.subr.bf16.mxu0 %v6306_v6 }
 0x119   : > { %5781 = vmatmul.mubr.msk.f32.gmra.mrb[4].mxu0 %vm536_vm1, %v7284_v42 }
 0x11a   : > { %5783 = vmatprep.mubr.msk.f32.mxu0 %vm536_vm1, %v7290_v45  ;;  %6309 = vmatpush3.bf16.msra.mxu0 %v6306_v6 }
 0x11b   : > { %6311 = vmatprep.subr.bf16.mxu0 %v6310_v37 }
 0x11d   : > { %5784 = vmatmul.mubr.msk.f32.gmra.mrb[6].mxu0 %vm536_vm1, %v7296_v46 }
 0x11e   : > { %5786 = vmatprep.mubr.msk.f32.mxu0 %vm536_vm1, %v7302_v49  ;;  %6313 = vmatpush3.bf16.msra.mxu0 %v6310_v37 }
 0x11f   : > { %6315 = vmatprep.subr.bf16.mxu0 %v6314_v14 }
 0x121   : > { %5787 = vmatmul.mubr.msk.f32.gmra.mrb[8].mxu0 %vm536_vm1, %v7308_v50 }
 0x122   : > { %5789 = vmatprep.mubr.msk.f32.mxu0 %vm536_vm1, %v7314_v53  ;;  %6317 = vmatpush3.bf16.msra.mxu0 %v6314_v14 }
 0x123   : > { %6319 = vmatprep.subr.bf16.mxu0 %v6318_v21 }
 0x125   : > { %5790 = vmatmul.mubr.msk.f32.gmra.mrb[10].mxu0 %vm536_vm1, %v7320_v54 }
 0x126   : > { %5792 = vmatprep.mubr.msk.f32.mxu0 %vm536_vm1, %v7326_v57 }
 0x129   : > { %5793 = vmatmul.mubr.msk.f32.gmra.mrb[12].mxu0 %vm536_vm1, %v7332_v58 }
 0x12a   : > { %5795 = vmatprep.mubr.msk.f32.mxu0 %vm536_vm1, %v7338_v62 }
 0x12d   : > { %5796 = vmatmul.mubr.msk.f32.gmra.mrb[14].mxu0 %vm536_vm1, %v7344_v63 }
 0x12e   : > { %5798 = vmatprep.mubr.msk.f32.mxu0 %vm536_vm1, %v7350_v2 }
 0x131   : > { %5799 = vmatmul.mubr.msk.f32.gmra.mrb[16].mxu0 %vm536_vm1, %v7356_v3 }
 0x132   : > { %5801 = vmatprep.mubr.msk.f32.mxu0 %vm536_vm1, %v7362_v7 }
 0x135   : > { %5802 = vmatmul.mubr.msk.f32.gmra.mrb[18].mxu0 %vm536_vm1, %v7368_v8 }
 0x136   : > { %5804 = vmatprep.mubr.msk.f32.mxu0 %vm536_vm1, %v7374_v11 }
 0x139   : > { %5805 = vmatmul.mubr.msk.f32.gmra.mrb[20].mxu0 %vm536_vm1, %v7380_v12 }
 0x13a   : > { %5807 = vmatprep.mubr.msk.f32.mxu0 %vm536_vm1, %v7386_v15 }
 0x13d   : > { %5808 = vmatmul.mubr.msk.f32.gmra.mrb[22].mxu0 %vm536_vm1, %v7392_v16 }
 0x13e   : > { %5810 = vmatprep.mubr.msk.f32.mxu0 %vm536_vm1, %v7398_v19 }
 0x141   : > { %5811 = vmatmul.mubr.msk.f32.gmra.mrb[24].mxu0 %vm536_vm1, %v7404_v20 }
 0x142   : > { %5813 = vmatprep.mubr.msk.f32.mxu0 %vm536_vm1, %v7410_v23 }
 0x145   : > { %5814 = vmatmul.mubr.msk.f32.gmra.mrb[26].mxu0 %vm536_vm1, %v7417_v25 }
 0x146   : > { %5816 = vmatprep.mubr.msk.f32.mxu0 %vm536_vm1, %v7423_v29 }
 0x149   : > { %5817 = vmatmul.mubr.msk.f32.gmra.mrb[28].mxu0 %vm536_vm1, %v7428_v30 }
 0x14a   : > { %5819 = vmatprep.mubr.msk.f32.mxu0 %vm536_vm1, %v7615_v26 }
 0x14d   : > { %5820 = vmatmul.mubr.msk.f32.gmra.mrb[30].mxu0 %vm536_vm1, %v7621_v32 }
 0x14e   : > { %5842 = vmatprep.mubr.msk.f32.mxu0 %vm536_vm1, %v7262_v34  ;;  %v4991_v34 = vld [vmem:[%s9364_s2 + $0x170] sm:$0xff] }
 0x151   : > { %5843 = vmatmul.mubr.msk.f32.vlgmr.msra.gmra.mrb[0].mxu0 %vm536_vm1, %v7274_v38  ;;  %v6330_v38 = vpack.c.bf16 %v4992_v44, %v4991_v34 }
 0x152   : > { %6321 = vmatpush3.bf16.msra.mxu0 %v6318_v21  ;;  %5845 = vmatprep.mubr.msk.f32.mxu0 %vm536_vm1, %v7278_v41 }
 0x153   : > { %6323 = vmatprep.subr.bf16.mxu0 %v6322_v36 }
 0x155   : > { %5846 = vmatmul.mubr.msk.f32.gmra.mrb[2].mxu0 %vm536_vm1, %v7284_v42 }
 0x156   : > { %5848 = vmatprep.mubr.msk.f32.mxu0 %vm536_vm1, %v7290_v45  ;;  %6325 = vmatpush3.bf16.msra.mxu0 %v6322_v36 }
 0x157   : > { %6327 = vmatprep.subr.bf16.mxu0 %v6326_v43 }
 0x159   : > { %5849 = vmatmul.mubr.msk.f32.gmra.mrb[4].mxu0 %vm536_vm1, %v7296_v46 }
 0x15a   : > { %5851 = vmatprep.mubr.msk.f32.mxu0 %vm536_vm1, %v7302_v49  ;;  %6329 = vmatpush3.bf16.msra.mxu0 %v6326_v43 }
 0x15b   : > { %6331 = vmatprep.subr.bf16.mxu0 %v6330_v38 }
 0x15d   : > { %5852 = vmatmul.mubr.msk.f32.gmra.mrb[6].mxu0 %vm536_vm1, %v7308_v50 }
 0x15e   : > { %5854 = vmatprep.mubr.msk.f32.mxu0 %vm536_vm1, %v7314_v53  ;;  %6333 = vmatpush3.bf16.msra.mxu0 %v6330_v38 }
 0x15f   : > { %6335 = vmatprep.subr.bf16.mxu0 %v6334_v48 }
 0x161   : > { %5855 = vmatmul.mubr.msk.f32.gmra.mrb[8].mxu0 %vm536_vm1, %v7320_v54 }
 0x162   : > { %5857 = vmatprep.mubr.msk.f32.mxu0 %vm536_vm1, %v7326_v57  ;;  %6337 = vmatpush3.bf16.msra.mxu0 %v6334_v48 }
 0x165   : > { %5858 = vmatmul.mubr.msk.f32.gmra.mrb[10].mxu0 %vm536_vm1, %v7332_v58 }
 0x166   : > { %5860 = vmatprep.mubr.msk.f32.mxu0 %vm536_vm1, %v7338_v62 }
 0x169   : > { %5861 = vmatmul.mubr.msk.f32.gmra.mrb[12].mxu0 %vm536_vm1, %v7344_v63 }
 0x16a   : > { %5863 = vmatprep.mubr.msk.f32.mxu0 %vm536_vm1, %v7350_v2 }
 0x16d   : > { %5864 = vmatmul.mubr.msk.f32.gmra.mrb[14].mxu0 %vm536_vm1, %v7356_v3 }
 0x16e   : > { %5866 = vmatprep.mubr.msk.f32.mxu0 %vm536_vm1, %v7362_v7 }
 0x171   : > { %5867 = vmatmul.mubr.msk.f32.gmra.mrb[16].mxu0 %vm536_vm1, %v7368_v8 }
 0x172   : > { %5869 = vmatprep.mubr.msk.f32.mxu0 %vm536_vm1, %v7374_v11 }
 0x175   : > { %5870 = vmatmul.mubr.msk.f32.gmra.mrb[18].mxu0 %vm536_vm1, %v7380_v12 }
 0x176   : > { %5872 = vmatprep.mubr.msk.f32.mxu0 %vm536_vm1, %v7386_v15 }
 0x179   : > { %5873 = vmatmul.mubr.msk.f32.gmra.mrb[20].mxu0 %vm536_vm1, %v7392_v16 }
 0x17a   : > { %5875 = vmatprep.mubr.msk.f32.mxu0 %vm536_vm1, %v7398_v19 }
 0x17d   : > { %5876 = vmatmul.mubr.msk.f32.gmra.mrb[22].mxu0 %vm536_vm1, %v7404_v20 }
 0x17e   : > { %5878 = vmatprep.mubr.msk.f32.mxu0 %vm536_vm1, %v7410_v23 }
 0x181   : > { %5879 = vmatmul.mubr.msk.f32.gmra.mrb[24].mxu0 %vm536_vm1, %v7417_v25 }
 0x182   : > { %5881 = vmatprep.mubr.msk.f32.mxu0 %vm536_vm1, %v7423_v29 }
 0x185   : > { %5882 = vmatmul.mubr.msk.f32.gmra.mrb[26].mxu0 %vm536_vm1, %v7428_v30 }
 0x186   : > { %5884 = vmatprep.mubr.msk.f32.mxu0 %vm536_vm1, %v7615_v26 }
 0x189   : > { %5885 = vmatmul.mubr.msk.f32.gmra.mrb[28].mxu0 %vm536_vm1, %v7621_v32 }
 0x18a   : > { %5887 = vmatprep.mubr.f32.mxu0 %v9368_v5 }
 0x18d   : > { %5888 = vmatmul.mubr.f32.gmra.mrb[30].mxu0 %v9368_v5 }
 0x18e   : > { %5910 = vmatprep.mubr.msk.f32.mxu0 %vm536_vm1, %v7278_v41  ;;  %v2377_v41 = vld [vmem:[%s9366_s4] sm:$0xff] }
 0x191   : > { %5911 = vmatmul.mubr.msk.f32.vlgmr.msra.gmra.mrb[0].mxu0 %vm536_vm1, %v7284_v42  ;;  %v2378_v42 = vld [vmem:[%s9366_s4 + $0x8] sm:$0xff] }
 0x192   : > { %5913 = vmatprep.mubr.msk.f32.mxu0 %vm536_vm1, %v7290_v45  ;;  %v2379_v45 = vld [vmem:[%s9366_s4 + $0x10] sm:$0xff] }
 0x195   : > { %5914 = vmatmul.mubr.msk.f32.gmra.mrb[2].mxu0 %vm536_vm1, %v7296_v46  ;;  %v6338_v46 = vpack.c.bf16 %v2378_v42, %v2377_v41 }
 0x196   : > { %5916 = vmatprep.mubr.msk.f32.mxu0 %vm536_vm1, %v7302_v49  ;;  %v2380_v49 = vld [vmem:[%s9366_s4 + $0x18] sm:$0xff] }
 0x197   : > { %6339 = vmatprep.subr.bf16.mxu1 %v6338_v46 }
 0x198   : > { %6341 = vmatpush3.bf16.msra.mxu1 %v6338_v46 }
 0x199   : > { %5917 = vmatmul.mubr.msk.f32.gmra.mrb[4].mxu0 %vm536_vm1, %v7308_v50  ;;  %v6342_v50 = vpack.c.bf16 %v2380_v49, %v2379_v45 }
 0x19a   : > { %5919 = vmatprep.mubr.msk.f32.mxu0 %vm536_vm1, %v7314_v53  ;;  %v7791_v53 = vld [vmem:[%s9365_s3] ss:$0 sm:$0xff] }
 0x19b   : > { %6343 = vmatprep.subr.bf16.mxu1 %v6342_v50 }
 0x19c   : > { %6345 = vmatpush3.bf16.msra.mxu1 %v6342_v50 }
 0x19d   : > { %5920 = vmatmul.mubr.msk.f32.gmra.mrb[6].mxu0 %vm536_vm1, %v7320_v54 }
 0x19e   : > { %5922 = vmatprep.mubr.msk.f32.mxu0 %vm536_vm1, %v7326_v57  ;;  %v7793_v57 = vpop.permute.xlu1 %2155 }
 0x19f   : > { %5967 = vmatmul.mubr.f32.vlgmr.msra.gmra.mrb[0].mxu1 %v9368_v5 }
 0x1a0   : > { %5969 = vmatprep.mubr.f32.mxu1 %v9368_v5 }
 0x1a1   : > { %5923 = vmatmul.mubr.msk.f32.gmra.mrb[8].mxu0 %vm536_vm1, %v7332_v58 }
 0x1a2   : > { %5925 = vmatprep.mubr.msk.f32.mxu0 %vm536_vm1, %v7338_v62 }
 0x1a3   : > { %5970 = vmatmul.mubr.f32.gmra.mrb[2].mxu1 %v9368_v5 }
 0x1a5   : > { %5926 = vmatmul.mubr.msk.f32.gmra.mrb[10].mxu0 %vm536_vm1, %v7344_v63 }
 0x1a6   : > { %5928 = vmatprep.mubr.msk.f32.mxu0 %vm536_vm1, %v7350_v2 }
 0x1a9   : > { %5929 = vmatmul.mubr.msk.f32.gmra.mrb[12].mxu0 %vm536_vm1, %v7356_v3 }
 0x1aa   : > { %5931 = vmatprep.mubr.msk.f32.mxu0 %vm536_vm1, %v7362_v7 }
 0x1ad   : > { %5932 = vmatmul.mubr.msk.f32.gmra.mrb[14].mxu0 %vm536_vm1, %v7368_v8  ;;  %v7803_v8 = vpop.permute.xlu0 %2153 }
 0x1ae   : > { %5934 = vmatprep.mubr.msk.f32.mxu0 %vm536_vm1, %v7374_v11 }
 0x1b1   : > { %5935 = vmatmul.mubr.msk.f32.gmra.mrb[16].mxu0 %vm536_vm1, %v7380_v12  ;;  %v7821_v51 = vpop.permute.xlu0 %2157 }
 0x1b2   : > { %5937 = vmatprep.mubr.msk.f32.mxu0 %vm536_vm1, %v7386_v15 }
 0x1b5   : > { %5938 = vmatmul.mubr.msk.f32.gmra.mrb[18].mxu0 %vm536_vm1, %v7392_v16  ;;  %v7811_v16 = vpop.permute.xlu1 %2159  ;;  %v7835_v13 = vpop.permute.xlu0 %2161 }
 0x1b6   : > { %5940 = vmatprep.mubr.msk.f32.mxu0 %vm536_vm1, %v7398_v19 }
 0x1b9   : > { %5941 = vmatmul.mubr.msk.f32.gmra.mrb[20].mxu0 %vm536_vm1, %v7404_v20  ;;  %v7825_v59 = vpop.permute.xlu1 %2163  ;;  %v7853_v43 = vpop.permute.xlu0 %2165 }
 0x1ba   : > { %5943 = vmatprep.mubr.msk.f32.mxu0 %vm536_vm1, %v7410_v23 }
 0x1bd   : > { %5944 = vmatmul.mubr.msk.f32.gmra.mrb[22].mxu0 %vm536_vm1, %v7417_v25  ;;  %v7843_v22 = vpop.permute.xlu1 %2167 }
 0x1be   : > { %5946 = vmatprep.mubr.msk.f32.mxu0 %vm536_vm1, %v7423_v29 }
 0x1c1   : > { %5947 = vmatmul.mubr.msk.f32.gmra.mrb[24].mxu0 %vm536_vm1, %v7428_v30  ;;  %v7857_v41 = vpop.permute.xlu1 %2171 }
 0x1c2   : > { %5949 = vmatprep.mubr.msk.f32.mxu0 %vm536_vm1, %v7615_v26 }
 0x1c5   : > { %5950 = vmatmul.mubr.msk.f32.gmra.mrb[26].mxu0 %vm536_vm1, %v7621_v32 }
 0x1c6   : > { %5952 = vmatprep.mubr.f32.mxu0 %v9368_v5 }
 0x1c9   : > { %5953 = vmatmul.mubr.f32.gmra.mrb[28].mxu0 %v9368_v5 }
 0x1ca   : > { %5955 = vmatprep.mubr.f32.mxu0 %v9368_v5 }
 0x1cd   : > { %5956 = vmatmul.mubr.f32.gmra.mrb[30].mxu0 %v9368_v5 }
 0x264   : > { %v5912_v54 = vpop.f32.mrb[0].mxu0 }
 0x265   : > { %v7796_v58 = vadd.f32 %v5912_v54, %v7791_v53  ;;  %v1699_v62 = vpop.f32.mrb[1].mxu0 }
 0x266   : > { %v7799_v63 = vadd.f32 %v7791_v53, %v1699_v62 }
 0x267   : > { %v5025_v2 = vmul.f32 -1.442695, %v7796_v58 }
 0x268   : > { %v5024_v3 = vmul.f32 -1.442695, %v7799_v63  ;;  %v5915_v7 = vpop.f32.mrb[2].mxu0 }
 0x269   : > { %6567 = vpow2.f32 %v5025_v2  ;;  %v7806_v11 = vadd.f32 %v5915_v7, %v7791_v53  ;;  %v1709_v12 = vpop.f32.mrb[3].mxu0 }
 0x26a   : > { %6569 = vpow2.f32 %v5024_v3  ;;  %v7809_v15 = vadd.f32 %v7791_v53, %v1709_v12  ;;  %v7869_v12 = vpop.permute.xlu0 %2169 }
 0x26b   : > { %v5027_v19 = vmul.f32 -1.442695, %v7806_v11 }
 0x26c   : > { %v5026_v20 = vmul.f32 -1.442695, %v7809_v15  ;;  %v5918_v23 = vpop.f32.mrb[4].mxu0 }
 0x26d   : > { %6571 = vpow2.f32 %v5027_v19  ;;  %v7816_v25 = vadd.f32 %v5918_v23, %v7791_v53  ;;  %v1719_v29 = vpop.f32.mrb[5].mxu0 }
 0x26e   : > { %6573 = vpow2.f32 %v5026_v20  ;;  %v7819_v30 = vadd.f32 %v7791_v53, %v1719_v29 }
 0x26f   : > { %v5029_v52 = vmul.f32 -1.442695, %v7816_v25 }
 0x270   : > { %v5028_v55 = vmul.f32 -1.442695, %v7819_v30  ;;  %v5921_v56 = vpop.f32.mrb[6].mxu0 }
 0x271   : > { %6575 = vpow2.f32 %v5029_v52  ;;  %v7828_v60 = vadd.f32 %v5921_v56, %v7791_v53  ;;  %v1729_v0 = vpop.f32.mrb[7].mxu0 }
 0x272   : > { %6577 = vpow2.f32 %v5028_v55  ;;  %v7831_v1 = vadd.f32 %v7791_v53, %v1729_v0  ;;  %v7883_v0 = vpop.permute.xlu1 %2175 }
 0x273   : > { %v6568_v4 = vpop.eup %6567  ;;  %v5031_v6 = vmul.f32 -1.442695, %v7828_v60 }
 0x274   : > { %v6570_v31 = vpop.eup %6569  ;;  %v2026_v9 = vadd.f32 1.0, %v6568_v4  ;;  %v5030_v37 = vmul.f32 -1.442695, %v7831_v1  ;;  %v5924_v10 = vpop.f32.mrb[8].mxu0 }
 0x275   : > { %v2025_v14 = vadd.f32 1.0, %v6570_v31  ;;  %6579 = vpow2.f32 %v5031_v6  ;;  %v7838_v17 = vadd.f32 %v5924_v10, %v7791_v53  ;;  %v1739_v18 = vpop.f32.mrb[9].mxu0 }
 0x276   : > { %6581 = vrcp.f32 %v2026_v9  ;;  %v7841_v21 = vadd.f32 %v7791_v53, %v1739_v18 }
 0x277   : > { %v6572_v24 = vpop.eup %6571  ;;  %6583 = vrcp.f32 %v2025_v14  ;;  %v5033_v26 = vmul.f32 -1.442695, %v7838_v17 }
 0x278   : > { %v6574_v27 = vpop.eup %6573  ;;  %v2028_v28 = vadd.f32 1.0, %v6572_v24  ;;  %6585 = vpow2.f32 %v5030_v37  ;;  %v5032_v32 = vmul.f32 -1.442695, %v7841_v21  ;;  %v5927_v33 = vpop.f32.mrb[10].mxu0 }
 0x279   : > { %v2027_v35 = vadd.f32 1.0, %v6574_v27  ;;  %6587 = vpow2.f32 %v5033_v26  ;;  %v7848_v36 = vadd.f32 %v5927_v33, %v7791_v53  ;;  %v1749_v39 = vpop.f32.mrb[11].mxu0 }
 0x27a   : > { %6589 = vrcp.f32 %v2028_v28  ;;  %v7851_v40 = vadd.f32 %v7791_v53, %v1749_v39 }
 0x27b   : > { %v6576_v34 = vpop.eup %6575  ;;  %6591 = vrcp.f32 %v2027_v35  ;;  %v5035_v44 = vmul.f32 -1.442695, %v7848_v36 }
 0x27c   : > { %v6578_v38 = vpop.eup %6577  ;;  %v2030_v61 = vadd.f32 1.0, %v6576_v34  ;;  %6593 = vpow2.f32 %v5032_v32  ;;  %v5034_v47 = vmul.f32 -1.442695, %v7851_v40  ;;  %v5930_v48 = vpop.f32.mrb[12].mxu0 }
 0x27d   : > { %v2029_v42 = vadd.f32 1.0, %v6578_v38  ;;  %6595 = vpow2.f32 %v5035_v44  ;;  %v7860_v45 = vadd.f32 %v5930_v48, %v7791_v53  ;;  %v1759_v46 = vpop.f32.mrb[13].mxu0  ;;  %v7903_v32 = vpop.permute.xlu0 %2173 }
 0x27e   : > { %6597 = vrcp.f32 %v2030_v61  ;;  %v7863_v49 = vadd.f32 %v7791_v53, %v1759_v46  ;;  %v7911_v38 = vpop.permute.xlu1 %2179 }
 0x27f   : > { %9456 = vst [vmem:[#allocation5_spill] sm:$0xff] %v7860_v45  ;;  %v6580_v50 = vpop.eup %6579  ;;  %6599 = vrcp.f32 %v2029_v42  ;;  %v5037_v54 = vmul.f32 -1.442695, %v7860_v45 }
 0x280   : > { %9457 = vst [vmem:[#allocation6_spill] sm:$0xff] %v7863_v49  ;;  %v7866_v62 = vpop.eup %6581  ;;  %v2032_v2 = vadd.f32 1.0, %v6580_v50  ;;  %6601 = vpow2.f32 %v5034_v47  ;;  %v5036_v3 = vmul.f32 -1.442695, %v7863_v49  ;;  %v5933_v7 = vpop.f32.mrb[14].mxu0 }
 0x281   : > { %9458 = vst [vmem:[#allocation7_spill] sm:$0xff] %v7866_v62  ;;  %v7871_v19 = vpop.eup %6583  ;;  %6603 = vpow2.f32 %v5037_v54  ;;  %v2250_v20 = vmul.f32 %v7866_v62, %v7793_v57  ;;  %v7876_v23 = vadd.f32 %v5933_v7, %v7791_v53  ;;  %v1769_v29 = vpop.f32.mrb[15].mxu0 }
 0x282   : > { %9459 = vst [vmem:[#allocation8_spill] sm:$0xff] %v7871_v19  ;;  %v6586_v52 = vpop.eup %6585  ;;  %6605 = vrcp.f32 %v2032_v2  ;;  %v2249_v55 = vmul.f32 %v7871_v19, %v7803_v8  ;;  %v7881_v56 = vadd.f32 %v7791_v53, %v1769_v29  ;;  %v8215_v19 = vpop.f32.mrb[0].mxu1 }
 0x283   : > { %9460 = vst [vmem:[#allocation9_spill] sm:$0xff] %v7876_v23  ;;  %v6588_v4 = vpop.eup %6587  ;;  %v2031_v6 = vadd.f32 1.0, %v6586_v52  ;;  %6607 = vpow2.f32 %v5036_v3  ;;  %v5039_v31 = vmul.f32 -1.442695, %v7876_v23  ;;  %2315 = vrot.lane.b32.xlu1 %v2250_v20, %s6877_s27  ;;  %v7930_v52 = vpop.permute.xlu0 %2177 }
 0x284   : > { %9461 = vst [vmem:[#allocation10_spill] sm:$0xff] %v7881_v56  ;;  %v7887_v57 = vpop.eup %6589  ;;  %v2034_v9 = vadd.f32 1.0, %v6588_v4  ;;  %v5038_v37 = vmul.f32 -1.442695, %v7881_v56  ;;  %2313 = vrot.lane.b32.xlu0 %v2249_v55, %s6877_s27  ;;  %v5936_v8 = vpop.f32.mrb[16].mxu0 }
 0x285   : > { %9462 = vst [vmem:[#allocation11_spill] sm:$0xff] %v7887_v57  ;;  %v7891_v10 = vpop.eup %6591  ;;  %6609 = vrcp.f32 %v2031_v6  ;;  %v2252_v14 = vmul.f32 %v7887_v57, %v7811_v16  ;;  %v7896_v18 = vadd.f32 %v5936_v8, %v7791_v53  ;;  %v1779_v24 = vpop.f32.mrb[17].mxu0 }
 0x286   : > { %9463 = vst [vmem:[#allocation12_spill] sm:$0xff] %v7891_v10  ;;  %v6594_v26 = vpop.eup %6593  ;;  %6611 = vrcp.f32 %v2034_v9  ;;  %v2251_v27 = vmul.f32 %v7891_v10, %v7821_v51  ;;  %v7901_v28 = vadd.f32 %v7791_v53, %v1779_v24  ;;  %v7941_v8 = vpop.permute.xlu1 %2183 }
 0x287   : > { %9464 = vst [vmem:[#allocation13_spill] sm:$0xff] %v7896_v18  ;;  %v6596_v33 = vpop.eup %6595  ;;  %v2033_v35 = vadd.f32 1.0, %v6594_v26  ;;  %6613 = vpow2.f32 %v5039_v31  ;;  %v5041_v39 = vmul.f32 -1.442695, %v7896_v18  ;;  %2319 = vrot.lane.b32.xlu1 %v2252_v14, %s6877_s27 }
 0x288   : > { %9465 = vst [vmem:[#allocation14_spill] sm:$0xff] %v7901_v28  ;;  %v7907_v16 = vpop.eup %6597  ;;  %v2036_v34 = vadd.f32 1.0, %v6596_v33  ;;  %6615 = vpow2.f32 %v5038_v37  ;;  %v5040_v44 = vmul.f32 -1.442695, %v7901_v28  ;;  %2317 = vrot.lane.b32.xlu0 %v2251_v27, %s6877_s27  ;;  %v5939_v51 = vpop.f32.mrb[18].mxu0 }
 0x289   : > { %9466 = vst [vmem:[#allocation15_spill] sm:$0xff] %v7907_v16  ;;  %v7913_v61 = vpop.eup %6599  ;;  %6617 = vrcp.f32 %v2033_v35  ;;  %v2254_v47 = vmul.f32 %v7907_v16, %v7825_v59  ;;  %v7918_v48 = vadd.f32 %v5939_v51, %v7791_v53  ;;  %v1789_v42 = vpop.f32.mrb[19].mxu0 }
 0x28a   : > { %9467 = vst [vmem:[#allocation16_spill] sm:$0xff] %v7913_v61  ;;  %v6602_v46 = vpop.eup %6601  ;;  %6619 = vrcp.f32 %v2036_v34  ;;  %v2253_v50 = vmul.f32 %v7913_v61, %v7835_v13  ;;  %v7923_v54 = vadd.f32 %v7791_v53, %v1789_v42 }
 0x28b   : > { %9468 = vst [vmem:[#allocation17_spill] sm:$0xff] %v7918_v48  ;;  %v6604_v2 = vpop.eup %6603  ;;  %v2035_v3 = vadd.f32 1.0, %v6602_v46  ;;  %6621 = vpow2.f32 %v5041_v39  ;;  %v5043_v7 = vmul.f32 -1.442695, %v7918_v48  ;;  %2323 = vrot.lane.b32.xlu1 %v2254_v47, %s6877_s27  ;;  %v5188_v48 = vld [vmem:[%s9366_s4 + $0x80] sm:$0xff] }
 0x28c   : > { %9469 = vst [vmem:[#allocation18_spill] sm:$0xff] %v7923_v54  ;;  %v7927_v59 = vpop.eup %6605  ;;  %v2038_v20 = vadd.f32 1.0, %v6604_v2  ;;  %6623 = vpow2.f32 %v5040_v44  ;;  %2321 = vrot.lane.b32.xlu0 %v2253_v50, %s6877_s27  ;;  %v5942_v29 = vpop.f32.mrb[20].mxu0  ;;  %v5042_v55 = vmul.f32 -1.442695, %v7923_v54 }
 0x28d   : > { %9470 = vst [vmem:[#allocation19_spill] sm:$0xff] %v7927_v59  ;;  %v6608_v13 = vpop.eup %6607  ;;  %6625 = vrcp.f32 %v2035_v3  ;;  %v2256_v4 = vmul.f32 %v7927_v59, %v7843_v22  ;;  %v7936_v6 = vadd.f32 %v5942_v29, %v7791_v53  ;;  %v1799_v31 = vpop.f32.mrb[21].mxu0 }
 0x28e   : > { %6627 = vrcp.f32 %v2038_v20  ;;  %v2037_v9 = vadd.f32 1.0, %v6608_v13  ;;  %v7939_v37 = vadd.f32 %v7791_v53, %v1799_v31  ;;  %v7972_v29 = vpop.permute.xlu1 %2187 }
 0x28f   : > { %9471 = vst [vmem:[#allocation20_spill] sm:$0xff] %v7936_v6  ;;  %v7943_v14 = vpop.eup %6609  ;;  %6629 = vpow2.f32 %v5043_v7  ;;  %v5045_v24 = vmul.f32 -1.442695, %v7936_v6  ;;  %2327 = vrot.lane.b32.xlu1 %v2256_v4, %s6877_s27 }
 0x290   : > { %9472 = vst [vmem:[#allocation21_spill] sm:$0xff] %v7939_v37  ;;  %9473 = vst [vmem:[#allocation22_spill] sm:$0xff] %v7943_v14  ;;  %v7947_v26 = vpop.eup %6611  ;;  %6631 = vrcp.f32 %v2037_v9  ;;  %v2255_v22 = vmul.f32 %v7943_v14, %v7853_v43  ;;  %v5044_v27 = vmul.f32 -1.442695, %v7939_v37  ;;  %v5945_v33 = vpop.f32.mrb[22].mxu0 }
 0x291   : > { %9474 = vst [vmem:[#allocation23_spill] sm:$0xff] %v7947_v26  ;;  %v6614_v35 = vpop.eup %6613  ;;  %6633 = vpow2.f32 %v5042_v55  ;;  %v2258_v39 = vmul.f32 %v7947_v26, %v7857_v41  ;;  %v7955_v34 = vadd.f32 %v5945_v33, %v7791_v53  ;;  %v1809_v44 = vpop.f32.mrb[23].mxu0 }
 0x292   : > { %v6616_v51 = vpop.eup %6615  ;;  %v2040_v47 = vadd.f32 1.0, %v6614_v35  ;;  %6635 = vpow2.f32 %v5045_v24  ;;  %2325 = vrot.lane.b32.xlu0 %v2255_v22, %s6877_s27  ;;  %v7959_v42 = vadd.f32 %v7791_v53, %v1809_v44  ;;  %v7961_v43 = vpop.permute.xlu0 %2181 }
 0x293   : > { %9475 = vst [vmem:[#allocation24_spill] sm:$0xff] %v7955_v34  ;;  %v7963_v46 = vpop.eup %6617  ;;  %v2039_v50 = vadd.f32 1.0, %v6616_v51  ;;  %6637 = vpow2.f32 %v5044_v27  ;;  %v5047_v41 = vmul.f32 -1.442695, %v7955_v34  ;;  %2331 = vrot.lane.b32.xlu1 %v2258_v39, %s6877_s27 }
 0x294   : > { %9476 = vst [vmem:[#allocation25_spill] sm:$0xff] %v7959_v42  ;;  %9477 = vst [vmem:[#allocation26_spill] sm:$0xff] %v7963_v46  ;;  %v7967_v2 = vpop.eup %6619  ;;  %6639 = vrcp.f32 %v2040_v47  ;;  %v2257_v3 = vmul.f32 %v7963_v46, %v7869_v12  ;;  %v5046_v7 = vmul.f32 -1.442695, %v7959_v42  ;;  %v5948_v20 = vpop.f32.mrb[24].mxu0 }
 0x295   : > { %9478 = vst [vmem:[#allocation27_spill] sm:$0xff] %v7967_v2  ;;  %v6622_v13 = vpop.eup %6621  ;;  %6641 = vrcp.f32 %v2039_v50  ;;  %v2260_v55 = vmul.f32 %v7967_v2, %v7883_v0  ;;  %v7977_v4 = vadd.f32 %v5948_v20, %v7791_v53  ;;  %v1819_v31 = vpop.f32.mrb[25].mxu0 }
 0x296   : > { %v6624_v9 = vpop.eup %6623  ;;  %v2042_v24 = vadd.f32 1.0, %v6622_v13  ;;  %6643 = vpow2.f32 %v5047_v41  ;;  %2329 = vrot.lane.b32.xlu0 %v2257_v3, %s6877_s27  ;;  %v7981_v12 = vadd.f32 %v7791_v53, %v1819_v31  ;;  %v2186_v51 = vpop.permute.xlu0 %2185 }
 0x297   : > { %9479 = vst [vmem:[#allocation28_spill] sm:$0xff] %v7977_v4  ;;  %v7983_v22 = vpop.eup %6625  ;;  %v2041_v27 = vadd.f32 1.0, %v6624_v9  ;;  %6645 = vpow2.f32 %v5046_v7  ;;  %v5049_v33 = vmul.f32 -1.442695, %v7977_v4  ;;  %2335 = vrot.lane.b32.xlu1 %v2260_v55, %s6877_s27  ;;  %v2192_v13 = vpop.permute.xlu1 %2191 }
 0x298   : > { %9480 = vst [vmem:[#allocation29_spill] sm:$0xff] %v7981_v12  ;;  %9481 = vst [vmem:[#allocation30_spill] sm:$0xff] %v7983_v22  ;;  %v7987_v0 = vpop.eup %6627  ;;  %6647 = vrcp.f32 %v2042_v24  ;;  %v2259_v35 = vmul.f32 %v7983_v22, %v7903_v32  ;;  %v5048_v39 = vmul.f32 -1.442695, %v7981_v12  ;;  %v5951_v44 = vpop.f32.mrb[26].mxu0  ;;  %v9505_v12 = vmov 0.0  }
 0x299   : > { %9482 = vst [vmem:[#allocation31_spill] sm:$0xff] %v7987_v0  ;;  %v6630_v47 = vpop.eup %6629  ;;  %6649 = vrcp.f32 %v2041_v27  ;;  %v2262_v50 = vmul.f32 %v7987_v0, %v7911_v38  ;;  %v7995_v41 = vadd.f32 %v5951_v44, %v7791_v53  ;;  %v1829_v3 = vpop.f32.mrb[27].mxu0 }
 0x29a   : > { %v7997_v7 = vpop.eup %6631  ;;  %v2044_v20 = vadd.f32 1.0, %v6630_v47  ;;  %6651 = vpow2.f32 %v5049_v33  ;;  %2333 = vrot.lane.b32.xlu0 %v2259_v35, %s6877_s27  ;;  %v8001_v32 = vadd.f32 %v7791_v53, %v1829_v3 }
 0x29b   : > { %9483 = vst [vmem:[#allocation32_spill] sm:$0xff] %v7995_v41  ;;  %9484 = vst [vmem:[#allocation33_spill] sm:$0xff] %v7997_v7  ;;  %v6634_v55 = vpop.eup %6633  ;;  %6653 = vpow2.f32 %v5048_v39  ;;  %v5051_v31 = vmul.f32 -1.442695, %v7995_v41  ;;  %v2261_v38 = vmul.f32 %v7997_v7, %v7930_v52  ;;  %2339 = vrot.lane.b32.xlu1 %v2262_v50, %s6877_s27  ;;  %v2190_v50 = vpop.permute.xlu0 %2189 }
 0x29c   : > { %9485 = vst [vmem:[#allocation34_spill] sm:$0xff] %v8001_v32  ;;  %v6636_v9 = vpop.eup %6635  ;;  %6655 = vrcp.f32 %v2044_v20  ;;  %v2043_v24 = vadd.f32 1.0, %v6634_v55  ;;  %v5954_v27 = vpop.f32.mrb[28].mxu0  ;;  %v5050_v35 = vmul.f32 -1.442695, %v8001_v32  ;;  %v5121_v32 = vld [vmem:[%s9366_s4 + $0x58] sm:$0xff] }
 0x29d   : > { %v6638_v33 = vpop.eup %6637  ;;  %v2046_v44 = vadd.f32 1.0, %v6636_v9  ;;  %6657 = vpow2.f32 %v5051_v31  ;;  %v8009_v47 = vadd.f32 %v5954_v27, %v7791_v53  ;;  %v1839_v39 = vpop.f32.mrb[29].mxu0 }
 0x29e   : > { %v8011_v3 = vpop.eup %6639  ;;  %6659 = vrcp.f32 %v2043_v24  ;;  %v2045_v5 = vadd.f32 1.0, %v6638_v33  ;;  %2337 = vrot.lane.b32.xlu0 %v2261_v38, %s6877_s27  ;;  %v8015_v52 = vadd.f32 %v7791_v53, %v1839_v39  ;;  %v2196_v24 = vpop.permute.xlu1 %2195 }
 0x29f   : > { %9486 = vst [vmem:[#allocation35_spill] sm:$0xff] %v8009_v47  ;;  %9487 = vst [vmem:[#allocation36_spill] sm:$0xff] %v8011_v3  ;;  %v8017_v20 = vpop.eup %6641  ;;  %6661 = vrcp.f32 %v2046_v44  ;;  %v2264_v55 = vmul.f32 %v8011_v3, %v7941_v8 }
 0x2a0   : > { %9488 = vst [vmem:[#allocation37_spill] sm:$0xff] %v8015_v52  ;;  %9489 = vst [vmem:[#allocation38_spill] sm:$0xff] %v8017_v20  ;;  %v6644_v31 = vpop.eup %6643  ;;  %6663 = vrcp.f32 %v2045_v5  ;;  %v2263_v9 = vmul.f32 %v8017_v20, %v7961_v43  ;;  %v5957_v27 = vpop.f32.mrb[30].mxu0 }
 0x2a1   : > { %v6646_v33 = vpop.eup %6645  ;;  %v2048_v7 = vadd.f32 1.0, %v6644_v31  ;;  %6665 = vpow2.f32 %v5050_v35  ;;  %2343 = vrot.lane.b32.xlu1 %v2264_v55, %s6877_s27  ;;  %v8025_v38 = vadd.f32 %v5957_v27, %v7791_v53  ;;  %v1849_v39 = vpop.f32.mrb[31].mxu0 }
 0x2a2   : > { %v8027_v44 = vpop.eup %6647  ;;  %v2047_v0 = vadd.f32 1.0, %v6646_v33  ;;  %2341 = vrot.lane.b32.xlu0 %v2263_v9, %s6877_s27  ;;  %v8031_v5 = vadd.f32 %v7791_v53, %v1849_v39  ;;  %v2194_v31 = vpop.permute.xlu0 %2193 }
 0x2a3   : > { %9490 = vst [vmem:[#allocation39_spill] sm:$0xff] %v8025_v38  ;;  %9491 = vst [vmem:[#allocation40_spill] sm:$0xff] %v8027_v44  ;;  %v8033_v8 = vpop.eup %6649  ;;  %6667 = vrcp.f32 %v2048_v7  ;;  %v2266_v43 = vmul.f32 %v8027_v44, %v7972_v29  ;;  %v2200_v53 = vpop.permute.xlu1 %2199 }
 0x2a4   : > { %9492 = vst [vmem:[#allocation41_spill] sm:$0xff] %v8031_v5  ;;  %9493 = vst [vmem:[#allocation42_spill] sm:$0xff] %v8033_v8  ;;  %v6652_v35 = vpop.eup %6651  ;;  %6669 = vrcp.f32 %v2047_v0  ;;  %v2265_v55 = vmul.f32 %v8033_v8, %v2186_v51  ;;  %v5084_v51 = vld [vmem:[%s9366_s4 + $0x20] sm:$0xff] }
 0x2a5   : > { %v6654_v27 = vpop.eup %6653  ;;  %v2050_v20 = vadd.f32 1.0, %v6652_v35  ;;  %2347 = vrot.lane.b32.xlu1 %v2266_v43, %s6877_s27  ;;  %v5085_v43 = vld [vmem:[%s9366_s4 + $0x28] sm:$0xff] }
 0x2a6   : > { %v8039_v33 = vpop.eup %6655  ;;  %v2049_v9 = vadd.f32 1.0, %v6654_v27  ;;  %2345 = vrot.lane.b32.xlu0 %v2265_v55, %s6877_s27 }
 0x2a7   : > { %9494 = vst [vmem:[#allocation43_spill] sm:$0xff] %v8039_v33  ;;  %v6658_v39 = vpop.eup %6657  ;;  %6671 = vrcp.f32 %v2050_v20  ;;  %v2268_v7 = vmul.f32 %v8039_v33, %v2192_v13  ;;  %v6346_v20 = vpack.c.bf16 %v5085_v43, %v5084_v51  ;;  %v2204_v44 = vpop.permute.xlu1 %2203 }
 0x2a8   : > { %v8043_v29 = vpop.eup %6659  ;;  %6673 = vrcp.f32 %v2049_v9  ;;  %v2052_v0 = vadd.f32 1.0, %v6658_v39  ;;  %v2198_v9 = vpop.permute.xlu0 %2197 }
 0x2a9   : > { %9495 = vst [vmem:[#allocation44_spill] sm:$0xff] %v8043_v29  ;;  %v8051_v35 = vpop.eup %6661  ;;  %v2267_v55 = vmul.f32 %v8043_v29, %v2190_v50  ;;  %2351 = vrot.lane.b32.xlu1 %v2268_v7, %s6877_s27  ;;  %6347 = vmatprep.subr.bf16.mxu1 %v6346_v20  ;;  %v5086_v50 = vld [vmem:[%s9366_s4 + $0x30] sm:$0xff]  ;;  %v5087_v7 = vld [vmem:[%s9366_s4 + $0x38] sm:$0xff] }
 0x2aa   : > { %9496 = vst [vmem:[#allocation45_spill] sm:$0xff] %v8051_v35  ;;  %v8055_v13 = vpop.eup %6663  ;;  %6675 = vrcp.f32 %v2052_v0  ;;  %v2270_v27 = vmul.f32 %v8051_v35, %v2196_v24  ;;  %6349 = vmatpush3.bf16.msra.mxu1 %v6346_v20  ;;  %v6350_v24 = vpack.c.bf16 %v5087_v7, %v5086_v50 }
 0x2ab   : > { %9497 = vst [vmem:[#allocation46_spill] sm:$0xff] %v8055_v13  ;;  %v6666_v39 = vpop.eup %6665  ;;  %2349 = vrot.lane.b32.xlu0 %v2267_v55, %s6877_s27  ;;  %v2269_v33 = vmul.f32 %v8055_v13, %v2194_v31  ;;  %v5052_v13 = vmul.f32 -1.442695, %v8015_v52 }
 0x2ac   : > { %v2051_v8 = vadd.f32 1.0, %v6666_v39  ;;  %6351 = vmatprep.subr.bf16.mxu1 %v6350_v24  ;;  %v2202_v55 = vpop.permute.xlu0 %2201 }
 0x2ad   : > { %v8066_v0 = vpop.eup %6667  ;;  %2355 = vrot.lane.b32.xlu1 %v2270_v27, %s6877_s27 }
 0x2ae   : > { %9498 = vst [vmem:[#allocation47_spill] sm:$0xff] %v8066_v0  ;;  %v8069_v51 = vpop.eup %6669  ;;  %6677 = vrcp.f32 %v2051_v8  ;;  %v2272_v31 = vmul.f32 %v8066_v0, %v2200_v53  ;;  %6353 = vmatpush3.bf16.msra.mxu1 %v6350_v24  ;;  %v2208_v8 = vpop.permute.xlu1 %2207 }
 0x2af   : > { %9499 = vst [vmem:[#allocation48_spill] sm:$0xff] %v8069_v51  ;;  %2353 = vrot.lane.b32.xlu0 %v2269_v33, %s6877_s27  ;;  %v2271_v43 = vmul.f32 %v8069_v51, %v2198_v9  ;;  %v5053_v51 = vmul.f32 -1.442695, %v8009_v47  ;;  %v5120_v47 = vld [vmem:[%s9366_s4 + $0x50] sm:$0xff] }
 0x2b0   : > { %v2206_v50 = vpop.permute.xlu0 %2205  ;;  %v6358_v6 = vpack.c.bf16 %v5121_v32, %v5120_v47  ;;  %v5055_v32 = vmul.f32 -1.442695, %v8025_v38  ;;  %v5054_v47 = vmul.f32 -1.442695, %v8031_v5 }
 0x2b1   : > { %v8074_v20 = vpop.eup %6671  ;;  %2359 = vrot.lane.b32.xlu1 %v2272_v31, %s6877_s27  ;;  %v6760_v31 = vld [vmem:[%s7118_s10 + $0xe0] sm:$0xff]  ;;  %6679 = vpow2.f32 %v5053_v51 }
 0x2b2   : > { %9500 = vst [vmem:[#allocation49_spill] sm:$0xff] %v8074_v20  ;;  %v8077_v39 = vpop.eup %6673  ;;  %v2274_v27 = vmul.f32 %v8074_v20, %v2204_v44  ;;  %v6759_v44 = vld [vmem:[%s7118_s10 + $0xe8] sm:$0xff]  ;;  %6681 = vpow2.f32 %v5052_v13 }
 0x2b3   : > { %9501 = vst [vmem:[#allocation50_spill] sm:$0xff] %v8077_v39  ;;  %2357 = vrot.lane.b32.xlu0 %v2271_v43, %s6877_s27  ;;  %v2273_v33 = vmul.f32 %v8077_v39, %v2202_v55  ;;  %v5118_v43 = vld [vmem:[%s9366_s4 + $0x40] sm:$0xff]  ;;  %v5119_v55 = vld [vmem:[%s9366_s4 + $0x48] sm:$0xff] }
 0x2b4   : > { %v8082_v53 = vpop.eup %6675 }
 0x2b5   : > { %9502 = vst [vmem:[#allocation51_spill] sm:$0xff] %v8082_v53  ;;  %2363 = vrot.lane.b32.xlu1 %v2274_v27, %s6877_s27  ;;  %v2276_v9 = vmul.f32 %v8082_v53, %v2208_v8  ;;  %v8102_v27 = vpack.c.bf16 %v5119_v55, %v5118_v43 }
 0x2b7   : > { %2361 = vrot.lane.b32.xlu0 %v2273_v33, %s6877_s27  ;;  %6355 = vmatprep.subr.bf16.mxu1 %v8102_v27 }
 0x2b8   : > { %v8087_v7 = vpop.eup %6677 }
 0x2b9   : > { %9503 = vst [vmem:[#allocation52_spill] sm:$0xff] %v8087_v7  ;;  %v2275_v24 = vmul.f32 %v8087_v7, %v2206_v50  ;;  %2367 = vrot.lane.b32.xlu1 %v2276_v9, %s6877_s27 }
 0x2bb   : > { %2365 = vrot.lane.b32.xlu0 %v2275_v24, %s6877_s27  ;;  %v6680_v46 = vpop.eup %6679 }
 0x2bc   : > { %v6682_v26 = vpop.eup %6681  ;;  %v2054_v14 = vadd.f32 1.0, %v6680_v46 }
 0x2bd   : > { %2211 = vrot.lane.b32.xlu1 %v6759_v44, %s6876_s13  ;;  %v2053_v61 = vadd.f32 1.0, %v6682_v26 }
 0x2be   : > { %6683 = vrcp.f32 %v2054_v14 }
 0x2bf   : > { %2209 = vrot.lane.b32.xlu0 %v6760_v31, %s6876_s13  ;;  %6685 = vrcp.f32 %v2053_v61  ;;  %v8219_v61 = vpop.f32.mrb[1].mxu1 }
 0x2c0   : > { %v8235_v34 = vpop.f32.mrb[2].mxu1  ;;  %6687 = vpow2.f32 %v5055_v32 }
 0x2c1   : > { %v8239_v54 = vpop.f32.mrb[3].mxu1  ;;  %6689 = vpow2.f32 %v5054_v47  ;;  %v5156_v47 = vld [vmem:[%s9366_s4 + $0x70] sm:$0xff] }
 0x2c8   : > { %v8221_v62 = vpop.eup %6683 }
 0x2c9   : > { %9504 = vst [vmem:[#allocation53_spill] sm:$0xff] %v8221_v62  ;;  %v8233_v4 = vpop.eup %6685 }
 0x2ca   : > { %9506 = vst [vmem:[#allocation54_spill] sm:$0xff] %v8233_v4 }
 0x2f5   : > { %v8105_v8 = vpop.permute.xlu1 %2315 }
 0x2f6   : > { %v8107_v33 = vpop.permute.xlu0 %2313 }
 0x2f7   : > { %5972 = vmatprep.mubr.msk.f32.mxu1 %vm482_vm0, %v8107_v33 }
 0x2f8   : > { %5973 = vmatmul.mubr.msk.f32.gmra.mrb[4].mxu1 %vm482_vm0, %v8105_v8 }
 0x2f9   : > { %v8113_v9 = vpop.permute.xlu1 %2319 }
 0x2fa   : > { %v8115_v50 = vpop.permute.xlu0 %2317 }
 0x2fb   : > { %5975 = vmatprep.mubr.msk.f32.mxu1 %vm482_vm0, %v8115_v50 }
 0x2fc   : > { %5976 = vmatmul.mubr.msk.f32.gmra.mrb[6].mxu1 %vm482_vm0, %v8113_v9 }
 0x2fd   : > { %v8121_v24 = vpop.permute.xlu1 %2323 }
 0x2fe   : > { %v8123_v44 = vpop.permute.xlu0 %2321 }
 0x2ff   : > { %5978 = vmatprep.mubr.msk.f32.mxu1 %vm482_vm0, %v8123_v44 }
 0x300   : > { %5979 = vmatmul.mubr.msk.f32.gmra.mrb[8].mxu1 %vm482_vm0, %v8121_v24 }
 0x301   : > { %v8129_v31 = vpop.permute.xlu1 %2327 }
 0x304   : > { %v8131_v43 = vpop.permute.xlu0 %2325 }
 0x305   : > { %5981 = vmatprep.mubr.msk.f32.mxu1 %vm482_vm0, %v8131_v43  ;;  %v8135_v55 = vpop.permute.xlu1 %2331 }
 0x306   : > { %5982 = vmatmul.mubr.msk.f32.gmra.mrb[10].mxu1 %vm482_vm0, %v8129_v31 }
 0x308   : > { %v8139_v7 = vpop.permute.xlu0 %2329 }
 0x309   : > { %5984 = vmatprep.mubr.msk.f32.mxu1 %vm482_vm0, %v8139_v7  ;;  %v8143_v53 = vpop.permute.xlu1 %2335 }
 0x30a   : > { %5985 = vmatmul.mubr.msk.f32.gmra.mrb[12].mxu1 %vm482_vm0, %v8135_v55 }
 0x30c   : > { %v8147_v39 = vpop.permute.xlu0 %2333 }
 0x30d   : > { %5987 = vmatprep.mubr.msk.f32.mxu1 %vm482_vm0, %v8147_v39  ;;  %v8151_v20 = vpop.permute.xlu1 %2339 }
 0x30e   : > { %5988 = vmatmul.mubr.msk.f32.gmra.mrb[14].mxu1 %vm482_vm0, %v8143_v53 }
 0x310   : > { %v8156_v0 = vpop.permute.xlu0 %2337 }
 0x311   : > { %5990 = vmatprep.mubr.msk.f32.mxu1 %vm482_vm0, %v8156_v0 }
 0x312   : > { %5991 = vmatmul.mubr.msk.f32.gmra.mrb[16].mxu1 %vm482_vm0, %v8151_v20 }
 0x313   : > { %v8163_v35 = vpop.permute.xlu1 %2343 }
 0x314   : > { %v8165_v29 = vpop.permute.xlu0 %2341 }
 0x315   : > { %5993 = vmatprep.mubr.msk.f32.mxu1 %vm482_vm0, %v8165_v29 }
 0x316   : > { %5994 = vmatmul.mubr.msk.f32.gmra.mrb[18].mxu1 %vm482_vm0, %v8163_v35 }
 0x317   : > { %v8171_v3 = vpop.permute.xlu1 %2347 }
 0x318   : > { %v8173_v22 = vpop.permute.xlu0 %2345 }
 0x319   : > { %5996 = vmatprep.mubr.msk.f32.mxu1 %vm482_vm0, %v8173_v22 }
 0x31a   : > { %5997 = vmatmul.mubr.msk.f32.gmra.mrb[20].mxu1 %vm482_vm0, %v8171_v3 }
 0x31b   : > { %v8179_v51 = vpop.permute.xlu1 %2351 }
 0x31d   : > { %v8181_v2 = vpop.permute.xlu0 %2349 }
 0x31e   : > { %5999 = vmatprep.mubr.msk.f32.mxu1 %vm482_vm0, %v8181_v2 }
 0x31f   : > { %6000 = vmatmul.mubr.msk.f32.gmra.mrb[22].mxu1 %vm482_vm0, %v8179_v51  ;;  %v8187_v13 = vpop.permute.xlu1 %2355 }
 0x321   : > { %v8189_v59 = vpop.permute.xlu0 %2353 }
 0x322   : > { %6002 = vmatprep.mubr.msk.f32.mxu1 %vm482_vm0, %v8189_v59 }
 0x323   : > { %6003 = vmatmul.mubr.msk.f32.gmra.mrb[24].mxu1 %vm482_vm0, %v8187_v13  ;;  %v8195_v16 = vpop.permute.xlu1 %2359 }
 0x325   : > { %v8197_v10 = vpop.permute.xlu0 %2357 }
 0x326   : > { %6005 = vmatprep.mubr.msk.f32.mxu1 %vm482_vm0, %v8197_v10 }
 0x327   : > { %6006 = vmatmul.mubr.msk.f32.gmra.mrb[26].mxu1 %vm482_vm0, %v8195_v16  ;;  %v8203_v46 = vpop.permute.xlu1 %2363 }
 0x329   : > { %v8205_v57 = vpop.permute.xlu0 %2361 }
 0x32a   : > { %6008 = vmatprep.mubr.msk.f32.mxu1 %vm482_vm0, %v8205_v57 }
 0x32b   : > { %6009 = vmatmul.mubr.msk.f32.gmra.mrb[28].mxu1 %vm482_vm0, %v8203_v46  ;;  %v8211_v14 = vpop.permute.xlu1 %2367 }
 0x32d   : > { %v8213_v26 = vpop.permute.xlu0 %2365 }
 0x32e   : > { %6011 = vmatprep.mubr.msk.f32.mxu1 %vm482_vm0, %v8213_v26 }
 0x32f   : > { %6012 = vmatmul.mubr.msk.f32.gmra.mrb[30].mxu1 %vm482_vm0, %v8211_v14  ;;  %v2212_v52 = vpop.permute.xlu1 %2211 }
 0x330   : > { %v2278_v41 = vmul.f32 %v8221_v62, %v2212_v52  ;;  %6022 = vmatprep.mubr.f32.mxu1 %v9505_v12  ;;  %v6761_v52 = vld [vmem:[%s7118_s10 + $0xf8] sm:$0xff] }
 0x331   : > { %v2210_v42 = vpop.permute.xlu0 %2209 }
 0x332   : > { %v2277_v37 = vmul.f32 %v8233_v4, %v2210_v42  ;;  %2371 = vrot.lane.b32.xlu1 %v2278_v41, %s6877_s27  ;;  %v6762_v42 = vld [vmem:[%s7118_s10 + $0xf0] sm:$0xff] }
 0x333   : > { %6023 = vmatmul.mubr.f32.vlgmr.msra.gmra.mrb[32].mxu1 %v9505_v12 }
 0x334   : > { %6025 = vmatprep.mubr.msk.f32.mxu1 %vm482_vm0, %v8107_v33  ;;  %2369 = vrot.lane.b32.xlu0 %v2277_v37, %s6877_s27  ;;  %v5155_v37 = vld [vmem:[%s9366_s4 + $0x68] sm:$0xff] }
 0x335   : > { %6357 = vmatpush3.bf16.msra.mxu1 %v8102_v27  ;;  %v6688_v27 = vpop.eup %6687 }
 0x336   : > { %2215 = vrot.lane.b32.xlu1 %v6761_v52, %s6876_s13  ;;  %6359 = vmatprep.subr.bf16.mxu1 %v6358_v6  ;;  %v6690_v52 = vpop.eup %6689 }
 0x337   : > { %6026 = vmatmul.mubr.msk.f32.gmra.mrb[34].mxu1 %vm482_vm0, %v8105_v8 }
 0x338   : > { %6028 = vmatprep.mubr.msk.f32.mxu1 %vm482_vm0, %v8115_v50  ;;  %2213 = vrot.lane.b32.xlu0 %v6762_v42, %s6876_s13  ;;  %v2056_v42 = vadd.f32 1.0, %v6688_v27  ;;  %v5157_v27 = vld [vmem:[%s9366_s4 + $0x78] sm:$0xff] }
 0x339   : > { %6361 = vmatpush3.bf16.msra.mxu1 %v6358_v6  ;;  %v5154_v6 = vld [vmem:[%s9366_s4 + $0x60] sm:$0xff]  ;;  %v6366_v38 = vpack.c.bf16 %v5157_v27, %v5156_v47 }
 0x33a   : > { %v6362_v41 = vpack.c.bf16 %v5155_v37, %v5154_v6  ;;  %v2055_v6 = vadd.f32 1.0, %v6690_v52  ;;  %6691 = vrcp.f32 %v2056_v42 }
 0x33b   : > { %6029 = vmatmul.mubr.msk.f32.gmra.mrb[36].mxu1 %vm482_vm0, %v8113_v9 }
 0x33c   : > { %6031 = vmatprep.mubr.msk.f32.mxu1 %vm482_vm0, %v8123_v44  ;;  %6363 = vmatprep.subr.bf16.mxu1 %v6362_v41  ;;  %6693 = vrcp.f32 %v2055_v6 }
 0x33f   : > { %6032 = vmatmul.mubr.msk.f32.gmra.mrb[38].mxu1 %vm482_vm0, %v8121_v24 }
 0x340   : > { %6034 = vmatprep.mubr.msk.f32.mxu1 %vm482_vm0, %v8131_v43 }
 0x343   : > { %6035 = vmatmul.mubr.msk.f32.gmra.mrb[40].mxu1 %vm482_vm0, %v8129_v31 }
 0x344   : > { %6037 = vmatprep.mubr.msk.f32.mxu1 %vm482_vm0, %v8139_v7  ;;  %v8318_v62 = vpop.eup %6691 }
 0x345   : > { %9507 = vst [vmem:[#allocation55_spill] sm:$0xff] %v8318_v62 }
 0x346   : > { %v8331_v42 = vpop.eup %6693 }
 0x347   : > { %6038 = vmatmul.mubr.msk.f32.gmra.mrb[42].mxu1 %vm482_vm0, %v8135_v55  ;;  %9508 = vst [vmem:[#allocation56_spill] sm:$0xff] %v8331_v42 }
 0x348   : > { %6040 = vmatprep.mubr.msk.f32.mxu1 %vm482_vm0, %v8147_v39 }
 0x34b   : > { %6041 = vmatmul.mubr.msk.f32.gmra.mrb[44].mxu1 %vm482_vm0, %v8143_v53 }
 0x34c   : > { %6043 = vmatprep.mubr.msk.f32.mxu1 %vm482_vm0, %v8156_v0 }
 0x34f   : > { %6044 = vmatmul.mubr.msk.f32.gmra.mrb[46].mxu1 %vm482_vm0, %v8151_v20 }
 0x350   : > { %6046 = vmatprep.mubr.msk.f32.mxu1 %vm482_vm0, %v8165_v29 }
 0x353   : > { %6047 = vmatmul.mubr.msk.f32.gmra.mrb[48].mxu1 %vm482_vm0, %v8163_v35 }
 0x354   : > { %6049 = vmatprep.mubr.msk.f32.mxu1 %vm482_vm0, %v8173_v22 }
 0x357   : > { %6050 = vmatmul.mubr.msk.f32.gmra.mrb[50].mxu1 %vm482_vm0, %v8171_v3 }
 0x358   : > { %6052 = vmatprep.mubr.msk.f32.mxu1 %vm482_vm0, %v8181_v2 }
 0x35b   : > { %6053 = vmatmul.mubr.msk.f32.gmra.mrb[52].mxu1 %vm482_vm0, %v8179_v51 }
 0x35c   : > { %6055 = vmatprep.mubr.msk.f32.mxu1 %vm482_vm0, %v8189_v59 }
 0x35f   : > { %6056 = vmatmul.mubr.msk.f32.gmra.mrb[54].mxu1 %vm482_vm0, %v8187_v13 }
 0x360   : > { %6058 = vmatprep.mubr.msk.f32.mxu1 %vm482_vm0, %v8197_v10 }
 0x363   : > { %6059 = vmatmul.mubr.msk.f32.gmra.mrb[56].mxu1 %vm482_vm0, %v8195_v16 }
 0x364   : > { %6061 = vmatprep.mubr.msk.f32.mxu1 %vm482_vm0, %v8205_v57 }
 0x367   : > { %6062 = vmatmul.mubr.msk.f32.gmra.mrb[58].mxu1 %vm482_vm0, %v8203_v46 }
 0x368   : > { %6064 = vmatprep.mubr.msk.f32.mxu1 %vm482_vm0, %v8213_v26 }
 0x36b   : > { %6065 = vmatmul.mubr.msk.f32.gmra.mrb[60].mxu1 %vm482_vm0, %v8211_v14 }
 0x3a4   : > { %v8312_v37 = vpop.permute.xlu1 %2371 }
 0x3a6   : > { %v8314_v4 = vpop.permute.xlu0 %2369 }
 0x3a7   : > { %6067 = vmatprep.mubr.msk.f32.mxu1 %vm482_vm0, %v8314_v4 }
 0x3a8   : > { %6068 = vmatmul.mubr.msk.f32.gmra.mrb[62].mxu1 %vm482_vm0, %v8312_v37  ;;  %v2216_v32 = vpop.permute.xlu1 %2215 }
 0x3a9   : > { %v2280_v52 = vmul.f32 %v8318_v62, %v2216_v32  ;;  %6078 = vmatprep.mubr.msk.f32.mxu1 %vm482_vm0, %v8107_v33  ;;  %v5189_v32 = vld [vmem:[%s9366_s4 + $0x88] sm:$0xff] }
 0x3aa   : > { %v2214_v6 = vpop.permute.xlu0 %2213 }
 0x3ab   : > { %v2279_v5 = vmul.f32 %v8331_v42, %v2214_v6  ;;  %2375 = vrot.lane.b32.xlu1 %v2280_v52, %s6877_s27 }
 0x3ac   : > { %6079 = vmatmul.mubr.msk.f32.vlgmr.msra.gmra.mrb[64].mxu1 %vm482_vm0, %v8105_v8  ;;  %v8348_v8 = vpack.c.bf16 %v5189_v32, %v5188_v48 }
 0x3ad   : > { %6081 = vmatprep.mubr.msk.f32.mxu1 %vm482_vm0, %v8115_v50  ;;  %2373 = vrot.lane.b32.xlu0 %v2279_v5, %s6877_s27 }
 0x3ae   : > { %6365 = vmatpush3.bf16.msra.mxu1 %v6362_v41 }
 0x3af   : > { %2698 = vrot.lane.b32.xlu1 %v8215_v19, %s6878_s14  ;;  %6367 = vmatprep.subr.bf16.mxu1 %v6366_v38 }
 0x3b0   : > { %6082 = vmatmul.mubr.msk.f32.gmra.mrb[66].mxu1 %vm482_vm0, %v8113_v9 }
 0x3b1   : > { %6084 = vmatprep.mubr.msk.f32.mxu1 %vm482_vm0, %v8123_v44  ;;  %2696 = vrot.lane.b32.xlu0 %v8219_v61, %s6878_s14 }
 0x3b2   : > { %6369 = vmatpush3.bf16.msra.mxu1 %v6366_v38 }
 0x3b3   : > { %2702 = vrot.lane.b32.xlu1 %v8235_v34, %s6878_s14  ;;  %6371 = vmatprep.subr.bf16.mxu1 %v8348_v8 }
 0x3b4   : > { %6085 = vmatmul.mubr.msk.f32.gmra.mrb[68].mxu1 %vm482_vm0, %v8121_v24 }
 0x3b5   : > { %6087 = vmatprep.mubr.msk.f32.mxu1 %vm482_vm0, %v8131_v43  ;;  %2700 = vrot.lane.b32.xlu0 %v8239_v54, %s6878_s14 }
 0x3b8   : > { %6088 = vmatmul.mubr.msk.f32.gmra.mrb[70].mxu1 %vm482_vm0, %v8129_v31 }
 0x3b9   : > { %6090 = vmatprep.mubr.msk.f32.mxu1 %vm482_vm0, %v8139_v7 }
 0x3bc   : > { %6091 = vmatmul.mubr.msk.f32.gmra.mrb[72].mxu1 %vm482_vm0, %v8135_v55 }
 0x3bd   : > { %6093 = vmatprep.mubr.msk.f32.mxu1 %vm482_vm0, %v8147_v39 }
 0x3c0   : > { %6094 = vmatmul.mubr.msk.f32.gmra.mrb[74].mxu1 %vm482_vm0, %v8143_v53 }
 0x3c1   : > { %6096 = vmatprep.mubr.msk.f32.mxu1 %vm482_vm0, %v8156_v0 }
 0x3c4   : > { %6097 = vmatmul.mubr.msk.f32.gmra.mrb[76].mxu1 %vm482_vm0, %v8151_v20 }
 0x3c5   : > { %6099 = vmatprep.mubr.msk.f32.mxu1 %vm482_vm0, %v8165_v29 }
 0x3c8   : > { %6100 = vmatmul.mubr.msk.f32.gmra.mrb[78].mxu1 %vm482_vm0, %v8163_v35 }
 0x3c9   : > { %6102 = vmatprep.mubr.msk.f32.mxu1 %vm482_vm0, %v8173_v22 }
 0x3cb   : > { %v5974_v19 = vpop.f32.mrb[4].mxu1 }
 0x3cc   : > { %6103 = vmatmul.mubr.msk.f32.gmra.mrb[80].mxu1 %vm482_vm0, %v8171_v3  ;;  %v2525_v48 = vpop.f32.mrb[5].mxu1  ;;  %2706 = vrot.lane.b32.xlu1 %v5974_v19, %s6878_s14 }
 0x3cd   : > { %6105 = vmatprep.mubr.msk.f32.mxu1 %vm482_vm0, %v8181_v2  ;;  %2704 = vrot.lane.b32.xlu0 %v2525_v48, %s6878_s14 }
 0x3cf   : > { %v5977_v54 = vpop.f32.mrb[6].mxu1 }
 0x3d0   : > { %6106 = vmatmul.mubr.msk.f32.gmra.mrb[82].mxu1 %vm482_vm0, %v8179_v51  ;;  %v2535_v34 = vpop.f32.mrb[7].mxu1  ;;  %2710 = vrot.lane.b32.xlu1 %v5977_v54, %s6878_s14 }
 0x3d1   : > { %6108 = vmatprep.mubr.msk.f32.mxu1 %vm482_vm0, %v8189_v59  ;;  %2708 = vrot.lane.b32.xlu0 %v2535_v34, %s6878_s14 }
 0x3d3   : > { %v5980_v38 = vpop.f32.mrb[8].mxu1 }
 0x3d4   : > { %6109 = vmatmul.mubr.msk.f32.gmra.mrb[84].mxu1 %vm482_vm0, %v8187_v13  ;;  %v2545_v5 = vpop.f32.mrb[9].mxu1  ;;  %2714 = vrot.lane.b32.xlu1 %v5980_v38, %s6878_s14 }
 0x3d5   : > { %6111 = vmatprep.mubr.msk.f32.mxu1 %vm482_vm0, %v8197_v10  ;;  %2712 = vrot.lane.b32.xlu0 %v2545_v5, %s6878_s14 }
 0x3d8   : > { %6112 = vmatmul.mubr.msk.f32.gmra.mrb[86].mxu1 %vm482_vm0, %v8195_v16 }
 0x3d9   : > { %6114 = vmatprep.mubr.msk.f32.mxu1 %vm482_vm0, %v8205_v57  ;;  %v5983_v33 = vpop.f32.mrb[10].mxu1 }
 0x3da   : > { %v2555_v61 = vpop.f32.mrb[11].mxu1  ;;  %2718 = vrot.lane.b32.xlu1 %v5983_v33, %s6878_s14 }
 0x3db   : > { %2716 = vrot.lane.b32.xlu0 %v2555_v61, %s6878_s14 }
 0x3dc   : > { %6115 = vmatmul.mubr.msk.f32.gmra.mrb[88].mxu1 %vm482_vm0, %v8203_v46 }
 0x3dd   : > { %6117 = vmatprep.mubr.msk.f32.mxu1 %vm482_vm0, %v8213_v26  ;;  %v5986_v41 = vpop.f32.mrb[12].mxu1 }
 0x3de   : > { %v2565_v47 = vpop.f32.mrb[13].mxu1  ;;  %2722 = vrot.lane.b32.xlu1 %v5986_v41, %s6878_s14 }
 0x3df   : > { %2720 = vrot.lane.b32.xlu0 %v2565_v47, %s6878_s14 }
 0x3e0   : > { %6118 = vmatmul.mubr.msk.f32.gmra.mrb[90].mxu1 %vm482_vm0, %v8211_v14 }
 0x3e1   : > { %6120 = vmatprep.mubr.msk.f32.mxu1 %vm482_vm0, %v8314_v4  ;;  %v5989_v27 = vpop.f32.mrb[14].mxu1 }
 0x3e2   : > { %v2575_v52 = vpop.f32.mrb[15].mxu1  ;;  %2726 = vrot.lane.b32.xlu1 %v5989_v27, %s6878_s14 }
 0x3e3   : > { %2724 = vrot.lane.b32.xlu0 %v2575_v52, %s6878_s14 }
 0x3e4   : > { %6121 = vmatmul.mubr.msk.f32.gmra.mrb[92].mxu1 %vm482_vm0, %v8312_v37 }
 0x3e5   : > { %v5992_v6 = vpop.f32.mrb[16].mxu1 }
 0x3e6   : > { %v2585_v32 = vpop.f32.mrb[17].mxu1  ;;  %2730 = vrot.lane.b32.xlu1 %v5992_v6, %s6878_s14 }
 0x3e7   : > { %2728 = vrot.lane.b32.xlu0 %v2585_v32, %s6878_s14 }
 0x3e9   : > { %v5995_v19 = vpop.f32.mrb[18].mxu1 }
 0x3ea   : > { %v2595_v48 = vpop.f32.mrb[19].mxu1  ;;  %2734 = vrot.lane.b32.xlu1 %v5995_v19, %s6878_s14 }
 0x3eb   : > { %2732 = vrot.lane.b32.xlu0 %v2595_v48, %s6878_s14 }
 0x3ed   : > { %v5998_v54 = vpop.f32.mrb[20].mxu1 }
 0x3ee   : > { %v2605_v34 = vpop.f32.mrb[21].mxu1  ;;  %2738 = vrot.lane.b32.xlu1 %v5998_v54, %s6878_s14 }
 0x3ef   : > { %2736 = vrot.lane.b32.xlu0 %v2605_v34, %s6878_s14 }
 0x3f2   : > { %v6001_v38 = vpop.f32.mrb[22].mxu1 }
 0x3f3   : > { %v2615_v5 = vpop.f32.mrb[23].mxu1  ;;  %2742 = vrot.lane.b32.xlu1 %v6001_v38, %s6878_s14 }
 0x3f4   : > { %2740 = vrot.lane.b32.xlu0 %v2615_v5, %s6878_s14 }
 0x3f6   : > { %v6004_v33 = vpop.f32.mrb[24].mxu1 }
 0x3f7   : > { %v2625_v61 = vpop.f32.mrb[25].mxu1  ;;  %2746 = vrot.lane.b32.xlu1 %v6004_v33, %s6878_s14 }
 0x3f8   : > { %2744 = vrot.lane.b32.xlu0 %v2625_v61, %s6878_s14 }
 0x3fa   : > { %v6007_v41 = vpop.f32.mrb[26].mxu1 }
 0x3fb   : > { %v2635_v47 = vpop.f32.mrb[27].mxu1  ;;  %2750 = vrot.lane.b32.xlu1 %v6007_v41, %s6878_s14 }
 0x3fc   : > { %2748 = vrot.lane.b32.xlu0 %v2635_v47, %s6878_s14 }
 0x3fe   : > { %v6010_v27 = vpop.f32.mrb[28].mxu1 }
 0x3ff   : > { %v2645_v52 = vpop.f32.mrb[29].mxu1  ;;  %2754 = vrot.lane.b32.xlu1 %v6010_v27, %s6878_s14 }
 0x400   : > { %2752 = vrot.lane.b32.xlu0 %v2645_v52, %s6878_s14 }
 0x402   : > { %v6013_v6 = vpop.f32.mrb[30].mxu1 }
 0x403   : > { %v2655_v32 = vpop.f32.mrb[31].mxu1  ;;  %2758 = vrot.lane.b32.xlu1 %v6013_v6, %s6878_s14 }
 0x404   : > { %2756 = vrot.lane.b32.xlu0 %v2655_v32, %s6878_s14 }
 0x406   : > { %v6024_v19 = vpop.f32.mrb[32].mxu1 }
 0x407   : > { %v2899_v48 = vpop.f32.mrb[33].mxu1  ;;  %3092 = vrot.lane.b32.xlu1 %v6024_v19, %s6878_s14 }
 0x408   : > { %3090 = vrot.lane.b32.xlu0 %v2899_v48, %s6878_s14 }
 0x40a   : > { %v6027_v54 = vpop.f32.mrb[34].mxu1 }
 0x40b   : > { %v2909_v34 = vpop.f32.mrb[35].mxu1  ;;  %3096 = vrot.lane.b32.xlu1 %v6027_v54, %s6878_s14  ;;  %v5190_v54 = vld [vmem:[%s9366_s4 + $0x90] sm:$0xff] }
 0x40c   : > { %3094 = vrot.lane.b32.xlu0 %v2909_v34, %s6878_s14  ;;  %v5191_v34 = vld [vmem:[%s9366_s4 + $0x98] sm:$0xff] }
 0x40e   : > { %v6030_v38 = vpop.f32.mrb[36].mxu1 }
 0x40f   : > { %v2919_v5 = vpop.f32.mrb[37].mxu1  ;;  %3100 = vrot.lane.b32.xlu1 %v6030_v38, %s6878_s14 }
 0x410   : > { %3098 = vrot.lane.b32.xlu0 %v2919_v5, %s6878_s14 }
 0x412   : > { %v6033_v33 = vpop.f32.mrb[38].mxu1 }
 0x413   : > { %v2929_v61 = vpop.f32.mrb[39].mxu1  ;;  %3104 = vrot.lane.b32.xlu1 %v6033_v33, %s6878_s14  ;;  %v6374_v33 = vpack.c.bf16 %v5191_v34, %v5190_v54 }
 0x414   : > { %3102 = vrot.lane.b32.xlu0 %v2929_v61, %s6878_s14 }
 0x416   : > { %v6036_v41 = vpop.f32.mrb[40].mxu1 }
 0x417   : > { %v2939_v47 = vpop.f32.mrb[41].mxu1  ;;  %3108 = vrot.lane.b32.xlu1 %v6036_v41, %s6878_s14 }
 0x418   : > { %3106 = vrot.lane.b32.xlu0 %v2939_v47, %s6878_s14 }
 0x41a   : > { %v6039_v27 = vpop.f32.mrb[42].mxu1 }
 0x41b   : > { %v2949_v52 = vpop.f32.mrb[43].mxu1  ;;  %3112 = vrot.lane.b32.xlu1 %v6039_v27, %s6878_s14 }
 0x41c   : > { %3110 = vrot.lane.b32.xlu0 %v2949_v52, %s6878_s14 }
 0x41d   : > { %v8454_v48 = vpop.permute.xlu1 %2375 }
 0x41e   : > { %v6042_v6 = vpop.f32.mrb[44].mxu1 }
 0x41f   : > { %v2959_v32 = vpop.f32.mrb[45].mxu1  ;;  %3116 = vrot.lane.b32.xlu1 %v6042_v6, %s6878_s14  ;;  %v8452_v19 = vpop.permute.xlu0 %2373 }
 0x420   : > { %3114 = vrot.lane.b32.xlu0 %v2959_v32, %s6878_s14  ;;  %6123 = vmatprep.mubr.msk.f32.mxu1 %vm482_vm0, %v8452_v19 }
 0x421   : > { %6124 = vmatmul.mubr.msk.f32.gmra.mrb[94].mxu1 %vm482_vm0, %v8454_v48 }
 0x422   : > { %v6045_v38 = vpop.f32.mrb[46].mxu1  ;;  %6134 = vmatprep.mubr.msk.f32.mxu1 %vm482_vm0, %v8115_v50 }
 0x423   : > { %v2969_v5 = vpop.f32.mrb[47].mxu1  ;;  %3120 = vrot.lane.b32.xlu1 %v6045_v38, %s6878_s14 }
 0x424   : > { %3118 = vrot.lane.b32.xlu0 %v2969_v5, %s6878_s14 }
 0x425   : > { %6135 = vmatmul.mubr.msk.f32.vlgmr.msra.gmra.mrb[96].mxu1 %vm482_vm0, %v8113_v9 }
 0x426   : > { %6373 = vmatpush3.bf16.msra.mxu1 %v8348_v8  ;;  %v6048_v61 = vpop.f32.mrb[48].mxu1  ;;  %6137 = vmatprep.mubr.msk.f32.mxu1 %vm482_vm0, %v8123_v44 }
 0x427   : > { %v2979_v41 = vpop.f32.mrb[49].mxu1  ;;  %3124 = vrot.lane.b32.xlu1 %v6048_v61, %s6878_s14  ;;  %6375 = vmatprep.subr.bf16.mxu1 %v6374_v33  ;;  %v8536_v61 = vpop.permute.xlu0 %2696 }
 0x428   : > { %3122 = vrot.lane.b32.xlu0 %v2979_v41, %s6878_s14 }
 0x429   : > { %6138 = vmatmul.mubr.msk.f32.gmra.mrb[98].mxu1 %vm482_vm0, %v8121_v24 }
 0x42a   : > { %v6051_v50 = vpop.f32.mrb[50].mxu1  ;;  %6140 = vmatprep.mubr.msk.f32.mxu1 %vm482_vm0, %v8131_v43  ;;  %6377 = vmatpush3.bf16.msra.mxu1 %v6374_v33  ;;  %v8534_v33 = vpop.permute.xlu1 %2698 }
 0x42b   : > { %v2989_v9 = vpop.f32.mrb[51].mxu1  ;;  %3128 = vrot.lane.b32.xlu1 %v6051_v50, %s6878_s14  ;;  %v8546_v50 = vpop.permute.xlu0 %2700 }
 0x42c   : > { %3126 = vrot.lane.b32.xlu0 %v2989_v9, %s6878_s14 }
 0x42d   : > { %6141 = vmatmul.mubr.msk.f32.gmra.mrb[100].mxu1 %vm482_vm0, %v8129_v31 }
 0x42e   : > { %v6054_v8 = vpop.f32.mrb[52].mxu1  ;;  %6143 = vmatprep.mubr.msk.f32.mxu1 %vm482_vm0, %v8139_v7  ;;  %v8542_v41 = vpop.permute.xlu1 %2702 }
 0x42f   : > { %v2999_v47 = vpop.f32.mrb[53].mxu1  ;;  %3132 = vrot.lane.b32.xlu1 %v6054_v8, %s6878_s14 }
 0x430   : > { %3130 = vrot.lane.b32.xlu0 %v2999_v47, %s6878_s14 }
 0x431   : > { %6144 = vmatmul.mubr.msk.f32.gmra.mrb[102].mxu1 %vm482_vm0, %v8135_v55 }
 0x432   : > { %v6057_v27 = vpop.f32.mrb[54].mxu1  ;;  %6146 = vmatprep.mubr.msk.f32.mxu1 %vm482_vm0, %v8147_v39 }
 0x433   : > { %v3009_v52 = vpop.f32.mrb[55].mxu1  ;;  %3136 = vrot.lane.b32.xlu1 %v6057_v27, %s6878_s14 }
 0x434   : > { %3134 = vrot.lane.b32.xlu0 %v3009_v52, %s6878_s14 }
 0x435   : > { %6147 = vmatmul.mubr.msk.f32.gmra.mrb[104].mxu1 %vm482_vm0, %v8143_v53 }
 0x436   : > { %v6060_v6 = vpop.f32.mrb[56].mxu1  ;;  %6149 = vmatprep.mubr.msk.f32.mxu1 %vm482_vm0, %v8156_v0 }
 0x437   : > { %v3019_v32 = vpop.f32.mrb[57].mxu1  ;;  %3140 = vrot.lane.b32.xlu1 %v6060_v6, %s6878_s14 }
 0x438   : > { %3138 = vrot.lane.b32.xlu0 %v3019_v32, %s6878_s14 }
 0x439   : > { %6150 = vmatmul.mubr.msk.f32.gmra.mrb[106].mxu1 %vm482_vm0, %v8151_v20 }
 0x43a   : > { %v6063_v54 = vpop.f32.mrb[58].mxu1  ;;  %6152 = vmatprep.mubr.msk.f32.mxu1 %vm482_vm0, %v8165_v29 }
 0x43b   : > { %v3029_v34 = vpop.f32.mrb[59].mxu1  ;;  %3144 = vrot.lane.b32.xlu1 %v6063_v54, %s6878_s14 }
 0x43c   : > { %3142 = vrot.lane.b32.xlu0 %v3029_v34, %s6878_s14 }
 0x43d   : > { %6153 = vmatmul.mubr.msk.f32.gmra.mrb[108].mxu1 %vm482_vm0, %v8163_v35 }
 0x43e   : > { %v6066_v38 = vpop.f32.mrb[60].mxu1  ;;  %6155 = vmatprep.mubr.msk.f32.mxu1 %vm482_vm0, %v8173_v22  ;;  %v8550_v9 = vpop.permute.xlu1 %2706 }
 0x43f   : > { %v3039_v5 = vpop.f32.mrb[61].mxu1  ;;  %3148 = vrot.lane.b32.xlu1 %v6066_v38, %s6878_s14  ;;  %v8554_v8 = vpop.permute.xlu0 %2704 }
 0x440   : > { %3146 = vrot.lane.b32.xlu0 %v3039_v5, %s6878_s14 }
 0x441   : > { %6156 = vmatmul.mubr.msk.f32.gmra.mrb[110].mxu1 %vm482_vm0, %v8171_v3 }
 0x442   : > { %6158 = vmatprep.mubr.msk.f32.mxu1 %vm482_vm0, %v8181_v2  ;;  %v8560_v47 = vpop.permute.xlu1 %2710 }
 0x443   : > { %v8562_v27 = vpop.permute.xlu0 %2708 }
 0x445   : > { %6159 = vmatmul.mubr.msk.f32.gmra.mrb[112].mxu1 %vm482_vm0, %v8179_v51 }
 0x446   : > { %6161 = vmatprep.mubr.msk.f32.mxu1 %vm482_vm0, %v8189_v59  ;;  %v8568_v52 = vpop.permute.xlu1 %2714 }
 0x447   : > { %v8572_v6 = vpop.permute.xlu0 %2712 }
 0x449   : > { %6162 = vmatmul.mubr.msk.f32.gmra.mrb[114].mxu1 %vm482_vm0, %v8187_v13 }
 0x44a   : > { %6164 = vmatprep.mubr.msk.f32.mxu1 %vm482_vm0, %v8197_v10 }
 0x44d   : > { %6165 = vmatmul.mubr.msk.f32.gmra.mrb[116].mxu1 %vm482_vm0, %v8195_v16 }
 0x44e   : > { %6167 = vmatprep.mubr.msk.f32.mxu1 %vm482_vm0, %v8205_v57 }
 0x451   : > { %6168 = vmatmul.mubr.msk.f32.gmra.mrb[118].mxu1 %vm482_vm0, %v8203_v46 }
 0x452   : > { %6170 = vmatprep.mubr.msk.f32.mxu1 %vm482_vm0, %v8213_v26 }
 0x455   : > { %6171 = vmatmul.mubr.msk.f32.gmra.mrb[120].mxu1 %vm482_vm0, %v8211_v14 }
 0x456   : > { %6173 = vmatprep.mubr.msk.f32.mxu1 %vm482_vm0, %v8314_v4 }
 0x459   : > { %6174 = vmatmul.mubr.msk.f32.gmra.mrb[122].mxu1 %vm482_vm0, %v8312_v37 }
 0x45a   : > { %6176 = vmatprep.mubr.msk.f32.mxu1 %vm482_vm0, %v8452_v19 }
 0x45d   : > { %6177 = vmatmul.mubr.msk.f32.gmra.mrb[124].mxu1 %vm482_vm0, %v8454_v48 }
 0x45e   : > { %6179 = vmatprep.mubr.f32.mxu1 %v9505_v12 }
 0x461   : > { %6180 = vmatmul.mubr.f32.gmra.mrb[126].mxu1 %v9505_v12 }
 0x462   : > { %6190 = vmatprep.mubr.msk.f32.mxu1 %vm482_vm0, %v8123_v44  ;;  %v8582_v44 = vpop.permute.xlu0 %2716 }
 0x465   : > { %6191 = vmatmul.mubr.msk.f32.vlgmr.msra.gmra.mrb[128].mxu1 %vm482_vm0, %v8121_v24  ;;  %v8580_v24 = vpop.permute.xlu1 %2718 }
 0x466   : > { %6193 = vmatprep.mubr.msk.f32.mxu1 %vm482_vm0, %v8131_v43 }
 0x469   : > { %6194 = vmatmul.mubr.msk.f32.gmra.mrb[130].mxu1 %vm482_vm0, %v8129_v31  ;;  %v8588_v31 = vpop.permute.xlu1 %2722 }
 0x46a   : > { %6196 = vmatprep.mubr.msk.f32.mxu1 %vm482_vm0, %v8139_v7  ;;  %9509 = vst [vmem:[#allocation57_spill] sm:$0xff] %v8588_v31  ;;  %v8592_v7 = vpop.permute.xlu0 %2720 }
 0x46b   : > { %9510 = vst [vmem:[#allocation58_spill] sm:$0xff] %v8592_v7 }
 0x46d   : > { %6197 = vmatmul.mubr.msk.f32.gmra.mrb[132].mxu1 %vm482_vm0, %v8135_v55 }
 0x46e   : > { %6199 = vmatprep.mubr.msk.f32.mxu1 %vm482_vm0, %v8147_v39  ;;  %v8600_v39 = vpop.permute.xlu1 %2726 }
 0x46f   : > { %9511 = vst [vmem:[#allocation59_spill] sm:$0xff] %v8600_v39 }
 0x471   : > { %6200 = vmatmul.mubr.msk.f32.gmra.mrb[134].mxu1 %vm482_vm0, %v8143_v53 }
 0x472   : > { %6202 = vmatprep.mubr.msk.f32.mxu1 %vm482_vm0, %v8156_v0  ;;  %v8602_v0 = vpop.permute.xlu0 %2724 }
 0x473   : > { %9512 = vst [vmem:[#allocation60_spill] sm:$0xff] %v8602_v0 }
 0x475   : > { %6203 = vmatmul.mubr.msk.f32.gmra.mrb[136].mxu1 %vm482_vm0, %v8151_v20 }
 0x476   : > { %6205 = vmatprep.mubr.msk.f32.mxu1 %vm482_vm0, %v8165_v29  ;;  %v8616_v20 = vpop.permute.xlu0 %2728 }
 0x477   : > { %9514 = vst [vmem:[#allocation62_spill] sm:$0xff] %v8616_v20 }
 0x479   : > { %6206 = vmatmul.mubr.msk.f32.gmra.mrb[138].mxu1 %vm482_vm0, %v8163_v35 }
 0x47a   : > { %6208 = vmatprep.mubr.msk.f32.mxu1 %vm482_vm0, %v8173_v22  ;;  %v8611_v22 = vpop.permute.xlu1 %2730  ;;  %v8628_v32 = vpop.permute.xlu0 %2732 }
 0x47b   : > { %v6069_v53 = vpop.f32.mrb[62].mxu1  ;;  %9513 = vst [vmem:[#allocation61_spill] sm:$0xff] %v8611_v22  ;;  %9516 = vst [vmem:[#allocation64_spill] sm:$0xff] %v8628_v32 }
 0x47c   : > { %v3049_v43 = vpop.f32.mrb[63].mxu1  ;;  %3152 = vrot.lane.b32.xlu1 %v6069_v53, %s6878_s14 }
 0x47d   : > { %3150 = vrot.lane.b32.xlu0 %v3049_v43, %s6878_s14  ;;  %6209 = vmatmul.mubr.msk.f32.gmra.mrb[140].mxu1 %vm482_vm0, %v8171_v3 }
 0x47e   : > { %6211 = vmatprep.mubr.msk.f32.mxu1 %vm482_vm0, %v8181_v2  ;;  %v8626_v2 = vpop.permute.xlu1 %2734  ;;  %v8642_v34 = vpop.permute.xlu0 %2736 }
 0x47f   : > { %v6080_v29 = vpop.f32.mrb[64].mxu1  ;;  %9515 = vst [vmem:[#allocation63_spill] sm:$0xff] %v8626_v2  ;;  %9518 = vst [vmem:[#allocation66_spill] sm:$0xff] %v8642_v34 }
 0x480   : > { %v3293_v35 = vpop.f32.mrb[65].mxu1  ;;  %3486 = vrot.lane.b32.xlu1 %v6080_v29, %s6878_s14 }
 0x481   : > { %3484 = vrot.lane.b32.xlu0 %v3293_v35, %s6878_s14  ;;  %6212 = vmatmul.mubr.msk.f32.gmra.mrb[142].mxu1 %vm482_vm0, %v8179_v51 }
 0x482   : > { %6214 = vmatprep.mubr.msk.f32.mxu1 %vm482_vm0, %v8189_v59  ;;  %v8654_v5 = vpop.permute.xlu0 %2740 }
 0x483   : > { %v6083_v3 = vpop.f32.mrb[66].mxu1  ;;  %9520 = vst [vmem:[#allocation68_spill] sm:$0xff] %v8654_v5 }
 0x484   : > { %v3303_v55 = vpop.f32.mrb[67].mxu1  ;;  %3490 = vrot.lane.b32.xlu1 %v6083_v3, %s6878_s14 }
 0x485   : > { %3488 = vrot.lane.b32.xlu0 %v3303_v55, %s6878_s14  ;;  %6215 = vmatmul.mubr.msk.f32.gmra.mrb[144].mxu1 %vm482_vm0, %v8187_v13 }
 0x486   : > { %6217 = vmatprep.mubr.msk.f32.mxu1 %vm482_vm0, %v8197_v10  ;;  %v8637_v10 = vpop.permute.xlu1 %2738  ;;  %v8668_v43 = vpop.permute.xlu0 %2744 }
 0x487   : > { %v6086_v51 = vpop.f32.mrb[68].mxu1  ;;  %9517 = vst [vmem:[#allocation65_spill] sm:$0xff] %v8637_v10  ;;  %9522 = vst [vmem:[#allocation70_spill] sm:$0xff] %v8668_v43 }
 0x488   : > { %v3313_v54 = vpop.f32.mrb[69].mxu1  ;;  %3494 = vrot.lane.b32.xlu1 %v6086_v51, %s6878_s14 }
 0x489   : > { %3492 = vrot.lane.b32.xlu0 %v3313_v54, %s6878_s14  ;;  %6218 = vmatmul.mubr.msk.f32.gmra.mrb[146].mxu1 %vm482_vm0, %v8195_v16 }
 0x48a   : > { %6220 = vmatprep.mubr.msk.f32.mxu1 %vm482_vm0, %v8205_v57  ;;  %v8652_v57 = vpop.permute.xlu1 %2742  ;;  %v8677_v3 = vpop.permute.xlu0 %2748 }
 0x48b   : > { %v6089_v59 = vpop.f32.mrb[70].mxu1  ;;  %9519 = vst [vmem:[#allocation67_spill] sm:$0xff] %v8652_v57  ;;  %9524 = vst [vmem:[#allocation72_spill] sm:$0xff] %v8677_v3 }
 0x48c   : > { %v3323_v13 = vpop.f32.mrb[71].mxu1  ;;  %3498 = vrot.lane.b32.xlu1 %v6089_v59, %s6878_s14 }
 0x48d   : > { %3496 = vrot.lane.b32.xlu0 %v3323_v13, %s6878_s14  ;;  %6221 = vmatmul.mubr.msk.f32.gmra.mrb[148].mxu1 %vm482_vm0, %v8203_v46 }
 0x48e   : > { %6223 = vmatprep.mubr.msk.f32.mxu1 %vm482_vm0, %v8213_v26  ;;  %v8686_v59 = vpop.permute.xlu0 %2752 }
 0x48f   : > { %v6092_v16 = vpop.f32.mrb[72].mxu1  ;;  %9526 = vst [vmem:[#allocation74_spill] sm:$0xff] %v8686_v59 }
 0x490   : > { %v3333_v38 = vpop.f32.mrb[73].mxu1  ;;  %3502 = vrot.lane.b32.xlu1 %v6092_v16, %s6878_s14 }
 0x491   : > { %3500 = vrot.lane.b32.xlu0 %v3333_v38, %s6878_s14  ;;  %6224 = vmatmul.mubr.msk.f32.gmra.mrb[150].mxu1 %vm482_vm0, %v8211_v14 }
 0x492   : > { %6226 = vmatprep.mubr.msk.f32.mxu1 %vm482_vm0, %v8314_v4  ;;  %v8663_v4 = vpop.permute.xlu1 %2746 }
 0x493   : > { %v6095_v46 = vpop.f32.mrb[74].mxu1  ;;  %9521 = vst [vmem:[#allocation69_spill] sm:$0xff] %v8663_v4 }
 0x494   : > { %v3343_v53 = vpop.f32.mrb[75].mxu1  ;;  %3506 = vrot.lane.b32.xlu1 %v6095_v46, %s6878_s14 }
 0x495   : > { %3504 = vrot.lane.b32.xlu0 %v3343_v53, %s6878_s14  ;;  %6227 = vmatmul.mubr.msk.f32.gmra.mrb[152].mxu1 %vm482_vm0, %v8312_v37 }
 0x496   : > { %6229 = vmatprep.mubr.msk.f32.mxu1 %vm482_vm0, %v8452_v19  ;;  %v8675_v19 = vpop.permute.xlu1 %2750 }
 0x497   : > { %v6098_v14 = vpop.f32.mrb[76].mxu1  ;;  %9523 = vst [vmem:[#allocation71_spill] sm:$0xff] %v8675_v19 }
 0x498   : > { %v3353_v26 = vpop.f32.mrb[77].mxu1  ;;  %3510 = vrot.lane.b32.xlu1 %v6098_v14, %s6878_s14 }
 0x499   : > { %3508 = vrot.lane.b32.xlu0 %v3353_v26, %s6878_s14  ;;  %6230 = vmatmul.mubr.msk.f32.gmra.mrb[154].mxu1 %vm482_vm0, %v8454_v48 }
 0x49a   : > { %6232 = vmatprep.mubr.f32.mxu1 %v9505_v12  ;;  %v8683_v54 = vpop.permute.xlu1 %2754 }
 0x49b   : > { %v6101_v29 = vpop.f32.mrb[78].mxu1  ;;  %9525 = vst [vmem:[#allocation73_spill] sm:$0xff] %v8683_v54 }
 0x49c   : > { %v3363_v37 = vpop.f32.mrb[79].mxu1  ;;  %3514 = vrot.lane.b32.xlu1 %v6101_v29, %s6878_s14 }
 0x49d   : > { %3512 = vrot.lane.b32.xlu0 %v3363_v37, %s6878_s14  ;;  %6233 = vmatmul.mubr.f32.gmra.mrb[156].mxu1 %v9505_v12 }
 0x49e   : > { %6235 = vmatprep.mubr.f32.mxu1 %v9505_v12  ;;  %v8690_v38 = vpop.permute.xlu1 %2758 }
 0x49f   : > { %v6104_v35 = vpop.f32.mrb[80].mxu1  ;;  %9527 = vst [vmem:[#allocation75_spill] sm:$0xff] %v8690_v38 }
 0x4a0   : > { %v3373_v48 = vpop.f32.mrb[81].mxu1  ;;  %3518 = vrot.lane.b32.xlu1 %v6104_v35, %s6878_s14 }
 0x4a1   : > { %3516 = vrot.lane.b32.xlu0 %v3373_v48, %s6878_s14  ;;  %6236 = vmatmul.mubr.f32.gmra.mrb[158].mxu1 %v9505_v12  ;;  %v8692_v12 = vpop.permute.xlu0 %2756 }
 0x4a2   : > { %9528 = vst [vmem:[#allocation76_spill] sm:$0xff] %v8692_v12  ;;  %v8697_v29 = vpop.permute.xlu1 %3092 }
 0x4a3   : > { %v6107_v55 = vpop.f32.mrb[82].mxu1 }
 0x4a4   : > { %v3383_v51 = vpop.f32.mrb[83].mxu1  ;;  %3522 = vrot.lane.b32.xlu1 %v6107_v55, %s6878_s14 }
 0x4a5   : > { %3520 = vrot.lane.b32.xlu0 %v3383_v51, %s6878_s14  ;;  %v8700_v37 = vpop.permute.xlu0 %3090 }
 0x4a6   : > { %v8704_v55 = vpop.permute.xlu1 %3096 }
 0x4a7   : > { %v6110_v13 = vpop.f32.mrb[84].mxu1 }
 0x4a8   : > { %v3393_v16 = vpop.f32.mrb[85].mxu1  ;;  %3526 = vrot.lane.b32.xlu1 %v6110_v13, %s6878_s14 }
 0x4a9   : > { %3524 = vrot.lane.b32.xlu0 %v3393_v16, %s6878_s14  ;;  %v8706_v13 = vpop.permute.xlu0 %3094 }
 0x4ab   : > { %v6113_v46 = vpop.f32.mrb[86].mxu1 }
 0x4ac   : > { %v3403_v53 = vpop.f32.mrb[87].mxu1  ;;  %3530 = vrot.lane.b32.xlu1 %v6113_v46, %s6878_s14  ;;  %v8710_v46 = vpop.permute.xlu1 %3100 }
 0x4ad   : > { %3528 = vrot.lane.b32.xlu0 %v3403_v53, %s6878_s14  ;;  %v8712_v53 = vpop.permute.xlu0 %3098 }
 0x4af   : > { %v6116_v14 = vpop.f32.mrb[88].mxu1 }
 0x4b0   : > { %v3413_v26 = vpop.f32.mrb[89].mxu1  ;;  %3534 = vrot.lane.b32.xlu1 %v6116_v14, %s6878_s14  ;;  %v8714_v14 = vpop.permute.xlu1 %3104 }
 0x4b1   : > { %3532 = vrot.lane.b32.xlu0 %v3413_v26, %s6878_s14  ;;  %v8716_v26 = vpop.permute.xlu0 %3102 }
 0x4b3   : > { %v6119_v35 = vpop.f32.mrb[90].mxu1 }
 0x4b4   : > { %v3423_v48 = vpop.f32.mrb[91].mxu1  ;;  %3538 = vrot.lane.b32.xlu1 %v6119_v35, %s6878_s14  ;;  %v8718_v35 = vpop.permute.xlu1 %3108 }
 0x4b5   : > { %3536 = vrot.lane.b32.xlu0 %v3423_v48, %s6878_s14  ;;  %v8720_v48 = vpop.permute.xlu0 %3106 }
 0x4b7   : > { %v6122_v51 = vpop.f32.mrb[92].mxu1 }
 0x4b8   : > { %v3433_v16 = vpop.f32.mrb[93].mxu1  ;;  %3542 = vrot.lane.b32.xlu1 %v6122_v51, %s6878_s14  ;;  %v8722_v42 = vpop.permute.xlu1 %3112 }
 0x4b9   : > { %3540 = vrot.lane.b32.xlu0 %v3433_v16, %s6878_s14  ;;  %v8724_v62 = vpop.permute.xlu0 %3110 }
 0x4ba   : > { %9529 = vst [vmem:[#allocation77_spill] sm:$0xff] %v8724_v62 }
 0x4bc   : > { %v8726_v12 = vpop.permute.xlu1 %3116 }
 0x4bd   : > { %9530 = vst [vmem:[#allocation78_spill] sm:$0xff] %v8726_v12  ;;  %v8728_v51 = vpop.permute.xlu0 %3114 }
 0x4be   : > { %9531 = vst [vmem:[#allocation79_spill] sm:$0xff] %v8728_v51 }
 0x4c0   : > { %v8730_v16 = vpop.permute.xlu1 %3120 }
 0x4c1   : > { %9532 = vst [vmem:[#allocation80_spill] sm:$0xff] %v8730_v16  ;;  %v8732_v38 = vpop.permute.xlu0 %3118 }
 0x4c2   : > { %9533 = vst [vmem:[#allocation81_spill] sm:$0xff] %v8732_v38 }
 0x4c4   : > { %v8734_v59 = vpop.permute.xlu1 %3124 }
 0x4c5   : > { %9534 = vst [vmem:[#allocation82_spill] sm:$0xff] %v8734_v59  ;;  %v8736_v54 = vpop.permute.xlu0 %3122 }
 0x4c6   : > { %9535 = vst [vmem:[#allocation83_spill] sm:$0xff] %v8736_v54 }
 0x4c8   : > { %v8738_v3 = vpop.permute.xlu1 %3128 }
 0x4c9   : > { %9536 = vst [vmem:[#allocation84_spill] sm:$0xff] %v8738_v3  ;;  %v8740_v19 = vpop.permute.xlu0 %3126 }
 0x4ca   : > { %9537 = vst [vmem:[#allocation85_spill] sm:$0xff] %v8740_v19 }
 0x4cc   : > { %v8742_v43 = vpop.permute.xlu1 %3132 }
 0x4cd   : > { %9538 = vst [vmem:[#allocation86_spill] sm:$0xff] %v8742_v43  ;;  %v8744_v4 = vpop.permute.xlu0 %3130 }
 0x4ce   : > { %9539 = vst [vmem:[#allocation87_spill] sm:$0xff] %v8744_v4 }
 0x4d0   : > { %v8746_v5 = vpop.permute.xlu1 %3136 }
 0x4d1   : > { %9540 = vst [vmem:[#allocation88_spill] sm:$0xff] %v8746_v5  ;;  %v8748_v57 = vpop.permute.xlu0 %3134 }
 0x4d2   : > { %9541 = vst [vmem:[#allocation89_spill] sm:$0xff] %v8748_v57 }
 0x4d4   : > { %v8752_v2 = vpop.permute.xlu1 %3140 }
 0x4d5   : > { %9542 = vst [vmem:[#allocation90_spill] sm:$0xff] %v8752_v2  ;;  %v8755_v3 = vpop.permute.xlu0 %3138 }
 0x4d6   : > { %9543 = vst [vmem:[#allocation91_spill] sm:$0xff] %v8755_v3 }
 0x4d9   : > { %v8762_v5 = vpop.permute.xlu0 %3142 }
 0x4da   : > { %9545 = vst [vmem:[#allocation93_spill] sm:$0xff] %v8762_v5 }
 0x4f4   : > { %v6125_v34 = vpop.f32.mrb[94].mxu1 }
 0x4f5   : > { %3546 = vrot.lane.b32.xlu1 %v6125_v34, %s6878_s14  ;;  %v3443_v10 = vpop.f32.mrb[95].mxu1  ;;  %v8760_v34 = vpop.permute.xlu1 %3144 }
 0x4f6   : > { %3544 = vrot.lane.b32.xlu0 %v3443_v10, %s6878_s14  ;;  %9544 = vst [vmem:[#allocation92_spill] sm:$0xff] %v8760_v34 }
 0x4f8   : > { %v6136_v32 = vpop.f32.mrb[96].mxu1 }
 0x4f9   : > { %3876 = vrot.lane.b32.xlu1 %v6136_v32, %s6878_s14  ;;  %v3683_v19 = vpop.f32.mrb[97].mxu1  ;;  %v8766_v3 = vpop.permute.xlu1 %3148 }
 0x4fa   : > { %3874 = vrot.lane.b32.xlu0 %v3683_v19, %s6878_s14  ;;  %9546 = vst [vmem:[#allocation94_spill] sm:$0xff] %v8766_v3 }
 0x4fc   : > { %v6139_v4 = vpop.f32.mrb[98].mxu1 }
 0x4fd   : > { %3880 = vrot.lane.b32.xlu1 %v6139_v4, %s6878_s14  ;;  %v3693_v57 = vpop.f32.mrb[99].mxu1  ;;  %v8769_v4 = vpop.permute.xlu0 %3146 }
 0x4fe   : > { %3878 = vrot.lane.b32.xlu0 %v3693_v57, %s6878_s14  ;;  %9547 = vst [vmem:[#allocation95_spill] sm:$0xff] %v8769_v4  ;;  %v8772_v34 = vpop.permute.xlu1 %3152 }
 0x4ff   : > { %9548 = vst [vmem:[#allocation96_spill] sm:$0xff] %v8772_v34 }
 0x500   : > { %v6142_v10 = vpop.f32.mrb[100].mxu1 }
 0x501   : > { %3884 = vrot.lane.b32.xlu1 %v6142_v10, %s6878_s14  ;;  %v3703_v2 = vpop.f32.mrb[101].mxu1  ;;  %v8775_v10 = vpop.permute.xlu0 %3150 }
 0x502   : > { %3882 = vrot.lane.b32.xlu0 %v3703_v2, %s6878_s14  ;;  %9549 = vst [vmem:[#allocation97_spill] sm:$0xff] %v8775_v10 }
 0x504   : > { %v6145_v32 = vpop.f32.mrb[102].mxu1 }
 0x505   : > { %3888 = vrot.lane.b32.xlu1 %v6145_v32, %s6878_s14  ;;  %v3713_v19 = vpop.f32.mrb[103].mxu1  ;;  %v8780_v32 = vpop.permute.xlu1 %3486 }
 0x506   : > { %3886 = vrot.lane.b32.xlu0 %v3713_v19, %s6878_s14  ;;  %v8782_v4 = vpop.permute.xlu0 %3484 }
 0x508   : > { %v6148_v57 = vpop.f32.mrb[104].mxu1 }
 0x509   : > { %3892 = vrot.lane.b32.xlu1 %v6148_v57, %s6878_s14  ;;  %v3723_v5 = vpop.f32.mrb[105].mxu1  ;;  %v8786_v10 = vpop.permute.xlu1 %3490 }
 0x50a   : > { %3890 = vrot.lane.b32.xlu0 %v3723_v5, %s6878_s14 }
 0x50c   : > { %v6151_v2 = vpop.f32.mrb[106].mxu1 }
 0x50d   : > { %3896 = vrot.lane.b32.xlu1 %v6151_v2, %s6878_s14  ;;  %v3733_v3 = vpop.f32.mrb[107].mxu1  ;;  %v8789_v2 = vpop.permute.xlu0 %3488 }
 0x50e   : > { %3894 = vrot.lane.b32.xlu0 %v3733_v3, %s6878_s14 }
 0x510   : > { %v6154_v19 = vpop.f32.mrb[108].mxu1 }
 0x511   : > { %3900 = vrot.lane.b32.xlu1 %v6154_v19, %s6878_s14  ;;  %v3743_v34 = vpop.f32.mrb[109].mxu1  ;;  %v8794_v19 = vpop.permute.xlu1 %3494 }
 0x512   : > { %3898 = vrot.lane.b32.xlu0 %v3743_v34, %s6878_s14  ;;  %v8796_v54 = vpop.permute.xlu0 %3492 }
 0x514   : > { %v6157_v57 = vpop.f32.mrb[110].mxu1 }
 0x515   : > { %3904 = vrot.lane.b32.xlu1 %v6157_v57, %s6878_s14  ;;  %v3753_v5 = vpop.f32.mrb[111].mxu1  ;;  %v8800_v20 = vpop.permute.xlu1 %3498 }
 0x516   : > { %3902 = vrot.lane.b32.xlu0 %v3753_v5, %s6878_s14 }
 0x518   : > { %v6160_v3 = vpop.f32.mrb[112].mxu1 }
 0x519   : > { %3908 = vrot.lane.b32.xlu1 %v6160_v3, %s6878_s14  ;;  %v3763_v43 = vpop.f32.mrb[113].mxu1  ;;  %v8803_v3 = vpop.permute.xlu0 %3496 }
 0x51a   : > { %3906 = vrot.lane.b32.xlu0 %v3763_v43, %s6878_s14 }
 0x51c   : > { %v6163_v34 = vpop.f32.mrb[114].mxu1 }
 0x51d   : > { %3912 = vrot.lane.b32.xlu1 %v6163_v34, %s6878_s14  ;;  %v3773_v59 = vpop.f32.mrb[115].mxu1  ;;  %v8808_v34 = vpop.permute.xlu1 %3502 }
 0x51e   : > { %3910 = vrot.lane.b32.xlu0 %v3773_v59, %s6878_s14  ;;  %v8810_v22 = vpop.permute.xlu0 %3500 }
 0x520   : > { %v6166_v57 = vpop.f32.mrb[116].mxu1 }
 0x521   : > { %3916 = vrot.lane.b32.xlu1 %v6166_v57, %s6878_s14  ;;  %v3783_v5 = vpop.f32.mrb[117].mxu1  ;;  %v8814_v38 = vpop.permute.xlu1 %3506 }
 0x522   : > { %3914 = vrot.lane.b32.xlu0 %v3783_v5, %s6878_s14  ;;  %9550 = vst [vmem:[#allocation98_spill] sm:$0xff] %v8814_v38 }
 0x524   : > { %v6169_v43 = vpop.f32.mrb[118].mxu1 }
 0x525   : > { %3920 = vrot.lane.b32.xlu1 %v6169_v43, %s6878_s14  ;;  %v3793_v28 = vpop.f32.mrb[119].mxu1  ;;  %v8817_v43 = vpop.permute.xlu0 %3504 }
 0x526   : > { %3918 = vrot.lane.b32.xlu0 %v3793_v28, %s6878_s14  ;;  %9551 = vst [vmem:[#allocation99_spill] sm:$0xff] %v8817_v43 }
 0x528   : > { %v6172_v59 = vpop.f32.mrb[120].mxu1 }
 0x529   : > { %3924 = vrot.lane.b32.xlu1 %v6172_v59, %s6878_s14  ;;  %v3803_v18 = vpop.f32.mrb[121].mxu1  ;;  %v8822_v59 = vpop.permute.xlu1 %3510 }
 0x52a   : > { %3922 = vrot.lane.b32.xlu0 %v3803_v18, %s6878_s14  ;;  %9552 = vst [vmem:[#allocation100_spill] sm:$0xff] %v8822_v59  ;;  %v8824_v0 = vpop.permute.xlu0 %3508 }
 0x52b   : > { %9553 = vst [vmem:[#allocation101_spill] sm:$0xff] %v8824_v0 }
 0x52c   : > { %v6175_v57 = vpop.f32.mrb[122].mxu1 }
 0x52d   : > { %3928 = vrot.lane.b32.xlu1 %v6175_v57, %s6878_s14  ;;  %v3813_v5 = vpop.f32.mrb[123].mxu1  ;;  %v8828_v39 = vpop.permute.xlu1 %3514 }
 0x52e   : > { %3926 = vrot.lane.b32.xlu0 %v3813_v5, %s6878_s14  ;;  %9554 = vst [vmem:[#allocation102_spill] sm:$0xff] %v8828_v39 }
 0x530   : > { %v6178_v28 = vpop.f32.mrb[124].mxu1 }
 0x531   : > { %3932 = vrot.lane.b32.xlu1 %v6178_v28, %s6878_s14  ;;  %v3823_v16 = vpop.f32.mrb[125].mxu1  ;;  %v8831_v28 = vpop.permute.xlu0 %3512 }
 0x532   : > { %3930 = vrot.lane.b32.xlu0 %v3823_v16, %s6878_s14  ;;  %9555 = vst [vmem:[#allocation103_spill] sm:$0xff] %v8831_v28 }
 0x534   : > { %v6181_v18 = vpop.f32.mrb[126].mxu1 }
 0x535   : > { %3936 = vrot.lane.b32.xlu1 %v6181_v18, %s6878_s14  ;;  %v3833_v56 = vpop.f32.mrb[127].mxu1  ;;  %v8836_v18 = vpop.permute.xlu1 %3518 }
 0x536   : > { %3934 = vrot.lane.b32.xlu0 %v3833_v56, %s6878_s14  ;;  %9556 = vst [vmem:[#allocation104_spill] sm:$0xff] %v8836_v18  ;;  %v8838_v59 = vpop.permute.xlu0 %3516 }
 0x537   : > { %9557 = vst [vmem:[#allocation105_spill] sm:$0xff] %v8838_v59 }
 0x538   : > { %v6192_v57 = vpop.f32.mrb[128].mxu1 }
 0x539   : > { %4266 = vrot.lane.b32.xlu1 %v6192_v57, %s6878_s14  ;;  %v4073_v5 = vpop.f32.mrb[129].mxu1  ;;  %v8842_v28 = vpop.permute.xlu1 %3522 }
 0x53a   : > { %4264 = vrot.lane.b32.xlu0 %v4073_v5, %s6878_s14  ;;  %9558 = vst [vmem:[#allocation106_spill] sm:$0xff] %v8842_v28 }
 0x53c   : > { %v6195_v16 = vpop.f32.mrb[130].mxu1 }
 0x53d   : > { %4270 = vrot.lane.b32.xlu1 %v6195_v16, %s6878_s14  ;;  %v4083_v0 = vpop.f32.mrb[131].mxu1  ;;  %v8845_v16 = vpop.permute.xlu0 %3520 }
 0x53e   : > { %4268 = vrot.lane.b32.xlu0 %v4083_v0, %s6878_s14  ;;  %9559 = vst [vmem:[#allocation107_spill] sm:$0xff] %v8845_v16 }
 0x540   : > { %v6198_v56 = vpop.f32.mrb[132].mxu1 }
 0x541   : > { %4274 = vrot.lane.b32.xlu1 %v6198_v56, %s6878_s14  ;;  %v4093_v39 = vpop.f32.mrb[133].mxu1  ;;  %v8850_v56 = vpop.permute.xlu1 %3526 }
 0x542   : > { %4272 = vrot.lane.b32.xlu0 %v4093_v39, %s6878_s14  ;;  %9560 = vst [vmem:[#allocation108_spill] sm:$0xff] %v8850_v56  ;;  %v8852_v18 = vpop.permute.xlu0 %3524 }
 0x543   : > { %9561 = vst [vmem:[#allocation109_spill] sm:$0xff] %v8852_v18 }
 0x544   : > { %v6201_v57 = vpop.f32.mrb[134].mxu1 }
 0x545   : > { %4278 = vrot.lane.b32.xlu1 %v6201_v57, %s6878_s14  ;;  %v4103_v5 = vpop.f32.mrb[135].mxu1  ;;  %v8856_v16 = vpop.permute.xlu1 %3530 }
 0x546   : > { %4276 = vrot.lane.b32.xlu0 %v4103_v5, %s6878_s14  ;;  %9562 = vst [vmem:[#allocation110_spill] sm:$0xff] %v8856_v16 }
 0x548   : > { %v6204_v0 = vpop.f32.mrb[136].mxu1 }
 0x549   : > { %4282 = vrot.lane.b32.xlu1 %v6204_v0, %s6878_s14  ;;  %v4113_v59 = vpop.f32.mrb[137].mxu1  ;;  %v8859_v0 = vpop.permute.xlu0 %3528 }
 0x54a   : > { %4280 = vrot.lane.b32.xlu0 %v4113_v59, %s6878_s14  ;;  %9563 = vst [vmem:[#allocation111_spill] sm:$0xff] %v8859_v0 }
 0x54c   : > { %v6207_v39 = vpop.f32.mrb[138].mxu1 }
 0x54d   : > { %4286 = vrot.lane.b32.xlu1 %v6207_v39, %s6878_s14  ;;  %v4123_v28 = vpop.f32.mrb[139].mxu1  ;;  %v8864_v39 = vpop.permute.xlu1 %3534 }
 0x54e   : > { %4284 = vrot.lane.b32.xlu0 %v4123_v28, %s6878_s14  ;;  %9564 = vst [vmem:[#allocation112_spill] sm:$0xff] %v8864_v39  ;;  %v8866_v56 = vpop.permute.xlu0 %3532 }
 0x54f   : > { %9565 = vst [vmem:[#allocation113_spill] sm:$0xff] %v8866_v56 }
 0x550   : > { %v6210_v57 = vpop.f32.mrb[140].mxu1 }
 0x551   : > { %4290 = vrot.lane.b32.xlu1 %v6210_v57, %s6878_s14  ;;  %v4133_v5 = vpop.f32.mrb[141].mxu1  ;;  %v8870_v0 = vpop.permute.xlu1 %3538 }
 0x552   : > { %4288 = vrot.lane.b32.xlu0 %v4133_v5, %s6878_s14  ;;  %9566 = vst [vmem:[#allocation114_spill] sm:$0xff] %v8870_v0 }
 0x554   : > { %v6213_v59 = vpop.f32.mrb[142].mxu1 }
 0x555   : > { %4294 = vrot.lane.b32.xlu1 %v6213_v59, %s6878_s14  ;;  %v4143_v18 = vpop.f32.mrb[143].mxu1  ;;  %v8873_v59 = vpop.permute.xlu0 %3536 }
 0x556   : > { %4292 = vrot.lane.b32.xlu0 %v4143_v18, %s6878_s14  ;;  %9567 = vst [vmem:[#allocation115_spill] sm:$0xff] %v8873_v59 }
 0x558   : > { %v6216_v28 = vpop.f32.mrb[144].mxu1 }
 0x559   : > { %4298 = vrot.lane.b32.xlu1 %v6216_v28, %s6878_s14  ;;  %v4153_v16 = vpop.f32.mrb[145].mxu1  ;;  %v8878_v28 = vpop.permute.xlu1 %3542 }
 0x55a   : > { %4296 = vrot.lane.b32.xlu0 %v4153_v16, %s6878_s14  ;;  %9568 = vst [vmem:[#allocation116_spill] sm:$0xff] %v8878_v28  ;;  %v8880_v39 = vpop.permute.xlu0 %3540 }
 0x55b   : > { %9569 = vst [vmem:[#allocation117_spill] sm:$0xff] %v8880_v39 }
 0x55c   : > { %v6219_v57 = vpop.f32.mrb[146].mxu1 }
 0x55d   : > { %4302 = vrot.lane.b32.xlu1 %v6219_v57, %s6878_s14  ;;  %v4163_v5 = vpop.f32.mrb[147].mxu1 }
 0x55e   : > { %4300 = vrot.lane.b32.xlu0 %v4163_v5, %s6878_s14 }
 0x560   : > { %v6222_v18 = vpop.f32.mrb[148].mxu1 }
 0x561   : > { %4306 = vrot.lane.b32.xlu1 %v6222_v18, %s6878_s14  ;;  %v4173_v56 = vpop.f32.mrb[149].mxu1 }
 0x562   : > { %4304 = vrot.lane.b32.xlu0 %v4173_v56, %s6878_s14 }
 0x564   : > { %v6225_v16 = vpop.f32.mrb[150].mxu1 }
 0x565   : > { %4310 = vrot.lane.b32.xlu1 %v6225_v16, %s6878_s14  ;;  %v4183_v0 = vpop.f32.mrb[151].mxu1 }
 0x566   : > { %4308 = vrot.lane.b32.xlu0 %v4183_v0, %s6878_s14 }
 0x567   : > { %v8884_v57 = vpop.permute.xlu1 %3546 }
 0x568   : > { %9570 = vst [vmem:[#allocation118_spill] sm:$0xff] %v8884_v57  ;;  %v6228_v59 = vpop.f32.mrb[152].mxu1  ;;  %v8886_v5 = vpop.permute.xlu0 %3544 }
 0x569   : > { %9571 = vst [vmem:[#allocation119_spill] sm:$0xff] %v8886_v5  ;;  %4314 = vrot.lane.b32.xlu1 %v6228_v59, %s6878_s14  ;;  %v4193_v18 = vpop.f32.mrb[153].mxu1 }
 0x56a   : > { %4312 = vrot.lane.b32.xlu0 %v4193_v18, %s6878_s14 }
 0x56b   : > { %v3877_v56 = vpop.permute.xlu1 %3876 }
 0x56c   : > { %v6231_v28 = vpop.f32.mrb[154].mxu1  ;;  %v3875_v23 = vpop.permute.xlu0 %3874 }
 0x56d   : > { %4318 = vrot.lane.b32.xlu1 %v6231_v28, %s6878_s14  ;;  %v4203_v39 = vpop.f32.mrb[155].mxu1 }
 0x56e   : > { %4316 = vrot.lane.b32.xlu0 %v4203_v39, %s6878_s14 }
 0x56f   : > { %v3881_v16 = vpop.permute.xlu1 %3880 }
 0x570   : > { %v6234_v0 = vpop.f32.mrb[156].mxu1  ;;  %v3879_v51 = vpop.permute.xlu0 %3878 }
 0x571   : > { %4322 = vrot.lane.b32.xlu1 %v6234_v0, %s6878_s14  ;;  %v4213_v57 = vpop.f32.mrb[157].mxu1 }
 0x572   : > { %4320 = vrot.lane.b32.xlu0 %v4213_v57, %s6878_s14 }
 0x573   : > { %v8894_v59 = vpop.permute.xlu1 %3884 }
 0x574   : > { %v6237_v5 = vpop.f32.mrb[158].mxu1  ;;  %v8896_v18 = vpop.permute.xlu0 %3882 }
 0x575   : > { %4326 = vrot.lane.b32.xlu1 %v6237_v5, %s6878_s14  ;;  %v4223_v12 = vpop.f32.mrb[159].mxu1 }
 0x576   : > { %4324 = vrot.lane.b32.xlu0 %v4223_v12, %s6878_s14 }
 0x577   : > { %v8900_v28 = vpop.permute.xlu1 %3888 }
 0x578   : > { %v8902_v39 = vpop.permute.xlu0 %3886 }
 0x57b   : > { %v8904_v43 = vpop.permute.xlu1 %3892 }
 0x57c   : > { %9572 = vst [vmem:[#allocation120_spill] sm:$0xff] %v8904_v43  ;;  %v8906_v0 = vpop.permute.xlu0 %3890 }
 0x57d   : > { %9573 = vst [vmem:[#allocation121_spill] sm:$0xff] %v8906_v0 }
 0x57f   : > { %v8908_v7 = vpop.permute.xlu1 %3896 }
 0x580   : > { %9574 = vst [vmem:[#allocation122_spill] sm:$0xff] %v8908_v7  ;;  %v8910_v57 = vpop.permute.xlu0 %3894 }
 0x581   : > { %9575 = vst [vmem:[#allocation123_spill] sm:$0xff] %v8910_v57 }
 0x583   : > { %v8912_v49 = vpop.permute.xlu1 %3900 }
 0x584   : > { %9576 = vst [vmem:[#allocation124_spill] sm:$0xff] %v8912_v49  ;;  %v8914_v38 = vpop.permute.xlu0 %3898 }
 0x585   : > { %9577 = vst [vmem:[#allocation125_spill] sm:$0xff] %v8914_v38 }
 0x587   : > { %v8916_v5 = vpop.permute.xlu1 %3904 }
 0x588   : > { %9578 = vst [vmem:[#allocation126_spill] sm:$0xff] %v8916_v5  ;;  %v8918_v31 = vpop.permute.xlu0 %3902 }
 0x589   : > { %9579 = vst [vmem:[#allocation127_spill] sm:$0xff] %v8918_v31 }
 0x58b   : > { %v8920_v12 = vpop.permute.xlu1 %3908 }
 0x58c   : > { %9580 = vst [vmem:[#allocation128_spill] sm:$0xff] %v8920_v12  ;;  %v8922_v45 = vpop.permute.xlu0 %3906 }
 0x58d   : > { %9581 = vst [vmem:[#allocation129_spill] sm:$0xff] %v8922_v45 }
 0x58f   : > { %v8924_v62 = vpop.permute.xlu1 %3912 }
 0x590   : > { %v8926_v43 = vpop.permute.xlu0 %3910 }
 0x591   : > { %9582 = vst [vmem:[#allocation130_spill] sm:$0xff] %v8926_v43  ;;  %v2793_v43 = vadd.f32 %v8534_v33, %v7796_v58  ;;  %v2794_v58 = vadd.f32 %v8546_v50, %v7809_v15 }
 0x593   : > { %v8928_v0 = vpop.permute.xlu1 %3916 }
 0x594   : > { %9583 = vst [vmem:[#allocation131_spill] sm:$0xff] %v8928_v0  ;;  %v8930_v7 = vpop.permute.xlu0 %3914 }
 0x595   : > { %9584 = vst [vmem:[#allocation132_spill] sm:$0xff] %v8930_v7 }
 0x597   : > { %v8932_v57 = vpop.permute.xlu1 %3920 }
 0x598   : > { %9585 = vst [vmem:[#allocation133_spill] sm:$0xff] %v8932_v57  ;;  %v8934_v49 = vpop.permute.xlu0 %3918  ;;  %v2792_v57 = vadd.f32 %v8536_v61, %v7799_v63 }
 0x599   : > { %9586 = vst [vmem:[#allocation134_spill] sm:$0xff] %v8934_v49  ;;  %v3187_v49 = vadd.f32 %v8697_v29, %v2793_v43  ;;  %v3188_v29 = vadd.f32 %v8706_v13, %v2794_v58 }
 0x59b   : > { %v8936_v38 = vpop.permute.xlu1 %3924  ;;  %v3582_v15 = vadd.f32 %v8789_v2, %v3188_v29 }
 0x59c   : > { %9587 = vst [vmem:[#allocation135_spill] sm:$0xff] %v8936_v38  ;;  %v8938_v5 = vpop.permute.xlu0 %3922  ;;  %v3186_v38 = vadd.f32 %v8700_v37, %v2792_v57  ;;  %v2797_v57 = vadd.f32 %v8550_v9, %v7816_v25  ;;  %v2799_v25 = vadd.f32 %v8560_v47, %v7828_v60  ;;  %v2801_v47 = vadd.f32 %v8568_v52, %v7838_v17 }
 0x59e   : > { %v3580_v33 = vadd.f32 %v8782_v4, %v3186_v38  ;;  %v3193_v2 = vadd.f32 %v8714_v14, %v2799_v25 }
 0x59f   : > { %v8940_v31 = vpop.permute.xlu1 %3928 }
 0x5a0   : > { %9588 = vst [vmem:[#allocation136_spill] sm:$0xff] %v8940_v31  ;;  %v8942_v12 = vpop.permute.xlu0 %3926  ;;  %v2795_v31 = vadd.f32 %v8542_v41, %v7806_v11  ;;  %v3970_v37 = vadd.f32 %v3875_v23, %v3580_v33 }
 0x5a1   : > { %9589 = vst [vmem:[#allocation137_spill] sm:$0xff] %v8942_v12  ;;  %v3581_v12 = vadd.f32 %v8780_v32, %v3187_v49  ;;  %v2796_v32 = vadd.f32 %v8554_v8, %v7819_v30  ;;  %v2798_v30 = vadd.f32 %v8562_v27, %v7831_v1 }
 0x5a2   : > { %v3189_v63 = vadd.f32 %v8704_v55, %v2795_v31  ;;  %v3191_v31 = vadd.f32 %v8710_v46, %v2797_v57  ;;  %v3972_v55 = vadd.f32 %v3879_v51, %v3582_v15 }
 0x5a3   : > { %v8944_v45 = vpop.permute.xlu1 %3932  ;;  %v3971_v61 = vadd.f32 %v3877_v56, %v3581_v12  ;;  %v3190_v23 = vadd.f32 %v8712_v53, %v2796_v32  ;;  %v3192_v51 = vadd.f32 %v8716_v26, %v2798_v30  ;;  %v9598_v32 = vld [vmem:[#allocation58_spill] sm:$0xff] }
 0x5a4   : > { %9590 = vst [vmem:[#allocation138_spill] sm:$0xff] %v8944_v45  ;;  %v8948_v0 = vpop.permute.xlu0 %3930  ;;  %v3583_v11 = vadd.f32 %v8786_v10, %v3189_v63  ;;  %v3585_v9 = vadd.f32 %v8794_v19, %v3191_v31  ;;  %v3587_v19 = vadd.f32 %v8800_v20, %v3193_v2  ;;  %v2803_v20 = vadd.f32 %v8580_v24, %v7848_v36  ;;  %v9592_v36 = vld [vmem:[#allocation77_spill] sm:$0xff] }
 0x5a5   : > { %v3584_v8 = vadd.f32 %v8796_v54, %v3190_v23  ;;  %v2800_v54 = vadd.f32 %v8572_v6, %v7841_v21  ;;  %v3586_v14 = vadd.f32 %v8803_v3, %v3192_v51  ;;  %v9600_v23 = vld [vmem:[#allocation78_spill] sm:$0xff]  ;;  %v9604_v2 = vld [vmem:[#allocation9_spill] sm:$0xff] }
 0x5a6   : > { %v3973_v38 = vadd.f32 %v3881_v16, %v3583_v11  ;;  %v3975_v53 = vadd.f32 %v8894_v59, %v3585_v9  ;;  %v3195_v59 = vadd.f32 %v8718_v35, %v2801_v47  ;;  %v3977_v26 = vadd.f32 %v8900_v28, %v3587_v19  ;;  %v9602_v9 = vld [vmem:[#allocation79_spill] sm:$0xff] }
 0x5a7   : > { %v8954_v7 = vpop.permute.xlu1 %3936  ;;  %v3974_v56 = vadd.f32 %v8896_v18, %v3584_v8  ;;  %v3194_v18 = vadd.f32 %v8720_v48, %v2800_v54  ;;  %v3976_v12 = vadd.f32 %v8902_v39, %v3586_v14  ;;  %v2802_v35 = vadd.f32 %v8582_v44, %v7851_v40  ;;  %v9591_v39 = vld [vmem:[#allocation120_spill] sm:$0xff]  ;;  %v9594_v40 = vld [vmem:[#allocation5_spill] sm:$0xff] }
 0x5a8   : > { %v8959_v45 = vpop.permute.xlu0 %3934  ;;  %v3589_v21 = vadd.f32 %v8808_v34, %v3195_v59  ;;  %v3197_v48 = vadd.f32 %v8722_v42, %v2803_v20  ;;  %v9593_v34 = vld [vmem:[#allocation121_spill] sm:$0xff]  ;;  %v9608_v54 = vld [vmem:[#allocation60_spill] sm:$0xff] }
 0x5a9   : > { %v3588_v28 = vadd.f32 %v8810_v22, %v3194_v18  ;;  %v3196_v24 = vadd.f32 %v9592_v36, %v2802_v35  ;;  %v9595_v44 = vld [vmem:[#allocation57_spill] sm:$0xff]  ;;  %v9610_v18 = vld [vmem:[#allocation80_spill] sm:$0xff] }
 0x5aa   : > { %v3979_v63 = vadd.f32 %v9591_v39, %v3589_v21  ;;  %v2805_v22 = vadd.f32 %v9595_v44, %v9594_v40  ;;  %v9612_v20 = vld [vmem:[#allocation81_spill] sm:$0xff]  ;;  %v9616_v39 = vld [vmem:[#allocation102_spill] sm:$0xff]  ;;  %v9619_v40 = vld [vmem:[#allocation103_spill] sm:$0xff] }
 0x5ab   : > { %v4267_v43 = vpop.permute.xlu1 %4266 }
 0x5ac   : > { %v4361_v49 = vadd.f32 %v4267_v43, %v3971_v61  ;;  %v4265_v41 = vpop.permute.xlu0 %4264  ;;  %v3978_v61 = vadd.f32 %v9593_v34, %v3588_v28  ;;  %v9596_v43 = vld [vmem:[#allocation98_spill] sm:$0xff]  ;;  %v9614_v28 = vld [vmem:[#allocation13_spill] sm:$0xff] }
 0x5ad   : > { %v4360_v50 = vadd.f32 %v4265_v41, %v3970_v37  ;;  %v3591_v57 = vadd.f32 %v9596_v43, %v3197_v48  ;;  %v9597_v41 = vld [vmem:[#allocation6_spill] sm:$0xff] }
 0x5ae   : > { %6695 = vtanh.f32 %v4361_v49  ;;  %v2804_v15 = vadd.f32 %v9598_v32, %v9597_v41  ;;  %v9620_v43 = vld [vmem:[#allocation82_spill] sm:$0xff]  ;;  %v9623_v32 = vld [vmem:[#allocation127_spill] sm:$0xff] }
 0x5af   : > { %6697 = vtanh.f32 %v4360_v50  ;;  %v4271_v13 = vpop.permute.xlu1 %4270  ;;  %v9599_v50 = vld [vmem:[#allocation99_spill] sm:$0xff] }
 0x5b0   : > { %v4363_v4 = vadd.f32 %v4271_v13, %v3973_v38  ;;  %v4269_v10 = vpop.permute.xlu0 %4268  ;;  %v3590_v31 = vadd.f32 %v9599_v50, %v3196_v24  ;;  %v9601_v13 = vld [vmem:[#allocation122_spill] sm:$0xff] }
 0x5b1   : > { %v4362_v46 = vadd.f32 %v4269_v10, %v3972_v55  ;;  %v3199_v55 = vadd.f32 %v9600_v23, %v2805_v22  ;;  %v3981_v25 = vadd.f32 %v9601_v13, %v3591_v57  ;;  %v9603_v10 = vld [vmem:[#allocation123_spill] sm:$0xff]  ;;  %v9626_v13 = vld [vmem:[#allocation104_spill] sm:$0xff] }
 0x5b2   : > { %6699 = vtanh.f32 %v4363_v4  ;;  %v3198_v4 = vadd.f32 %v9602_v9, %v2804_v15  ;;  %v3980_v30 = vadd.f32 %v9603_v10, %v3590_v31  ;;  %v9625_v23 = vld [vmem:[#allocation63_spill] sm:$0xff] }
 0x5b3   : > { %6701 = vtanh.f32 %v4362_v46  ;;  %v4275_v60 = vpop.permute.xlu1 %4274 }
 0x5b4   : > { %v4365_v1 = vadd.f32 %v4275_v60, %v3975_v53  ;;  %v4273_v27 = vpop.permute.xlu0 %4272  ;;  %v9605_v53 = vld [vmem:[#allocation59_spill] sm:$0xff] }
 0x5b5   : > { %v4364_v16 = vadd.f32 %v4273_v27, %v3974_v56  ;;  %v2807_v51 = vadd.f32 %v9605_v53, %v9604_v2  ;;  %v9606_v56 = vld [vmem:[#allocation100_spill] sm:$0xff]  ;;  %v9607_v27 = vld [vmem:[#allocation10_spill] sm:$0xff]  ;;  %v9629_v2 = vld [vmem:[#allocation105_spill] sm:$0xff] }
 0x5b6   : > { %6703 = vtanh.f32 %v4365_v1  ;;  %v3593_v60 = vadd.f32 %v9606_v56, %v3199_v55  ;;  %v2806_v14 = vadd.f32 %v9608_v54, %v9607_v27  ;;  %v9630_v56 = vld [vmem:[#allocation84_spill] sm:$0xff]  ;;  %v9633_v54 = vld [vmem:[#allocation129_spill] sm:$0xff] }
 0x5b7   : > { %6705 = vtanh.f32 %v4364_v16  ;;  %v4279_v17 = vpop.permute.xlu1 %4278  ;;  %v9609_v16 = vld [vmem:[#allocation101_spill] sm:$0xff] }
 0x5b8   : > { %v6696_v52 = vpop.eup %6695  ;;  %v4367_v6 = vadd.f32 %v4279_v17, %v3977_v26  ;;  %v4277_v3 = vpop.permute.xlu0 %4276  ;;  %v3592_v59 = vadd.f32 %v9609_v16, %v3198_v4  ;;  %v9611_v17 = vld [vmem:[#allocation124_spill] sm:$0xff]  ;;  %v3200_v21 = vadd.f32 %v9612_v20, %v2806_v14 }
 0x5b9   : > { %v6698_v58 = vpop.eup %6697  ;;  %v4366_v33 = vadd.f32 %v4277_v3, %v3976_v12  ;;  %4522 = vrot.lane.b32.xlu1 %v6696_v52, %s6878_s14  ;;  %v3201_v12 = vadd.f32 %v9610_v18, %v2807_v51  ;;  %v3983_v52 = vadd.f32 %v9611_v17, %v3593_v60  ;;  %v9635_v18 = vld [vmem:[#allocation65_spill] sm:$0xff]  ;;  %v9636_v17 = vld [vmem:[#allocation106_spill] sm:$0xff] }
 0x5ba   : > { %6707 = vtanh.f32 %v4367_v6  ;;  %4520 = vrot.lane.b32.xlu0 %v6698_v58, %s6878_s14  ;;  %v9613_v6 = vld [vmem:[#allocation125_spill] sm:$0xff]  ;;  %v3594_v44 = vadd.f32 %v9619_v40, %v3200_v21 }
 0x5bb   : > { %6709 = vtanh.f32 %v4366_v33  ;;  %v4283_v29 = vpop.permute.xlu1 %4282  ;;  %v3982_v3 = vadd.f32 %v9613_v6, %v3592_v59  ;;  %v9615_v33 = vld [vmem:[#allocation61_spill] sm:$0xff] }
 0x5bc   : > { %v6700_v37 = vpop.eup %6699  ;;  %v4369_v11 = vadd.f32 %v4283_v29, %v3979_v63  ;;  %v4281_v49 = vpop.permute.xlu0 %4280  ;;  %v2809_v48 = vadd.f32 %v9615_v33, %v9614_v28  ;;  %v3595_v63 = vadd.f32 %v9616_v39, %v3201_v12  ;;  %v9618_v29 = vld [vmem:[#allocation62_spill] sm:$0xff]  ;;  %v3984_v15 = vadd.f32 %v9623_v32, %v3594_v44  ;;  %v9639_v28 = vld [vmem:[#allocation107_spill] sm:$0xff]  ;;  %v9643_v44 = vld [vmem:[#allocation24_spill] sm:$0xff] }
 0x5bd   : > { %v6702_v42 = vpop.eup %6701  ;;  %v4368_v38 = vadd.f32 %v4281_v49, %v3978_v61  ;;  %4526 = vrot.lane.b32.xlu1 %v6700_v37, %s6878_s14  ;;  %v9617_v61 = vld [vmem:[#allocation14_spill] sm:$0xff]  ;;  %v9646_v32 = vld [vmem:[#allocation25_spill] sm:$0xff] }
 0x5be   : > { %6711 = vtanh.f32 %v4369_v11  ;;  %4524 = vrot.lane.b32.xlu0 %v6702_v42, %s6878_s14  ;;  %v2808_v37 = vadd.f32 %v9618_v29, %v9617_v61  ;;  %v3203_v57 = vadd.f32 %v9620_v43, %v2809_v48  ;;  %v9621_v11 = vld [vmem:[#allocation126_spill] sm:$0xff]  ;;  %v9622_v42 = vld [vmem:[#allocation83_spill] sm:$0xff] }
 0x5bf   : > { %6713 = vtanh.f32 %v4368_v38  ;;  %v4287_v8 = vpop.permute.xlu1 %4286  ;;  %v3985_v49 = vadd.f32 %v9621_v11, %v3595_v63  ;;  %v9624_v38 = vld [vmem:[#allocation17_spill] sm:$0xff]  ;;  %v9640_v39 = vld [vmem:[#allocation86_spill] sm:$0xff] }
 0x5c0   : > { %v6704_v46 = vpop.eup %6703  ;;  %v4371_v47 = vadd.f32 %v4287_v8, %v3981_v25  ;;  %v4285_v19 = vpop.permute.xlu0 %4284  ;;  %v3202_v41 = vadd.f32 %v9622_v42, %v2808_v37  ;;  %v2811_v55 = vadd.f32 %v9625_v23, %v9624_v38  ;;  %v3597_v25 = vadd.f32 %v9626_v13, %v3203_v57  ;;  %v9628_v8 = vld [vmem:[#allocation64_spill] sm:$0xff]  ;;  %v9642_v61 = vld [vmem:[#allocation130_spill] sm:$0xff]  ;;  %v9650_v13 = vld [vmem:[#allocation131_spill] sm:$0xff] }
 0x5c1   : > { %v6706_v1 = vpop.eup %6705  ;;  %v4370_v26 = vadd.f32 %v4285_v19, %v3980_v30  ;;  %4530 = vrot.lane.b32.xlu1 %v6704_v46, %s6878_s14  ;;  %v9627_v30 = vld [vmem:[#allocation18_spill] sm:$0xff]  ;;  %v9645_v57 = vld [vmem:[#allocation108_spill] sm:$0xff] }
 0x5c2   : > { %6715 = vtanh.f32 %v4371_v47  ;;  %4528 = vrot.lane.b32.xlu0 %v6706_v1, %s6878_s14  ;;  %v2810_v46 = vadd.f32 %v9628_v8, %v9627_v30  ;;  %v3596_v53 = vadd.f32 %v9629_v2, %v3202_v41  ;;  %v3205_v60 = vadd.f32 %v9630_v56, %v2811_v55  ;;  %v9631_v47 = vld [vmem:[#allocation128_spill] sm:$0xff]  ;;  %v9632_v1 = vld [vmem:[#allocation85_spill] sm:$0xff]  ;;  %v9655_v56 = vld [vmem:[#allocation110_spill] sm:$0xff] }
 0x5c3   : > { %6717 = vtanh.f32 %v4370_v26  ;;  %v4291_v58 = vpop.permute.xlu1 %4290  ;;  %v3987_v19 = vadd.f32 %v9631_v47, %v3597_v25  ;;  %v9634_v26 = vld [vmem:[#allocation20_spill] sm:$0xff] }
 0x5c4   : > { %v6708_v35 = vpop.eup %6707  ;;  %v4373_v36 = vadd.f32 %v4291_v58, %v3983_v52  ;;  %v4289_v24 = vpop.permute.xlu0 %4288  ;;  %v3204_v27 = vadd.f32 %v9632_v1, %v2810_v46  ;;  %v3986_v14 = vadd.f32 %v9633_v54, %v3596_v53  ;;  %v2813_v12 = vadd.f32 %v9635_v18, %v9634_v26  ;;  %v9638_v58 = vld [vmem:[#allocation66_spill] sm:$0xff]  ;;  %v9649_v23 = vld [vmem:[#allocation88_spill] sm:$0xff]  ;;  %v9654_v53 = vld [vmem:[#allocation69_spill] sm:$0xff] }
 0x5c5   : > { %v6710_v34 = vpop.eup %6709  ;;  %v4372_v22 = vadd.f32 %v4289_v24, %v3982_v3  ;;  %4534 = vrot.lane.b32.xlu1 %v6708_v35, %s6878_s14  ;;  %v3599_v52 = vadd.f32 %v9636_v17, %v3205_v60  ;;  %v9637_v3 = vld [vmem:[#allocation21_spill] sm:$0xff]  ;;  %v9641_v24 = vld [vmem:[#allocation87_spill] sm:$0xff]  ;;  %v9653_v2 = vld [vmem:[#allocation28_spill] sm:$0xff] }
 0x5c6   : > { %6719 = vtanh.f32 %v4373_v36  ;;  %4532 = vrot.lane.b32.xlu0 %v6710_v34, %s6878_s14  ;;  %v2812_v35 = vadd.f32 %v9638_v58, %v9637_v3  ;;  %v3598_v33 = vadd.f32 %v9639_v28, %v3204_v27  ;;  %v3207_v63 = vadd.f32 %v9640_v39, %v2813_v12  ;;  %v9656_v27 = vld [vmem:[#allocation29_spill] sm:$0xff]  ;;  %v9657_v54 = vld [vmem:[#allocation70_spill] sm:$0xff]  ;;  %v9663_v28 = vld [vmem:[#allocation32_spill] sm:$0xff] }
 0x5c7   : > { %6721 = vtanh.f32 %v4372_v22  ;;  %v4295_v50 = vpop.permute.xlu1 %4294  ;;  %v3989_v36 = vadd.f32 %v8924_v62, %v3599_v52  ;;  %v9644_v22 = vld [vmem:[#allocation67_spill] sm:$0xff]  ;;  %v9647_v62 = vld [vmem:[#allocation68_spill] sm:$0xff]  ;;  %v9659_v18 = vld [vmem:[#allocation90_spill] sm:$0xff] }
 0x5c8   : > { %v6712_v31 = vpop.eup %6711  ;;  %v4375_v9 = vadd.f32 %v4295_v50, %v3985_v49  ;;  %v4293_v4 = vpop.permute.xlu0 %4292  ;;  %v3206_v34 = vadd.f32 %v9641_v24, %v2812_v35  ;;  %v3988_v29 = vadd.f32 %v9642_v61, %v3598_v33  ;;  %v2815_v43 = vadd.f32 %v9644_v22, %v9643_v44  ;;  %v9648_v50 = vld [vmem:[#allocation109_spill] sm:$0xff]  ;;  %v9664_v33 = vld [vmem:[#allocation71_spill] sm:$0xff]  ;;  %v9665_v39 = vld [vmem:[#allocation112_spill] sm:$0xff] }
 0x5c9   : > { %v6714_v10 = vpop.eup %6713  ;;  %v4374_v51 = vadd.f32 %v4293_v4, %v3984_v15  ;;  %4538 = vrot.lane.b32.xlu1 %v6712_v31, %s6878_s14  ;;  %v3601_v11 = vadd.f32 %v9645_v57, %v3207_v63  ;;  %v2814_v15 = vadd.f32 %v9647_v62, %v9646_v32  ;;  %v9660_v17 = vld [vmem:[#allocation133_spill] sm:$0xff]  ;;  %v9666_v61 = vld [vmem:[#allocation34_spill] sm:$0xff] }
 0x5ca   : > { %6723 = vtanh.f32 %v4375_v9  ;;  %4536 = vrot.lane.b32.xlu0 %v6714_v10, %s6878_s14  ;;  %v3600_v31 = vadd.f32 %v9648_v50, %v3206_v34  ;;  %v3209_v55 = vadd.f32 %v9649_v23, %v2815_v43  ;;  %v9651_v9 = vld [vmem:[#allocation89_spill] sm:$0xff]  ;;  %v9652_v10 = vld [vmem:[#allocation132_spill] sm:$0xff]  ;;  %v9672_v50 = vld [vmem:[#allocation35_spill] sm:$0xff] }
 0x5cb   : > { %6725 = vtanh.f32 %v4374_v51  ;;  %v4299_v16 = vpop.permute.xlu1 %4298  ;;  %v3991_v25 = vadd.f32 %v9650_v13, %v3601_v11  ;;  %v3208_v4 = vadd.f32 %v9651_v9, %v2814_v15  ;;  %v2817_v51 = vadd.f32 %v9654_v53, %v9653_v2  ;;  %v9669_v43 = vld [vmem:[#allocation92_spill] sm:$0xff]  ;;  %v9670_v11 = vld [vmem:[#allocation135_spill] sm:$0xff]  ;;  %v9674_v23 = vld [vmem:[#allocation114_spill] sm:$0xff] }
 0x5cc   : > { %v6716_v59 = vpop.eup %6715  ;;  %v4377_v20 = vadd.f32 %v4299_v16, %v3987_v19  ;;  %v4297_v21 = vpop.permute.xlu0 %4296  ;;  %v3990_v30 = vadd.f32 %v9652_v10, %v3600_v31  ;;  %v3603_v60 = vadd.f32 %v9655_v56, %v3209_v55  ;;  %v9658_v16 = vld [vmem:[#allocation111_spill] sm:$0xff]  ;;  %v9673_v31 = vld [vmem:[#allocation73_spill] sm:$0xff]  ;;  %v9676_v10 = vld [vmem:[#allocation74_spill] sm:$0xff] }
 0x5cd   : > { %v6718_v6 = vpop.eup %6717  ;;  %v4376_v48 = vadd.f32 %v4297_v21, %v3986_v14  ;;  %4542 = vrot.lane.b32.xlu1 %v6716_v59, %s6878_s14  ;;  %v2816_v14 = vadd.f32 %v9657_v54, %v9656_v27  ;;  %v3602_v59 = vadd.f32 %v9658_v16, %v3208_v4  ;;  %v3211_v12 = vadd.f32 %v9659_v18, %v2817_v51  ;;  %v9675_v4 = vld [vmem:[#allocation37_spill] sm:$0xff]  ;;  %v9679_v51 = vld [vmem:[#allocation136_spill] sm:$0xff]  ;;  %v9683_v16 = vld [vmem:[#allocation75_spill] sm:$0xff] }
 0x5ce   : > { %6727 = vtanh.f32 %v4377_v20  ;;  %4540 = vrot.lane.b32.xlu0 %v6718_v6, %s6878_s14  ;;  %v3993_v52 = vadd.f32 %v9660_v17, %v3603_v60  ;;  %v9661_v20 = vld [vmem:[#allocation91_spill] sm:$0xff]  ;;  %v9662_v6 = vld [vmem:[#allocation134_spill] sm:$0xff] }
 0x5cf   : > { %6729 = vtanh.f32 %v4376_v48  ;;  %v4303_v37 = vpop.permute.xlu1 %4302  ;;  %v3210_v21 = vadd.f32 %v9661_v20, %v2816_v14  ;;  %v3992_v3 = vadd.f32 %v9662_v6, %v3602_v59  ;;  %v2819_v48 = vadd.f32 %v9664_v33, %v9663_v28  ;;  %v9680_v60 = vld [vmem:[#allocation95_spill] sm:$0xff]  ;;  %v9685_v20 = vld [vmem:[#allocation41_spill] sm:$0xff]  ;;  %v9688_v28 = vld [vmem:[#allocation96_spill] sm:$0xff] }
 0x5d0   : > { %v6720_v40 = vpop.eup %6719  ;;  %v4379_v49 = vadd.f32 %v4303_v37, %v3989_v36  ;;  %v4301_v42 = vpop.permute.xlu0 %4300  ;;  %v3605_v63 = vadd.f32 %v9665_v39, %v3211_v12  ;;  %v9682_v14 = vld [vmem:[#allocation39_spill] sm:$0xff] }
 0x5d1   : > { %v6722_v41 = vpop.eup %6721  ;;  %v4378_v38 = vadd.f32 %v4301_v42, %v3988_v29  ;;  %4546 = vrot.lane.b32.xlu1 %v6720_v40, %s6878_s14  ;;  %v9667_v29 = vld [vmem:[#allocation72_spill] sm:$0xff]  ;;  %v9668_v40 = vld [vmem:[#allocation113_spill] sm:$0xff]  ;;  %v3213_v57 = vadd.f32 %v9669_v43, %v2819_v48  ;;  %v2823_v59 = vadd.f32 %v9683_v16, %v9682_v14  ;;  %v9689_v48 = vld [vmem:[#allocation138_spill] sm:$0xff] }
 0x5d2   : > { %6731 = vtanh.f32 %v4379_v49  ;;  %4544 = vrot.lane.b32.xlu0 %v6722_v41, %s6878_s14  ;;  %v2818_v37 = vadd.f32 %v9667_v29, %v9666_v61  ;;  %v3604_v44 = vadd.f32 %v9668_v40, %v3210_v21  ;;  %v3995_v49 = vadd.f32 %v9670_v11, %v3605_v63  ;;  %v9671_v42 = vld [vmem:[#allocation93_spill] sm:$0xff]  ;;  %v9686_v21 = vld [vmem:[#allocation76_spill] sm:$0xff]  ;;  %v9691_v29 = vld [vmem:[#allocation118_spill] sm:$0xff] }
 0x5d3   : > { %6733 = vtanh.f32 %v4378_v38  ;;  %v4307_v8 = vpop.permute.xlu1 %4306  ;;  %v2821_v38 = vadd.f32 %v9673_v31, %v9672_v50  ;;  %v3607_v55 = vadd.f32 %v9674_v23, %v3213_v57  ;;  %v2822_v6 = vadd.f32 %v9686_v21, %v9685_v20  ;;  %v9690_v63 = vld [vmem:[#allocation97_spill] sm:$0xff]  ;;  %v9692_v43 = vld [vmem:[#allocation119_spill] sm:$0xff]  ;;  %v6765_v14 = vld [vmem:[%s7118_s10 + $0x18] sm:$0xff] }
 0x5d4   : > { %v6724_v46 = vpop.eup %6723  ;;  %v4381_v47 = vadd.f32 %v4307_v8, %v3991_v25  ;;  %v4305_v19 = vpop.permute.xlu0 %4304  ;;  %v3212_v41 = vadd.f32 %v9671_v42, %v2818_v37  ;;  %v3994_v32 = vadd.f32 %v8938_v5, %v3604_v44  ;;  %v9677_v8 = vld [vmem:[#allocation115_spill] sm:$0xff]  ;;  %v9678_v5 = vld [vmem:[#allocation94_spill] sm:$0xff]  ;;  %v3217_v33 = vadd.f32 %v9688_v28, %v2823_v59  ;;  %v9698_v21 = vld [vmem:[#allocation16_spill] sm:$0xff] }
 0x5d5   : > { %v6726_v1 = vpop.eup %6725  ;;  %v4380_v26 = vadd.f32 %v4305_v19, %v3990_v30  ;;  %4550 = vrot.lane.b32.xlu1 %v6724_v46, %s6878_s14  ;;  %v2820_v30 = vadd.f32 %v9676_v10, %v9675_v4  ;;  %v3215_v53 = vadd.f32 %v9678_v5, %v2821_v38  ;;  %v3997_v56 = vadd.f32 %v9679_v51, %v3607_v55  ;;  %v9681_v19 = vld [vmem:[#allocation137_spill] sm:$0xff]  ;;  %v9695_v5 = vld [vmem:[#allocation11_spill] sm:$0xff]  ;;  %v6767_v28 = vld [vmem:[%s7118_s10 + $0x28] sm:$0xff] }
 0x5d6   : > { %6735 = vtanh.f32 %v4381_v47  ;;  %4548 = vrot.lane.b32.xlu0 %v6726_v1, %s6878_s14  ;;  %v3606_v46 = vadd.f32 %v9677_v8, %v3212_v41  ;;  %v3611_v37 = vadd.f32 %v9691_v29, %v3217_v33  ;;  %v6764_v51 = vld [vmem:[%s7118_s10] sm:$0xff]  ;;  %v9700_v29 = vld [vmem:[#allocation22_spill] sm:$0xff] }
 0x5d7   : > { %6737 = vtanh.f32 %v4380_v26  ;;  %v4311_v58 = vpop.permute.xlu1 %4310  ;;  %v3214_v47 = vadd.f32 %v9680_v60, %v2820_v30  ;;  %v9684_v26 = vld [vmem:[#allocation116_spill] sm:$0xff]  ;;  %v6763_v30 = vld [vmem:[%s7118_s10 + $0x8] sm:$0xff] }
 0x5d8   : > { %v6728_v35 = vpop.eup %6727  ;;  %v4383_v36 = vadd.f32 %v4311_v58, %v3993_v52  ;;  %v4309_v24 = vpop.permute.xlu0 %4308  ;;  %v3996_v1 = vadd.f32 %v9681_v19, %v3606_v46  ;;  %v3609_v18 = vadd.f32 %v9684_v26, %v3215_v53  ;;  %v4427_v53 = vsub.f32 1.0, %v9695_v5 }
 0x5d9   : > { %v6730_v34 = vpop.eup %6729  ;;  %v4382_v22 = vadd.f32 %v4309_v24, %v3992_v3  ;;  %4554 = vrot.lane.b32.xlu1 %v6728_v35, %s6878_s14  ;;  %v9687_v3 = vld [vmem:[#allocation117_spill] sm:$0xff] }
 0x5da   : > { %6739 = vtanh.f32 %v4383_v36  ;;  %4552 = vrot.lane.b32.xlu0 %v6730_v34, %s6878_s14  ;;  %v3608_v58 = vadd.f32 %v9687_v3, %v3214_v47  ;;  %v3999_v39 = vadd.f32 %v9689_v48, %v3609_v18  ;;  %v3216_v36 = vadd.f32 %v9690_v63, %v2822_v6  ;;  %v9696_v47 = vld [vmem:[#allocation12_spill] sm:$0xff]  ;;  %v9697_v18 = vld [vmem:[#allocation15_spill] sm:$0xff] }
 0x5db   : > { %6741 = vtanh.f32 %v4382_v22  ;;  %v4315_v62 = vpop.permute.xlu1 %4314  ;;  %v4426_v19 = vsub.f32 1.0, %v9696_v47  ;;  %v4459_v16 = vmul.f32 %v6765_v14, %v4427_v53  ;;  %v4428_v6 = vsub.f32 1.0, %v9698_v21  ;;  %v9699_v63 = vld [vmem:[#allocation19_spill] sm:$0xff] }
 0x5dc   : > { %v6732_v15 = vpop.eup %6731  ;;  %v4385_v13 = vadd.f32 %v4315_v62, %v3995_v49  ;;  %v4313_v25 = vpop.permute.xlu0 %4312  ;;  %v3998_v24 = vadd.f32 %v8948_v0, %v3608_v58  ;;  %v3610_v57 = vadd.f32 %v9692_v43, %v3216_v36  ;;  %v4001_v49 = vadd.f32 %v8954_v7, %v3611_v37  ;;  %v6769_v43 = vld [vmem:[%s7118_s10 + $0x38] sm:$0xff] }
 0x5dd   : > { %v6734_v9 = vpop.eup %6733  ;;  %v4384_v2 = vadd.f32 %v4313_v25, %v3994_v32  ;;  %4558 = vrot.lane.b32.xlu1 %v6732_v15, %s6878_s14  ;;  %v4431_v36 = vsub.f32 1.0, %v9699_v63  ;;  %v4430_v37 = vsub.f32 1.0, %v9700_v29 }
 0x5de   : > { %6743 = vtanh.f32 %v4385_v13  ;;  %4556 = vrot.lane.b32.xlu0 %v6734_v9, %s6878_s14  ;;  %v4000_v0 = vadd.f32 %v8959_v45, %v3610_v57  ;;  %v9693_v13 = vld [vmem:[#allocation7_spill] sm:$0xff]  ;;  %v9694_v9 = vld [vmem:[#allocation8_spill] sm:$0xff] }
 0x5df   : > { %6745 = vtanh.f32 %v4384_v2  ;;  %v4319_v27 = vpop.permute.xlu1 %4318  ;;  %v4425_v25 = vsub.f32 1.0, %v9693_v13  ;;  %v4424_v4 = vsub.f32 1.0, %v9694_v9  ;;  %v4463_v57 = vmul.f32 %v6769_v43, %v4431_v36 }
 0x5e0   : > { %v6736_v54 = vpop.eup %6735  ;;  %v4387_v12 = vadd.f32 %v4319_v27, %v3997_v56  ;;  %v4317_v17 = vpop.permute.xlu0 %4316 }
 0x5e1   : > { %v6738_v52 = vpop.eup %6737  ;;  %v4386_v35 = vadd.f32 %v4317_v17, %v3996_v1  ;;  %4562 = vrot.lane.b32.xlu1 %v6736_v54, %s6878_s14  ;;  %v4457_v8 = vmul.f32 %v6763_v30, %v4425_v25  ;;  %v4456_v56 = vmul.f32 %v6764_v51, %v4424_v4  ;;  %v6766_v17 = vld [vmem:[%s7118_s10 + $0x10] sm:$0xff]  ;;  %v6772_v4 = vld [vmem:[%s7118_s10 + $0x40] sm:$0xff]  ;;  %v6773_v51 = vld [vmem:[%s7118_s10 + $0x58] sm:$0xff] }
 0x5e2   : > { %6747 = vtanh.f32 %v4387_v12  ;;  %4560 = vrot.lane.b32.xlu0 %v6738_v52, %s6878_s14  ;;  %v4429_v12 = vsub.f32 1.0, %v9697_v18  ;;  %v4458_v52 = vmul.f32 %v6766_v17, %v4426_v19  ;;  %v9703_v25 = vld [vmem:[#allocation27_spill] sm:$0xff]  ;;  %v6775_v17 = vld [vmem:[%s7118_s10 + $0x68] sm:$0xff] }
 0x5e3   : > { %6749 = vtanh.f32 %v4386_v35  ;;  %v4323_v34 = vpop.permute.xlu1 %4322  ;;  %v9705_v19 = vld [vmem:[#allocation31_spill] sm:$0xff] }
 0x5e4   : > { %v6740_v61 = vpop.eup %6739  ;;  %v4389_v40 = vadd.f32 %v4323_v34, %v3999_v39  ;;  %v4321_v44 = vpop.permute.xlu0 %4320  ;;  %v4461_v33 = vmul.f32 %v6767_v28, %v4429_v12 }
 0x5e5   : > { %v6742_v22 = vpop.eup %6741  ;;  %v4388_v11 = vadd.f32 %v4321_v44, %v3998_v24  ;;  %4566 = vrot.lane.b32.xlu1 %v6740_v61, %s6878_s14  ;;  %v6768_v24 = vld [vmem:[%s7118_s10 + $0x20] sm:$0xff] }
 0x5e6   : > { %6751 = vtanh.f32 %v4389_v40  ;;  %4564 = vrot.lane.b32.xlu0 %v6742_v22, %s6878_s14  ;;  %v4460_v34 = vmul.f32 %v6768_v24, %v4428_v6  ;;  %v9707_v6 = vld [vmem:[#allocation36_spill] sm:$0xff] }
 0x5e7   : > { %6753 = vtanh.f32 %v4388_v11  ;;  %v4327_v42 = vpop.permute.xlu1 %4326  ;;  %v6777_v24 = vld [vmem:[%s7118_s10 + $0x78] sm:$0xff] }
 0x5e8   : > { %v6744_v41 = vpop.eup %6743  ;;  %v4391_v32 = vadd.f32 %v4327_v42, %v4001_v49  ;;  %v4325_v62 = vpop.permute.xlu0 %4324 }
 0x5e9   : > { %v6746_v15 = vpop.eup %6745  ;;  %v4390_v50 = vadd.f32 %v4325_v62, %v4000_v0  ;;  %4570 = vrot.lane.b32.xlu1 %v6744_v41, %s6878_s14  ;;  %v9701_v0 = vld [vmem:[#allocation23_spill] sm:$0xff] }
 0x5ea   : > { %6755 = vtanh.f32 %v4391_v32  ;;  %4568 = vrot.lane.b32.xlu0 %v6746_v15, %s6878_s14  ;;  %v4433_v42 = vsub.f32 1.0, %v9701_v0  ;;  %v6770_v41 = vld [vmem:[%s7118_s10 + $0x30] sm:$0xff]  ;;  %v9702_v15 = vld [vmem:[#allocation26_spill] sm:$0xff] }
 0x5eb   : > { %6757 = vtanh.f32 %v4390_v50  ;;  %v4462_v32 = vmul.f32 %v6770_v41, %v4430_v37  ;;  %v4432_v50 = vsub.f32 1.0, %v9702_v15  ;;  %v9709_v37 = vld [vmem:[#allocation40_spill] sm:$0xff]  ;;  %v6779_v41 = vld [vmem:[%s7118_s10 + $0x88] sm:$0xff] }
 0x5ec   : > { %v6748_v7 = vpop.eup %6747 }
 0x5ed   : > { %v6750_v31 = vpop.eup %6749  ;;  %4574 = vrot.lane.b32.xlu1 %v6748_v7, %s6878_s14 }
 0x5ee   : > { %4572 = vrot.lane.b32.xlu0 %v6750_v31, %s6878_s14 }
 0x5f0   : > { %v6752_v45 = vpop.eup %6751 }
 0x5f1   : > { %v6754_v38 = vpop.eup %6753  ;;  %4578 = vrot.lane.b32.xlu1 %v6752_v45, %s6878_s14 }
 0x5f2   : > { %4576 = vrot.lane.b32.xlu0 %v6754_v38, %s6878_s14  ;;  %v6771_v38 = vld [vmem:[%s7118_s10 + $0x48] sm:$0xff] }
 0x5f4   : > { %v6756_v23 = vpop.eup %6755 }
 0x5f5   : > { %v6758_v55 = vpop.eup %6757  ;;  %4582 = vrot.lane.b32.xlu1 %v6756_v23, %s6878_s14  ;;  %v4465_v23 = vmul.f32 %v6771_v38, %v4433_v42 }
 0x5f6   : > { %4580 = vrot.lane.b32.xlu0 %v6758_v55, %s6878_s14  ;;  %s6799_s14 = sshll.u32 %s6879_s12, 4  ;;  %s6800_s14 = int_to_ptr.vmem [resolvable:$false] %s6799_s14 }
 0x5f7   : > { %s6801_s27 = scalar_lea.vmem %s6800_s14, 8192  ;;  %p6802_p1 = scmp.lt.s32.totalorder %s9308_s9, %s6800_s14 }
 0x5f8   : > { %p6803_p2 = scmp.lt.s32.totalorder %s6801_s27, %s6795_s11 }
 0x5fa   : > { %p6804_p3 = por %p6803_p2, %p6802_p1 }
 0x5fc   : > { %p6805_p5 = pnand %p6804_p3, %p6798_p0 }
 0x62b   : > { %v4523_v10 = vpop.permute.xlu1 %4522 }
 0x62c   : > { %v4617_v46 = vmul.f32 %v9693_v13, %v4523_v10  ;;  %v4521_v2 = vpop.permute.xlu0 %4520  ;;  %v4464_v10 = vmul.f32 %v6772_v4, %v4432_v50  ;;  %v9711_v50 = vld [vmem:[#allocation43_spill] sm:$0xff]  ;;  %v6781_v4 = vld [vmem:[%s7118_s10 + $0x98] sm:$0xff] }
 0x62d   : > { %v4616_v60 = vmul.f32 %v9694_v9, %v4521_v2  ;;  %v4435_v9 = vsub.f32 1.0, %v9703_v25 }
 0x62e   : > { %v4649_v1 = vadd.f32 %v4617_v46, %v4457_v8  ;;  %v9704_v8 = vld [vmem:[#allocation30_spill] sm:$0xff] }
 0x62f   : > { %v4648_v27 = vadd.f32 %v4616_v60, %v4456_v56  ;;  %v4527_v54 = vpop.permute.xlu1 %4526  ;;  %v4434_v46 = vsub.f32 1.0, %v9704_v8  ;;  %v4467_v56 = vmul.f32 %v6773_v51, %v4435_v9 }
 0x630   : > { %4681 = vst.msk [vmem:[%s9151_s29 + $0x8] sm:$0xff] %vm482_vm0, %v4649_v1  ;;  %v4619_v59 = vmul.f32 %v9695_v5, %v4527_v54  ;;  %v4525_v26 = vpop.permute.xlu0 %4524  ;;  %v4437_v1 = vsub.f32 1.0, %v9705_v19 }
 0x631   : > { %4680 = vst.msk [vmem:[%s9151_s29] sm:$0xff] %vm482_vm0, %v4648_v27  ;;  %v4618_v20 = vmul.f32 %v9696_v47, %v4525_v26  ;;  %v6774_v27 = vld [vmem:[%s7118_s10 + $0x50] sm:$0xff] }
 0x632   : > { %v4651_v3 = vadd.f32 %v4619_v59, %v4459_v16  ;;  %v4466_v54 = vmul.f32 %v6774_v27, %v4434_v46  ;;  %v9706_v16 = vld [vmem:[#allocation33_spill] sm:$0xff]  ;;  %v6783_v27 = vld [vmem:[%s7118_s10 + $0xa8] sm:$0xff] }
 0x633   : > { %v4650_v58 = vadd.f32 %v4618_v20, %v4458_v52  ;;  %v4531_v35 = vpop.permute.xlu1 %4530  ;;  %v4436_v59 = vsub.f32 1.0, %v9706_v16  ;;  %v4469_v52 = vmul.f32 %v6775_v17, %v4437_v1  ;;  %v9713_v46 = vld [vmem:[#allocation45_spill] sm:$0xff] }
 0x634   : > { %4683 = vst.msk [vmem:[%s9151_s29 + $0x18] sm:$0xff] %vm482_vm0, %v4651_v3  ;;  %v4621_v48 = vmul.f32 %v9697_v18, %v4531_v35  ;;  %v4529_v39 = vpop.permute.xlu0 %4528  ;;  %v4439_v3 = vsub.f32 1.0, %v9707_v6 }
 0x635   : > { %4682 = vst.msk [vmem:[%s9151_s29 + $0x10] sm:$0xff] %vm482_vm0, %v4650_v58  ;;  %v4620_v61 = vmul.f32 %v9698_v21, %v4529_v39  ;;  %v6776_v58 = vld [vmem:[%s7118_s10 + $0x60] sm:$0xff] }
 0x636   : > { %v4653_v40 = vadd.f32 %v4621_v48, %v4461_v33  ;;  %v4468_v35 = vmul.f32 %v6776_v58, %v4436_v59  ;;  %v9708_v33 = vld [vmem:[#allocation38_spill] sm:$0xff]  ;;  %v9715_v59 = vld [vmem:[#allocation47_spill] sm:$0xff]  ;;  %v6785_v58 = vld [vmem:[%s7118_s10 + $0xb8] sm:$0xff] }
 0x637   : > { %v4652_v44 = vadd.f32 %v4620_v61, %v4460_v34  ;;  %v4535_v22 = vpop.permute.xlu1 %4534  ;;  %v4438_v48 = vsub.f32 1.0, %v9708_v33  ;;  %v4471_v34 = vmul.f32 %v6777_v24, %v4439_v3 }
 0x638   : > { %4685 = vst.msk [vmem:[%s9151_s29 + $0x28] sm:$0xff] %vm482_vm0, %v4653_v40  ;;  %v4623_v11 = vmul.f32 %v9699_v63, %v4535_v22  ;;  %v4533_v49 = vpop.permute.xlu0 %4532  ;;  %v4441_v40 = vsub.f32 1.0, %v9709_v37 }
 0x639   : > { %4684 = vst.msk [vmem:[%s9151_s29 + $0x20] sm:$0xff] %vm482_vm0, %v4652_v44  ;;  %v4622_v62 = vmul.f32 %v9700_v29, %v4533_v49  ;;  %v6778_v44 = vld [vmem:[%s7118_s10 + $0x70] sm:$0xff] }
 0x63a   : > { %v4655_v7 = vadd.f32 %v4623_v11, %v4463_v57  ;;  %v4470_v22 = vmul.f32 %v6778_v44, %v4438_v48  ;;  %v9710_v57 = vld [vmem:[#allocation42_spill] sm:$0xff]  ;;  %v9717_v48 = vld [vmem:[#allocation49_spill] sm:$0xff] }
 0x63b   : > { %v4654_v31 = vadd.f32 %v4622_v62, %v4462_v32  ;;  %v4539_v45 = vpop.permute.xlu1 %4538  ;;  %v4440_v11 = vsub.f32 1.0, %v9710_v57  ;;  %v4473_v32 = vmul.f32 %v6779_v41, %v4441_v40  ;;  %v6787_v44 = vld [vmem:[%s7118_s10 + $0xc8] sm:$0xff] }
 0x63c   : > { %4687 = vst.msk [vmem:[%s9151_s29 + $0x38] sm:$0xff] %vm482_vm0, %v4655_v7  ;;  %v4625_v55 = vmul.f32 %v9701_v0, %v4539_v45  ;;  %v4537_v13 = vpop.permute.xlu0 %4536  ;;  %v4443_v7 = vsub.f32 1.0, %v9711_v50 }
 0x63d   : > { %4686 = vst.msk [vmem:[%s9151_s29 + $0x30] sm:$0xff] %vm482_vm0, %v4654_v31  ;;  %v4624_v30 = vmul.f32 %v9702_v15, %v4537_v13  ;;  %v6780_v31 = vld [vmem:[%s7118_s10 + $0x80] sm:$0xff] }
 0x63e   : > { %v4657_v2 = vadd.f32 %v4625_v55, %v4465_v23  ;;  %v4472_v45 = vmul.f32 %v6780_v31, %v4440_v11  ;;  %v9712_v23 = vld [vmem:[#allocation44_spill] sm:$0xff]  ;;  %v9719_v11 = vld [vmem:[#allocation51_spill] sm:$0xff] }
 0x63f   : > { %v4656_v5 = vadd.f32 %v4624_v30, %v4464_v10  ;;  %v4543_v53 = vpop.permute.xlu1 %4542  ;;  %v4442_v55 = vsub.f32 1.0, %v9712_v23  ;;  %v4475_v10 = vmul.f32 %v6781_v4, %v4443_v7  ;;  %v6789_v31 = vld [vmem:[%s7118_s10 + $0xd8] sm:$0xff] }
 0x640   : > { %4689 = vst.msk [vmem:[%s9151_s29 + $0x48] sm:$0xff] %vm482_vm0, %v4657_v2  ;;  %v4627_v60 = vmul.f32 %v9703_v25, %v4543_v53  ;;  %v4541_v47 = vpop.permute.xlu0 %4540  ;;  %v4445_v2 = vsub.f32 1.0, %v9713_v46 }
 0x641   : > { %4688 = vst.msk [vmem:[%s9151_s29 + $0x40] sm:$0xff] %vm482_vm0, %v4656_v5  ;;  %v4626_v14 = vmul.f32 %v9704_v8, %v4541_v47  ;;  %v6782_v5 = vld [vmem:[%s7118_s10 + $0x90] sm:$0xff] }
 0x642   : > { %v4659_v26 = vadd.f32 %v4627_v60, %v4467_v56  ;;  %v4474_v53 = vmul.f32 %v6782_v5, %v4442_v55  ;;  %v9714_v56 = vld [vmem:[#allocation46_spill] sm:$0xff]  ;;  %v9721_v55 = vld [vmem:[#allocation53_spill] sm:$0xff] }
 0x643   : > { %v4658_v18 = vadd.f32 %v4626_v14, %v4466_v54  ;;  %v4547_v12 = vpop.permute.xlu1 %4546  ;;  %v4444_v60 = vsub.f32 1.0, %v9714_v56  ;;  %v4477_v54 = vmul.f32 %v6783_v27, %v4445_v2  ;;  %v6791_v5 = vld [vmem:[%s7118_s10 + $0xe8] sm:$0xff] }
 0x644   : > { %4691 = vst.msk [vmem:[%s9151_s29 + $0x58] sm:$0xff] %vm482_vm0, %v4659_v26  ;;  %v4629_v20 = vmul.f32 %v9705_v19, %v4547_v12  ;;  %v4545_v21 = vpop.permute.xlu0 %4544  ;;  %v4447_v26 = vsub.f32 1.0, %v9715_v59 }
 0x645   : > { %4690 = vst.msk [vmem:[%s9151_s29 + $0x50] sm:$0xff] %vm482_vm0, %v4658_v18  ;;  %v4628_v28 = vmul.f32 %v9706_v16, %v4545_v21  ;;  %v6784_v18 = vld [vmem:[%s7118_s10 + $0xa0] sm:$0xff] }
 0x646   : > { %v4661_v39 = vadd.f32 %v4629_v20, %v4469_v52  ;;  %v4476_v12 = vmul.f32 %v6784_v18, %v4444_v60  ;;  %v9716_v52 = vld [vmem:[#allocation48_spill] sm:$0xff]  ;;  %v9723_v60 = vld [vmem:[#allocation55_spill] sm:$0xff] }
 0x647   : > { %v4660_v63 = vadd.f32 %v4628_v28, %v4468_v35  ;;  %v4551_v36 = vpop.permute.xlu1 %4550  ;;  %v4446_v20 = vsub.f32 1.0, %v9716_v52  ;;  %v4479_v35 = vmul.f32 %v6785_v58, %v4447_v26  ;;  %v6793_v18 = vld [vmem:[%s7118_s10 + $0xf8] sm:$0xff] }
 0x648   : > { %4693 = vst.msk [vmem:[%s9151_s29 + $0x68] sm:$0xff] %vm482_vm0, %v4661_v39  ;;  %v4631_v61 = vmul.f32 %v9707_v6, %v4551_v36  ;;  %v4549_v29 = vpop.permute.xlu0 %4548  ;;  %v4449_v39 = vsub.f32 1.0, %v9717_v48 }
 0x649   : > { %4692 = vst.msk [vmem:[%s9151_s29 + $0x60] sm:$0xff] %vm482_vm0, %v4660_v63  ;;  %v4630_v43 = vmul.f32 %v9708_v33, %v4549_v29  ;;  %v6786_v63 = vld [vmem:[%s7118_s10 + $0xb0] sm:$0xff] }
 0x64a   : > { %v4663_v49 = vadd.f32 %v4631_v61, %v4471_v34  ;;  %v4478_v36 = vmul.f32 %v6786_v63, %v4446_v20  ;;  %v9718_v34 = vld [vmem:[#allocation50_spill] sm:$0xff]  ;;  %v6794_v20 = vld [vmem:[%s7118_s10 + $0xf0] sm:$0xff] }
 0x64b   : > { %v4662_v0 = vadd.f32 %v4630_v43, %v4470_v22  ;;  %v4555_v42 = vpop.permute.xlu1 %4554  ;;  %v4448_v61 = vsub.f32 1.0, %v9718_v34  ;;  %v4481_v22 = vmul.f32 %v6787_v44, %v4449_v39 }
 0x64c   : > { %4695 = vst.msk [vmem:[%s9151_s29 + $0x78] sm:$0xff] %vm482_vm0, %v4663_v49  ;;  %v4633_v62 = vmul.f32 %v9709_v37, %v4555_v42  ;;  %v4553_v15 = vpop.permute.xlu0 %4552  ;;  %v4451_v49 = vsub.f32 1.0, %v9719_v11 }
 0x64d   : > { %4694 = vst.msk [vmem:[%s9151_s29 + $0x70] sm:$0xff] %vm482_vm0, %v4662_v0  ;;  %v4632_v38 = vmul.f32 %v9710_v57, %v4553_v15  ;;  %v6788_v0 = vld [vmem:[%s7118_s10 + $0xc0] sm:$0xff] }
 0x64e   : > { %v4665_v13 = vadd.f32 %v4633_v62, %v4473_v32  ;;  %v4480_v42 = vmul.f32 %v6788_v0, %v4448_v61  ;;  %v9720_v32 = vld [vmem:[#allocation52_spill] sm:$0xff] }
 0x64f   : > { %v4664_v25 = vadd.f32 %v4632_v38, %v4472_v45  ;;  %v4559_v9 = vpop.permute.xlu1 %4558  ;;  %v4450_v62 = vsub.f32 1.0, %v9720_v32  ;;  %v4483_v45 = vmul.f32 %v6789_v31, %v4451_v49 }
 0x650   : > { %4697 = vst.msk [vmem:[%s9151_s29 + $0x88] sm:$0xff] %vm482_vm0, %v4665_v13  ;;  %v4635_v30 = vmul.f32 %v9711_v50, %v4559_v9  ;;  %v4557_v8 = vpop.permute.xlu0 %4556  ;;  %v4453_v13 = vsub.f32 1.0, %v9721_v55 }
 0x651   : > { %4696 = vst.msk [vmem:[%s9151_s29 + $0x80] sm:$0xff] %vm482_vm0, %v4664_v25  ;;  %v4634_v51 = vmul.f32 %v9712_v23, %v4557_v8  ;;  %v6790_v25 = vld [vmem:[%s7118_s10 + $0xd0] sm:$0xff] }
 0x652   : > { %v4667_v47 = vadd.f32 %v4635_v30, %v4475_v10  ;;  %v4482_v9 = vmul.f32 %v6790_v25, %v4450_v62  ;;  %v9722_v10 = vld [vmem:[#allocation54_spill] sm:$0xff] }
 0x653   : > { %v4666_v19 = vadd.f32 %v4634_v51, %v4474_v53  ;;  %v4563_v1 = vpop.permute.xlu1 %4562  ;;  %v4452_v30 = vsub.f32 1.0, %v9722_v10  ;;  %v4485_v53 = vmul.f32 %v6791_v5, %v4453_v13 }
 0x654   : > { %4699 = vst.msk [vmem:[%s9151_s29 + $0x98] sm:$0xff] %vm482_vm0, %v4667_v47  ;;  %v4637_v14 = vmul.f32 %v9713_v46, %v4563_v1  ;;  %v4561_v16 = vpop.permute.xlu0 %4560  ;;  %v4455_v47 = vsub.f32 1.0, %v9723_v60 }
 0x655   : > { %4698 = vst.msk [vmem:[%s9151_s29 + $0x90] sm:$0xff] %vm482_vm0, %v4666_v19  ;;  %v4636_v17 = vmul.f32 %v9714_v56, %v4561_v16  ;;  %v6792_v19 = vld [vmem:[%s7118_s10 + $0xe0] sm:$0xff]  ;;  %s9316_s10 = scalar_lea.sflag [#allocation3], %s266_s24 }
 0x656   : > { %v4669_v21 = vadd.f32 %v4637_v14, %v4477_v54  ;;  %v4484_v1 = vmul.f32 %v6792_v19, %v4452_v30  ;;  %v9724_v54 = vld [vmem:[#allocation56_spill] sm:$0xff] }
 0x657   : > { %v4668_v6 = vadd.f32 %v4636_v17, %v4476_v12  ;;  %v4567_v3 = vpop.permute.xlu1 %4566  ;;  %v4454_v14 = vsub.f32 1.0, %v9724_v54  ;;  %v4487_v12 = vmul.f32 %v6793_v18, %v4455_v47 }
 0x658   : > { %4701 = vst.msk [vmem:[%s9151_s29 + $0xa8] sm:$0xff] %vm482_vm0, %v4669_v21  ;;  %v4639_v28 = vmul.f32 %v9715_v59, %v4567_v3  ;;  %v4565_v33 = vpop.permute.xlu0 %4564 }
 0x659   : > { %4700 = vst.msk [vmem:[%s9151_s29 + $0xa0] sm:$0xff] %vm482_vm0, %v4668_v6  ;;  %v4638_v24 = vmul.f32 %v9716_v52, %v4565_v33  ;;  %v4486_v21 = vmul.f32 %v6794_v20, %v4454_v14 }
 0x65a   : > { %v4671_v29 = vadd.f32 %v4639_v28, %v4479_v35 }
 0x65b   : > { %v4670_v37 = vadd.f32 %v4638_v24, %v4478_v36  ;;  %v4571_v40 = vpop.permute.xlu1 %4570 }
 0x65c   : > { %4703 = vst.msk [vmem:[%s9151_s29 + $0xb8] sm:$0xff] %vm482_vm0, %v4671_v29  ;;  %v4641_v43 = vmul.f32 %v9717_v48, %v4571_v40  ;;  %v4569_v57 = vpop.permute.xlu0 %4568 }
 0x65d   : > { %4702 = vst.msk [vmem:[%s9151_s29 + $0xb0] sm:$0xff] %vm482_vm0, %v4670_v37  ;;  %v4640_v41 = vmul.f32 %v9718_v34, %v4569_v57 }
 0x65e   : > { %v4673_v15 = vadd.f32 %v4641_v43, %v4481_v22 }
 0x65f   : > { %v4672_v50 = vadd.f32 %v4640_v41, %v4480_v42  ;;  %v4575_v7 = vpop.permute.xlu1 %4574 }
 0x660   : > { %4705 = vst.msk [vmem:[%s9151_s29 + $0xc8] sm:$0xff] %vm482_vm0, %v4673_v15  ;;  %v4643_v38 = vmul.f32 %v9719_v11, %v4575_v7  ;;  %v4573_v23 = vpop.permute.xlu0 %4572 }
 0x661   : > { %4704 = vst.msk [vmem:[%s9151_s29 + $0xc0] sm:$0xff] %vm482_vm0, %v4672_v50  ;;  %v4642_v4 = vmul.f32 %v9720_v32, %v4573_v23 }
 0x662   : > { %v4675_v8 = vadd.f32 %v4643_v38, %v4483_v45 }
 0x663   : > { %v4674_v46 = vadd.f32 %v4642_v4, %v4482_v9  ;;  %v4579_v2 = vpop.permute.xlu1 %4578 }
 0x664   : > { %4707 = vst.msk [vmem:[%s9151_s29 + $0xd8] sm:$0xff] %vm482_vm0, %v4675_v8  ;;  %v4645_v51 = vmul.f32 %v9721_v55, %v4579_v2  ;;  %v4577_v56 = vpop.permute.xlu0 %4576 }
 0x665   : > { %4706 = vst.msk [vmem:[%s9151_s29 + $0xd0] sm:$0xff] %vm482_vm0, %v4674_v46  ;;  %v4644_v27 = vmul.f32 %v9722_v10, %v4577_v56 }
 0x666   : > { %v4677_v16 = vadd.f32 %v4645_v51, %v4485_v53 }
 0x667   : > { %v4676_v59 = vadd.f32 %v4644_v27, %v4484_v1  ;;  %v4583_v26 = vpop.permute.xlu1 %4582 }
 0x668   : > { %4709 = vst.msk [vmem:[%s9151_s29 + $0xe8] sm:$0xff] %vm482_vm0, %v4677_v16  ;;  %v4647_v17 = vmul.f32 %v9723_v60, %v4583_v26  ;;  %v4581_v52 = vpop.permute.xlu0 %4580 }
 0x669   : > { %4708 = vst.msk [vmem:[%s9151_s29 + $0xe0] sm:$0xff] %vm482_vm0, %v4676_v59  ;;  %v4646_v6 = vmul.f32 %v9724_v54, %v4581_v52 }
 0x66a   : > { %v4679_v3 = vadd.f32 %v4647_v17, %v4487_v12 }
 0x66b   : > { %v4678_v58 = vadd.f32 %v4646_v6, %v4486_v21 }
 0x66c   : > { %4711 = vst.msk [vmem:[%s9151_s29 + $0xf8] sm:$0xff] %vm482_vm0, %v4679_v3 }
 0x66d   : > { %4710 = vst.msk [vmem:[%s9151_s29 + $0xf0] sm:$0xff] %vm482_vm0, %v4678_v58 }
 0x66e   : > { %6808 = shalt.err (!%p6805_p5)
}
 0x66f   : > { %s6809_s13 = scalar_lea.hbm %s9306_s8, 4096  ;;  %s6813_s24 = scalar_lea.hbm %s9367_s5, 8192 }
 0x670   : > { %p6810_p6 = scmp.ne.s32.totalorder %s9306_s8, %s6809_s13  ;;  %p6814_p10 = scmp.lt.u32.totalorder %s9306_s8, %s9367_s5 }
 0x671   : > { %p6815_p11 = scmp.lt.u32.totalorder %s6813_s24, %s6809_s13  ;;  %p6817_p13 = scmp.lt.u32.totalorder %s6809_s13, %s9306_s8 }
 0x672   : > { %p6811_p7 = pnand %p6810_p6, %p6952_p4 }
 0x673   : > { %p6816_p12 = por %p6815_p11, %p6814_p10 }
 0x674   : > { %p6812_p9 = pneg %p6811_p7 }
 0x675   : > { %p6818_p0 = por %p6817_p13, %p6816_p12 }
 0x677   : > { %p6819_p1 = pnand %p6818_p0, %p6812_p9 }
 0x679   : > { %6822 = shalt.err (!%p6819_p1)
}
 0x67a   : > { %s6880_s7 = smov 128   ;;  %s6881_s15 = smov 8  }
 0x67b   : > { %6506 = dma.vmem_to_hbm [thread:$0]  (%p6952_p4), %s9308_s9, 4096, %s9306_s8, %s9316_s10, %s6880_s7, %s6880_s7, %s6881_s15  }
 0x67c PF: > { %p6512_p2 = scmp.ge.s32.totalorder %s6873_s23, 2  ;;  %s4743_s21 = sand.u32 1, %s6853_s18  }
 0x67d   : > { %s4744_s11 = scalar_lea.sflag [#allocation3], %s4743_s21 }
 0x67e   : > { %p6509_p3 = pnand %p6512_p2, %p6959_p8 }
 0x680   : > { %6848 = dma.done.wait (!%p6509_p3), %s4744_s11, 4096  }
 0x681   : > { %6850 = vsyncadd (!%p6509_p3), %s4744_s11, 4294963200  ;;  %s18_s23 = sadd.s32 1, %s6873_s23   ;;  %s9725_s18 = smov %s6857_s19 }
 0x682   : > { %p15_p5 = scmp.ge.s32.totalorder %s18_s23, 4   ;;  %s9726_s19 = smov %s6861_s20 }
 0x683   : > { %s9727_s20 = smov %s6965_s6  ;;  %s9728_s21 = smov %s6869_s22 }
 0x684   : > { %s9729_s22 = smov %s9731_s26  ;;  %17 = sbr.rel (!%p15_p5) target bundleno = 4 (0x4), region = 86 }
 0x68b   :  { %4749 = vsyncpa [#allocation3], 1 }
 0x68c   :  { %4751 = vsyncpa [#allocation3 + $0x1], 1 }

// kernel: _lambda_.2
= control target key start
LH: loop header
LB: loop body
LE: loop exit
PB: predicated region body
PF: predicated region fallthrough
CT: control target
= control target key end

     0   :  { %s8330_s18 = smov 0   ;;  %s8332_s19 = smov 0   ;;  %s11380_s0 = inlined_call_operand.vmem [shape: f32[2,16,16,32], index: 0, kind: input, shape index: {}]   ;;  %s11381_s1 = inlined_call_operand.vmem [shape: f32[2,16,16,48], index: 1, kind: input, shape index: {}]   ;;  %s11382_s2 = inlined_call_operand.vmem [shape: f32[5,80,96], index: 2, kind: input, shape index: {}]   ;;  %s11383_s3 = inlined_call_operand.vmem [shape: f32[1,96], index: 3, kind: input, shape index: {}]   ;;  %s11384_s4 = inlined_call_operand.vmem [shape: f32[5,32,32], index: 4, kind: input, shape index: {}]   ;;  %s11385_s5 = inlined_call_operand.vmem [shape: f32[2,16,16,32], index: 5, kind: output, shape index: {}]  }
   0x1   :  { %s8334_s20 = smov 0  }
   0x2 LB: > { %s27_s21 = sadd.s32 1, %s8291_s19  ;;  %p6323_p0 = scmp.ge.s32.totalorder %s8295_s20, 1  ;;  %s8295_s20 = sphi %s8334_s20, %s15_s20   ;;  %s8291_s19 = sphi %s8332_s19, %s11784_s19   ;;  %s8287_s18 = sphi %s8330_s18, %s11783_s18  }
   0x3   : > { %p29_p1 = scmp.ge.s32.totalorder %s27_s21, 2  ;;  %p227_p2 = scmp.lt.s32.totalorder %s8295_s20, 3 }
   0x5   : > { %s11786_s21 = smov (%p29_p1, %s27_s21), 0  ;;  %p228_p3 = pnand %p6323_p0, %p227_p2 }
   0x7   : > { %231 = sbr.rel (%p228_p3) target bundleno = 1547 (0x60b), region = 40 }
   0xe   : > { %p276_p4 = scmp.lt.s32.totalorder %s8287_s18, 1  ;;  %v6330_v0 = vld [vmem:[%s11382_s2 + $0x50] sm:$0xff]  ;;  %v6331_v1 = vld [vmem:[%s11382_s2 + $0x58] sm:$0xff]  ;;  %v6332_v2 = vld [vmem:[%s11382_s2 + $0x60] sm:$0xff]  ;;  %s8297_s17 = smov 32   ;;  %vm500_vm0 = vcmask 261120  }
   0xf   : > { %v7754_v3 = vpack.c.bf16 %v6331_v1, %v6330_v0  ;;  %v6333_v4 = vld [vmem:[%s11382_s2 + $0x68] sm:$0xff]  ;;  %v6334_v6 = vld [vmem:[%s11382_s2 + $0x70] sm:$0xff]  ;;  %v6335_v7 = vld [vmem:[%s11382_s2 + $0x78] sm:$0xff]  ;;  %vm565_vm1 = vcmask 1041408   ;;  %vm731_vm2 = vcmask 1046528   ;;  %vm812_vm3 = vcmask 654336  }
  0x10   : > { %s11788_s18 = smov (!%p276_p4, %s8287_s18), 1  ;;  %v7758_v5 = vpack.c.bf16 %v6333_v4, %v6332_v2  ;;  %v7762_v8 = vpack.c.bf16 %v6335_v7, %v6334_v6  ;;  %v6336_v9 = vld [vmem:[%s11382_s2 + $0x80] sm:$0xff]  ;;  %v6337_v12 = vld [vmem:[%s11382_s2 + $0x88] sm:$0xff]  ;;  %v6338_v16 = vld [vmem:[%s11382_s2 + $0x90] sm:$0xff]  ;;  %vm1402_vm4 = vcmask 1045504   ;;  %vm1815_vm5 = vcmask 1044480  }
  0x11   : > { %7755 = vmatprep.subr.bf16.mxu0 %v7754_v3  ;;  %s8366_s9 = sshll.u32 %s11788_s18, 8  ;;  %v7766_v15 = vpack.c.bf16 %v6337_v12, %v6336_v9  ;;  %v6339_v17 = vld [vmem:[%s11382_s2 + $0x98] sm:$0xff]  ;;  %v678_v21 = vld [vmem:[%s11382_s2] sm:$0xff]  ;;  %v679_v22 = vld [vmem:[%s11382_s2 + $0x8] sm:$0xff]  ;;  %vm2228_vm6 = vcmask 1043456   ;;  %s8298_s18 = smov 96  }
  0x12   : > { %7757 = vmatpush3.bf16.msra.mxu0 %v7754_v3  ;;  %s8372_s12 = scalar_lea.vmem %s11381_s1, %s8366_s9  ;;  %v7770_v20 = vpack.c.bf16 %v6339_v17, %v6338_v16  ;;  %v8406_v25 = vpack.c.bf16 %v679_v22, %v678_v21  ;;  %s8463_s6 = scalar_lea.vmem %s11380_s0, %s8366_s9 }
  0x13   : > { %7759 = vmatprep.subr.bf16.mxu0 %v7758_v5  ;;  %v342_v10 = vld [vmem:[%s8372_s12 + $0x10] sm:$0xff]  ;;  %v340_v11 = vld [vmem:[%s8372_s12] sm:$0xff]  ;;  %v343_v13 = vld [vmem:[%s8372_s12 + $0x18] sm:$0xff]  ;;  %s8299_s30 = smov 64   ;;  %s11214_s10 = scalar_lea.vmem %s11385_s5, %s8366_s9 }
  0x14   : > { %408 = vrot.lane.b32.xlu1 %v342_v10, %s8297_s17  ;;  %404 = vrot.lane.b32.xlu0 %v340_v11, %s8297_s17  ;;  %v341_v14 = vld [vmem:[%s8372_s12 + $0x8] sm:$0xff]  ;;  %v344_v19 = vld [vmem:[%s8372_s12 + $0x20] sm:$0xff] }
  0x15   : > { %v345_v18 = vld [vmem:[%s8372_s12 + $0x28] sm:$0xff]  ;;  %v347_v23 = vld [vmem:[%s8372_s12 + $0x38] sm:$0xff]  ;;  %v346_v24 = vld [vmem:[%s8372_s12 + $0x30] sm:$0xff] }
  0x16   : > { %7761 = vmatpush3.bf16.msra.mxu0 %v7758_v5  ;;  %v349_v26 = vld [vmem:[%s8372_s12 + $0x48] sm:$0xff]  ;;  %v348_v27 = vld [vmem:[%s8372_s12 + $0x40] sm:$0xff]  ;;  %v351_v28 = vld [vmem:[%s8372_s12 + $0x58] sm:$0xff] }
  0x17   : > { %7763 = vmatprep.subr.bf16.mxu0 %v7762_v8  ;;  %v350_v29 = vld [vmem:[%s8372_s12 + $0x50] sm:$0xff]  ;;  %v353_v30 = vld [vmem:[%s8372_s12 + $0x68] sm:$0xff]  ;;  %v352_v31 = vld [vmem:[%s8372_s12 + $0x60] sm:$0xff] }
  0x18   : > { %410 = vrot.lane.b32.xlu1 %v343_v13, %s8297_s17  ;;  %406 = vrot.lane.b32.xlu0 %v341_v14, %s8297_s17  ;;  %v355_v32 = vld [vmem:[%s8372_s12 + $0x78] sm:$0xff]  ;;  %v354_v33 = vld [vmem:[%s8372_s12 + $0x70] sm:$0xff] }
  0x19   : > { %v357_v34 = vld [vmem:[%s8372_s12 + $0x88] sm:$0xff]  ;;  %v356_v35 = vld [vmem:[%s8372_s12 + $0x80] sm:$0xff]  ;;  %v359_v36 = vld [vmem:[%s8372_s12 + $0x98] sm:$0xff] }
  0x1a   : > { %7765 = vmatpush3.bf16.msra.mxu0 %v7762_v8  ;;  %v358_v37 = vld [vmem:[%s8372_s12 + $0x90] sm:$0xff]  ;;  %v361_v38 = vld [vmem:[%s8372_s12 + $0xa8] sm:$0xff]  ;;  %v360_v39 = vld [vmem:[%s8372_s12 + $0xa0] sm:$0xff] }
  0x1b   : > { %7767 = vmatprep.subr.bf16.mxu0 %v7766_v15  ;;  %v363_v40 = vld [vmem:[%s8372_s12 + $0xb8] sm:$0xff]  ;;  %v362_v41 = vld [vmem:[%s8372_s12 + $0xb0] sm:$0xff]  ;;  %v365_v42 = vld [vmem:[%s8372_s12 + $0xc8] sm:$0xff] }
  0x1c   : > { %414 = vrot.lane.b32.xlu1 %v345_v18, %s8297_s17  ;;  %412 = vrot.lane.b32.xlu0 %v344_v19, %s8297_s17  ;;  %v364_v43 = vld [vmem:[%s8372_s12 + $0xc0] sm:$0xff]  ;;  %v367_v44 = vld [vmem:[%s8372_s12 + $0xd8] sm:$0xff] }
  0x1d   : > { %v366_v45 = vld [vmem:[%s8372_s12 + $0xd0] sm:$0xff]  ;;  %v369_v46 = vld [vmem:[%s8372_s12 + $0xe8] sm:$0xff]  ;;  %v368_v47 = vld [vmem:[%s8372_s12 + $0xe0] sm:$0xff] }
  0x1e   : > { %7769 = vmatpush3.bf16.msra.mxu0 %v7766_v15  ;;  %v371_v48 = vld [vmem:[%s8372_s12 + $0xf8] sm:$0xff]  ;;  %v370_v49 = vld [vmem:[%s8372_s12 + $0xf0] sm:$0xff]  ;;  %v308_v50 = vld [vmem:[%s8463_s6] sm:$0xff] }
  0x1f   : > { %7771 = vmatprep.subr.bf16.mxu0 %v7770_v20  ;;  %v8467_v51 = vld [vmem:[%s8463_s6 + $0x8] sm:$0xff]  ;;  %v310_v52 = vld [vmem:[%s8463_s6 + $0x10] sm:$0xff]  ;;  %v311_v53 = vld [vmem:[%s8463_s6 + $0x18] sm:$0xff] }
  0x20   : > { %418 = vrot.lane.b32.xlu1 %v347_v23, %s8297_s17  ;;  %416 = vrot.lane.b32.xlu0 %v346_v24, %s8297_s17  ;;  %v8477_v54 = vld [vmem:[%s8463_s6 + $0x28] sm:$0xff]  ;;  %v8480_v55 = vld [vmem:[%s8463_s6 + $0x20] sm:$0xff] }
  0x21   : > { %v8487_v56 = vld [vmem:[%s8463_s6 + $0x38] sm:$0xff]  ;;  %v8490_v57 = vld [vmem:[%s8463_s6 + $0x30] sm:$0xff]  ;;  %v8497_v58 = vld [vmem:[%s8463_s6 + $0x48] sm:$0xff] }
  0x22   : > { %7773 = vmatpush3.bf16.msra.mxu0 %v7770_v20  ;;  %v8500_v59 = vld [vmem:[%s8463_s6 + $0x40] sm:$0xff]  ;;  %v8507_v60 = vld [vmem:[%s8463_s6 + $0x58] sm:$0xff]  ;;  %v8510_v61 = vld [vmem:[%s8463_s6 + $0x50] sm:$0xff] }
  0x23   : > { %7775 = vmatprep.subr.bf16.mxu0 %v8406_v25  ;;  %v8517_v62 = vld [vmem:[%s8463_s6 + $0x68] sm:$0xff]  ;;  %v8520_v63 = vld [vmem:[%s8463_s6 + $0x60] sm:$0xff]  ;;  %v8527_v0 = vld [vmem:[%s8463_s6 + $0x78] sm:$0xff] }
  0x24   : > { %422 = vrot.lane.b32.xlu1 %v349_v26, %s8297_s17  ;;  %420 = vrot.lane.b32.xlu0 %v348_v27, %s8297_s17  ;;  %v8530_v1 = vld [vmem:[%s8463_s6 + $0x70] sm:$0xff]  ;;  %v8537_v2 = vld [vmem:[%s8463_s6 + $0x88] sm:$0xff] }
  0x25   : > { %v8540_v3 = vld [vmem:[%s8463_s6 + $0x80] sm:$0xff]  ;;  %v8547_v4 = vld [vmem:[%s8463_s6 + $0x98] sm:$0xff]  ;;  %v8550_v5 = vld [vmem:[%s8463_s6 + $0x90] sm:$0xff] }
  0x26   : > { %v8557_v6 = vld [vmem:[%s8463_s6 + $0xa8] sm:$0xff]  ;;  %v8560_v7 = vld [vmem:[%s8463_s6 + $0xa0] sm:$0xff]  ;;  %v8567_v8 = vld [vmem:[%s8463_s6 + $0xb8] sm:$0xff] }
  0x27   : > { %v8570_v9 = vld [vmem:[%s8463_s6 + $0xb0] sm:$0xff]  ;;  %v8577_v10 = vld [vmem:[%s8463_s6 + $0xc8] sm:$0xff]  ;;  %v8580_v11 = vld [vmem:[%s8463_s6 + $0xc0] sm:$0xff] }
  0x28   : > { %426 = vrot.lane.b32.xlu1 %v351_v28, %s8297_s17  ;;  %424 = vrot.lane.b32.xlu0 %v350_v29, %s8297_s17  ;;  %v8589_v16 = vld [vmem:[%s8463_s6 + $0xd8] sm:$0xff]  ;;  %v8592_v17 = vld [vmem:[%s8463_s6 + $0xd0] sm:$0xff] }
  0x29   : > { %v8602_v24 = vld [vmem:[%s8463_s6 + $0xe8] sm:$0xff]  ;;  %v8605_v26 = vld [vmem:[%s8463_s6 + $0xe0] sm:$0xff] }
  0x2c   : > { %430 = vrot.lane.b32.xlu1 %v353_v30, %s8297_s17  ;;  %428 = vrot.lane.b32.xlu0 %v352_v31, %s8297_s17 }
  0x30   : > { %434 = vrot.lane.b32.xlu1 %v355_v32, %s8297_s17  ;;  %432 = vrot.lane.b32.xlu0 %v354_v33, %s8297_s17 }
  0x34   : > { %438 = vrot.lane.b32.xlu1 %v357_v34, %s8297_s17  ;;  %436 = vrot.lane.b32.xlu0 %v356_v35, %s8297_s17 }
  0x38   : > { %442 = vrot.lane.b32.xlu1 %v359_v36, %s8297_s17  ;;  %440 = vrot.lane.b32.xlu0 %v358_v37, %s8297_s17  ;;  %v680_v36 = vld [vmem:[%s11382_s2 + $0x10] sm:$0xff]  ;;  %v681_v37 = vld [vmem:[%s11382_s2 + $0x18] sm:$0xff] }
  0x3c   : > { %446 = vrot.lane.b32.xlu1 %v361_v38, %s8297_s17  ;;  %444 = vrot.lane.b32.xlu0 %v360_v39, %s8297_s17 }
  0x40   : > { %450 = vrot.lane.b32.xlu1 %v363_v40, %s8297_s17  ;;  %448 = vrot.lane.b32.xlu0 %v362_v41, %s8297_s17 }
  0x44   : > { %454 = vrot.lane.b32.xlu1 %v365_v42, %s8297_s17  ;;  %452 = vrot.lane.b32.xlu0 %v364_v43, %s8297_s17  ;;  %v8640_v42 = vld [vmem:[%s8463_s6 + $0xf8] sm:$0xff]  ;;  %v8643_v43 = vld [vmem:[%s8463_s6 + $0xf0] sm:$0xff] }
  0x48   : > { %458 = vrot.lane.b32.xlu1 %v367_v44, %s8297_s17  ;;  %456 = vrot.lane.b32.xlu0 %v366_v45, %s8297_s17 }
  0x4c   : > { %462 = vrot.lane.b32.xlu1 %v369_v46, %s8297_s17  ;;  %460 = vrot.lane.b32.xlu0 %v368_v47, %s8297_s17 }
  0x50   : > { %466 = vrot.lane.b32.xlu1 %v371_v48, %s8297_s17  ;;  %464 = vrot.lane.b32.xlu0 %v370_v49, %s8297_s17 }
  0x54   : > { %2895 = vrot.lane.b32.xlu1 %v8467_v51, %s8297_s17  ;;  %2893 = vrot.lane.b32.xlu0 %v308_v50, %s8297_s17 }
  0x58   : > { %2899 = vrot.lane.b32.xlu1 %v311_v53, %s8297_s17  ;;  %2897 = vrot.lane.b32.xlu0 %v310_v52, %s8297_s17 }
  0x5c   : > { %2903 = vrot.lane.b32.xlu1 %v8477_v54, %s8297_s17  ;;  %2901 = vrot.lane.b32.xlu0 %v8480_v55, %s8297_s17 }
  0x60   : > { %2907 = vrot.lane.b32.xlu1 %v8487_v56, %s8297_s17  ;;  %2905 = vrot.lane.b32.xlu0 %v8490_v57, %s8297_s17 }
  0x64   : > { %2911 = vrot.lane.b32.xlu1 %v8497_v58, %s8297_s17  ;;  %2909 = vrot.lane.b32.xlu0 %v8500_v59, %s8297_s17 }
  0x68   : > { %2915 = vrot.lane.b32.xlu1 %v8507_v60, %s8297_s17  ;;  %2913 = vrot.lane.b32.xlu0 %v8510_v61, %s8297_s17 }
  0x6c   : > { %2919 = vrot.lane.b32.xlu1 %v8517_v62, %s8297_s17  ;;  %2917 = vrot.lane.b32.xlu0 %v8520_v63, %s8297_s17 }
  0x70   : > { %2923 = vrot.lane.b32.xlu1 %v8527_v0, %s8297_s17  ;;  %2921 = vrot.lane.b32.xlu0 %v8530_v1, %s8297_s17 }
  0x74   : > { %2927 = vrot.lane.b32.xlu1 %v8537_v2, %s8297_s17  ;;  %2925 = vrot.lane.b32.xlu0 %v8540_v3, %s8297_s17 }
  0x78   : > { %2931 = vrot.lane.b32.xlu1 %v8547_v4, %s8297_s17  ;;  %2929 = vrot.lane.b32.xlu0 %v8550_v5, %s8297_s17 }
  0x7c   : > { %2935 = vrot.lane.b32.xlu1 %v8557_v6, %s8297_s17  ;;  %2933 = vrot.lane.b32.xlu0 %v8560_v7, %s8297_s17 }
  0x80   : > { %2939 = vrot.lane.b32.xlu1 %v8567_v8, %s8297_s17  ;;  %2937 = vrot.lane.b32.xlu0 %v8570_v9, %s8297_s17 }
  0x84   : > { %2943 = vrot.lane.b32.xlu1 %v8577_v10, %s8297_s17  ;;  %2941 = vrot.lane.b32.xlu0 %v8580_v11, %s8297_s17 }
  0x86   : > { %v409_v12 = vpop.permute.xlu1 %408  ;;  %v405_v13 = vpop.permute.xlu0 %404 }
  0x87   : > { %v503_v14 = vsel %vm500_vm0, %v310_v52, %v409_v12  ;;  %v501_v15 = vsel %vm500_vm0, %v308_v50, %v405_v13  ;;  %v7778_v50 = vpack.c.bf16 %v681_v37, %v680_v36 }
  0x88   : > { %v569_v18 = vrot.slane %v503_v14, 6  ;;  %v566_v19 = vrot.slane %v501_v15, 6  ;;  %2947 = vrot.lane.b32.xlu1 %v8589_v16, %s8297_s17  ;;  %2945 = vrot.lane.b32.xlu0 %v8592_v17, %s8297_s17 }
  0x8a   : > { %v411_v20 = vpop.permute.xlu1 %410  ;;  %v407_v21 = vpop.permute.xlu0 %406  ;;  %v8608_v27 = vsel %vm565_vm1, 0.0, %v569_v18  ;;  %v8611_v28 = vsel %vm565_vm1, 0.0, %v566_v19 }
  0x8b   : > { %v504_v22 = vsel %vm500_vm0, %v311_v53, %v411_v20  ;;  %v502_v23 = vsel %vm500_vm0, %v8467_v51, %v407_v21  ;;  %v732_v40 = vrot.slane %v8611_v28, 1  ;;  %v737_v41 = vrot.slane %v8608_v27, 1 }
  0x8c   : > { %v570_v29 = vrot.slane %v504_v22, 6  ;;  %v567_v30 = vrot.slane %v502_v23, 6  ;;  %2951 = vrot.lane.b32.xlu1 %v8602_v24, %s8297_s17  ;;  %2949 = vrot.lane.b32.xlu0 %v8605_v26, %s8297_s17 }
  0x8e   : > { %v8618_v31 = vsel %vm565_vm1, %v569_v18, %v570_v29  ;;  %v8621_v32 = vsel %vm565_vm1, %v566_v19, %v567_v30  ;;  %v8624_v33 = vsel %vm565_vm1, %v567_v30, 0.0  ;;  %v415_v34 = vpop.permute.xlu1 %414  ;;  %v413_v35 = vpop.permute.xlu0 %412  ;;  %v8633_v38 = vsel %vm565_vm1, %v570_v29, 0.0  ;;  %v682_v18 = vld [vmem:[%s11382_s2 + $0x20] sm:$0xff]  ;;  %v683_v19 = vld [vmem:[%s11382_s2 + $0x28] sm:$0xff] }
  0x8f   : > { %v506_v39 = vsel %vm500_vm0, %v8477_v54, %v415_v34  ;;  %v505_v45 = vsel %vm500_vm0, %v8480_v55, %v413_v35  ;;  %v733_v46 = vrot.slane %v8621_v32, 1  ;;  %v735_v47 = vrot.slane %v8624_v33, 1 }
  0x90   : > { %v573_v44 = vrot.slane %v506_v39, 6  ;;  %2955 = vrot.lane.b32.xlu1 %v8640_v42, %s8297_s17  ;;  %2953 = vrot.lane.b32.xlu0 %v8643_v43, %s8297_s17  ;;  %v572_v48 = vrot.slane %v505_v45, 6  ;;  %v738_v49 = vrot.slane %v8618_v31, 1  ;;  %v740_v12 = vrot.slane %v8633_v38, 1  ;;  %v685_v45 = vld [vmem:[%s11382_s2 + $0x38] sm:$0xff] }
  0x91   : > { %v734_v52 = vsel %vm731_vm2, %v732_v40, %v733_v46  ;;  %v736_v53 = vsel %vm731_vm2, %v733_v46, %v735_v47 }
  0x92   : > { %v8655_v51 = vsel %vm565_vm1, %v573_v44, 0.0  ;;  %v419_v54 = vpop.permute.xlu1 %418  ;;  %v417_v55 = vpop.permute.xlu0 %416  ;;  %v8661_v13 = vsel %vm565_vm1, %v572_v48, %v573_v44  ;;  %v8664_v14 = vsel %vm565_vm1, 0.0, %v572_v48  ;;  %7154 = vmatprep.mubr.msk.f32.mxu0 %vm812_vm3, %v734_v52  ;;  %v739_v20 = vsel %vm731_vm2, %v737_v41, %v738_v49  ;;  %v684_v44 = vld [vmem:[%s11382_s2 + $0x30] sm:$0xff] }
  0x93   : > { %v508_v15 = vsel %vm500_vm0, %v8487_v56, %v419_v54  ;;  %7155 = vmatmul.mubr.msk.f32.vlgmr.msra.gmra.mrb[0].mxu0 %vm812_vm3, %v736_v53  ;;  %v507_v22 = vsel %vm500_vm0, %v8490_v57, %v417_v55  ;;  %v742_v23 = vrot.slane %v8664_v14, 1  ;;  %v743_v29 = vrot.slane %v8661_v13, 1 }
  0x94   : > { %v576_v21 = vrot.slane %v508_v15, 6  ;;  %7777 = vmatpush3.bf16.msra.mxu0 %v8406_v25  ;;  %7157 = vmatprep.mubr.msk.f32.mxu0 %vm812_vm3, %v739_v20  ;;  %v575_v56 = vrot.slane %v507_v22, 6  ;;  %v745_v30 = vrot.slane %v8655_v51, 1  ;;  %v741_v35 = vsel %vm731_vm2, %v738_v49, %v740_v12 }
  0x95   : > { %7779 = vmatprep.subr.bf16.mxu0 %v7778_v50  ;;  %v7782_v57 = vpack.c.bf16 %v683_v19, %v682_v18  ;;  %v744_v48 = vsel %vm731_vm2, %v742_v23, %v743_v29  ;;  %v7786_v18 = vpack.c.bf16 %v685_v45, %v684_v44  ;;  %v686_v19 = vld [vmem:[%s11382_s2 + $0x40] sm:$0xff] }
  0x96   : > { %v8685_v34 = vsel %vm565_vm1, %v576_v21, 0.0  ;;  %v423_v36 = vpop.permute.xlu1 %422  ;;  %v421_v37 = vpop.permute.xlu0 %420  ;;  %v8689_v39 = vsel %vm565_vm1, %v575_v56, %v576_v21  ;;  %v8692_v25 = vsel %vm565_vm1, 0.0, %v575_v56 }
  0x97   : > { %v510_v40 = vsel %vm500_vm0, %v8497_v58, %v423_v36  ;;  %v509_v41 = vsel %vm500_vm0, %v8500_v59, %v421_v37  ;;  %7158 = vmatmul.mubr.msk.f32.gmra.mrb[2].mxu0 %vm812_vm3, %v741_v35  ;;  %v746_v58 = vsel %vm731_vm2, %v743_v29, %v745_v30  ;;  %v747_v59 = vrot.slane %v8692_v25, 1 }
  0x98   : > { %v579_v46 = vrot.slane %v510_v40, 6  ;;  %v578_v47 = vrot.slane %v509_v41, 6  ;;  %7160 = vmatprep.mubr.msk.f32.mxu0 %vm812_vm3, %v744_v48  ;;  %v748_v49 = vrot.slane %v8689_v39, 1  ;;  %v750_v52 = vrot.slane %v8685_v34, 1  ;;  %7781 = vmatpush3.bf16.msra.mxu0 %v7778_v50  ;;  %v687_v50 = vld [vmem:[%s11382_s2 + $0x48] sm:$0xff] }
  0x99   : > { %7783 = vmatprep.subr.bf16.mxu0 %v7782_v57 }
  0x9a   : > { %v8712_v53 = vsel %vm565_vm1, %v579_v46, 0.0  ;;  %v8715_v54 = vsel %vm565_vm1, %v578_v47, %v579_v46  ;;  %v8718_v55 = vsel %vm565_vm1, 0.0, %v578_v47  ;;  %v427_v12 = vpop.permute.xlu1 %426  ;;  %v425_v15 = vpop.permute.xlu0 %424  ;;  %v749_v22 = vsel %vm731_vm2, %v747_v59, %v748_v49  ;;  %v6404_v46 = vld [vmem:[%s11382_s2 + $0xa0] sm:$0xff] }
  0x9b   : > { %v512_v20 = vsel %vm500_vm0, %v8507_v60, %v427_v12  ;;  %v511_v21 = vsel %vm500_vm0, %v8510_v61, %v425_v15  ;;  %7161 = vmatmul.mubr.msk.f32.gmra.mrb[4].mxu0 %vm812_vm3, %v746_v58  ;;  %v752_v29 = vrot.slane %v8718_v55, 1  ;;  %v753_v30 = vrot.slane %v8715_v54, 1 }
  0x9c   : > { %v582_v23 = vrot.slane %v512_v20, 6  ;;  %v581_v56 = vrot.slane %v511_v21, 6  ;;  %7163 = vmatprep.mubr.msk.f32.mxu0 %vm812_vm3, %v749_v22  ;;  %v751_v35 = vsel %vm731_vm2, %v748_v49, %v750_v52  ;;  %v755_v36 = vrot.slane %v8712_v53, 1  ;;  %7785 = vmatpush3.bf16.msra.mxu0 %v7782_v57  ;;  %v6405_v57 = vld [vmem:[%s11382_s2 + $0xa8] sm:$0xff] }
  0x9d   : > { %v7790_v60 = vpack.c.bf16 %v687_v50, %v686_v19  ;;  %v754_v45 = vsel %vm731_vm2, %v752_v29, %v753_v30  ;;  %7787 = vmatprep.subr.bf16.mxu0 %v7786_v18  ;;  %v8763_v19 = vpack.c.bf16 %v6405_v57, %v6404_v46 }
  0x9e   : > { %v8738_v61 = vsel %vm565_vm1, %v582_v23, 0.0  ;;  %v8741_v37 = vsel %vm565_vm1, %v581_v56, %v582_v23  ;;  %v8744_v40 = vsel %vm565_vm1, 0.0, %v581_v56  ;;  %v431_v41 = vpop.permute.xlu1 %430  ;;  %v429_v44 = vpop.permute.xlu0 %428  ;;  %v756_v12 = vsel %vm731_vm2, %v753_v30, %v755_v36 }
  0x9f   : > { %v514_v47 = vsel %vm500_vm0, %v8517_v62, %v431_v41  ;;  %v513_v48 = vsel %vm500_vm0, %v8520_v63, %v429_v44  ;;  %v757_v58 = vrot.slane %v8744_v40, 1  ;;  %7164 = vmatmul.mubr.msk.f32.gmra.mrb[6].mxu0 %vm812_vm3, %v751_v35  ;;  %v758_v52 = vrot.slane %v8741_v37, 1 }
  0xa0   : > { %v585_v59 = vrot.slane %v514_v47, 6  ;;  %v584_v49 = vrot.slane %v513_v48, 6  ;;  %7166 = vmatprep.mubr.msk.f32.mxu0 %vm812_vm3, %v754_v45  ;;  %v760_v15 = vrot.slane %v8738_v61, 1  ;;  %7789 = vmatpush3.bf16.msra.mxu0 %v7786_v18 }
  0xa1   : > { %v759_v22 = vsel %vm731_vm2, %v757_v58, %v758_v52  ;;  %7791 = vmatprep.subr.bf16.mxu0 %v7790_v60 }
  0xa2   : > { %v8766_v62 = vsel %vm565_vm1, %v585_v59, 0.0  ;;  %v8769_v63 = vsel %vm565_vm1, %v584_v49, %v585_v59  ;;  %v8772_v50 = vsel %vm565_vm1, 0.0, %v584_v49  ;;  %v435_v20 = vpop.permute.xlu1 %434  ;;  %v433_v21 = vpop.permute.xlu0 %432  ;;  %v761_v36 = vsel %vm731_vm2, %v758_v52, %v760_v15 }
  0xa3   : > { %v516_v23 = vsel %vm500_vm0, %v8527_v0, %v435_v20  ;;  %v515_v18 = vsel %vm500_vm0, %v8530_v1, %v433_v21  ;;  %v762_v56 = vrot.slane %v8772_v50, 1  ;;  %7167 = vmatmul.mubr.msk.f32.gmra.mrb[8].mxu0 %vm812_vm3, %v756_v12  ;;  %v763_v35 = vrot.slane %v8769_v63, 1 }
  0xa4   : > { %v588_v29 = vrot.slane %v516_v23, 6  ;;  %v587_v30 = vrot.slane %v515_v18, 6  ;;  %7169 = vmatprep.mubr.msk.f32.mxu0 %vm812_vm3, %v759_v22  ;;  %v765_v41 = vrot.slane %v8766_v62, 1  ;;  %7793 = vmatpush3.bf16.msra.mxu0 %v7790_v60 }
  0xa5   : > { %v764_v57 = vsel %vm731_vm2, %v762_v56, %v763_v35  ;;  %7795 = vmatprep.subr.bf16.mxu0 %v8763_v19 }
  0xa6   : > { %v8786_v0 = vsel %vm565_vm1, %v588_v29, 0.0  ;;  %v8789_v1 = vsel %vm565_vm1, %v587_v30, %v588_v29  ;;  %v8792_v44 = vsel %vm565_vm1, 0.0, %v587_v30  ;;  %v439_v45 = vpop.permute.xlu1 %438  ;;  %v437_v46 = vpop.permute.xlu0 %436  ;;  %v766_v52 = vsel %vm731_vm2, %v763_v35, %v765_v41 }
  0xa7   : > { %v518_v47 = vsel %vm500_vm0, %v8537_v2, %v439_v45  ;;  %v517_v60 = vsel %vm500_vm0, %v8540_v3, %v437_v46  ;;  %v767_v48 = vrot.slane %v8792_v44, 1  ;;  %7170 = vmatmul.mubr.msk.f32.gmra.mrb[10].mxu0 %vm812_vm3, %v761_v36  ;;  %v768_v49 = vrot.slane %v8789_v1, 1 }
  0xa8   : > { %v591_v58 = vrot.slane %v518_v47, 6  ;;  %v590_v59 = vrot.slane %v517_v60, 6  ;;  %7172 = vmatprep.mubr.msk.f32.mxu0 %vm812_vm3, %v764_v57  ;;  %v770_v12 = vrot.slane %v8786_v0, 1 }
  0xa9   : > { %v769_v22 = vsel %vm731_vm2, %v767_v48, %v768_v49 }
  0xaa   : > { %v8807_v15 = vsel %vm565_vm1, %v591_v58, 0.0  ;;  %v8810_v2 = vsel %vm565_vm1, %v590_v59, %v591_v58  ;;  %v8813_v3 = vsel %vm565_vm1, 0.0, %v590_v59  ;;  %v443_v20 = vpop.permute.xlu1 %442  ;;  %v441_v21 = vpop.permute.xlu0 %440  ;;  %v771_v36 = vsel %vm731_vm2, %v768_v49, %v770_v12 }
  0xab   : > { %v520_v23 = vsel %vm500_vm0, %v8547_v4, %v443_v20  ;;  %v519_v18 = vsel %vm500_vm0, %v8550_v5, %v441_v21  ;;  %v772_v56 = vrot.slane %v8813_v3, 1  ;;  %7173 = vmatmul.mubr.msk.f32.gmra.mrb[12].mxu0 %vm812_vm3, %v766_v52  ;;  %v773_v35 = vrot.slane %v8810_v2, 1 }
  0xac   : > { %v594_v29 = vrot.slane %v520_v23, 6  ;;  %v593_v30 = vrot.slane %v519_v18, 6  ;;  %7175 = vmatprep.mubr.msk.f32.mxu0 %vm812_vm3, %v769_v22  ;;  %v775_v41 = vrot.slane %v8807_v15, 1 }
  0xad   : > { %v774_v47 = vsel %vm731_vm2, %v772_v56, %v773_v35 }
  0xae   : > { %v8827_v45 = vsel %vm565_vm1, %v594_v29, 0.0  ;;  %v8830_v4 = vsel %vm565_vm1, %v593_v30, %v594_v29  ;;  %v8833_v5 = vsel %vm565_vm1, 0.0, %v593_v30  ;;  %v447_v46 = vpop.permute.xlu1 %446  ;;  %v445_v57 = vpop.permute.xlu0 %444  ;;  %v776_v12 = vsel %vm731_vm2, %v773_v35, %v775_v41 }
  0xaf   : > { %v522_v60 = vsel %vm500_vm0, %v8557_v6, %v447_v46  ;;  %v521_v48 = vsel %vm500_vm0, %v8560_v7, %v445_v57  ;;  %v777_v58 = vrot.slane %v8833_v5, 1  ;;  %7176 = vmatmul.mubr.msk.f32.gmra.mrb[14].mxu0 %vm812_vm3, %v771_v36  ;;  %v778_v52 = vrot.slane %v8830_v4, 1 }
  0xb0   : > { %v597_v59 = vrot.slane %v522_v60, 6  ;;  %v596_v49 = vrot.slane %v521_v48, 6  ;;  %7178 = vmatprep.mubr.msk.f32.mxu0 %vm812_vm3, %v774_v47  ;;  %v780_v20 = vrot.slane %v8827_v45, 1 }
  0xb1   : > { %v779_v18 = vsel %vm731_vm2, %v777_v58, %v778_v52 }
  0xb2   : > { %v8847_v21 = vsel %vm565_vm1, %v597_v59, 0.0  ;;  %v8850_v6 = vsel %vm565_vm1, %v596_v49, %v597_v59  ;;  %v8853_v7 = vsel %vm565_vm1, 0.0, %v596_v49  ;;  %v451_v22 = vpop.permute.xlu1 %450  ;;  %v449_v23 = vpop.permute.xlu0 %448  ;;  %v781_v46 = vsel %vm731_vm2, %v778_v52, %v780_v20 }
  0xb3   : > { %v524_v56 = vsel %vm500_vm0, %v8567_v8, %v451_v22  ;;  %v523_v29 = vsel %vm500_vm0, %v8570_v9, %v449_v23  ;;  %v782_v30 = vrot.slane %v8853_v7, 1  ;;  %7179 = vmatmul.mubr.msk.f32.gmra.mrb[16].mxu0 %vm812_vm3, %v776_v12  ;;  %v783_v41 = vrot.slane %v8850_v6, 1 }
  0xb4   : > { %v600_v35 = vrot.slane %v524_v56, 6  ;;  %v599_v36 = vrot.slane %v523_v29, 6  ;;  %7181 = vmatprep.mubr.msk.f32.mxu0 %vm812_vm3, %v779_v18  ;;  %v785_v57 = vrot.slane %v8847_v21, 1 }
  0xb5   : > { %v784_v58 = vsel %vm731_vm2, %v782_v30, %v783_v41 }
  0xb6   : > { %v8867_v47 = vsel %vm565_vm1, %v600_v35, 0.0  ;;  %v8870_v8 = vsel %vm565_vm1, %v599_v36, %v600_v35  ;;  %v8873_v9 = vsel %vm565_vm1, 0.0, %v599_v36  ;;  %v455_v60 = vpop.permute.xlu1 %454  ;;  %v453_v48 = vpop.permute.xlu0 %452  ;;  %v786_v23 = vsel %vm731_vm2, %v783_v41, %v785_v57 }
  0xb7   : > { %v526_v59 = vsel %vm500_vm0, %v8577_v10, %v455_v60  ;;  %v525_v49 = vsel %vm500_vm0, %v8580_v11, %v453_v48  ;;  %v787_v52 = vrot.slane %v8873_v9, 1  ;;  %7182 = vmatmul.mubr.msk.f32.gmra.mrb[18].mxu0 %vm812_vm3, %v781_v46  ;;  %v788_v22 = vrot.slane %v8870_v8, 1 }
  0xb8   : > { %v603_v12 = vrot.slane %v526_v59, 6  ;;  %v602_v20 = vrot.slane %v525_v49, 6  ;;  %7184 = vmatprep.mubr.msk.f32.mxu0 %vm812_vm3, %v784_v58  ;;  %v790_v18 = vrot.slane %v8867_v47, 1 }
  0xb9   : > { %v789_v35 = vsel %vm731_vm2, %v787_v52, %v788_v22 }
  0xba   : > { %v8887_v56 = vsel %vm565_vm1, %v603_v12, 0.0  ;;  %v8890_v10 = vsel %vm565_vm1, %v602_v20, %v603_v12  ;;  %v8893_v11 = vsel %vm565_vm1, 0.0, %v602_v20  ;;  %v459_v29 = vpop.permute.xlu1 %458  ;;  %v457_v30 = vpop.permute.xlu0 %456  ;;  %v791_v58 = vsel %vm731_vm2, %v788_v22, %v790_v18 }
  0xbb   : > { %v528_v36 = vsel %vm500_vm0, %v8589_v16, %v459_v29  ;;  %v527_v41 = vsel %vm500_vm0, %v8592_v17, %v457_v30  ;;  %v792_v46 = vrot.slane %v8893_v11, 1  ;;  %7185 = vmatmul.mubr.msk.f32.gmra.mrb[20].mxu0 %vm812_vm3, %v786_v23  ;;  %v793_v48 = vrot.slane %v8890_v10, 1 }
  0xbc   : > { %v606_v57 = vrot.slane %v528_v36, 6  ;;  %v605_v60 = vrot.slane %v527_v41, 6  ;;  %7187 = vmatprep.mubr.msk.f32.mxu0 %vm812_vm3, %v789_v35  ;;  %v795_v59 = vrot.slane %v8887_v56, 1 }
  0xbd   : > { %v794_v20 = vsel %vm731_vm2, %v792_v46, %v793_v48 }
  0xbe   : > { %v8907_v49 = vsel %vm565_vm1, %v606_v57, 0.0  ;;  %v8910_v16 = vsel %vm565_vm1, %v605_v60, %v606_v57  ;;  %v8913_v17 = vsel %vm565_vm1, 0.0, %v605_v60  ;;  %v463_v52 = vpop.permute.xlu1 %462  ;;  %v461_v12 = vpop.permute.xlu0 %460  ;;  %v796_v36 = vsel %vm731_vm2, %v793_v48, %v795_v59 }
  0xbf   : > { %v530_v23 = vsel %vm500_vm0, %v8602_v24, %v463_v52  ;;  %v529_v22 = vsel %vm500_vm0, %v8605_v26, %v461_v12  ;;  %v797_v18 = vrot.slane %v8913_v17, 1  ;;  %7188 = vmatmul.mubr.msk.f32.gmra.mrb[22].mxu0 %vm812_vm3, %v791_v58  ;;  %v798_v35 = vrot.slane %v8910_v16, 1 }
  0xc0   : > { %v609_v29 = vrot.slane %v530_v23, 6  ;;  %v608_v30 = vrot.slane %v529_v22, 6  ;;  %7190 = vmatprep.mubr.msk.f32.mxu0 %vm812_vm3, %v794_v20  ;;  %v800_v41 = vrot.slane %v8907_v49, 1 }
  0xc1   : > { %v799_v58 = vsel %vm731_vm2, %v797_v18, %v798_v35 }
  0xc2   : > { %v8927_v46 = vsel %vm565_vm1, %v609_v29, 0.0  ;;  %v8930_v24 = vsel %vm565_vm1, %v608_v30, %v609_v29  ;;  %v8933_v26 = vsel %vm565_vm1, 0.0, %v608_v30  ;;  %v467_v57 = vpop.permute.xlu1 %466  ;;  %v465_v60 = vpop.permute.xlu0 %464  ;;  %v801_v22 = vsel %vm731_vm2, %v798_v35, %v800_v41 }
  0xc3   : > { %v532_v52 = vsel %vm500_vm0, %v8640_v42, %v467_v57  ;;  %v531_v48 = vsel %vm500_vm0, %v8643_v43, %v465_v60  ;;  %v802_v59 = vrot.slane %v8933_v26, 1  ;;  %7191 = vmatmul.mubr.msk.f32.gmra.mrb[24].mxu0 %vm812_vm3, %v796_v36  ;;  %v803_v23 = vrot.slane %v8930_v24, 1 }
  0xc4   : > { %v612_v12 = vrot.slane %v532_v52, 6  ;;  %v611_v20 = vrot.slane %v531_v48, 6  ;;  %7193 = vmatprep.mubr.msk.f32.mxu0 %vm812_vm3, %v799_v58  ;;  %v805_v18 = vrot.slane %v8927_v46, 1  ;;  %v6406_v52 = vld [vmem:[%s11382_s2 + $0xb0] sm:$0xff]  ;;  %v6407_v48 = vld [vmem:[%s11382_s2 + $0xb8] sm:$0xff] }
  0xc5   : > { %v804_v30 = vsel %vm731_vm2, %v802_v59, %v803_v23  ;;  %v7798_v59 = vpack.c.bf16 %v6407_v48, %v6406_v52  ;;  %v1403_v52 = vrot.slane %v8611_v28, 2  ;;  %v1406_v48 = vrot.slane %v8624_v33, 2 }
  0xc6   : > { %v8947_v29 = vsel %vm565_vm1, %v612_v12, 0.0  ;;  %v8950_v42 = vsel %vm565_vm1, %v611_v20, %v612_v12  ;;  %v8953_v43 = vsel %vm565_vm1, 0.0, %v611_v20  ;;  %v806_v35 = vsel %vm731_vm2, %v803_v23, %v805_v18  ;;  %v6408_v12 = vld [vmem:[%s11382_s2 + $0xc0] sm:$0xff]  ;;  %v6409_v20 = vld [vmem:[%s11382_s2 + $0xc8] sm:$0xff]  ;;  %v6411_v18 = vld [vmem:[%s11382_s2 + $0xd8] sm:$0xff] }
  0xc7   : > { %v807_v36 = vrot.slane %v8953_v43, 1  ;;  %v808_v57 = vrot.slane %v8950_v42, 1  ;;  %7194 = vmatmul.mubr.msk.f32.gmra.mrb[26].mxu0 %vm812_vm3, %v801_v22  ;;  %v810_v41 = vrot.slane %v8947_v29, 1  ;;  %v7802_v23 = vpack.c.bf16 %v6409_v20, %v6408_v12  ;;  %v6410_v22 = vld [vmem:[%s11382_s2 + $0xd0] sm:$0xff]  ;;  %v6449_v12 = vld [vmem:[%s11382_s2 + $0x108] sm:$0xff] }
  0xc8   : > { %7196 = vmatprep.mubr.msk.f32.mxu0 %vm812_vm3, %v804_v30  ;;  %v6412_v30 = vld [vmem:[%s11382_s2 + $0xe0] sm:$0xff] }
  0xc9   : > { %v809_v60 = vsel %vm731_vm2, %v807_v36, %v808_v57  ;;  %v811_v58 = vsel %vm731_vm2, %v808_v57, %v810_v41  ;;  %v6413_v36 = vld [vmem:[%s11382_s2 + $0xe8] sm:$0xff]  ;;  %v6447_v41 = vld [vmem:[%s11382_s2 + $0xf8] sm:$0xff] }
  0xca   : > { %v7810_v57 = vpack.c.bf16 %v6413_v36, %v6412_v30  ;;  %v1411_v30 = vrot.slane %v8633_v38, 2  ;;  %v6450_v36 = vld [vmem:[%s11382_s2 + $0x110] sm:$0xff] }
  0xcb   : > { %7197 = vmatmul.mubr.msk.f32.gmra.mrb[28].mxu0 %vm812_vm3, %v806_v35  ;;  %v6446_v35 = vld [vmem:[%s11382_s2 + $0xf0] sm:$0xff] }
  0xcc   : > { %7199 = vmatprep.mubr.msk.f32.mxu0 %vm812_vm3, %v809_v60  ;;  %v7814_v60 = vpack.c.bf16 %v6447_v41, %v6446_v35  ;;  %v1413_v41 = vrot.slane %v8664_v14, 2 }
  0xcf   : > { %7200 = vmatmul.mubr.msk.f32.gmra.mrb[30].mxu0 %vm812_vm3, %v811_v58  ;;  %v1404_v58 = vrot.slane %v8621_v32, 2 }
  0xd0   : > { %7222 = vmatprep.mubr.msk.f32.mxu0 %vm812_vm3, %v8611_v28 }
  0xd1   : > { %v1405_v20 = vsel %vm1402_vm4, %v1403_v52, %v1404_v58  ;;  %v1414_v52 = vrot.slane %v8661_v13, 2 }
  0xd3   : > { %7223 = vmatmul.mubr.msk.f32.vlgmr.msra.gmra.mrb[0].mxu0 %vm812_vm3, %v8621_v32 }
  0xd4   : > { %7797 = vmatpush3.bf16.msra.mxu0 %v8763_v19  ;;  %7225 = vmatprep.mubr.msk.f32.mxu0 %vm812_vm3, %v8608_v27  ;;  %v7806_v19 = vpack.c.bf16 %v6411_v18, %v6410_v22  ;;  %v1409_v22 = vrot.slane %v8618_v31, 2 }
  0xd5   : > { %7799 = vmatprep.subr.bf16.mxu0 %v7798_v59 }
  0xd7   : > { %7226 = vmatmul.mubr.msk.f32.gmra.mrb[2].mxu0 %vm812_vm3, %v8618_v31 }
  0xd8   : > { %7228 = vmatprep.mubr.msk.f32.mxu0 %vm812_vm3, %v8664_v14  ;;  %7801 = vmatpush3.bf16.msra.mxu0 %v7798_v59  ;;  %v6448_v59 = vld [vmem:[%s11382_s2 + $0x100] sm:$0xff] }
  0xd9   : > { %7803 = vmatprep.subr.bf16.mxu0 %v7802_v23  ;;  %v7818_v18 = vpack.c.bf16 %v6449_v12, %v6448_v59  ;;  %v1416_v59 = vrot.slane %v8655_v51, 2  ;;  %v6452_v12 = vld [vmem:[%s11382_s2 + $0x120] sm:$0xff] }
  0xdb   : > { %7229 = vmatmul.mubr.msk.f32.gmra.mrb[4].mxu0 %vm812_vm3, %v8661_v13 }
  0xdc   : > { %7231 = vmatprep.mubr.msk.f32.mxu0 %vm812_vm3, %v8692_v25  ;;  %7805 = vmatpush3.bf16.msra.mxu0 %v7802_v23  ;;  %v1408_v23 = vrot.slane %v8608_v27, 2 }
  0xdd   : > { %7807 = vmatprep.subr.bf16.mxu0 %v7806_v19 }
  0xde   : > { %v1410_v35 = vsel %vm1402_vm4, %v1408_v23, %v1409_v22  ;;  %v1418_v23 = vrot.slane %v8692_v25, 2 }
  0xdf   : > { %7232 = vmatmul.mubr.msk.f32.gmra.mrb[6].mxu0 %vm812_vm3, %v8689_v39 }
  0xe0   : > { %7234 = vmatprep.mubr.msk.f32.mxu0 %vm812_vm3, %v8718_v55  ;;  %7809 = vmatpush3.bf16.msra.mxu0 %v7806_v19  ;;  %v1407_v19 = vsel %vm1402_vm4, %v1404_v58, %v1406_v48  ;;  %v1412_v48 = vsel %vm1402_vm4, %v1409_v22, %v1411_v30  ;;  %v1417_v30 = vsel %vm1402_vm4, %v1414_v52, %v1416_v59 }
  0xe1   : > { %7811 = vmatprep.subr.bf16.mxu0 %v7810_v57 }
  0xe3   : > { %7235 = vmatmul.mubr.msk.f32.gmra.mrb[8].mxu0 %vm812_vm3, %v8715_v54 }
  0xe4   : > { %7237 = vmatprep.mubr.msk.f32.mxu0 %vm812_vm3, %v8744_v40  ;;  %7813 = vmatpush3.bf16.msra.mxu0 %v7810_v57  ;;  %v6451_v57 = vld [vmem:[%s11382_s2 + $0x118] sm:$0xff] }
  0xe5   : > { %7815 = vmatprep.subr.bf16.mxu0 %v7814_v60  ;;  %v7822_v58 = vpack.c.bf16 %v6451_v57, %v6450_v36  ;;  %v1421_v36 = vrot.slane %v8685_v34, 2  ;;  %v6454_v57 = vld [vmem:[%s11382_s2 + $0x130] sm:$0xff] }
  0xe7   : > { %7238 = vmatmul.mubr.msk.f32.gmra.mrb[10].mxu0 %vm812_vm3, %v8741_v37 }
  0xe8   : > { %7240 = vmatprep.mubr.msk.f32.mxu0 %vm812_vm3, %v8772_v50 }
  0xeb   : > { %7241 = vmatmul.mubr.msk.f32.gmra.mrb[12].mxu0 %vm812_vm3, %v8769_v63 }
  0xec   : > { %7243 = vmatprep.mubr.msk.f32.mxu0 %vm812_vm3, %v8792_v44 }
  0xef   : > { %7244 = vmatmul.mubr.msk.f32.gmra.mrb[14].mxu0 %vm812_vm3, %v8789_v1 }
  0xf0   : > { %7246 = vmatprep.mubr.msk.f32.mxu0 %vm812_vm3, %v8813_v3 }
  0xf3   : > { %7247 = vmatmul.mubr.msk.f32.gmra.mrb[16].mxu0 %vm812_vm3, %v8810_v2 }
  0xf4   : > { %7249 = vmatprep.mubr.msk.f32.mxu0 %vm812_vm3, %v8833_v5 }
  0xf7   : > { %7250 = vmatmul.mubr.msk.f32.gmra.mrb[18].mxu0 %vm812_vm3, %v8830_v4 }
  0xf8   : > { %7252 = vmatprep.mubr.msk.f32.mxu0 %vm812_vm3, %v8853_v7 }
  0xfb   : > { %7253 = vmatmul.mubr.msk.f32.gmra.mrb[20].mxu0 %vm812_vm3, %v8850_v6 }
  0xfc   : > { %7255 = vmatprep.mubr.msk.f32.mxu0 %vm812_vm3, %v8873_v9 }
  0xff   : > { %7256 = vmatmul.mubr.msk.f32.gmra.mrb[22].mxu0 %vm812_vm3, %v8870_v8 }
 0x100   : > { %7258 = vmatprep.mubr.msk.f32.mxu0 %vm812_vm3, %v8893_v11 }
 0x103   : > { %7259 = vmatmul.mubr.msk.f32.gmra.mrb[24].mxu0 %vm812_vm3, %v8890_v10 }
 0x104   : > { %7261 = vmatprep.mubr.msk.f32.mxu0 %vm812_vm3, %v8913_v17 }
 0x107   : > { %7262 = vmatmul.mubr.msk.f32.gmra.mrb[26].mxu0 %vm812_vm3, %v8910_v16 }
 0x108   : > { %7264 = vmatprep.mubr.msk.f32.mxu0 %vm812_vm3, %v8933_v26 }
 0x10b   : > { %7265 = vmatmul.mubr.msk.f32.gmra.mrb[28].mxu0 %vm812_vm3, %v8930_v24 }
 0x10c   : > { %7267 = vmatprep.mubr.msk.f32.mxu0 %vm812_vm3, %v8953_v43 }
 0x10f   : > { %7268 = vmatmul.mubr.msk.f32.gmra.mrb[30].mxu0 %vm812_vm3, %v8950_v42 }
 0x110   : > { %7290 = vmatprep.mubr.msk.f32.mxu0 %vm812_vm3, %v1405_v20  ;;  %v6453_v20 = vld [vmem:[%s11382_s2 + $0x128] sm:$0xff] }
 0x111   : > { %v7826_v22 = vpack.c.bf16 %v6453_v20, %v6452_v12  ;;  %v1426_v12 = vrot.slane %v8712_v53, 2  ;;  %v6488_v20 = vld [vmem:[%s11382_s2 + $0x140] sm:$0xff] }
 0x113   : > { %7291 = vmatmul.mubr.msk.f32.vlgmr.msra.gmra.mrb[0].mxu0 %vm812_vm3, %v1407_v19  ;;  %v1419_v19 = vrot.slane %v8689_v39, 2 }
 0x114   : > { %7817 = vmatpush3.bf16.msra.mxu0 %v7814_v60  ;;  %7293 = vmatprep.mubr.msk.f32.mxu0 %vm812_vm3, %v1410_v35  ;;  %v1415_v60 = vsel %vm1402_vm4, %v1413_v41, %v1414_v52  ;;  %v6455_v35 = vld [vmem:[%s11382_s2 + $0x138] sm:$0xff] }
 0x115   : > { %7819 = vmatprep.subr.bf16.mxu0 %v7818_v18  ;;  %v1420_v41 = vsel %vm1402_vm4, %v1418_v23, %v1419_v19  ;;  %v7830_v52 = vpack.c.bf16 %v6455_v35, %v6454_v57  ;;  %v1422_v59 = vsel %vm1402_vm4, %v1419_v19, %v1421_v36  ;;  %v1431_v57 = vrot.slane %v8738_v61, 2 }
 0x117   : > { %7294 = vmatmul.mubr.msk.f32.gmra.mrb[2].mxu0 %vm812_vm3, %v1412_v48  ;;  %v1424_v48 = vrot.slane %v8715_v54, 2 }
 0x118   : > { %7296 = vmatprep.mubr.msk.f32.mxu0 %vm812_vm3, %v1415_v60  ;;  %7821 = vmatpush3.bf16.msra.mxu0 %v7818_v18  ;;  %v1423_v18 = vrot.slane %v8718_v55, 2  ;;  %v6489_v60 = vld [vmem:[%s11382_s2 + $0x148] sm:$0xff] }
 0x119   : > { %7823 = vmatprep.subr.bf16.mxu0 %v7822_v58  ;;  %v9127_v19 = vpack.c.bf16 %v6489_v60, %v6488_v20  ;;  %v1427_v36 = vsel %vm1402_vm4, %v1424_v48, %v1426_v12  ;;  %v1438_v12 = vrot.slane %v8792_v44, 2  ;;  %v1439_v20 = vrot.slane %v8789_v1, 2 }
 0x11a   : > { %v1425_v23 = vsel %vm1402_vm4, %v1423_v18, %v1424_v48  ;;  %v1434_v18 = vrot.slane %v8769_v63, 2 }
 0x11b   : > { %7297 = vmatmul.mubr.msk.f32.gmra.mrb[4].mxu0 %vm812_vm3, %v1417_v30  ;;  %v1429_v30 = vrot.slane %v8741_v37, 2 }
 0x11c   : > { %7299 = vmatprep.mubr.msk.f32.mxu0 %vm812_vm3, %v1420_v41  ;;  %7825 = vmatpush3.bf16.msra.mxu0 %v7822_v58  ;;  %v1428_v58 = vrot.slane %v8744_v40, 2  ;;  %v1433_v41 = vrot.slane %v8772_v50, 2 }
 0x11d   : > { %7827 = vmatprep.subr.bf16.mxu0 %v7826_v22 }
 0x11e   : > { %v1430_v35 = vsel %vm1402_vm4, %v1428_v58, %v1429_v30  ;;  %v1435_v48 = vsel %vm1402_vm4, %v1433_v41, %v1434_v18  ;;  %v1443_v58 = vrot.slane %v8813_v3, 2  ;;  %v1448_v41 = vrot.slane %v8833_v5, 2 }
 0x11f   : > { %7300 = vmatmul.mubr.msk.f32.gmra.mrb[6].mxu0 %vm812_vm3, %v1422_v59  ;;  %v1436_v59 = vrot.slane %v8766_v62, 2 }
 0x120   : > { %7302 = vmatprep.mubr.msk.f32.mxu0 %vm812_vm3, %v1425_v23  ;;  %7829 = vmatpush3.bf16.msra.mxu0 %v7826_v22  ;;  %v1432_v22 = vsel %vm1402_vm4, %v1429_v30, %v1431_v57  ;;  %v1440_v23 = vsel %vm1402_vm4, %v1438_v12, %v1439_v20  ;;  %v1444_v30 = vrot.slane %v8810_v2, 2  ;;  %v1446_v57 = vrot.slane %v8807_v15, 2 }
 0x121   : > { %7831 = vmatprep.subr.bf16.mxu0 %v7830_v52  ;;  %v1437_v60 = vsel %vm1402_vm4, %v1434_v18, %v1436_v59  ;;  %v1449_v18 = vrot.slane %v8830_v4, 2  ;;  %v1451_v59 = vrot.slane %v8827_v45, 2  ;;  %v1453_v12 = vrot.slane %v8853_v7, 2 }
 0x123   : > { %7303 = vmatmul.mubr.msk.f32.gmra.mrb[8].mxu0 %vm812_vm3, %v1427_v36 }
 0x124   : > { %7305 = vmatprep.mubr.msk.f32.mxu0 %vm812_vm3, %v1430_v35  ;;  %7833 = vmatpush3.bf16.msra.mxu0 %v7830_v52  ;;  %v1441_v52 = vrot.slane %v8786_v0, 2  ;;  %v1445_v35 = vsel %vm1402_vm4, %v1443_v58, %v1444_v30  ;;  %v1458_v58 = vrot.slane %v8873_v9, 2 }
 0x125   : > { %7835 = vmatprep.subr.bf16.mxu0 %v9127_v19 }
 0x126   : > { %v1442_v36 = vsel %vm1402_vm4, %v1439_v20, %v1441_v52  ;;  %v1454_v20 = vrot.slane %v8850_v6, 2  ;;  %v1456_v52 = vrot.slane %v8847_v21, 2 }
 0x127   : > { %7306 = vmatmul.mubr.msk.f32.gmra.mrb[10].mxu0 %vm812_vm3, %v1432_v22  ;;  %v1447_v22 = vsel %vm1402_vm4, %v1444_v30, %v1446_v57  ;;  %v1459_v30 = vrot.slane %v8870_v8, 2  ;;  %v1461_v57 = vrot.slane %v8867_v47, 2 }
 0x128   : > { %7308 = vmatprep.mubr.msk.f32.mxu0 %vm812_vm3, %v1435_v48  ;;  %v1450_v48 = vsel %vm1402_vm4, %v1448_v41, %v1449_v18  ;;  %v1463_v41 = vrot.slane %v8893_v11, 2 }
 0x12b   : > { %7309 = vmatmul.mubr.msk.f32.gmra.mrb[12].mxu0 %vm812_vm3, %v1437_v60  ;;  %v1452_v60 = vsel %vm1402_vm4, %v1449_v18, %v1451_v59  ;;  %v1464_v18 = vrot.slane %v8890_v10, 2  ;;  %v1466_v59 = vrot.slane %v8887_v56, 2 }
 0x12c   : > { %7311 = vmatprep.mubr.msk.f32.mxu0 %vm812_vm3, %v1440_v23  ;;  %v1455_v23 = vsel %vm1402_vm4, %v1453_v12, %v1454_v20  ;;  %v1468_v12 = vrot.slane %v8913_v17, 2 }
 0x12f   : > { %7312 = vmatmul.mubr.msk.f32.gmra.mrb[14].mxu0 %vm812_vm3, %v1442_v36  ;;  %v1457_v36 = vsel %vm1402_vm4, %v1454_v20, %v1456_v52  ;;  %v1469_v20 = vrot.slane %v8910_v16, 2  ;;  %v1471_v52 = vrot.slane %v8907_v49, 2 }
 0x130   : > { %7314 = vmatprep.mubr.msk.f32.mxu0 %vm812_vm3, %v1445_v35  ;;  %v1460_v35 = vsel %vm1402_vm4, %v1458_v58, %v1459_v30  ;;  %v1473_v58 = vrot.slane %v8933_v26, 2 }
 0x133   : > { %7315 = vmatmul.mubr.msk.f32.gmra.mrb[16].mxu0 %vm812_vm3, %v1447_v22  ;;  %v1462_v22 = vsel %vm1402_vm4, %v1459_v30, %v1461_v57  ;;  %v1474_v30 = vrot.slane %v8930_v24, 2  ;;  %v1476_v57 = vrot.slane %v8927_v46, 2 }
 0x134   : > { %7317 = vmatprep.mubr.msk.f32.mxu0 %vm812_vm3, %v1450_v48  ;;  %v1465_v48 = vsel %vm1402_vm4, %v1463_v41, %v1464_v18  ;;  %v1478_v41 = vrot.slane %v8953_v43, 2 }
 0x137   : > { %7318 = vmatmul.mubr.msk.f32.gmra.mrb[18].mxu0 %vm812_vm3, %v1452_v60  ;;  %v1467_v60 = vsel %vm1402_vm4, %v1464_v18, %v1466_v59  ;;  %v1479_v18 = vrot.slane %v8950_v42, 2  ;;  %v1481_v59 = vrot.slane %v8947_v29, 2 }
 0x138   : > { %7320 = vmatprep.mubr.msk.f32.mxu0 %vm812_vm3, %v1455_v23  ;;  %v1470_v23 = vsel %vm1402_vm4, %v1468_v12, %v1469_v20  ;;  %v1817_v12 = vrot.slane %v8621_v32, 3 }
 0x13b   : > { %7321 = vmatmul.mubr.msk.f32.gmra.mrb[20].mxu0 %vm812_vm3, %v1457_v36  ;;  %v1472_v36 = vsel %vm1402_vm4, %v1469_v20, %v1471_v52  ;;  %v1816_v20 = vrot.slane %v8611_v28, 3  ;;  %v1482_v52 = vsel %vm1402_vm4, %v1479_v18, %v1481_v59  ;;  %v6493_v59 = vld [vmem:[%s11382_s2 + $0x168] sm:$0xff] }
 0x13c   : > { %7323 = vmatprep.mubr.msk.f32.mxu0 %vm812_vm3, %v1460_v35  ;;  %v1475_v35 = vsel %vm1402_vm4, %v1473_v58, %v1474_v30  ;;  %v6491_v58 = vld [vmem:[%s11382_s2 + $0x158] sm:$0xff] }
 0x13f   : > { %7324 = vmatmul.mubr.msk.f32.gmra.mrb[22].mxu0 %vm812_vm3, %v1462_v22  ;;  %v1477_v22 = vsel %vm1402_vm4, %v1474_v30, %v1476_v57  ;;  %v1818_v30 = vsel %vm1815_vm5, %v1816_v20, %v1817_v12  ;;  %v1822_v57 = vrot.slane %v8618_v31, 3  ;;  %v1826_v20 = vrot.slane %v8664_v14, 3 }
 0x140   : > { %7326 = vmatprep.mubr.msk.f32.mxu0 %vm812_vm3, %v1465_v48  ;;  %v1480_v48 = vsel %vm1402_vm4, %v1478_v41, %v1479_v18  ;;  %v1824_v18 = vrot.slane %v8633_v38, 3 }
 0x143   : > { %7327 = vmatmul.mubr.msk.f32.gmra.mrb[24].mxu0 %vm812_vm3, %v1467_v60  ;;  %v1819_v60 = vrot.slane %v8624_v33, 3 }
 0x144   : > { %7329 = vmatprep.mubr.msk.f32.mxu0 %vm812_vm3, %v1470_v23  ;;  %v6490_v23 = vld [vmem:[%s11382_s2 + $0x150] sm:$0xff] }
 0x145   : > { %v1820_v41 = vsel %vm1815_vm5, %v1817_v12, %v1819_v60  ;;  %v1825_v60 = vsel %vm1815_vm5, %v1822_v57, %v1824_v18 }
 0x147   : > { %7330 = vmatmul.mubr.msk.f32.gmra.mrb[26].mxu0 %vm812_vm3, %v1472_v36  ;;  %v1821_v36 = vrot.slane %v8608_v27, 3 }
 0x148   : > { %7332 = vmatprep.mubr.msk.f32.mxu0 %vm812_vm3, %v1475_v35  ;;  %v7838_v35 = vpack.c.bf16 %v6491_v58, %v6490_v23  ;;  %v1829_v23 = vrot.slane %v8655_v51, 3  ;;  %v6494_v58 = vld [vmem:[%s11382_s2 + $0x170] sm:$0xff] }
 0x14b   : > { %7333 = vmatmul.mubr.msk.f32.gmra.mrb[28].mxu0 %vm812_vm3, %v1477_v22  ;;  %v6492_v22 = vld [vmem:[%s11382_s2 + $0x160] sm:$0xff] }
 0x14c   : > { %7335 = vmatprep.mubr.msk.f32.mxu0 %vm812_vm3, %v1480_v48  ;;  %v1823_v48 = vsel %vm1815_vm5, %v1821_v36, %v1822_v57  ;;  %v7842_v12 = vpack.c.bf16 %v6493_v59, %v6492_v22  ;;  %v1831_v36 = vrot.slane %v8692_v25, 3  ;;  %v1834_v22 = vrot.slane %v8685_v34, 3  ;;  %v6496_v59 = vld [vmem:[%s11382_s2 + $0x180] sm:$0xff] }
 0x14f   : > { %7336 = vmatmul.mubr.msk.f32.gmra.mrb[30].mxu0 %vm812_vm3, %v1482_v52  ;;  %v1827_v52 = vrot.slane %v8661_v13, 3 }
 0x150   : > { %7358 = vmatprep.mubr.msk.f32.mxu0 %vm812_vm3, %v1818_v30  ;;  %v6495_v30 = vld [vmem:[%s11382_s2 + $0x178] sm:$0xff] }
 0x151   : > { %v7846_v57 = vpack.c.bf16 %v6495_v30, %v6494_v58  ;;  %v1830_v18 = vsel %vm1815_vm5, %v1827_v52, %v1829_v23  ;;  %v1839_v58 = vrot.slane %v8712_v53, 3 }
 0x153   : > { %7359 = vmatmul.mubr.msk.f32.vlgmr.msra.gmra.mrb[0].mxu0 %vm812_vm3, %v1820_v41  ;;  %v1832_v41 = vrot.slane %v8689_v39, 3 }
 0x154   : > { %7837 = vmatpush3.bf16.msra.mxu0 %v9127_v19  ;;  %7361 = vmatprep.mubr.msk.f32.mxu0 %vm812_vm3, %v1823_v48  ;;  %v1828_v19 = vsel %vm1815_vm5, %v1826_v20, %v1827_v52  ;;  %v6497_v48 = vld [vmem:[%s11382_s2 + $0x188] sm:$0xff] }
 0x155   : > { %7839 = vmatprep.subr.bf16.mxu0 %v7838_v35  ;;  %v1833_v20 = vsel %vm1815_vm5, %v1831_v36, %v1832_v41  ;;  %v7850_v52 = vpack.c.bf16 %v6497_v48, %v6496_v59  ;;  %v1835_v23 = vsel %vm1815_vm5, %v1832_v41, %v1834_v22  ;;  %v1842_v36 = vrot.slane %v8741_v37, 3 }
 0x156   : > { %v1846_v22 = vrot.slane %v8772_v50, 3  ;;  %v1847_v59 = vrot.slane %v8769_v63, 3 }
 0x157   : > { %7362 = vmatmul.mubr.msk.f32.gmra.mrb[2].mxu0 %vm812_vm3, %v1825_v60  ;;  %v1837_v60 = vrot.slane %v8715_v54, 3 }
 0x158   : > { %7364 = vmatprep.mubr.msk.f32.mxu0 %vm812_vm3, %v1828_v19  ;;  %7841 = vmatpush3.bf16.msra.mxu0 %v7838_v35  ;;  %v1836_v35 = vrot.slane %v8718_v55, 3  ;;  %v1841_v19 = vrot.slane %v8744_v40, 3 }
 0x159   : > { %7843 = vmatprep.subr.bf16.mxu0 %v7842_v12 }
 0x15a   : > { %v1838_v30 = vsel %vm1815_vm5, %v1836_v35, %v1837_v60  ;;  %v1843_v41 = vsel %vm1815_vm5, %v1841_v19, %v1842_v36  ;;  %v1851_v35 = vrot.slane %v8792_v44, 3  ;;  %v1857_v19 = vrot.slane %v8810_v2, 3 }
 0x15b   : > { %7365 = vmatmul.mubr.msk.f32.gmra.mrb[4].mxu0 %vm812_vm3, %v1830_v18  ;;  %v1844_v18 = vrot.slane %v8738_v61, 3 }
 0x15c   : > { %7367 = vmatprep.mubr.msk.f32.mxu0 %vm812_vm3, %v1833_v20  ;;  %7845 = vmatpush3.bf16.msra.mxu0 %v7842_v12  ;;  %v1840_v12 = vsel %vm1815_vm5, %v1837_v60, %v1839_v58  ;;  %v1848_v20 = vsel %vm1815_vm5, %v1846_v22, %v1847_v59  ;;  %v1852_v60 = vrot.slane %v8789_v1, 3  ;;  %v1854_v58 = vrot.slane %v8786_v0, 3 }
 0x15d   : > { %7847 = vmatprep.subr.bf16.mxu0 %v7846_v57  ;;  %v1845_v48 = vsel %vm1815_vm5, %v1842_v36, %v1844_v18  ;;  %v1862_v22 = vrot.slane %v8830_v4, 3 }
 0x15e   : > { %v1855_v36 = vsel %vm1815_vm5, %v1852_v60, %v1854_v58 }
 0x15f   : > { %7368 = vmatmul.mubr.msk.f32.gmra.mrb[6].mxu0 %vm812_vm3, %v1835_v23 }
 0x160   : > { %7370 = vmatprep.mubr.msk.f32.mxu0 %vm812_vm3, %v1838_v30  ;;  %7849 = vmatpush3.bf16.msra.mxu0 %v7846_v57  ;;  %v1849_v57 = vrot.slane %v8766_v62, 3  ;;  %v1856_v30 = vrot.slane %v8813_v3, 3 }
 0x161   : > { %7851 = vmatprep.subr.bf16.mxu0 %v7850_v52 }
 0x162   : > { %v1850_v23 = vsel %vm1815_vm5, %v1847_v59, %v1849_v57  ;;  %v1858_v18 = vsel %vm1815_vm5, %v1856_v30, %v1857_v19  ;;  %v1872_v30 = vrot.slane %v8870_v8, 3 }
 0x163   : > { %7371 = vmatmul.mubr.msk.f32.gmra.mrb[8].mxu0 %vm812_vm3, %v1840_v12  ;;  %v1859_v12 = vrot.slane %v8807_v15, 3 }
 0x164   : > { %7373 = vmatprep.mubr.msk.f32.mxu0 %vm812_vm3, %v1843_v41  ;;  %7853 = vmatpush3.bf16.msra.mxu0 %v7850_v52  ;;  %v1853_v52 = vsel %vm1815_vm5, %v1851_v35, %v1852_v60  ;;  %v1861_v41 = vrot.slane %v8833_v5, 3  ;;  %v1867_v35 = vrot.slane %v8850_v6, 3 }
 0x165   : > { %v1860_v59 = vsel %vm1815_vm5, %v1857_v19, %v1859_v12 }
 0x166   : > { %v1863_v57 = vsel %vm1815_vm5, %v1861_v41, %v1862_v22  ;;  %v1877_v41 = vrot.slane %v8890_v10, 3 }
 0x167   : > { %7374 = vmatmul.mubr.msk.f32.gmra.mrb[10].mxu0 %vm812_vm3, %v1845_v48  ;;  %v1864_v48 = vrot.slane %v8827_v45, 3 }
 0x168   : > { %7376 = vmatprep.mubr.msk.f32.mxu0 %vm812_vm3, %v1848_v20  ;;  %v1866_v20 = vrot.slane %v8853_v7, 3 }
 0x169   : > { %v1865_v60 = vsel %vm1815_vm5, %v1862_v22, %v1864_v48 }
 0x16a   : > { %v1868_v58 = vsel %vm1815_vm5, %v1866_v20, %v1867_v35  ;;  %v1882_v20 = vrot.slane %v8910_v16, 3 }
 0x16b   : > { %7377 = vmatmul.mubr.msk.f32.gmra.mrb[12].mxu0 %vm812_vm3, %v1850_v23  ;;  %v1869_v23 = vrot.slane %v8847_v21, 3 }
 0x16c   : > { %7379 = vmatprep.mubr.msk.f32.mxu0 %vm812_vm3, %v1853_v52  ;;  %v1871_v52 = vrot.slane %v8873_v9, 3 }
 0x16d   : > { %v1870_v19 = vsel %vm1815_vm5, %v1867_v35, %v1869_v23 }
 0x16e   : > { %v1873_v12 = vsel %vm1815_vm5, %v1871_v52, %v1872_v30  ;;  %v1887_v52 = vrot.slane %v8930_v24, 3 }
 0x16f   : > { %7380 = vmatmul.mubr.msk.f32.gmra.mrb[14].mxu0 %vm812_vm3, %v1855_v36  ;;  %v1874_v36 = vrot.slane %v8867_v47, 3 }
 0x170   : > { %7382 = vmatprep.mubr.msk.f32.mxu0 %vm812_vm3, %v1858_v18  ;;  %v1876_v18 = vrot.slane %v8893_v11, 3 }
 0x171   : > { %v1875_v22 = vsel %vm1815_vm5, %v1872_v30, %v1874_v36 }
 0x172   : > { %v1878_v48 = vsel %vm1815_vm5, %v1876_v18, %v1877_v41  ;;  %v1892_v18 = vrot.slane %v8950_v42, 3 }
 0x173   : > { %7383 = vmatmul.mubr.msk.f32.gmra.mrb[16].mxu0 %vm812_vm3, %v1860_v59  ;;  %v1879_v59 = vrot.slane %v8887_v56, 3 }
 0x174   : > { %7385 = vmatprep.mubr.msk.f32.mxu0 %vm812_vm3, %v1863_v57  ;;  %v1881_v57 = vrot.slane %v8913_v17, 3 }
 0x175   : > { %v1880_v35 = vsel %vm1815_vm5, %v1877_v41, %v1879_v59 }
 0x176   : > { %v1883_v23 = vsel %vm1815_vm5, %v1881_v57, %v1882_v20  ;;  %v2229_v57 = vrot.slane %v8611_v28, 4 }
 0x177   : > { %7386 = vmatmul.mubr.msk.f32.gmra.mrb[18].mxu0 %vm812_vm3, %v1865_v60  ;;  %v1884_v60 = vrot.slane %v8907_v49, 3 }
 0x178   : > { %7388 = vmatprep.mubr.msk.f32.mxu0 %vm812_vm3, %v1868_v58  ;;  %v1886_v58 = vrot.slane %v8933_v26, 3 }
 0x179   : > { %v1885_v30 = vsel %vm1815_vm5, %v1882_v20, %v1884_v60  ;;  %v2232_v20 = vrot.slane %v8624_v33, 4  ;;  %v2239_v33 = vrot.slane %v8664_v14, 4 }
 0x17a   : > { %v1888_v36 = vsel %vm1815_vm5, %v1886_v58, %v1887_v52  ;;  %v2235_v58 = vrot.slane %v8618_v31, 4  ;;  %v2242_v31 = vrot.slane %v8655_v51, 4  ;;  %v2249_v51 = vrot.slane %v8718_v55, 4 }
 0x17b   : > { %7389 = vmatmul.mubr.msk.f32.gmra.mrb[20].mxu0 %vm812_vm3, %v1870_v19  ;;  %v1889_v19 = vrot.slane %v8927_v46, 3 }
 0x17c   : > { %7391 = vmatprep.mubr.msk.f32.mxu0 %vm812_vm3, %v1873_v12  ;;  %v1891_v12 = vrot.slane %v8953_v43, 3 }
 0x17d   : > { %v1890_v41 = vsel %vm1815_vm5, %v1887_v52, %v1889_v19  ;;  %v2237_v52 = vrot.slane %v8633_v38, 4  ;;  %v2244_v38 = vrot.slane %v8692_v25, 4 }
 0x17e   : > { %v1893_v59 = vsel %vm1815_vm5, %v1891_v12, %v1892_v18 }
 0x17f   : > { %7392 = vmatmul.mubr.msk.f32.gmra.mrb[22].mxu0 %vm812_vm3, %v1875_v22  ;;  %v1894_v22 = vrot.slane %v8947_v29, 3 }
 0x180   : > { %7394 = vmatprep.mubr.msk.f32.mxu0 %vm812_vm3, %v1878_v48  ;;  %v2230_v48 = vrot.slane %v8621_v32, 4 }
 0x182   : > { %v2231_v60 = vsel %vm2228_vm6, %v2229_v57, %v2230_v48  ;;  %v2233_v32 = vsel %vm2228_vm6, %v2230_v48, %v2232_v20  ;;  %v2260_v48 = vrot.slane %v8769_v63, 4  ;;  %v2265_v20 = vrot.slane %v8789_v1, 4 }
 0x183   : > { %7395 = vmatmul.mubr.msk.f32.gmra.mrb[24].mxu0 %vm812_vm3, %v1880_v35  ;;  %v1895_v35 = vsel %vm1815_vm5, %v1892_v18, %v1894_v22  ;;  %v2250_v18 = vrot.slane %v8715_v54, 4  ;;  %v2255_v22 = vrot.slane %v8741_v37, 4  ;;  %v2257_v54 = vrot.slane %v8738_v61, 4 }
 0x184   : > { %7397 = vmatprep.mubr.msk.f32.mxu0 %vm812_vm3, %v1883_v23  ;;  %v2234_v23 = vrot.slane %v8608_v27, 4  ;;  %v2238_v27 = vsel %vm2228_vm6, %v2235_v58, %v2237_v52  ;;  %v2262_v37 = vrot.slane %v8766_v62, 4  ;;  %v2264_v61 = vrot.slane %v8792_v44, 4 }
 0x185   : > { %v2267_v63 = vrot.slane %v8786_v0, 4  ;;  %v2269_v62 = vrot.slane %v8813_v3, 4  ;;  %v2272_v1 = vrot.slane %v8807_v15, 4  ;;  %v2274_v0 = vrot.slane %v8833_v5, 4 }
 0x186   : > { %v2236_v28 = vsel %vm2228_vm6, %v2234_v23, %v2235_v58  ;;  %v2275_v58 = vrot.slane %v8830_v4, 4  ;;  %v2279_v15 = vrot.slane %v8853_v7, 4  ;;  %v2280_v52 = vrot.slane %v8850_v6, 4 }
 0x187   : > { %7398 = vmatmul.mubr.msk.f32.gmra.mrb[26].mxu0 %vm812_vm3, %v1885_v30  ;;  %v2240_v30 = vrot.slane %v8661_v13, 4  ;;  %v2247_v13 = vrot.slane %v8685_v34, 4  ;;  %v2254_v34 = vrot.slane %v8744_v40, 4  ;;  %v2258_v40 = vsel %vm2228_vm6, %v2255_v22, %v2257_v54 }
 0x188   : > { %7400 = vmatprep.mubr.msk.f32.mxu0 %vm812_vm3, %v1888_v36  ;;  %v2245_v36 = vrot.slane %v8689_v39, 4  ;;  %v2252_v39 = vrot.slane %v8712_v53, 4  ;;  %v2259_v53 = vrot.slane %v8772_v50, 4  ;;  %v2263_v50 = vsel %vm2228_vm6, %v2260_v48, %v2262_v37 }
 0x189   : > { %v2241_v19 = vsel %vm2228_vm6, %v2239_v33, %v2240_v30  ;;  %v2243_v14 = vsel %vm2228_vm6, %v2240_v30, %v2242_v31  ;;  %v2268_v44 = vsel %vm2228_vm6, %v2265_v20, %v2267_v63  ;;  %v2282_v4 = vrot.slane %v8847_v21, 4 }
 0x18a   : > { %v2246_v12 = vsel %vm2228_vm6, %v2244_v38, %v2245_v36  ;;  %v2248_v25 = vsel %vm2228_vm6, %v2245_v36, %v2247_v13  ;;  %v2253_v55 = vsel %vm2228_vm6, %v2250_v18, %v2252_v39  ;;  %v2261_v57 = vsel %vm2228_vm6, %v2259_v53, %v2260_v48 }
 0x18b   : > { %7401 = vmatmul.mubr.msk.f32.gmra.mrb[28].mxu0 %vm812_vm3, %v1890_v41  ;;  %v2251_v41 = vsel %vm2228_vm6, %v2249_v51, %v2250_v18  ;;  %v2285_v33 = vrot.slane %v8870_v8, 4  ;;  %v2283_v7 = vsel %vm2228_vm6, %v2280_v52, %v2282_v4  ;;  %v2287_v6 = vrot.slane %v8867_v47, 4  ;;  %v9463_v18 = vpop.permute.xlu0 %2893 }
 0x18c   : > { %7403 = vmatprep.mubr.msk.f32.mxu0 %vm812_vm3, %v1893_v59  ;;  %v2256_v59 = vsel %vm2228_vm6, %v2254_v34, %v2255_v22  ;;  %v2289_v21 = vrot.slane %v8893_v11, 4  ;;  %v2292_v8 = vrot.slane %v8887_v56, 4  ;;  %v2294_v47 = vrot.slane %v8913_v17, 4  ;;  %v3262_v34 = vld [vmem:[%s11384_s4 + $0x8] sm:$0xff]  ;;  %v3263_v22 = vld [vmem:[%s11384_s4 + $0x10] sm:$0xff] }
 0x18d   : > { %v2299_v56 = vrot.slane %v8933_v26, 4  ;;  %v2300_v36 = vrot.slane %v8930_v24, 4  ;;  %v2305_v13 = vrot.slane %v8950_v42, 4  ;;  %v2307_v24 = vrot.slane %v8947_v29, 4  ;;  %v9459_v42 = vld [vmem:[%s11383_s3] ss:$0 sm:$0xff] }
 0x18f   : > { %7404 = vmatmul.mubr.msk.f32.gmra.mrb[30].mxu0 %vm812_vm3, %v1895_v35  ;;  %v2266_v35 = vsel %vm2228_vm6, %v2264_v61, %v2265_v20 }
 0x190   : > { %7426 = vmatprep.mubr.msk.f32.mxu0 %vm812_vm3, %v2231_v60  ;;  %v2270_v60 = vrot.slane %v8810_v2, 4  ;;  %v2277_v2 = vrot.slane %v8827_v45, 4  ;;  %v2284_v45 = vrot.slane %v8873_v9, 4  ;;  %v2288_v9 = vsel %vm2228_vm6, %v2285_v33, %v2287_v6 }
 0x192   : > { %v2271_v23 = vsel %vm2228_vm6, %v2269_v62, %v2270_v60  ;;  %v2273_v3 = vsel %vm2228_vm6, %v2270_v60, %v2272_v1  ;;  %v2278_v5 = vsel %vm2228_vm6, %v2275_v58, %v2277_v2  ;;  %v2286_v30 = vsel %vm2228_vm6, %v2284_v45, %v2285_v33 }
 0x193   : > { %7427 = vmatmul.mubr.msk.f32.vlgmr.msra.gmra.mrb[0].mxu0 %vm812_vm3, %v2233_v32  ;;  %v2276_v32 = vsel %vm2228_vm6, %v2274_v0, %v2275_v58 }
 0x194   : > { %7429 = vmatprep.mubr.msk.f32.mxu0 %vm812_vm3, %v2236_v28  ;;  %v2281_v28 = vsel %vm2228_vm6, %v2279_v15, %v2280_v52 }
 0x197   : > { %7430 = vmatmul.mubr.msk.f32.gmra.mrb[2].mxu0 %vm812_vm3, %v2238_v27  ;;  %v2290_v27 = vrot.slane %v8890_v10, 4  ;;  %v2297_v10 = vrot.slane %v8907_v49, 4  ;;  %v2304_v49 = vrot.slane %v8953_v43, 4  ;;  %v9461_v43 = vpop.permute.xlu1 %2895 }
 0x198   : > { %7432 = vmatprep.mubr.msk.f32.mxu0 %vm812_vm3, %v2241_v19  ;;  %v2295_v19 = vrot.slane %v8910_v16, 4  ;;  %v2302_v16 = vrot.slane %v8927_v46, 4  ;;  %v2308_v46 = vsel %vm2228_vm6, %v2305_v13, %v2307_v24  ;;  %v6596_v24 = vld [vmem:[%s11384_s4 + $0x28] sm:$0xff] }
 0x199   : > { %v2291_v31 = vsel %vm2228_vm6, %v2289_v21, %v2290_v27  ;;  %v2293_v11 = vsel %vm2228_vm6, %v2290_v27, %v2292_v8 }
 0x19a   : > { %v2296_v38 = vsel %vm2228_vm6, %v2294_v47, %v2295_v19  ;;  %v2298_v17 = vsel %vm2228_vm6, %v2295_v19, %v2297_v10  ;;  %v2303_v26 = vsel %vm2228_vm6, %v2300_v36, %v2302_v16 }
 0x19b   : > { %7433 = vmatmul.mubr.msk.f32.gmra.mrb[4].mxu0 %vm812_vm3, %v2243_v14  ;;  %v2301_v14 = vsel %vm2228_vm6, %v2299_v56, %v2300_v36  ;;  %v9488_v61 = vpop.permute.xlu1 %2899 }
 0x19c   : > { %7435 = vmatprep.mubr.msk.f32.mxu0 %vm812_vm3, %v2246_v12  ;;  %v2306_v12 = vsel %vm2228_vm6, %v2304_v49, %v2305_v13 }
 0x19f   : > { %7436 = vmatmul.mubr.msk.f32.gmra.mrb[6].mxu0 %vm812_vm3, %v2248_v25  ;;  %v9504_v0 = vpop.permute.xlu1 %2903 }
 0x1a0   : > { %7438 = vmatprep.mubr.msk.f32.mxu0 %vm812_vm3, %v2251_v41  ;;  %v3261_v41 = vld [vmem:[%s11384_s4] sm:$0xff] }
 0x1a1   : > { %v7854_v54 = vpack.c.bf16 %v3262_v34, %v3261_v41 }
 0x1a3   : > { %7439 = vmatmul.mubr.msk.f32.gmra.mrb[8].mxu0 %vm812_vm3, %v2253_v55  ;;  %7855 = vmatprep.subr.bf16.mxu1 %v7854_v54  ;;  %v9520_v27 = vpop.permute.xlu1 %2907 }
 0x1a4   : > { %7441 = vmatprep.mubr.msk.f32.mxu0 %vm812_vm3, %v2256_v59  ;;  %v3264_v59 = vld [vmem:[%s11384_s4 + $0x18] sm:$0xff]  ;;  %7857 = vmatpush3.bf16.msra.mxu1 %v7854_v54 }
 0x1a7   : > { %7442 = vmatmul.mubr.msk.f32.gmra.mrb[10].mxu0 %vm812_vm3, %v2258_v40  ;;  %v7858_v40 = vpack.c.bf16 %v3264_v59, %v3263_v22  ;;  %v9536_v13 = vpop.permute.xlu1 %2911 }
 0x1a8   : > { %7444 = vmatprep.mubr.msk.f32.mxu0 %vm812_vm3, %v2261_v57 }
 0x1a9   : > { %7859 = vmatprep.subr.bf16.mxu1 %v7858_v40 }
 0x1aa   : > { %7861 = vmatpush3.bf16.msra.mxu1 %v7858_v40 }
 0x1ab   : > { %7445 = vmatmul.mubr.msk.f32.gmra.mrb[12].mxu0 %vm812_vm3, %v2263_v50  ;;  %v9493_v50 = vpop.permute.xlu0 %2897 }
 0x1ac   : > { %7447 = vmatprep.mubr.msk.f32.mxu0 %vm812_vm3, %v2266_v35 }
 0x1af   : > { %7448 = vmatmul.mubr.msk.f32.gmra.mrb[14].mxu0 %vm812_vm3, %v2268_v44  ;;  %v9507_v2 = vpop.permute.xlu0 %2901 }
 0x1b0   : > { %7450 = vmatprep.mubr.msk.f32.mxu0 %vm812_vm3, %v2271_v23 }
 0x1b3   : > { %7451 = vmatmul.mubr.msk.f32.gmra.mrb[16].mxu0 %vm812_vm3, %v2273_v3  ;;  %v9525_v8 = vpop.permute.xlu0 %2905 }
 0x1b4   : > { %7453 = vmatprep.mubr.msk.f32.mxu0 %vm812_vm3, %v2276_v32 }
 0x1b7   : > { %7454 = vmatmul.mubr.msk.f32.gmra.mrb[18].mxu0 %vm812_vm3, %v2278_v5  ;;  %v9545_v41 = vpop.permute.xlu0 %2909 }
 0x1b8   : > { %7456 = vmatprep.mubr.msk.f32.mxu0 %vm812_vm3, %v2281_v28 }
 0x1bb   : > { %7457 = vmatmul.mubr.msk.f32.gmra.mrb[20].mxu0 %vm812_vm3, %v2283_v7 }
 0x1bc   : > { %7459 = vmatprep.mubr.msk.f32.mxu0 %vm812_vm3, %v2286_v30 }
 0x1bf   : > { %7460 = vmatmul.mubr.msk.f32.gmra.mrb[22].mxu0 %vm812_vm3, %v2288_v9 }
 0x1c0   : > { %7462 = vmatprep.mubr.msk.f32.mxu0 %vm812_vm3, %v2291_v31 }
 0x1c3   : > { %7463 = vmatmul.mubr.msk.f32.gmra.mrb[24].mxu0 %vm812_vm3, %v2293_v11 }
 0x1c4   : > { %7465 = vmatprep.mubr.msk.f32.mxu0 %vm812_vm3, %v2296_v38 }
 0x1c7   : > { %7466 = vmatmul.mubr.msk.f32.gmra.mrb[26].mxu0 %vm812_vm3, %v2298_v17 }
 0x1c8   : > { %7468 = vmatprep.mubr.msk.f32.mxu0 %vm812_vm3, %v2301_v14 }
 0x1cb   : > { %7469 = vmatmul.mubr.msk.f32.gmra.mrb[28].mxu0 %vm812_vm3, %v2303_v26  ;;  %v6595_v26 = vld [vmem:[%s11384_s4 + $0x20] sm:$0xff] }
 0x1cc   : > { %7471 = vmatprep.mubr.msk.f32.mxu0 %vm812_vm3, %v2306_v12  ;;  %v9547_v34 = vpack.c.bf16 %v6596_v24, %v6595_v26 }
 0x1ce   : > { %7863 = vmatprep.subr.bf16.mxu1 %v9547_v34 }
 0x1cf   : > { %7472 = vmatmul.mubr.msk.f32.gmra.mrb[30].mxu0 %vm812_vm3, %v2308_v46 }
 0x266   : > { %v7428_v51 = vpop.f32.mrb[0].mxu0 }
 0x267   : > { %v9466_v29 = vadd.f32 %v7428_v51, %v9459_v42  ;;  %v2439_v25 = vpop.f32.mrb[1].mxu0 }
 0x268   : > { %v9469_v39 = vadd.f32 %v9459_v42, %v2439_v25 }
 0x269   : > { %v6532_v55 = vmul.f32 -1.442695, %v9466_v29 }
 0x26a   : > { %11489 = vst [vmem:[#allocation2_spill] sm:$0xff] %v9469_v39  ;;  %v6531_v53 = vmul.f32 -1.442695, %v9469_v39  ;;  %v7431_v48 = vpop.f32.mrb[2].mxu0 }
 0x26b   : > { %8049 = vpow2.f32 %v6532_v55  ;;  %v9486_v37 = vadd.f32 %v7431_v48, %v9459_v42  ;;  %v2449_v57 = vpop.f32.mrb[3].mxu0 }
 0x26c   : > { %8051 = vpow2.f32 %v6531_v53  ;;  %v9491_v20 = vadd.f32 %v9459_v42, %v2449_v57 }
 0x26d   : > { %11490 = vst [vmem:[#allocation3_spill] sm:$0xff] %v9486_v37  ;;  %v6534_v63 = vmul.f32 -1.442695, %v9486_v37  ;;  %v6703_v37 = vld [vmem:[%s11384_s4 + $0x80] sm:$0xff] }
 0x26e   : > { %11491 = vst [vmem:[#allocation4_spill] sm:$0xff] %v9491_v20  ;;  %v6533_v35 = vmul.f32 -1.442695, %v9491_v20  ;;  %v7434_v62 = vpop.f32.mrb[4].mxu0 }
 0x26f   : > { %8053 = vpow2.f32 %v6534_v63  ;;  %v9498_v60 = vadd.f32 %v7434_v62, %v9459_v42  ;;  %v2459_v44 = vpop.f32.mrb[5].mxu0 }
 0x270   : > { %8055 = vpow2.f32 %v6533_v35  ;;  %v9501_v1 = vadd.f32 %v9459_v42, %v2459_v44 }
 0x271   : > { %11492 = vst [vmem:[#allocation5_spill] sm:$0xff] %v9498_v60  ;;  %v6536_v23 = vmul.f32 -1.442695, %v9498_v60 }
 0x272   : > { %11493 = vst [vmem:[#allocation6_spill] sm:$0xff] %v9501_v1  ;;  %v6535_v58 = vmul.f32 -1.442695, %v9501_v1  ;;  %v7437_v3 = vpop.f32.mrb[6].mxu0 }
 0x273   : > { %8057 = vpow2.f32 %v6536_v23  ;;  %v9510_v32 = vadd.f32 %v7437_v3, %v9459_v42  ;;  %v2469_v15 = vpop.f32.mrb[7].mxu0  ;;  %v9569_v3 = vpop.permute.xlu1 %2915 }
 0x274   : > { %8059 = vpow2.f32 %v6535_v58  ;;  %v9513_v52 = vadd.f32 %v9459_v42, %v2469_v15 }
 0x275   : > { %11494 = vst [vmem:[#allocation7_spill] sm:$0xff] %v9510_v32  ;;  %v8050_v5 = vpop.eup %8049  ;;  %v6538_v4 = vmul.f32 -1.442695, %v9510_v32 }
 0x276   : > { %11495 = vst [vmem:[#allocation8_spill] sm:$0xff] %v9513_v52  ;;  %v8052_v28 = vpop.eup %8051  ;;  %v2766_v45 = vadd.f32 1.0, %v8050_v5  ;;  %v6537_v33 = vmul.f32 -1.442695, %v9513_v52  ;;  %v7440_v7 = vpop.f32.mrb[8].mxu0 }
 0x277   : > { %v2765_v6 = vadd.f32 1.0, %v8052_v28  ;;  %8061 = vpow2.f32 %v6538_v4  ;;  %v9518_v30 = vadd.f32 %v7440_v7, %v9459_v42  ;;  %v2479_v21 = vpop.f32.mrb[9].mxu0  ;;  %v9576_v28 = vpop.permute.xlu0 %2913 }
 0x278   : > { %8063 = vrcp.f32 %v2766_v45  ;;  %v9523_v9 = vadd.f32 %v9459_v42, %v2479_v21 }
 0x279   : > { %11496 = vst [vmem:[#allocation9_spill] sm:$0xff] %v9518_v30  ;;  %v8054_v31 = vpop.eup %8053  ;;  %8065 = vrcp.f32 %v2765_v6  ;;  %v6540_v47 = vmul.f32 -1.442695, %v9518_v30 }
 0x27a   : > { %11497 = vst [vmem:[#allocation10_spill] sm:$0xff] %v9523_v9  ;;  %v8056_v19 = vpop.eup %8055  ;;  %v2768_v11 = vadd.f32 1.0, %v8054_v31  ;;  %8067 = vpow2.f32 %v6537_v33  ;;  %v6539_v10 = vmul.f32 -1.442695, %v9523_v9  ;;  %v7443_v38 = vpop.f32.mrb[10].mxu0 }
 0x27b   : > { %v2767_v56 = vadd.f32 1.0, %v8056_v19  ;;  %8069 = vpow2.f32 %v6540_v47  ;;  %v9530_v36 = vadd.f32 %v7443_v38, %v9459_v42  ;;  %v2489_v17 = vpop.f32.mrb[11].mxu0 }
 0x27c   : > { %8071 = vrcp.f32 %v2768_v11  ;;  %v9533_v16 = vadd.f32 %v9459_v42, %v2489_v17 }
 0x27d   : > { %11498 = vst [vmem:[#allocation11_spill] sm:$0xff] %v9530_v36  ;;  %v8058_v14 = vpop.eup %8057  ;;  %8073 = vrcp.f32 %v2767_v56  ;;  %v6542_v49 = vmul.f32 -1.442695, %v9530_v36 }
 0x27e   : > { %11499 = vst [vmem:[#allocation12_spill] sm:$0xff] %v9533_v16  ;;  %v8060_v12 = vpop.eup %8059  ;;  %v2770_v46 = vadd.f32 1.0, %v8058_v14  ;;  %8075 = vpow2.f32 %v6539_v10  ;;  %v6541_v51 = vmul.f32 -1.442695, %v9533_v16  ;;  %v7446_v25 = vpop.f32.mrb[12].mxu0 }
 0x27f   : > { %v2769_v22 = vadd.f32 1.0, %v8060_v12  ;;  %8077 = vpow2.f32 %v6542_v49  ;;  %v9550_v55 = vadd.f32 %v7446_v25, %v9459_v42  ;;  %v2499_v54 = vpop.f32.mrb[13].mxu0 }
 0x280   : > { %8079 = vrcp.f32 %v2770_v46  ;;  %v9553_v59 = vadd.f32 %v9459_v42, %v2499_v54 }
 0x281   : > { %11500 = vst [vmem:[#allocation13_spill] sm:$0xff] %v9550_v55  ;;  %v8062_v53 = vpop.eup %8061  ;;  %8081 = vrcp.f32 %v2769_v22  ;;  %v6544_v48 = vmul.f32 -1.442695, %v9550_v55 }
 0x282   : > { %11501 = vst [vmem:[#allocation14_spill] sm:$0xff] %v9553_v59  ;;  %v9557_v40 = vpop.eup %8063  ;;  %v2772_v57 = vadd.f32 1.0, %v8062_v53  ;;  %8083 = vpow2.f32 %v6541_v51  ;;  %v6543_v63 = vmul.f32 -1.442695, %v9553_v59  ;;  %v7449_v35 = vpop.f32.mrb[14].mxu0 }
 0x283   : > { %11502 = vst [vmem:[#allocation15_spill] sm:$0xff] %v9557_v40  ;;  %v9560_v62 = vpop.eup %8065  ;;  %8085 = vpow2.f32 %v6544_v48  ;;  %v9564_v44 = vmul.f32 %v9557_v40, %v9461_v43  ;;  %v9567_v23 = vadd.f32 %v7449_v35, %v9459_v42  ;;  %v2509_v58 = vpop.f32.mrb[15].mxu0 }
 0x284   : > { %11503 = vst [vmem:[#allocation16_spill] sm:$0xff] %v9560_v62  ;;  %v8068_v15 = vpop.eup %8067  ;;  %8087 = vrcp.f32 %v2772_v57  ;;  %v2989_v5 = vmul.f32 %v9560_v62, %v9463_v18  ;;  %v9574_v4 = vadd.f32 %v9459_v42, %v2509_v58  ;;  %v9609_v53 = vpop.permute.xlu0 %2917 }
 0x285   : > { %11504 = vst [vmem:[#allocation17_spill] sm:$0xff] %v9567_v23  ;;  %v8070_v45 = vpop.eup %8069  ;;  %v2771_v33 = vadd.f32 1.0, %v8068_v15  ;;  %8089 = vpow2.f32 %v6543_v63  ;;  %v11388_v43 = vrot.slane %v9564_v44, 6  ;;  %v6546_v7 = vmul.f32 -1.442695, %v9567_v23 }
 0x286   : > { %11505 = vst [vmem:[#allocation18_spill] sm:$0xff] %v9574_v4  ;;  %v9580_v6 = vpop.eup %8071  ;;  %v2774_v21 = vadd.f32 1.0, %v8070_v45  ;;  %v3053_v31 = vrot.slane %v2989_v5, 6  ;;  %v6545_v47 = vmul.f32 -1.442695, %v9574_v4  ;;  %v7452_v19 = vpop.f32.mrb[16].mxu0 }
 0x287   : > { %11506 = vst [vmem:[#allocation19_spill] sm:$0xff] %v9580_v6  ;;  %v9583_v18 = vpop.eup %8073  ;;  %8091 = vrcp.f32 %v2771_v33  ;;  %v9587_v11 = vmul.f32 %v9580_v6, %v9488_v61  ;;  %v9590_v10 = vadd.f32 %v7452_v19, %v9459_v42  ;;  %v2519_v38 = vpop.f32.mrb[17].mxu0  ;;  %v6667_v4 = vld [vmem:[%s11384_s4 + $0x60] sm:$0xff] }
 0x288   : > { %11507 = vst [vmem:[#allocation20_spill] sm:$0xff] %v9583_v18  ;;  %v8076_v56 = vpop.eup %8075  ;;  %8093 = vrcp.f32 %v2774_v21  ;;  %v2991_v17 = vmul.f32 %v9583_v18, %v9493_v50  ;;  %v9595_v14 = vadd.f32 %v9459_v42, %v2519_v38  ;;  %3101 = vrot.lane.b32.xlu0 %v3053_v31, %s8298_s18  ;;  %v3055_v61 = vsel %vm565_vm1, %v3053_v31, %v11388_v43  ;;  %v9604_v50 = vpop.permute.xlu1 %2919 }
 0x289   : > { %11508 = vst [vmem:[#allocation21_spill] sm:$0xff] %v9590_v10  ;;  %v8078_v49 = vpop.eup %8077  ;;  %v2773_v26 = vadd.f32 1.0, %v8076_v56  ;;  %8095 = vpow2.f32 %v6546_v7  ;;  %v11387_v24 = vrot.slane %v9587_v11, 6  ;;  %v6548_v12 = vmul.f32 -1.442695, %v9590_v10  ;;  %3103 = vrot.lane.b32.xlu1 %v3055_v61, %s8298_s18 }
 0x28a   : > { %11509 = vst [vmem:[#allocation22_spill] sm:$0xff] %v9595_v14  ;;  %v9606_v46 = vpop.eup %8079  ;;  %v2776_v51 = vadd.f32 1.0, %v8078_v49  ;;  %8097 = vpow2.f32 %v6545_v47  ;;  %v3056_v25 = vrot.slane %v2991_v17, 6  ;;  %v6547_v22 = vmul.f32 -1.442695, %v9595_v14  ;;  %v7455_v54 = vpop.f32.mrb[18].mxu0 }
 0x28b   : > { %11510 = vst [vmem:[#allocation23_spill] sm:$0xff] %v9606_v46  ;;  %v9611_v48 = vpop.eup %8081  ;;  %8099 = vrcp.f32 %v2773_v26  ;;  %v9615_v57 = vmul.f32 %v9606_v46, %v9504_v0  ;;  %v9618_v63 = vadd.f32 %v7455_v54, %v9459_v42  ;;  %v2529_v35 = vpop.f32.mrb[19].mxu0 }
 0x28c   : > { %11511 = vst [vmem:[#allocation24_spill] sm:$0xff] %v9611_v48  ;;  %v8084_v58 = vpop.eup %8083  ;;  %8101 = vrcp.f32 %v2776_v51  ;;  %v2993_v15 = vmul.f32 %v9611_v48, %v9507_v2  ;;  %v9623_v5 = vadd.f32 %v9459_v42, %v2529_v35  ;;  %3107 = vrot.lane.b32.xlu0 %v3056_v25, %s8298_s18  ;;  %v3058_v45 = vsel %vm565_vm1, %v3056_v25, %v11387_v24  ;;  %v9642_v26 = vpop.permute.xlu1 %2923 }
 0x28d   : > { %11512 = vst [vmem:[#allocation25_spill] sm:$0xff] %v9618_v63  ;;  %v8086_v0 = vpop.eup %8085  ;;  %v2775_v33 = vadd.f32 1.0, %v8084_v58  ;;  %8103 = vpow2.f32 %v6548_v12  ;;  %v11386_v7 = vrot.slane %v9615_v57, 6  ;;  %v6550_v21 = vmul.f32 -1.442695, %v9618_v63  ;;  %3109 = vrot.lane.b32.xlu1 %v3058_v45, %s8298_s18 }
 0x28e   : > { %11513 = vst [vmem:[#allocation26_spill] sm:$0xff] %v9623_v5  ;;  %v9632_v31 = vpop.eup %8087  ;;  %v2778_v2 = vadd.f32 1.0, %v8086_v0  ;;  %8105 = vpow2.f32 %v6547_v22  ;;  %v3059_v47 = vrot.slane %v2993_v15, 6  ;;  %v7458_v19 = vpop.f32.mrb[20].mxu0  ;;  %v6549_v56 = vmul.f32 -1.442695, %v9623_v5 }
 0x28f   : > { %11514 = vst [vmem:[#allocation27_spill] sm:$0xff] %v9632_v31  ;;  %v8090_v38 = vpop.eup %8089  ;;  %8107 = vrcp.f32 %v2775_v33  ;;  %v9637_v17 = vmul.f32 %v9632_v31, %v9520_v27  ;;  %v9640_v61 = vadd.f32 %v7458_v19, %v9459_v42  ;;  %v2539_v49 = vpop.f32.mrb[21].mxu0 }
 0x290   : > { %8109 = vrcp.f32 %v2778_v2  ;;  %v2777_v12 = vadd.f32 1.0, %v8090_v38  ;;  %v9645_v51 = vadd.f32 %v9459_v42, %v2539_v49  ;;  %3113 = vrot.lane.b32.xlu0 %v3059_v47, %s8298_s18  ;;  %v3061_v25 = vsel %vm565_vm1, %v3059_v47, %v11386_v7  ;;  %v9651_v22 = vpop.permute.xlu0 %2921  ;;  %v9677_v7 = vpop.permute.xlu1 %2927 }
 0x291   : > { %11515 = vst [vmem:[#allocation28_spill] sm:$0xff] %v9640_v61  ;;  %v9653_v27 = vpop.eup %8091  ;;  %8111 = vpow2.f32 %v6550_v21  ;;  %v6552_v54 = vmul.f32 -1.442695, %v9640_v61  ;;  %3115 = vrot.lane.b32.xlu1 %v3061_v25, %s8298_s18  ;;  %v11391_v58 = vrot.slane %v9637_v17, 6 }
 0x292   : > { %11516 = vst [vmem:[#allocation29_spill] sm:$0xff] %v9645_v51  ;;  %11517 = vst [vmem:[#allocation30_spill] sm:$0xff] %v9653_v27  ;;  %v9657_v35 = vpop.eup %8093  ;;  %8113 = vrcp.f32 %v2777_v12  ;;  %v2995_v15 = vmul.f32 %v9653_v27, %v9525_v8  ;;  %v6551_v45 = vmul.f32 -1.442695, %v9645_v51  ;;  %v7461_v0 = vpop.f32.mrb[22].mxu0 }
 0x293   : > { %11518 = vst [vmem:[#allocation31_spill] sm:$0xff] %v9657_v35  ;;  %v8096_v33 = vpop.eup %8095  ;;  %8115 = vpow2.f32 %v6549_v56  ;;  %v9665_v21 = vmul.f32 %v9657_v35, %v9536_v13  ;;  %v9668_v2 = vadd.f32 %v7461_v0, %v9459_v42  ;;  %v2549_v47 = vpop.f32.mrb[23].mxu0 }
 0x294   : > { %v8098_v19 = vpop.eup %8097  ;;  %v2780_v38 = vadd.f32 1.0, %v8096_v33  ;;  %8117 = vpow2.f32 %v6552_v54  ;;  %v3062_v49 = vrot.slane %v2995_v15, 6  ;;  %v9671_v12 = vadd.f32 %v9459_v42, %v2549_v47  ;;  %v9688_v47 = vpop.permute.xlu0 %2925 }
 0x295   : > { %11519 = vst [vmem:[#allocation32_spill] sm:$0xff] %v9668_v2  ;;  %v9673_v8 = vpop.eup %8099  ;;  %v2779_v25 = vadd.f32 1.0, %v8098_v19  ;;  %8119 = vpow2.f32 %v6551_v45  ;;  %v6554_v13 = vmul.f32 -1.442695, %v9668_v2 }
 0x296   : > { %11520 = vst [vmem:[#allocation33_spill] sm:$0xff] %v9671_v12  ;;  %11521 = vst [vmem:[#allocation34_spill] sm:$0xff] %v9673_v8  ;;  %v9679_v0 = vpop.eup %8101  ;;  %8121 = vrcp.f32 %v2780_v38  ;;  %v2997_v54 = vmul.f32 %v9673_v8, %v9545_v41  ;;  %v6553_v15 = vmul.f32 -1.442695, %v9671_v12  ;;  %3119 = vrot.lane.b32.xlu0 %v3062_v49, %s8298_s18  ;;  %v3064_v45 = vsel %vm565_vm1, %v3062_v49, %v11391_v58  ;;  %v7464_v33 = vpop.f32.mrb[24].mxu0 }
 0x297   : > { %11522 = vst [vmem:[#allocation35_spill] sm:$0xff] %v9679_v0  ;;  %v8104_v19 = vpop.eup %8103  ;;  %8123 = vrcp.f32 %v2779_v25  ;;  %3121 = vrot.lane.b32.xlu1 %v3064_v45, %s8298_s18  ;;  %v9693_v38 = vmul.f32 %v9679_v0, %v9569_v3  ;;  %v9696_v41 = vadd.f32 %v7464_v33, %v9459_v42  ;;  %v2559_v24 = vpop.f32.mrb[25].mxu0 }
 0x298   : > { %v8106_v43 = vpop.eup %8105  ;;  %v2782_v56 = vadd.f32 1.0, %v8104_v19  ;;  %8125 = vpow2.f32 %v6554_v13  ;;  %v3065_v8 = vrot.slane %v2997_v54, 6  ;;  %v9699_v49 = vadd.f32 %v9459_v42, %v2559_v24  ;;  %v9722_v45 = vpop.permute.xlu1 %2931 }
 0x299   : > { %11523 = vst [vmem:[#allocation36_spill] sm:$0xff] %v9696_v41  ;;  %v9701_v58 = vpop.eup %8107  ;;  %v2781_v25 = vadd.f32 1.0, %v8106_v43  ;;  %8127 = vpow2.f32 %v6553_v15  ;;  %v6556_v3 = vmul.f32 -1.442695, %v9696_v41  ;;  %v11527_v24 = vrot.slane %v9665_v21, 6  ;;  %v6634_v41 = vld [vmem:[%s11384_s4 + $0x58] sm:$0xff] }
 0x29a   : > { %11524 = vst [vmem:[#allocation37_spill] sm:$0xff] %v9699_v49  ;;  %11525 = vst [vmem:[#allocation38_spill] sm:$0xff] %v9701_v58  ;;  %v9705_v0 = vpop.eup %8109  ;;  %8129 = vrcp.f32 %v2782_v56  ;;  %v2999_v33 = vmul.f32 %v9701_v58, %v9576_v28  ;;  %v6555_v13 = vmul.f32 -1.442695, %v9699_v49  ;;  %3125 = vrot.lane.b32.xlu0 %v3065_v8, %s8298_s18  ;;  %v7467_v43 = vpop.f32.mrb[26].mxu0 }
 0x29b   : > { %11526 = vst [vmem:[#allocation39_spill] sm:$0xff] %v9705_v0  ;;  %v3067_v54 = vsel %vm565_vm1, %v3065_v8, %v11527_v24  ;;  %v8112_v15 = vpop.eup %8111  ;;  %8131 = vrcp.f32 %v2781_v25  ;;  %v9717_v19 = vmul.f32 %v9705_v0, %v9604_v50  ;;  %v9720_v56 = vadd.f32 %v7467_v43, %v9459_v42  ;;  %v2569_v28 = vpop.f32.mrb[27].mxu0 }
 0x29c   : > { %3127 = vrot.lane.b32.xlu1 %v3067_v54, %s8298_s18  ;;  %v9724_v58 = vpop.eup %8113  ;;  %v2784_v35 = vadd.f32 1.0, %v8112_v15  ;;  %8133 = vpow2.f32 %v6556_v3  ;;  %v3068_v8 = vrot.slane %v2999_v33, 6  ;;  %v9727_v24 = vadd.f32 %v9459_v42, %v2569_v28  ;;  %v9729_v25 = vpop.permute.xlu0 %2929 }
 0x29d   : > { %11528 = vst [vmem:[#allocation40_spill] sm:$0xff] %v9720_v56  ;;  %11529 = vst [vmem:[#allocation41_spill] sm:$0xff] %v9724_v58  ;;  %v8116_v54 = vpop.eup %8115  ;;  %8135 = vpow2.f32 %v6555_v13  ;;  %v6558_v43 = vmul.f32 -1.442695, %v9720_v56  ;;  %v3001_v0 = vmul.f32 %v9724_v58, %v9609_v53  ;;  %v11531_v33 = vrot.slane %v9693_v38, 6 }
 0x29e   : > { %11530 = vst [vmem:[#allocation42_spill] sm:$0xff] %v9727_v24  ;;  %v8118_v27 = vpop.eup %8117  ;;  %8137 = vrcp.f32 %v2784_v35  ;;  %v2783_v31 = vadd.f32 1.0, %v8116_v54  ;;  %v6557_v3 = vmul.f32 -1.442695, %v9727_v24  ;;  %3131 = vrot.lane.b32.xlu0 %v3068_v8, %s8298_s18  ;;  %v7470_v28 = vpop.f32.mrb[28].mxu0 }
 0x29f   : > { %v3070_v15 = vsel %vm565_vm1, %v3068_v8, %v11531_v33  ;;  %v8120_v13 = vpop.eup %8119  ;;  %v2786_v48 = vadd.f32 1.0, %v8118_v27  ;;  %8139 = vpow2.f32 %v6558_v43  ;;  %v3071_v50 = vrot.slane %v3001_v0, 6  ;;  %v2579_v35 = vpop.f32.mrb[29].mxu0 }
 0x2a0   : > { %3133 = vrot.lane.b32.xlu1 %v3070_v15, %s8298_s18  ;;  %v9742_v53 = vadd.f32 %v7470_v28, %v9459_v42  ;;  %v9744_v54 = vpop.eup %8121  ;;  %8141 = vrcp.f32 %v2783_v31  ;;  %v2785_v58 = vadd.f32 1.0, %v8120_v13  ;;  %v9747_v46 = vadd.f32 %v9459_v42, %v2579_v35  ;;  %v2936_v33 = vpop.permute.xlu1 %2935 }
 0x2a1   : > { %11533 = vst [vmem:[#allocation44_spill] sm:$0xff] %v9744_v54  ;;  %v9749_v18 = vpop.eup %8123  ;;  %8143 = vrcp.f32 %v2786_v48  ;;  %v9753_v27 = vmul.f32 %v9744_v54, %v9642_v26  ;;  %v11536_v8 = vrot.slane %v9717_v19, 6  ;;  %v2934_v13 = vpop.permute.xlu0 %2933 }
 0x2a2   : > { %11532 = vst [vmem:[#allocation43_spill] sm:$0xff] %v9742_v53  ;;  %11534 = vst [vmem:[#allocation45_spill] sm:$0xff] %v9747_v46  ;;  %v6560_v0 = vmul.f32 -1.442695, %v9742_v53  ;;  %v8126_v15 = vpop.eup %8125  ;;  %8145 = vrcp.f32 %v2785_v58  ;;  %v3003_v31 = vmul.f32 %v9749_v18, %v9651_v22  ;;  %v6559_v28 = vmul.f32 -1.442695, %v9747_v46  ;;  %3137 = vrot.lane.b32.xlu0 %v3071_v50, %s8298_s18 }
 0x2a3   : > { %11535 = vst [vmem:[#allocation46_spill] sm:$0xff] %v9749_v18  ;;  %v3073_v43 = vsel %vm565_vm1, %v3071_v50, %v11536_v8  ;;  %v7473_v48 = vpop.f32.mrb[30].mxu0  ;;  %v8128_v26 = vpop.eup %8127  ;;  %v2788_v35 = vadd.f32 1.0, %v8126_v15  ;;  %8147 = vpow2.f32 %v6557_v3  ;;  %v11425_v54 = vrot.slane %v9753_v27, 6 }
 0x2a4   : > { %3139 = vrot.lane.b32.xlu1 %v3073_v43, %s8298_s18  ;;  %v9766_v8 = vadd.f32 %v7473_v48, %v9459_v42  ;;  %v2589_v58 = vpop.f32.mrb[31].mxu0  ;;  %v9768_v6 = vpop.eup %8129  ;;  %v2787_v22 = vadd.f32 1.0, %v8128_v26  ;;  %8149 = vpow2.f32 %v6560_v0  ;;  %v3074_v18 = vrot.slane %v3003_v31, 6 }
 0x2a5   : > { %11538 = vst [vmem:[#allocation48_spill] sm:$0xff] %v9768_v6  ;;  %v9771_v50 = vadd.f32 %v9459_v42, %v2589_v58  ;;  %v9773_v62 = vpop.eup %8131  ;;  %8151 = vrcp.f32 %v2788_v35  ;;  %v9777_v3 = vmul.f32 %v9768_v6, %v9677_v7  ;;  %v2940_v35 = vpop.permute.xlu1 %2939 }
 0x2a6   : > { %11537 = vst [vmem:[#allocation47_spill] sm:$0xff] %v9766_v8  ;;  %11540 = vst [vmem:[#allocation50_spill] sm:$0xff] %v9773_v62  ;;  %v6562_v43 = vmul.f32 -1.442695, %v9766_v8  ;;  %v8134_v15 = vpop.eup %8133  ;;  %8153 = vrcp.f32 %v2787_v22  ;;  %v3005_v48 = vmul.f32 %v9773_v62, %v9688_v47  ;;  %3143 = vrot.lane.b32.xlu0 %v3074_v18, %s8298_s18  ;;  %v3076_v42 = vsel %vm565_vm1, %v3074_v18, %v11425_v54  ;;  %v2938_v62 = vpop.permute.xlu0 %2937 }
 0x2a7   : > { %11539 = vst [vmem:[#allocation49_spill] sm:$0xff] %v9771_v50  ;;  %v8136_v0 = vpop.eup %8135  ;;  %v2790_v31 = vadd.f32 1.0, %v8134_v15  ;;  %8155 = vpow2.f32 %v6559_v28  ;;  %v11424_v26 = vrot.slane %v9777_v3, 6  ;;  %v6561_v7 = vmul.f32 -1.442695, %v9771_v50 }
 0x2a8   : > { %3145 = vrot.lane.b32.xlu1 %v3076_v42, %s8298_s18  ;;  %v9789_v58 = vpop.eup %8137  ;;  %v2789_v22 = vadd.f32 1.0, %v8136_v0  ;;  %8157 = vpow2.f32 %v6562_v43  ;;  %v3077_v47 = vrot.slane %v3005_v48, 6 }
 0x2a9   : > { %11541 = vst [vmem:[#allocation51_spill] sm:$0xff] %v9789_v58  ;;  %v8140_v6 = vpop.eup %8139  ;;  %8159 = vrcp.f32 %v2790_v31  ;;  %v9793_v18 = vmul.f32 %v9789_v58, %v9722_v45 }
 0x2aa   : > { %v9795_v28 = vpop.eup %8141  ;;  %8161 = vrcp.f32 %v2789_v22  ;;  %v2792_v15 = vadd.f32 1.0, %v8140_v6  ;;  %3149 = vrot.lane.b32.xlu0 %v3077_v47, %s8298_s18  ;;  %v3079_v42 = vsel %vm565_vm1, %v3077_v47, %v11424_v26  ;;  %v2944_v26 = vpop.permute.xlu1 %2943 }
 0x2ab   : > { %11542 = vst [vmem:[#allocation52_spill] sm:$0xff] %v9795_v28  ;;  %v9801_v0 = vpop.eup %8143  ;;  %8163 = vpow2.f32 %v6561_v7  ;;  %v3007_v48 = vmul.f32 %v9795_v28, %v9729_v25  ;;  %v2942_v58 = vpop.permute.xlu0 %2941 }
 0x2ac   : > { %11543 = vst [vmem:[#allocation53_spill] sm:$0xff] %v9801_v0  ;;  %3151 = vrot.lane.b32.xlu1 %v3079_v42, %s8298_s18  ;;  %v9807_v45 = vpop.eup %8145  ;;  %8165 = vrcp.f32 %v2792_v15  ;;  %v9810_v6 = vmul.f32 %v9801_v0, %v2936_v33  ;;  %v11546_v15 = vrot.slane %v9793_v18, 6 }
 0x2ad   : > { %11544 = vst [vmem:[#allocation54_spill] sm:$0xff] %v9807_v45  ;;  %v8148_v31 = vpop.eup %8147  ;;  %v3080_v22 = vrot.slane %v3007_v48, 6  ;;  %v3009_v47 = vmul.f32 %v9807_v45, %v2934_v13 }
 0x2ae   : > { %v8150_v54 = vpop.eup %8149  ;;  %v2791_v7 = vadd.f32 1.0, %v8148_v31  ;;  %v11436_v43 = vrot.slane %v9810_v6, 6 }
 0x2af   : > { %v9814_v40 = vpop.eup %8151  ;;  %v2794_v25 = vadd.f32 1.0, %v8150_v54  ;;  %v3083_v42 = vrot.slane %v3009_v47, 6  ;;  %3155 = vrot.lane.b32.xlu0 %v3080_v22, %s8298_s18  ;;  %v3082_v33 = vsel %vm565_vm1, %v3080_v22, %v11546_v15 }
 0x2b0   : > { %11545 = vst [vmem:[#allocation55_spill] sm:$0xff] %v9814_v40  ;;  %v9820_v0 = vpop.eup %8153  ;;  %8167 = vrcp.f32 %v2791_v7  ;;  %3157 = vrot.lane.b32.xlu1 %v3082_v33, %s8298_s18  ;;  %v9824_v13 = vmul.f32 %v9814_v40, %v2940_v35  ;;  %v2948_v35 = vpop.permute.xlu1 %2947 }
 0x2b1   : > { %11547 = vst [vmem:[#allocation56_spill] sm:$0xff] %v9820_v0  ;;  %v8156_v48 = vpop.eup %8155  ;;  %8169 = vrcp.f32 %v2794_v25  ;;  %v3011_v31 = vmul.f32 %v9820_v0, %v2938_v62  ;;  %v3085_v54 = vsel %vm565_vm1, %v3083_v42, %v11436_v43  ;;  %v2946_v25 = vpop.permute.xlu0 %2945 }
 0x2b2   : > { %v8158_v47 = vpop.eup %8157  ;;  %v2793_v45 = vadd.f32 1.0, %v8156_v48  ;;  %v11443_v22 = vrot.slane %v9824_v13, 6 }
 0x2b3   : > { %v9831_v15 = vpop.eup %8159  ;;  %v2796_v7 = vadd.f32 1.0, %v8158_v47  ;;  %v3086_v28 = vrot.slane %v3011_v31, 6  ;;  %3161 = vrot.lane.b32.xlu0 %v3083_v42, %s8298_s18 }
 0x2b4   : > { %11548 = vst [vmem:[#allocation57_spill] sm:$0xff] %v9831_v15  ;;  %v9834_v33 = vpop.eup %8161  ;;  %8171 = vrcp.f32 %v2793_v45  ;;  %3163 = vrot.lane.b32.xlu1 %v3085_v54, %s8298_s18  ;;  %v3014_v62 = vmul.f32 %v9831_v15, %v2944_v26  ;;  %v2952_v54 = vpop.permute.xlu1 %2951 }
 0x2b5   : > { %11549 = vst [vmem:[#allocation58_spill] sm:$0xff] %v9834_v33  ;;  %v8164_v43 = vpop.eup %8163  ;;  %8173 = vrcp.f32 %v2796_v7  ;;  %v3013_v48 = vmul.f32 %v9834_v33, %v2942_v58  ;;  %v3088_v47 = vsel %vm565_vm1, %v3086_v28, %v11443_v22  ;;  %v2950_v7 = vpop.permute.xlu0 %2949 }
 0x2b6   : > { %v9842_v31 = vpop.eup %8165  ;;  %v2795_v42 = vadd.f32 1.0, %v8164_v43  ;;  %v3090_v0 = vrot.slane %v3014_v62, 6 }
 0x2b7   : > { %11550 = vst [vmem:[#allocation59_spill] sm:$0xff] %v9842_v31  ;;  %v3089_v40 = vrot.slane %v3013_v48, 6  ;;  %3167 = vrot.lane.b32.xlu0 %v3086_v28, %s8298_s18  ;;  %v3016_v45 = vmul.f32 %v9842_v31, %v2948_v35 }
 0x2b8   : > { %8175 = vrcp.f32 %v2795_v42  ;;  %3169 = vrot.lane.b32.xlu1 %v3088_v47, %s8298_s18  ;;  %v2956_v31 = vpop.permute.xlu1 %2955 }
 0x2b9   : > { %v3091_v26 = vsel %vm565_vm1, %v3089_v40, %v3090_v0  ;;  %v3093_v22 = vrot.slane %v3016_v45, 6 }
 0x2ba   : > { %v9848_v58 = vpop.eup %8167 }
 0x2bb   : > { %11551 = vst [vmem:[#allocation60_spill] sm:$0xff] %v9848_v58  ;;  %v9850_v33 = vpop.eup %8169  ;;  %v3015_v43 = vmul.f32 %v9848_v58, %v2946_v25  ;;  %3173 = vrot.lane.b32.xlu0 %v3089_v40, %s8298_s18  ;;  %v2954_v40 = vpop.permute.xlu0 %2953 }
 0x2bc   : > { %11552 = vst [vmem:[#allocation61_spill] sm:$0xff] %v9850_v33  ;;  %3175 = vrot.lane.b32.xlu1 %v3091_v26, %s8298_s18  ;;  %v3018_v28 = vmul.f32 %v9850_v33, %v2952_v54 }
 0x2bd   : > { %v3092_v35 = vrot.slane %v3015_v43, 6 }
 0x2be   : > { %v9856_v62 = vpop.eup %8171  ;;  %v3096_v47 = vrot.slane %v3018_v28, 6 }
 0x2bf   : > { %11553 = vst [vmem:[#allocation62_spill] sm:$0xff] %v9856_v62  ;;  %v9858_v48 = vpop.eup %8173  ;;  %v3017_v42 = vmul.f32 %v9856_v62, %v2950_v7  ;;  %3179 = vrot.lane.b32.xlu0 %v3092_v35, %s8298_s18  ;;  %v3094_v45 = vsel %vm565_vm1, %v3092_v35, %v3093_v22  ;;  %v11556_v35 = vrot.slane %v9564_v44, 6  ;;  %v11560_v44 = vrot.slane %v9665_v21, 6 }
 0x2c0   : > { %11554 = vst [vmem:[#allocation63_spill] sm:$0xff] %v9858_v48  ;;  %3181 = vrot.lane.b32.xlu1 %v3094_v45, %s8298_s18  ;;  %v3020_v54 = vmul.f32 %v9858_v48, %v2956_v31  ;;  %v11557_v31 = vrot.slane %v9587_v11, 6  ;;  %v11558_v45 = vrot.slane %v9615_v57, 6  ;;  %v11562_v11 = vrot.slane %v9717_v19, 6 }
 0x2c1   : > { %v3095_v25 = vrot.slane %v3017_v42, 6  ;;  %v11563_v57 = vrot.slane %v9753_v27, 6  ;;  %v11565_v21 = vrot.slane %v9793_v18, 6  ;;  %v11567_v19 = vrot.slane %v9824_v13, 6  ;;  %v6597_v27 = vld [vmem:[%s11384_s4 + $0x30] sm:$0xff] }
 0x2c2   : > { %v9864_v26 = vpop.eup %8175  ;;  %v3099_v62 = vrot.slane %v3020_v54, 6 }
 0x2c3   : > { %11555 = vst [vmem:[#allocation64_spill] sm:$0xff] %v9864_v26  ;;  %v3019_v43 = vmul.f32 %v9864_v26, %v2954_v40  ;;  %3185 = vrot.lane.b32.xlu0 %v3095_v25, %s8298_s18  ;;  %v3097_v28 = vsel %vm565_vm1, %v3095_v25, %v3096_v47  ;;  %v11559_v40 = vrot.slane %v9637_v17, 6  ;;  %v11561_v25 = vrot.slane %v9693_v38, 6 }
 0x2c4   : > { %3187 = vrot.lane.b32.xlu1 %v3097_v28, %s8298_s18  ;;  %v11564_v17 = vrot.slane %v9777_v3, 6  ;;  %v11566_v38 = vrot.slane %v9810_v6, 6  ;;  %v6598_v3 = vld [vmem:[%s11384_s4 + $0x38] sm:$0xff] }
 0x2c5   : > { %v3098_v7 = vrot.slane %v3019_v43, 6 }
 0x2c7   : > { %3191 = vrot.lane.b32.xlu0 %v3098_v7, %s8298_s18  ;;  %v3100_v42 = vsel %vm565_vm1, %v3098_v7, %v3099_v62 }
 0x2c8   : > { %3105 = vrot.lane.b32.xlu1 %v11556_v35, %s8298_s18 }
 0x2cb   : > { %3193 = vrot.lane.b32.xlu0 %v3100_v42, %s8298_s18 }
 0x2cc   : > { %3111 = vrot.lane.b32.xlu1 %v11557_v31, %s8298_s18 }
 0x2cf   : > { %3117 = vrot.lane.b32.xlu0 %v11558_v45, %s8298_s18 }
 0x2d0   : > { %3123 = vrot.lane.b32.xlu1 %v11559_v40, %s8298_s18 }
 0x2d3   : > { %3129 = vrot.lane.b32.xlu0 %v11560_v44, %s8298_s18 }
 0x2d4   : > { %3135 = vrot.lane.b32.xlu1 %v11561_v25, %s8298_s18 }
 0x2d7   : > { %3141 = vrot.lane.b32.xlu0 %v11562_v11, %s8298_s18 }
 0x2d8   : > { %3147 = vrot.lane.b32.xlu1 %v11563_v57, %s8298_s18 }
 0x2db   : > { %3153 = vrot.lane.b32.xlu0 %v11564_v17, %s8298_s18 }
 0x2dc   : > { %3159 = vrot.lane.b32.xlu1 %v11565_v21, %s8298_s18 }
 0x2df   : > { %3165 = vrot.lane.b32.xlu0 %v11566_v38, %s8298_s18 }
 0x2e0   : > { %3171 = vrot.lane.b32.xlu1 %v11567_v19, %s8298_s18 }
 0x2e3   : > { %3177 = vrot.lane.b32.xlu0 %v3090_v0, %s8298_s18  ;;  %v7866_v0 = vpack.c.bf16 %v6598_v3, %v6597_v27 }
 0x2e4   : > { %3183 = vrot.lane.b32.xlu1 %v3093_v22, %s8298_s18  ;;  %v6631_v22 = vld [vmem:[%s11384_s4 + $0x40] sm:$0xff] }
 0x2e7   : > { %3189 = vrot.lane.b32.xlu0 %v3096_v47, %s8298_s18 }
 0x2e8   : > { %3195 = vrot.lane.b32.xlu1 %v3099_v62, %s8298_s18  ;;  %v6632_v62 = vld [vmem:[%s11384_s4 + $0x48] sm:$0xff] }
 0x2e9   : > { %v9941_v28 = vpack.c.bf16 %v6632_v62, %v6631_v22 }
 0x2fa   : > { %v3102_v18 = vpop.permute.xlu0 %3101 }
 0x2fb   : > { %v9921_v6 = vsel %vm565_vm1, 0.0, %v3102_v18  ;;  %v9923_v13 = vpop.permute.xlu1 %3103 }
 0x2fc   : > { %7482 = vmatprep.mubr.msk.f32.mxu1 %vm500_vm0, %v9921_v6  ;;  %v3751_v53 = vrot.slane %v9921_v6, 1  ;;  %v3752_v24 = vrot.slane %v9923_v13, 1 }
 0x2fd   : > { %7483 = vmatmul.mubr.msk.f32.vlgmr.msra.gmra.mrb[0].mxu1 %vm500_vm0, %v9923_v13 }
 0x2fe   : > { %v3108_v47 = vpop.permute.xlu0 %3107  ;;  %7865 = vmatpush3.bf16.msra.mxu1 %v9547_v34 }
 0x2ff   : > { %v9937_v54 = vsel %vm565_vm1, 0.0, %v3108_v47  ;;  %v9939_v43 = vpop.permute.xlu1 %3109  ;;  %7867 = vmatprep.subr.bf16.mxu1 %v7866_v0 }
 0x300   : > { %7485 = vmatprep.mubr.msk.f32.mxu1 %vm500_vm0, %v9937_v54  ;;  %v3756_v2 = vrot.slane %v9937_v54, 1  ;;  %v3757_v51 = vrot.slane %v9939_v43, 1 }
 0x301   : > { %7486 = vmatmul.mubr.msk.f32.gmra.mrb[2].mxu1 %vm500_vm0, %v9939_v43 }
 0x302   : > { %v3114_v7 = vpop.permute.xlu0 %3113  ;;  %7869 = vmatpush3.bf16.msra.mxu1 %v7866_v0 }
 0x303   : > { %v9948_v35 = vsel %vm565_vm1, 0.0, %v3114_v7  ;;  %v9950_v34 = vpop.permute.xlu1 %3115  ;;  %7871 = vmatprep.subr.bf16.mxu1 %v9941_v28 }
 0x304   : > { %7488 = vmatprep.mubr.msk.f32.mxu1 %vm500_vm0, %v9948_v35  ;;  %v4295_v39 = vrot.slane %v9948_v35, 2 }
 0x305   : > { %7489 = vmatmul.mubr.msk.f32.gmra.mrb[4].mxu1 %vm500_vm0, %v9950_v34 }
 0x308   : > { %v3120_v42 = vpop.permute.xlu0 %3119 }
 0x309   : > { %v9958_v31 = vsel %vm565_vm1, 0.0, %v3120_v42  ;;  %v9960_v45 = vpop.permute.xlu1 %3121 }
 0x30a   : > { %7491 = vmatprep.mubr.msk.f32.mxu1 %vm500_vm0, %v9958_v31  ;;  %v3766_v59 = vrot.slane %v9958_v31, 1 }
 0x30b   : > { %7492 = vmatmul.mubr.msk.f32.gmra.mrb[6].mxu1 %vm500_vm0, %v9960_v45 }
 0x30c   : > { %v3126_v40 = vpop.permute.xlu0 %3125 }
 0x30d   : > { %v9967_v44 = vsel %vm565_vm1, 0.0, %v3126_v40 }
 0x30e   : > { %v9969_v25 = vpop.permute.xlu1 %3127  ;;  %7494 = vmatprep.mubr.msk.f32.mxu1 %vm500_vm0, %v9967_v44 }
 0x30f   : > { %7495 = vmatmul.mubr.msk.f32.gmra.mrb[8].mxu1 %vm500_vm0, %v9969_v25 }
 0x310   : > { %v3132_v11 = vpop.permute.xlu0 %3131 }
 0x311   : > { %v9976_v57 = vsel %vm565_vm1, 0.0, %v3132_v11 }
 0x312   : > { %v9978_v17 = vpop.permute.xlu1 %3133  ;;  %7497 = vmatprep.mubr.msk.f32.mxu1 %vm500_vm0, %v9976_v57 }
 0x313   : > { %7498 = vmatmul.mubr.msk.f32.gmra.mrb[10].mxu1 %vm500_vm0, %v9978_v17 }
 0x314   : > { %v3138_v21 = vpop.permute.xlu0 %3137 }
 0x315   : > { %v9985_v38 = vsel %vm565_vm1, 0.0, %v3138_v21 }
 0x316   : > { %v9987_v19 = vpop.permute.xlu1 %3139  ;;  %7500 = vmatprep.mubr.msk.f32.mxu1 %vm500_vm0, %v9985_v38 }
 0x317   : > { %7501 = vmatmul.mubr.msk.f32.gmra.mrb[12].mxu1 %vm500_vm0, %v9987_v19 }
 0x318   : > { %v3144_v27 = vpop.permute.xlu0 %3143 }
 0x319   : > { %v9994_v3 = vsel %vm565_vm1, 0.0, %v3144_v27 }
 0x31a   : > { %v9996_v18 = vpop.permute.xlu1 %3145  ;;  %7503 = vmatprep.mubr.msk.f32.mxu1 %vm500_vm0, %v9994_v3 }
 0x31b   : > { %7504 = vmatmul.mubr.msk.f32.gmra.mrb[14].mxu1 %vm500_vm0, %v9996_v18 }
 0x31c   : > { %v3150_v0 = vpop.permute.xlu0 %3149 }
 0x31d   : > { %v10003_v22 = vsel %vm565_vm1, 0.0, %v3150_v0 }
 0x31e   : > { %v10005_v62 = vpop.permute.xlu1 %3151  ;;  %7506 = vmatprep.mubr.msk.f32.mxu1 %vm500_vm0, %v10003_v22 }
 0x31f   : > { %7507 = vmatmul.mubr.msk.f32.gmra.mrb[16].mxu1 %vm500_vm0, %v10005_v62 }
 0x321   : > { %v3156_v47 = vpop.permute.xlu0 %3155 }
 0x322   : > { %v10012_v7 = vsel %vm565_vm1, 0.0, %v3156_v47  ;;  %v10014_v42 = vpop.permute.xlu1 %3157 }
 0x323   : > { %7509 = vmatprep.mubr.msk.f32.mxu1 %vm500_vm0, %v10012_v7 }
 0x324   : > { %7510 = vmatmul.mubr.msk.f32.gmra.mrb[18].mxu1 %vm500_vm0, %v10014_v42 }
 0x325   : > { %v3162_v40 = vpop.permute.xlu0 %3161 }
 0x326   : > { %v10021_v11 = vsel %vm565_vm1, 0.0, %v3162_v40  ;;  %v10023_v21 = vpop.permute.xlu1 %3163 }
 0x327   : > { %7512 = vmatprep.mubr.msk.f32.mxu1 %vm500_vm0, %v10021_v11 }
 0x328   : > { %7513 = vmatmul.mubr.msk.f32.gmra.mrb[20].mxu1 %vm500_vm0, %v10023_v21 }
 0x329   : > { %v3168_v27 = vpop.permute.xlu0 %3167 }
 0x32a   : > { %v10030_v0 = vsel %vm565_vm1, 0.0, %v3168_v27  ;;  %v10032_v47 = vpop.permute.xlu1 %3169 }
 0x32b   : > { %7515 = vmatprep.mubr.msk.f32.mxu1 %vm500_vm0, %v10030_v0 }
 0x32c   : > { %7516 = vmatmul.mubr.msk.f32.gmra.mrb[22].mxu1 %vm500_vm0, %v10032_v47 }
 0x32d   : > { %v3174_v40 = vpop.permute.xlu0 %3173 }
 0x32e   : > { %v10039_v26 = vsel %vm565_vm1, 0.0, %v3174_v40  ;;  %v10041_v48 = vpop.permute.xlu1 %3175 }
 0x32f   : > { %7518 = vmatprep.mubr.msk.f32.mxu1 %vm500_vm0, %v10039_v26 }
 0x330   : > { %7519 = vmatmul.mubr.msk.f32.gmra.mrb[24].mxu1 %vm500_vm0, %v10041_v48 }
 0x331   : > { %v3180_v27 = vpop.permute.xlu0 %3179 }
 0x332   : > { %v10048_v33 = vsel %vm565_vm1, 0.0, %v3180_v27  ;;  %v10050_v58 = vpop.permute.xlu1 %3181 }
 0x333   : > { %7521 = vmatprep.mubr.msk.f32.mxu1 %vm500_vm0, %v10048_v33 }
 0x334   : > { %7522 = vmatmul.mubr.msk.f32.gmra.mrb[26].mxu1 %vm500_vm0, %v10050_v58 }
 0x335   : > { %v3186_v40 = vpop.permute.xlu0 %3185 }
 0x336   : > { %v10057_v15 = vsel %vm565_vm1, 0.0, %v3186_v40  ;;  %v10059_v50 = vpop.permute.xlu1 %3187 }
 0x337   : > { %7524 = vmatprep.mubr.msk.f32.mxu1 %vm500_vm0, %v10057_v15 }
 0x338   : > { %7525 = vmatmul.mubr.msk.f32.gmra.mrb[28].mxu1 %vm500_vm0, %v10059_v50 }
 0x339   : > { %v3192_v27 = vpop.permute.xlu0 %3191 }
 0x33a   : > { %v10066_v8 = vsel %vm565_vm1, 0.0, %v3192_v27  ;;  %v3106_v46 = vpop.permute.xlu1 %3105  ;;  %v6633_v27 = vld [vmem:[%s11384_s4 + $0x50] sm:$0xff] }
 0x33b   : > { %v10071_v40 = vsel %vm565_vm1, %v3106_v46, 0.0  ;;  %7527 = vmatprep.mubr.msk.f32.mxu1 %vm500_vm0, %v10066_v8  ;;  %v3753_v46 = vsel %vm731_vm2, %v3751_v53, %v3752_v24  ;;  %v7874_v5 = vpack.c.bf16 %v6634_v41, %v6633_v27  ;;  %v6668_v53 = vld [vmem:[%s11384_s4 + $0x68] sm:$0xff]  ;;  %v3761_v41 = vrot.slane %v9948_v35, 1 }
 0x33c   : > { %v3754_v56 = vrot.slane %v10071_v40, 1  ;;  %v3762_v27 = vrot.slane %v9950_v34, 1 }
 0x33d   : > { %v10076_v49 = vpop.permute.xlu0 %3193 }
 0x33e   : > { %v3112_v12 = vpop.permute.xlu1 %3111  ;;  %7528 = vmatmul.mubr.msk.f32.gmra.mrb[30].mxu1 %vm500_vm0, %v10076_v49  ;;  %v3755_v10 = vsel %vm731_vm2, %v3752_v24, %v3754_v56  ;;  %v10110_v24 = vpack.c.bf16 %v6668_v53, %v6667_v4 }
 0x33f   : > { %v10090_v61 = vsel %vm565_vm1, %v3112_v12, 0.0  ;;  %7538 = vmatprep.mubr.msk.f32.mxu1 %vm500_vm0, %v3753_v46  ;;  %v3758_v12 = vsel %vm731_vm2, %v3756_v2, %v3757_v51  ;;  %v3763_v2 = vsel %vm731_vm2, %v3761_v41, %v3762_v27  ;;  %v3772_v41 = vrot.slane %v9969_v25, 1 }
 0x340   : > { %v3759_v63 = vrot.slane %v10090_v61, 1 }
 0x341   : > { %v3118_v14 = vpop.permute.xlu0 %3117 }
 0x342   : > { %v10102_v23 = vsel %vm565_vm1, %v3118_v14, 0.0  ;;  %7539 = vmatmul.mubr.msk.f32.vlgmr.msra.gmra.mrb[32].mxu1 %vm500_vm0, %v3755_v10  ;;  %v3124_v56 = vpop.permute.xlu1 %3123  ;;  %v3760_v14 = vsel %vm731_vm2, %v3757_v51, %v3759_v63 }
 0x343   : > { %7873 = vmatpush3.bf16.msra.mxu1 %v9941_v28  ;;  %7541 = vmatprep.mubr.msk.f32.mxu1 %vm500_vm0, %v3758_v12  ;;  %v3764_v46 = vrot.slane %v10102_v23, 1  ;;  %v10115_v10 = vsel %vm565_vm1, %v3124_v56, 0.0  ;;  %v3767_v28 = vrot.slane %v9960_v45, 1  ;;  %v3771_v12 = vrot.slane %v9967_v44, 1 }
 0x344   : > { %7875 = vmatprep.subr.bf16.mxu1 %v7874_v5  ;;  %v3769_v4 = vrot.slane %v10115_v10, 1 }
 0x345   : > { %v3130_v55 = vpop.permute.xlu0 %3129  ;;  %v3765_v63 = vsel %vm731_vm2, %v3762_v27, %v3764_v46  ;;  %v3768_v53 = vsel %vm731_vm2, %v3766_v59, %v3767_v28  ;;  %v3776_v59 = vrot.slane %v9976_v57, 1  ;;  %v3777_v46 = vrot.slane %v9978_v17, 1 }
 0x346   : > { %7542 = vmatmul.mubr.msk.f32.gmra.mrb[34].mxu1 %vm500_vm0, %v3760_v14  ;;  %v10126_v51 = vsel %vm565_vm1, %v3130_v55, 0.0  ;;  %v3136_v56 = vpop.permute.xlu1 %3135  ;;  %v3770_v14 = vsel %vm731_vm2, %v3767_v28, %v3769_v4  ;;  %v3773_v55 = vsel %vm731_vm2, %v3771_v12, %v3772_v41  ;;  %v3781_v12 = vrot.slane %v9985_v38, 1 }
 0x347   : > { %7544 = vmatprep.mubr.msk.f32.mxu1 %vm500_vm0, %v3763_v2  ;;  %7877 = vmatpush3.bf16.msra.mxu1 %v7874_v5  ;;  %v3774_v5 = vrot.slane %v10126_v51, 1  ;;  %v10136_v27 = vsel %vm565_vm1, %v3136_v56, 0.0  ;;  %v3778_v4 = vsel %vm731_vm2, %v3776_v59, %v3777_v46  ;;  %v3782_v56 = vrot.slane %v9987_v19, 1 }
 0x348   : > { %7879 = vmatprep.subr.bf16.mxu1 %v10110_v24  ;;  %v3786_v59 = vrot.slane %v9994_v3, 1 }
 0x349   : > { %v3142_v2 = vpop.permute.xlu0 %3141 }
 0x34a   : > { %7545 = vmatmul.mubr.msk.f32.gmra.mrb[36].mxu1 %vm500_vm0, %v3765_v63  ;;  %v3779_v63 = vrot.slane %v10136_v27, 1  ;;  %v10146_v28 = vsel %vm565_vm1, %v3142_v2, 0.0  ;;  %v3787_v2 = vrot.slane %v9996_v18, 1 }
 0x34b   : > { %7547 = vmatprep.mubr.msk.f32.mxu1 %vm500_vm0, %v3768_v53  ;;  %v3775_v53 = vsel %vm731_vm2, %v3772_v41, %v3774_v5  ;;  %v3783_v5 = vsel %vm731_vm2, %v3781_v12, %v3782_v56  ;;  %v3792_v12 = vrot.slane %v10005_v62, 1 }
 0x34c   : > { %v3780_v16 = vsel %vm731_vm2, %v3777_v46, %v3779_v63  ;;  %v3791_v63 = vrot.slane %v10003_v22, 1 }
 0x34e   : > { %7548 = vmatmul.mubr.msk.f32.gmra.mrb[38].mxu1 %vm500_vm0, %v3770_v14  ;;  %v3148_v14 = vpop.permute.xlu1 %3147 }
 0x34f   : > { %7550 = vmatprep.mubr.msk.f32.mxu1 %vm500_vm0, %v3773_v55  ;;  %v3784_v55 = vrot.slane %v10146_v28, 1  ;;  %v10156_v41 = vsel %vm565_vm1, %v3148_v14, 0.0 }
 0x351   : > { %v3785_v36 = vsel %vm731_vm2, %v3782_v56, %v3784_v55  ;;  %v3796_v55 = vrot.slane %v10012_v7, 1 }
 0x352   : > { %7551 = vmatmul.mubr.msk.f32.gmra.mrb[40].mxu1 %vm500_vm0, %v3775_v53  ;;  %v3154_v53 = vpop.permute.xlu0 %3153  ;;  %v3160_v14 = vpop.permute.xlu1 %3159 }
 0x353   : > { %7553 = vmatprep.mubr.msk.f32.mxu1 %vm500_vm0, %v3778_v4  ;;  %v3789_v4 = vrot.slane %v10156_v41, 1  ;;  %v10166_v46 = vsel %vm565_vm1, %v3154_v53, 0.0  ;;  %v10176_v56 = vsel %vm565_vm1, %v3160_v14, 0.0 }
 0x355   : > { %v3790_v9 = vsel %vm731_vm2, %v3787_v2, %v3789_v4  ;;  %v3801_v4 = vrot.slane %v10021_v11, 1 }
 0x356   : > { %7554 = vmatmul.mubr.msk.f32.gmra.mrb[42].mxu1 %vm500_vm0, %v3780_v16  ;;  %v3788_v16 = vsel %vm731_vm2, %v3786_v59, %v3787_v2  ;;  %v3797_v59 = vrot.slane %v10014_v42, 1  ;;  %v3166_v53 = vpop.permute.xlu0 %3165  ;;  %v3172_v14 = vpop.permute.xlu1 %3171 }
 0x357   : > { %7556 = vmatprep.mubr.msk.f32.mxu1 %vm500_vm0, %v3783_v5  ;;  %v3794_v5 = vrot.slane %v10166_v46, 1  ;;  %v10186_v2 = vsel %vm565_vm1, %v3166_v53, 0.0 }
 0x359   : > { %v3795_v30 = vsel %vm731_vm2, %v3792_v12, %v3794_v5  ;;  %v3806_v5 = vrot.slane %v10030_v0, 1 }
 0x35a   : > { %7557 = vmatmul.mubr.msk.f32.gmra.mrb[44].mxu1 %vm500_vm0, %v3785_v36  ;;  %v3793_v36 = vsel %vm731_vm2, %v3791_v63, %v3792_v12  ;;  %v3802_v63 = vrot.slane %v10023_v21, 1  ;;  %v10196_v12 = vsel %vm565_vm1, %v3172_v14, 0.0  ;;  %v3178_v53 = vpop.permute.xlu0 %3177  ;;  %v3184_v14 = vpop.permute.xlu1 %3183 }
 0x35b   : > { %7559 = vmatprep.mubr.msk.f32.mxu1 %vm500_vm0, %v3788_v16  ;;  %v3799_v16 = vrot.slane %v10176_v56, 1 }
 0x35d   : > { %v3800_v52 = vsel %vm731_vm2, %v3797_v59, %v3799_v16  ;;  %v3811_v16 = vrot.slane %v10039_v26, 1 }
 0x35e   : > { %7560 = vmatmul.mubr.msk.f32.gmra.mrb[46].mxu1 %vm500_vm0, %v3790_v9  ;;  %v3798_v9 = vsel %vm731_vm2, %v3796_v55, %v3797_v59  ;;  %v3807_v55 = vrot.slane %v10032_v47, 1  ;;  %v10206_v59 = vsel %vm565_vm1, %v3178_v53, 0.0  ;;  %v3190_v53 = vpop.permute.xlu0 %3189 }
 0x35f   : > { %7562 = vmatprep.mubr.msk.f32.mxu1 %vm500_vm0, %v3793_v36  ;;  %v3804_v36 = vrot.slane %v10186_v2, 1 }
 0x361   : > { %v3805_v32 = vsel %vm731_vm2, %v3802_v63, %v3804_v36  ;;  %v3816_v36 = vrot.slane %v10048_v33, 1 }
 0x362   : > { %7563 = vmatmul.mubr.msk.f32.gmra.mrb[48].mxu1 %vm500_vm0, %v3795_v30  ;;  %v3803_v30 = vsel %vm731_vm2, %v3801_v4, %v3802_v63  ;;  %v3812_v4 = vrot.slane %v10041_v48, 1  ;;  %v10216_v63 = vsel %vm565_vm1, %v3184_v14, 0.0  ;;  %v3196_v14 = vpop.permute.xlu1 %3195 }
 0x363   : > { %7565 = vmatprep.mubr.msk.f32.mxu1 %vm500_vm0, %v3798_v9  ;;  %v3809_v9 = vrot.slane %v10196_v12, 1 }
 0x365   : > { %v3810_v1 = vsel %vm731_vm2, %v3807_v55, %v3809_v9  ;;  %v3821_v9 = vrot.slane %v10057_v15, 1 }
 0x366   : > { %7566 = vmatmul.mubr.msk.f32.gmra.mrb[50].mxu1 %vm500_vm0, %v3800_v52  ;;  %v3808_v52 = vsel %vm731_vm2, %v3806_v5, %v3807_v55  ;;  %v3817_v5 = vrot.slane %v10050_v58, 1  ;;  %v10226_v55 = vsel %vm565_vm1, %v3190_v53, 0.0 }
 0x367   : > { %7568 = vmatprep.mubr.msk.f32.mxu1 %vm500_vm0, %v3803_v30  ;;  %v3814_v30 = vrot.slane %v10206_v59, 1 }
 0x369   : > { %v3815_v60 = vsel %vm731_vm2, %v3812_v4, %v3814_v30  ;;  %v3827_v30 = vrot.slane %v10076_v49, 1 }
 0x36a   : > { %7569 = vmatmul.mubr.msk.f32.gmra.mrb[52].mxu1 %vm500_vm0, %v3805_v32  ;;  %v3813_v32 = vsel %vm731_vm2, %v3811_v16, %v3812_v4  ;;  %v3822_v16 = vrot.slane %v10059_v50, 1  ;;  %v10236_v4 = vsel %vm565_vm1, %v3196_v14, 0.0 }
 0x36b   : > { %7571 = vmatprep.mubr.msk.f32.mxu1 %vm500_vm0, %v3808_v52  ;;  %v3819_v52 = vrot.slane %v10216_v63, 1  ;;  %v3829_v53 = vrot.slane %v10236_v4, 1 }
 0x36d   : > { %v3820_v20 = vsel %vm731_vm2, %v3817_v5, %v3819_v52  ;;  %v4285_v52 = vrot.slane %v9921_v6, 2  ;;  %v3830_v14 = vsel %vm731_vm2, %v3827_v30, %v3829_v53 }
 0x36e   : > { %7572 = vmatmul.mubr.msk.f32.gmra.mrb[54].mxu1 %vm500_vm0, %v3810_v1  ;;  %v3818_v1 = vsel %vm731_vm2, %v3816_v36, %v3817_v5  ;;  %v3826_v36 = vrot.slane %v10066_v8, 1 }
 0x36f   : > { %7574 = vmatprep.mubr.msk.f32.mxu1 %vm500_vm0, %v3813_v32  ;;  %v3824_v32 = vrot.slane %v10226_v55, 1 }
 0x370   : > { %v3828_v5 = vsel %vm731_vm2, %v3826_v36, %v3827_v30  ;;  %v4290_v36 = vrot.slane %v9937_v54, 2  ;;  %v4293_v30 = vrot.slane %v10090_v61, 2 }
 0x372   : > { %7575 = vmatmul.mubr.msk.f32.gmra.mrb[56].mxu1 %vm500_vm0, %v3815_v60  ;;  %v3823_v60 = vsel %vm731_vm2, %v3821_v9, %v3822_v16  ;;  %v4288_v9 = vrot.slane %v10071_v40, 2 }
 0x373   : > { %7577 = vmatprep.mubr.msk.f32.mxu1 %vm500_vm0, %v3818_v1  ;;  %v3825_v1 = vsel %vm731_vm2, %v3822_v16, %v3824_v32  ;;  %v6670_v16 = vld [vmem:[%s11384_s4 + $0x78] sm:$0xff] }
 0x376   : > { %7578 = vmatmul.mubr.msk.f32.gmra.mrb[58].mxu1 %vm500_vm0, %v3820_v20  ;;  %v4286_v20 = vrot.slane %v9923_v13, 2 }
 0x377   : > { %7580 = vmatprep.mubr.msk.f32.mxu1 %vm500_vm0, %v3823_v60  ;;  %v6669_v60 = vld [vmem:[%s11384_s4 + $0x70] sm:$0xff] }
 0x378   : > { %v4287_v32 = vsel %vm1402_vm4, %v4285_v52, %v4286_v20  ;;  %v4289_v53 = vsel %vm1402_vm4, %v4286_v20, %v4288_v9  ;;  %v4298_v9 = vrot.slane %v10102_v23, 2 }
 0x37a   : > { %7581 = vmatmul.mubr.msk.f32.gmra.mrb[60].mxu1 %vm500_vm0, %v3825_v1  ;;  %v4291_v1 = vrot.slane %v9939_v43, 2 }
 0x37b   : > { %7583 = vmatprep.mubr.msk.f32.mxu1 %vm500_vm0, %v3828_v5  ;;  %v7882_v5 = vpack.c.bf16 %v6670_v16, %v6669_v60  ;;  %v4296_v60 = vrot.slane %v9950_v34, 2 }
 0x37c   : > { %v4292_v52 = vsel %vm1402_vm4, %v4290_v36, %v4291_v1  ;;  %v4294_v16 = vsel %vm1402_vm4, %v4291_v1, %v4293_v30  ;;  %v4300_v36 = vrot.slane %v9958_v31, 2  ;;  %v4305_v30 = vrot.slane %v9967_v44, 2 }
 0x37e   : > { %7584 = vmatmul.mubr.msk.f32.gmra.mrb[62].mxu1 %vm500_vm0, %v3830_v14  ;;  %v6704_v14 = vld [vmem:[%s11384_s4 + $0x88] sm:$0xff] }
 0x37f   : > { %7594 = vmatprep.mubr.msk.f32.mxu1 %vm500_vm0, %v4287_v32  ;;  %v10277_v20 = vpack.c.bf16 %v6704_v14, %v6703_v37  ;;  %v4297_v32 = vsel %vm1402_vm4, %v4295_v39, %v4296_v60  ;;  %v4303_v37 = vrot.slane %v10115_v10, 2  ;;  %v4306_v39 = vrot.slane %v9969_v25, 2 }
 0x380   : > { %v4308_v14 = vrot.slane %v10126_v51, 2 }
 0x382   : > { %7595 = vmatmul.mubr.msk.f32.vlgmr.msra.gmra.mrb[64].mxu1 %vm500_vm0, %v4289_v53  ;;  %v4301_v53 = vrot.slane %v9960_v45, 2 }
 0x383   : > { %7881 = vmatpush3.bf16.msra.mxu1 %v10110_v24  ;;  %7597 = vmatprep.mubr.msk.f32.mxu1 %vm500_vm0, %v4292_v52  ;;  %v4299_v24 = vsel %vm1402_vm4, %v4296_v60, %v4298_v9  ;;  %v4307_v52 = vsel %vm1402_vm4, %v4305_v30, %v4306_v39  ;;  %v4310_v60 = vrot.slane %v9976_v57, 2  ;;  %v4311_v9 = vrot.slane %v9978_v17, 2 }
 0x384   : > { %7883 = vmatprep.subr.bf16.mxu1 %v7882_v5  ;;  %v4302_v1 = vsel %vm1402_vm4, %v4300_v36, %v4301_v53 }
 0x385   : > { %v4312_v36 = vsel %vm1402_vm4, %v4310_v60, %v4311_v9 }
 0x386   : > { %7598 = vmatmul.mubr.msk.f32.gmra.mrb[66].mxu1 %vm500_vm0, %v4294_v16  ;;  %v4313_v16 = vrot.slane %v10136_v27, 2 }
 0x387   : > { %7600 = vmatprep.mubr.msk.f32.mxu1 %vm500_vm0, %v4297_v32  ;;  %7885 = vmatpush3.bf16.msra.mxu1 %v7882_v5  ;;  %v4304_v5 = vsel %vm1402_vm4, %v4301_v53, %v4303_v37  ;;  %v4309_v32 = vsel %vm1402_vm4, %v4306_v39, %v4308_v14  ;;  %v4315_v53 = vrot.slane %v9985_v38, 2  ;;  %v4316_v37 = vrot.slane %v9987_v19, 2 }
 0x388   : > { %7887 = vmatprep.subr.bf16.mxu1 %v10277_v20  ;;  %v4320_v39 = vrot.slane %v9994_v3, 2  ;;  %v4321_v14 = vrot.slane %v9996_v18, 2 }
 0x389   : > { %v4317_v30 = vsel %vm1402_vm4, %v4315_v53, %v4316_v37 }
 0x38a   : > { %7601 = vmatmul.mubr.msk.f32.gmra.mrb[68].mxu1 %vm500_vm0, %v4299_v24  ;;  %v4318_v24 = vrot.slane %v10146_v28, 2  ;;  %v4322_v60 = vsel %vm1402_vm4, %v4320_v39, %v4321_v14 }
 0x38b   : > { %7603 = vmatprep.mubr.msk.f32.mxu1 %vm500_vm0, %v4302_v1  ;;  %v4314_v1 = vsel %vm1402_vm4, %v4311_v9, %v4313_v16  ;;  %v4325_v9 = vrot.slane %v10003_v22, 2  ;;  %v4326_v16 = vrot.slane %v10005_v62, 2 }
 0x38d   : > { %v4327_v53 = vsel %vm1402_vm4, %v4325_v9, %v4326_v16 }
 0x38e   : > { %7604 = vmatmul.mubr.msk.f32.gmra.mrb[70].mxu1 %vm500_vm0, %v4304_v5  ;;  %v4323_v5 = vrot.slane %v10156_v41, 2 }
 0x38f   : > { %7606 = vmatprep.mubr.msk.f32.mxu1 %vm500_vm0, %v4307_v52  ;;  %v4319_v52 = vsel %vm1402_vm4, %v4316_v37, %v4318_v24  ;;  %v4330_v37 = vrot.slane %v10012_v7, 2  ;;  %v4331_v24 = vrot.slane %v10014_v42, 2 }
 0x391   : > { %v4332_v39 = vsel %vm1402_vm4, %v4330_v37, %v4331_v24 }
 0x392   : > { %7607 = vmatmul.mubr.msk.f32.gmra.mrb[72].mxu1 %vm500_vm0, %v4309_v32  ;;  %v4328_v32 = vrot.slane %v10166_v46, 2 }
 0x393   : > { %7609 = vmatprep.mubr.msk.f32.mxu1 %vm500_vm0, %v4312_v36  ;;  %v4324_v36 = vsel %vm1402_vm4, %v4321_v14, %v4323_v5  ;;  %v4335_v14 = vrot.slane %v10021_v11, 2  ;;  %v4336_v5 = vrot.slane %v10023_v21, 2 }
 0x395   : > { %v4337_v9 = vsel %vm1402_vm4, %v4335_v14, %v4336_v5 }
 0x396   : > { %7610 = vmatmul.mubr.msk.f32.gmra.mrb[74].mxu1 %vm500_vm0, %v4314_v1  ;;  %v4333_v1 = vrot.slane %v10176_v56, 2 }
 0x397   : > { %7612 = vmatprep.mubr.msk.f32.mxu1 %vm500_vm0, %v4317_v30  ;;  %v4329_v30 = vsel %vm1402_vm4, %v4326_v16, %v4328_v32  ;;  %v4340_v16 = vrot.slane %v10030_v0, 2  ;;  %v4341_v32 = vrot.slane %v10032_v47, 2 }
 0x399   : > { %v4342_v37 = vsel %vm1402_vm4, %v4340_v16, %v4341_v32 }
 0x39a   : > { %7613 = vmatmul.mubr.msk.f32.gmra.mrb[76].mxu1 %vm500_vm0, %v4319_v52  ;;  %v4338_v52 = vrot.slane %v10186_v2, 2 }
 0x39b   : > { %7615 = vmatprep.mubr.msk.f32.mxu1 %vm500_vm0, %v4322_v60  ;;  %v4334_v60 = vsel %vm1402_vm4, %v4331_v24, %v4333_v1  ;;  %v4345_v24 = vrot.slane %v10039_v26, 2  ;;  %v4346_v1 = vrot.slane %v10041_v48, 2 }
 0x39d   : > { %v4347_v14 = vsel %vm1402_vm4, %v4345_v24, %v4346_v1 }
 0x39e   : > { %7616 = vmatmul.mubr.msk.f32.gmra.mrb[78].mxu1 %vm500_vm0, %v4324_v36  ;;  %v4343_v36 = vrot.slane %v10196_v12, 2 }
 0x39f   : > { %7618 = vmatprep.mubr.msk.f32.mxu1 %vm500_vm0, %v4327_v53  ;;  %v4339_v53 = vsel %vm1402_vm4, %v4336_v5, %v4338_v52  ;;  %v4350_v5 = vrot.slane %v10048_v33, 2  ;;  %v4351_v52 = vrot.slane %v10050_v58, 2 }
 0x3a1   : > { %v4352_v16 = vsel %vm1402_vm4, %v4350_v5, %v4351_v52 }
 0x3a2   : > { %7619 = vmatmul.mubr.msk.f32.gmra.mrb[80].mxu1 %vm500_vm0, %v4329_v30  ;;  %v4348_v30 = vrot.slane %v10206_v59, 2 }
 0x3a3   : > { %7621 = vmatprep.mubr.msk.f32.mxu1 %vm500_vm0, %v4332_v39  ;;  %v4344_v39 = vsel %vm1402_vm4, %v4341_v32, %v4343_v36  ;;  %v4355_v32 = vrot.slane %v10057_v15, 2  ;;  %v4356_v36 = vrot.slane %v10059_v50, 2 }
 0x3a5   : > { %v4357_v24 = vsel %vm1402_vm4, %v4355_v32, %v4356_v36  ;;  %v6705_v32 = vld [vmem:[%s11384_s4 + $0x90] sm:$0xff] }
 0x3a6   : > { %7622 = vmatmul.mubr.msk.f32.gmra.mrb[82].mxu1 %vm500_vm0, %v4334_v60  ;;  %v4353_v60 = vrot.slane %v10216_v63, 2 }
 0x3a7   : > { %7624 = vmatprep.mubr.msk.f32.mxu1 %vm500_vm0, %v4337_v9  ;;  %v4349_v9 = vsel %vm1402_vm4, %v4346_v1, %v4348_v30  ;;  %v4361_v1 = vrot.slane %v10076_v49, 2  ;;  %v4360_v30 = vrot.slane %v10066_v8, 2 }
 0x3a9   : > { %v4362_v5 = vsel %vm1402_vm4, %v4360_v30, %v4361_v1 }
 0x3aa   : > { %7625 = vmatmul.mubr.msk.f32.gmra.mrb[84].mxu1 %vm500_vm0, %v4339_v53  ;;  %v4358_v53 = vrot.slane %v10226_v55, 2 }
 0x3ab   : > { %7627 = vmatprep.mubr.msk.f32.mxu1 %vm500_vm0, %v4342_v37  ;;  %v4354_v37 = vsel %vm1402_vm4, %v4351_v52, %v4353_v60  ;;  %v4819_v52 = vrot.slane %v9921_v6, 3  ;;  %v4820_v60 = vrot.slane %v9923_v13, 3 }
 0x3ae   : > { %7628 = vmatmul.mubr.msk.f32.gmra.mrb[86].mxu1 %vm500_vm0, %v4344_v39  ;;  %v4363_v39 = vrot.slane %v10236_v4, 2 }
 0x3af   : > { %7630 = vmatprep.mubr.msk.f32.mxu1 %vm500_vm0, %v4347_v14  ;;  %v4359_v14 = vsel %vm1402_vm4, %v4356_v36, %v4358_v53  ;;  %v6706_v36 = vld [vmem:[%s11384_s4 + $0x98] sm:$0xff]  ;;  %v4821_v53 = vsel %vm1815_vm5, %v4819_v52, %v4820_v60  ;;  %v4832_v52 = vrot.slane %v10102_v23, 3 }
 0x3b0   : > { %v7890_v30 = vpack.c.bf16 %v6706_v36, %v6705_v32  ;;  %v4835_v36 = vrot.slane %v9960_v45, 3 }
 0x3b2   : > { %7631 = vmatmul.mubr.msk.f32.gmra.mrb[88].mxu1 %vm500_vm0, %v4349_v9  ;;  %v4822_v9 = vrot.slane %v10071_v40, 3 }
 0x3b3   : > { %7633 = vmatprep.mubr.msk.f32.mxu1 %vm500_vm0, %v4352_v16  ;;  %v4364_v16 = vsel %vm1402_vm4, %v4361_v1, %v4363_v39  ;;  %v4827_v1 = vrot.slane %v10090_v61, 3 }
 0x3b4   : > { %v4823_v39 = vsel %vm1815_vm5, %v4820_v60, %v4822_v9  ;;  %v4834_v9 = vrot.slane %v9958_v31, 3 }
 0x3b6   : > { %7634 = vmatmul.mubr.msk.f32.gmra.mrb[90].mxu1 %vm500_vm0, %v4354_v37  ;;  %v4824_v37 = vrot.slane %v9937_v54, 3 }
 0x3b7   : > { %7636 = vmatprep.mubr.msk.f32.mxu1 %vm500_vm0, %v4357_v24  ;;  %v4825_v24 = vrot.slane %v9939_v43, 3 }
 0x3b9   : > { %v4828_v32 = vsel %vm1815_vm5, %v4825_v24, %v4827_v1  ;;  %v4840_v1 = vrot.slane %v9969_v25, 3 }
 0x3ba   : > { %7637 = vmatmul.mubr.msk.f32.gmra.mrb[92].mxu1 %vm500_vm0, %v4359_v14  ;;  %v4826_v14 = vsel %vm1815_vm5, %v4824_v37, %v4825_v24  ;;  %v4836_v37 = vsel %vm1815_vm5, %v4834_v9, %v4835_v36  ;;  %v4839_v24 = vrot.slane %v9967_v44, 3 }
 0x3bb   : > { %7639 = vmatprep.mubr.msk.f32.mxu1 %vm500_vm0, %v4362_v5  ;;  %v4829_v5 = vrot.slane %v9948_v35, 3 }
 0x3be   : > { %7640 = vmatmul.mubr.msk.f32.gmra.mrb[94].mxu1 %vm500_vm0, %v4364_v16  ;;  %v4830_v16 = vrot.slane %v9950_v34, 3 }
 0x3bf   : > { %7650 = vmatprep.mubr.msk.f32.mxu1 %vm500_vm0, %v4821_v53 }
 0x3c0   : > { %v4831_v60 = vsel %vm1815_vm5, %v4829_v5, %v4830_v16  ;;  %v4833_v53 = vsel %vm1815_vm5, %v4830_v16, %v4832_v52  ;;  %v4844_v5 = vrot.slane %v9976_v57, 3  ;;  %v4845_v16 = vrot.slane %v9978_v17, 3 }
 0x3c2   : > { %7651 = vmatmul.mubr.msk.f32.vlgmr.msra.gmra.mrb[96].mxu1 %vm500_vm0, %v4823_v39  ;;  %v4842_v39 = vrot.slane %v10126_v51, 3 }
 0x3c3   : > { %7889 = vmatpush3.bf16.msra.mxu1 %v10277_v20  ;;  %7653 = vmatprep.mubr.msk.f32.mxu1 %vm500_vm0, %v4826_v14  ;;  %v4837_v20 = vrot.slane %v10115_v10, 3 }
 0x3c4   : > { %7891 = vmatprep.subr.bf16.mxu1 %v7890_v30 }
 0x3c5   : > { %v4838_v14 = vsel %vm1815_vm5, %v4835_v36, %v4837_v20  ;;  %v4846_v36 = vsel %vm1815_vm5, %v4844_v5, %v4845_v16  ;;  %v4849_v20 = vrot.slane %v9985_v38, 3  ;;  %v4855_v5 = vrot.slane %v9996_v18, 3 }
 0x3c6   : > { %7654 = vmatmul.mubr.msk.f32.gmra.mrb[98].mxu1 %vm500_vm0, %v4828_v32  ;;  %v4847_v32 = vrot.slane %v10136_v27, 3 }
 0x3c7   : > { %7656 = vmatprep.mubr.msk.f32.mxu1 %vm500_vm0, %v4831_v60  ;;  %7893 = vmatpush3.bf16.msra.mxu1 %v7890_v30  ;;  %v4841_v30 = vsel %vm1815_vm5, %v4839_v24, %v4840_v1  ;;  %v4843_v60 = vsel %vm1815_vm5, %v4840_v1, %v4842_v39  ;;  %v4852_v24 = vrot.slane %v10146_v28, 3 }
 0x3c8   : > { %v4848_v1 = vsel %vm1815_vm5, %v4845_v16, %v4847_v32 }
 0x3ca   : > { %7657 = vmatmul.mubr.msk.f32.gmra.mrb[100].mxu1 %vm500_vm0, %v4833_v53  ;;  %v4850_v53 = vrot.slane %v9987_v19, 3 }
 0x3cb   : > { %7659 = vmatprep.mubr.msk.f32.mxu1 %vm500_vm0, %v4836_v37 }
 0x3cc   : > { %v4853_v16 = vsel %vm1815_vm5, %v4850_v53, %v4852_v24 }
 0x3ce   : > { %7660 = vmatmul.mubr.msk.f32.gmra.mrb[102].mxu1 %vm500_vm0, %v4838_v14  ;;  %v4851_v14 = vsel %vm1815_vm5, %v4849_v20, %v4850_v53  ;;  %v4860_v20 = vrot.slane %v10005_v62, 3 }
 0x3cf   : > { %7662 = vmatprep.mubr.msk.f32.mxu1 %vm500_vm0, %v4841_v30  ;;  %v4854_v30 = vrot.slane %v9994_v3, 3 }
 0x3d0   : > { %v7484_v52 = vpop.f32.mrb[0].mxu1 }
 0x3d1   : > { %v3411_v9 = vpop.f32.mrb[1].mxu1  ;;  %3604 = vrot.lane.b32.xlu1 %v7484_v52, %s8299_s30 }
 0x3d2   : > { %7663 = vmatmul.mubr.msk.f32.gmra.mrb[104].mxu1 %vm500_vm0, %v4843_v60  ;;  %3602 = vrot.lane.b32.xlu0 %v3411_v9, %s8299_s30  ;;  %v4857_v60 = vrot.slane %v10156_v41, 3  ;;  %v4856_v9 = vsel %vm1815_vm5, %v4854_v30, %v4855_v5 }
 0x3d3   : > { %7665 = vmatprep.mubr.msk.f32.mxu1 %vm500_vm0, %v4846_v36  ;;  %v4859_v36 = vrot.slane %v10003_v22, 3 }
 0x3d4   : > { %v7487_v37 = vpop.f32.mrb[2].mxu1 }
 0x3d5   : > { %v3421_v39 = vpop.f32.mrb[3].mxu1  ;;  %3608 = vrot.lane.b32.xlu1 %v7487_v37, %s8299_s30  ;;  %v4862_v37 = vrot.slane %v10166_v46, 3  ;;  %v4861_v24 = vsel %vm1815_vm5, %v4859_v36, %v4860_v20 }
 0x3d6   : > { %7666 = vmatmul.mubr.msk.f32.gmra.mrb[106].mxu1 %vm500_vm0, %v4848_v1  ;;  %3606 = vrot.lane.b32.xlu0 %v3421_v39, %s8299_s30  ;;  %v4858_v1 = vsel %vm1815_vm5, %v4855_v5, %v4857_v60  ;;  %v4864_v39 = vrot.slane %v10012_v7, 3 }
 0x3d7   : > { %7668 = vmatprep.mubr.msk.f32.mxu1 %vm500_vm0, %v4851_v14  ;;  %v4865_v14 = vrot.slane %v10014_v42, 3  ;;  %v4863_v5 = vsel %vm1815_vm5, %v4860_v20, %v4862_v37 }
 0x3d8   : > { %v7490_v52 = vpop.f32.mrb[4].mxu1 }
 0x3d9   : > { %v3431_v32 = vpop.f32.mrb[5].mxu1  ;;  %3612 = vrot.lane.b32.xlu1 %v7490_v52, %s8299_s30  ;;  %v4867_v52 = vrot.slane %v10176_v56, 3 }
 0x3da   : > { %7669 = vmatmul.mubr.msk.f32.gmra.mrb[108].mxu1 %vm500_vm0, %v4853_v16  ;;  %3610 = vrot.lane.b32.xlu0 %v3431_v32, %s8299_s30  ;;  %v4866_v16 = vsel %vm1815_vm5, %v4864_v39, %v4865_v14  ;;  %v4869_v32 = vrot.slane %v10021_v11, 3  ;;  %v4875_v39 = vrot.slane %v10032_v47, 3 }
 0x3db   : > { %7671 = vmatprep.mubr.msk.f32.mxu1 %vm500_vm0, %v4856_v9  ;;  %v4870_v9 = vrot.slane %v10023_v21, 3  ;;  %v4868_v20 = vsel %vm1815_vm5, %v4865_v14, %v4867_v52 }
 0x3de   : > { %7672 = vmatmul.mubr.msk.f32.gmra.mrb[110].mxu1 %vm500_vm0, %v4858_v1  ;;  %v7493_v53 = vpop.f32.mrb[6].mxu1  ;;  %v4872_v1 = vrot.slane %v10186_v2, 3 }
 0x3df   : > { %7674 = vmatprep.mubr.msk.f32.mxu1 %vm500_vm0, %v4861_v24  ;;  %v3441_v30 = vpop.f32.mrb[7].mxu1  ;;  %3616 = vrot.lane.b32.xlu1 %v7493_v53, %s8299_s30  ;;  %v4871_v53 = vsel %vm1815_vm5, %v4869_v32, %v4870_v9  ;;  %v4874_v24 = vrot.slane %v10030_v0, 3  ;;  %v4880_v32 = vrot.slane %v10041_v48, 3 }
 0x3e0   : > { %3614 = vrot.lane.b32.xlu0 %v3441_v30, %s8299_s30  ;;  %v4873_v14 = vsel %vm1815_vm5, %v4870_v9, %v4872_v1 }
 0x3e2   : > { %7675 = vmatmul.mubr.msk.f32.gmra.mrb[112].mxu1 %vm500_vm0, %v4863_v5  ;;  %v7496_v60 = vpop.f32.mrb[8].mxu1  ;;  %v4877_v5 = vrot.slane %v10196_v12, 3 }
 0x3e3   : > { %7677 = vmatprep.mubr.msk.f32.mxu1 %vm500_vm0, %v4866_v16  ;;  %v3451_v36 = vpop.f32.mrb[9].mxu1  ;;  %3620 = vrot.lane.b32.xlu1 %v7496_v60, %s8299_s30  ;;  %v4876_v60 = vsel %vm1815_vm5, %v4874_v24, %v4875_v39  ;;  %v4879_v16 = vrot.slane %v10039_v26, 3  ;;  %v4885_v24 = vrot.slane %v10050_v58, 3 }
 0x3e4   : > { %3618 = vrot.lane.b32.xlu0 %v3451_v36, %s8299_s30  ;;  %v4878_v9 = vsel %vm1815_vm5, %v4875_v39, %v4877_v5 }
 0x3e6   : > { %7678 = vmatmul.mubr.msk.f32.gmra.mrb[114].mxu1 %vm500_vm0, %v4868_v20  ;;  %v7499_v37 = vpop.f32.mrb[10].mxu1  ;;  %v4882_v20 = vrot.slane %v10206_v59, 3 }
 0x3e7   : > { %7680 = vmatprep.mubr.msk.f32.mxu1 %vm500_vm0, %v4871_v53  ;;  %v3461_v30 = vpop.f32.mrb[11].mxu1  ;;  %3624 = vrot.lane.b32.xlu1 %v7499_v37, %s8299_s30  ;;  %v4881_v37 = vsel %vm1815_vm5, %v4879_v16, %v4880_v32  ;;  %v4884_v53 = vrot.slane %v10048_v33, 3  ;;  %v4890_v16 = vrot.slane %v10059_v50, 3 }
 0x3e8   : > { %3622 = vrot.lane.b32.xlu0 %v3461_v30, %s8299_s30  ;;  %v4883_v39 = vsel %vm1815_vm5, %v4880_v32, %v4882_v20 }
 0x3ea   : > { %7681 = vmatmul.mubr.msk.f32.gmra.mrb[116].mxu1 %vm500_vm0, %v4873_v14  ;;  %v7502_v52 = vpop.f32.mrb[12].mxu1  ;;  %v4887_v14 = vrot.slane %v10216_v63, 3 }
 0x3eb   : > { %7683 = vmatprep.mubr.msk.f32.mxu1 %vm500_vm0, %v4876_v60  ;;  %v3471_v36 = vpop.f32.mrb[13].mxu1  ;;  %3628 = vrot.lane.b32.xlu1 %v7502_v52, %s8299_s30  ;;  %v4886_v52 = vsel %vm1815_vm5, %v4884_v53, %v4885_v24  ;;  %v4889_v60 = vrot.slane %v10057_v15, 3 }
 0x3ec   : > { %3626 = vrot.lane.b32.xlu0 %v3471_v36, %s8299_s30  ;;  %v4888_v32 = vsel %vm1815_vm5, %v4885_v24, %v4887_v14 }
 0x3ed   : > { %v4891_v20 = vsel %vm1815_vm5, %v4889_v60, %v4890_v16 }
 0x3ee   : > { %7684 = vmatmul.mubr.msk.f32.gmra.mrb[118].mxu1 %vm500_vm0, %v4878_v9  ;;  %v7505_v1 = vpop.f32.mrb[14].mxu1  ;;  %v4892_v9 = vrot.slane %v10226_v55, 3 }
 0x3ef   : > { %7686 = vmatprep.mubr.msk.f32.mxu1 %vm500_vm0, %v4881_v37  ;;  %v3481_v30 = vpop.f32.mrb[15].mxu1  ;;  %3632 = vrot.lane.b32.xlu1 %v7505_v1, %s8299_s30  ;;  %v4895_v1 = vrot.slane %v10076_v49, 3 }
 0x3f0   : > { %3630 = vrot.lane.b32.xlu0 %v3481_v30, %s8299_s30  ;;  %v4894_v30 = vrot.slane %v10066_v8, 3  ;;  %v4893_v24 = vsel %vm1815_vm5, %v4890_v16, %v4892_v9 }
 0x3f2   : > { %7687 = vmatmul.mubr.msk.f32.gmra.mrb[120].mxu1 %vm500_vm0, %v4883_v39  ;;  %v7508_v5 = vpop.f32.mrb[16].mxu1  ;;  %v4897_v39 = vrot.slane %v10236_v4, 3  ;;  %v4896_v14 = vsel %vm1815_vm5, %v4894_v30, %v4895_v1 }
 0x3f3   : > { %7689 = vmatprep.mubr.msk.f32.mxu1 %vm500_vm0, %v4886_v52  ;;  %v3491_v36 = vpop.f32.mrb[17].mxu1  ;;  %3636 = vrot.lane.b32.xlu1 %v7508_v5, %s8299_s30  ;;  %v5353_v5 = vrot.slane %v9921_v6, 4  ;;  %v5354_v52 = vrot.slane %v9923_v13, 4  ;;  %v5358_v6 = vrot.slane %v9937_v54, 4  ;;  %v5359_v13 = vrot.slane %v9939_v43, 4 }
 0x3f4   : > { %3634 = vrot.lane.b32.xlu0 %v3491_v36, %s8299_s30  ;;  %v4898_v16 = vsel %vm1815_vm5, %v4895_v1, %v4897_v39  ;;  %v5363_v54 = vrot.slane %v9948_v35, 4  ;;  %v5364_v43 = vrot.slane %v9950_v34, 4  ;;  %v5368_v35 = vrot.slane %v9958_v31, 4 }
 0x3f5   : > { %v5355_v9 = vsel %vm2228_vm6, %v5353_v5, %v5354_v52  ;;  %v5369_v34 = vrot.slane %v9960_v45, 4  ;;  %v5373_v31 = vrot.slane %v9967_v44, 4  ;;  %v5374_v45 = vrot.slane %v9969_v25, 4 }
 0x3f6   : > { %7690 = vmatmul.mubr.msk.f32.gmra.mrb[122].mxu1 %vm500_vm0, %v4888_v32  ;;  %v5356_v32 = vrot.slane %v10071_v40, 4  ;;  %v5361_v40 = vrot.slane %v10090_v61, 4  ;;  %v5366_v61 = vrot.slane %v10102_v23, 4  ;;  %v5371_v23 = vrot.slane %v10115_v10, 4 }
 0x3f7   : > { %v7511_v37 = vpop.f32.mrb[18].mxu1  ;;  %7692 = vmatprep.mubr.msk.f32.mxu1 %vm500_vm0, %v4891_v20  ;;  %v5376_v10 = vrot.slane %v10126_v51, 4  ;;  %v5378_v44 = vrot.slane %v9976_v57, 4  ;;  %v5379_v25 = vrot.slane %v9978_v17, 4  ;;  %v5384_v57 = vrot.slane %v9987_v19, 4 }
 0x3f8   : > { %v3501_v53 = vpop.f32.mrb[19].mxu1  ;;  %3640 = vrot.lane.b32.xlu1 %v7511_v37, %s8299_s30  ;;  %v5357_v1 = vsel %vm2228_vm6, %v5354_v52, %v5356_v32  ;;  %v5386_v17 = vrot.slane %v10146_v28, 4  ;;  %v5389_v19 = vrot.slane %v9996_v18, 4  ;;  %v5391_v28 = vrot.slane %v10156_v41, 4 }
 0x3f9   : > { %3638 = vrot.lane.b32.xlu0 %v3501_v53, %s8299_s30  ;;  %v5360_v53 = vsel %vm2228_vm6, %v5358_v6, %v5359_v13  ;;  %v5375_v6 = vsel %vm2228_vm6, %v5373_v31, %v5374_v45  ;;  %v5394_v18 = vrot.slane %v10005_v62, 4  ;;  %v5396_v41 = vrot.slane %v10166_v46, 4 }
 0x3fa   : > { %7693 = vmatmul.mubr.msk.f32.gmra.mrb[124].mxu1 %vm500_vm0, %v4893_v24  ;;  %v5362_v24 = vsel %vm2228_vm6, %v5359_v13, %v5361_v40  ;;  %v5381_v13 = vrot.slane %v10136_v27, 4  ;;  %v5380_v40 = vsel %vm2228_vm6, %v5378_v44, %v5379_v25  ;;  %v5399_v62 = vrot.slane %v10014_v42, 4 }
 0x3fb   : > { %v7514_v60 = vpop.f32.mrb[20].mxu1  ;;  %7695 = vmatprep.mubr.msk.f32.mxu1 %vm500_vm0, %v4896_v14  ;;  %v5365_v14 = vsel %vm2228_vm6, %v5363_v54, %v5364_v43  ;;  %v5401_v46 = vrot.slane %v10176_v56, 4  ;;  %v5404_v42 = vrot.slane %v10023_v21, 4  ;;  %v5406_v56 = vrot.slane %v10186_v2, 4 }
 0x3fc   : > { %v3511_v36 = vpop.f32.mrb[21].mxu1  ;;  %3644 = vrot.lane.b32.xlu1 %v7514_v60, %s8299_s30  ;;  %v5367_v60 = vsel %vm2228_vm6, %v5364_v43, %v5366_v61  ;;  %v5409_v21 = vrot.slane %v10032_v47, 4  ;;  %v5411_v2 = vrot.slane %v10196_v12, 4  ;;  %v5414_v47 = vrot.slane %v10041_v48, 4 }
 0x3fd   : > { %3642 = vrot.lane.b32.xlu0 %v3511_v36, %s8299_s30  ;;  %v5370_v36 = vsel %vm2228_vm6, %v5368_v35, %v5369_v34  ;;  %v5392_v35 = vsel %vm2228_vm6, %v5389_v19, %v5391_v28  ;;  %v5416_v12 = vrot.slane %v10206_v59, 4  ;;  %v5419_v48 = vrot.slane %v10050_v58, 4 }
 0x3fe   : > { %7696 = vmatmul.mubr.msk.f32.gmra.mrb[126].mxu1 %vm500_vm0, %v4898_v16  ;;  %v5421_v59 = vrot.slane %v10216_v63, 4  ;;  %v5424_v58 = vrot.slane %v10059_v50, 4  ;;  %v5426_v63 = vrot.slane %v10226_v55, 4  ;;  %v5428_v50 = vrot.slane %v10066_v8, 4 }
 0x3ff   : > { %v7517_v20 = vpop.f32.mrb[22].mxu1  ;;  %7706 = vmatprep.mubr.msk.f32.mxu1 %vm500_vm0, %v5355_v9  ;;  %v5372_v9 = vsel %vm2228_vm6, %v5369_v34, %v5371_v23  ;;  %v5397_v23 = vsel %vm2228_vm6, %v5394_v18, %v5396_v41  ;;  %v5431_v55 = vrot.slane %v10236_v4, 4 }
 0x400   : > { %v3521_v37 = vpop.f32.mrb[23].mxu1  ;;  %3648 = vrot.lane.b32.xlu1 %v7517_v20, %s8299_s30 }
 0x401   : > { %3646 = vrot.lane.b32.xlu0 %v3521_v37, %s8299_s30  ;;  %v5377_v37 = vsel %vm2228_vm6, %v5374_v45, %v5376_v10  ;;  %v5402_v45 = vsel %vm2228_vm6, %v5399_v62, %v5401_v46 }
 0x402   : > { %7707 = vmatmul.mubr.msk.f32.vlgmr.msra.gmra.mrb[128].mxu1 %vm500_vm0, %v5357_v1  ;;  %v5383_v1 = vrot.slane %v9985_v38, 4  ;;  %v5388_v38 = vrot.slane %v9994_v3, 4  ;;  %v5393_v3 = vrot.slane %v10003_v22, 4  ;;  %v5398_v22 = vrot.slane %v10012_v7, 4 }
 0x403   : > { %v7520_v30 = vpop.f32.mrb[24].mxu1  ;;  %7709 = vmatprep.mubr.msk.f32.mxu1 %vm500_vm0, %v5360_v53  ;;  %v5382_v53 = vsel %vm2228_vm6, %v5379_v25, %v5381_v13  ;;  %v5403_v7 = vrot.slane %v10021_v11, 4  ;;  %v5408_v11 = vrot.slane %v10030_v0, 4  ;;  %v5413_v0 = vrot.slane %v10039_v26, 4 }
 0x404   : > { %v3531_v39 = vpop.f32.mrb[25].mxu1  ;;  %3652 = vrot.lane.b32.xlu1 %v7520_v30, %s8299_s30  ;;  %v5385_v43 = vsel %vm2228_vm6, %v5383_v1, %v5384_v57  ;;  %v5412_v13 = vsel %vm2228_vm6, %v5409_v21, %v5411_v2  ;;  %v5418_v26 = vrot.slane %v10048_v33, 4  ;;  %v5423_v33 = vrot.slane %v10057_v15, 4 }
 0x405   : > { %3650 = vrot.lane.b32.xlu0 %v3531_v39, %s8299_s30  ;;  %v5387_v39 = vsel %vm2228_vm6, %v5384_v57, %v5386_v17  ;;  %v5410_v44 = vsel %vm2228_vm6, %v5408_v11, %v5409_v21  ;;  %v5429_v15 = vrot.slane %v10076_v49, 4 }
 0x406   : > { %7710 = vmatmul.mubr.msk.f32.gmra.mrb[130].mxu1 %vm500_vm0, %v5362_v24  ;;  %v5390_v24 = vsel %vm2228_vm6, %v5388_v38, %v5389_v19  ;;  %v5420_v57 = vsel %vm2228_vm6, %v5418_v26, %v5419_v48  ;;  %v5427_v38 = vsel %vm2228_vm6, %v5424_v58, %v5426_v63 }
 0x407   : > { %v7523_v5 = vpop.f32.mrb[26].mxu1  ;;  %7712 = vmatprep.mubr.msk.f32.mxu1 %vm500_vm0, %v5365_v14  ;;  %v5430_v28 = vsel %vm2228_vm6, %v5428_v50, %v5429_v15 }
 0x408   : > { %v3541_v52 = vpop.f32.mrb[27].mxu1  ;;  %3656 = vrot.lane.b32.xlu1 %v7523_v5, %s8299_s30  ;;  %v5395_v5 = vsel %vm2228_vm6, %v5393_v3, %v5394_v18 }
 0x409   : > { %3654 = vrot.lane.b32.xlu0 %v3541_v52, %s8299_s30 }
 0x40a   : > { %7713 = vmatmul.mubr.msk.f32.gmra.mrb[132].mxu1 %vm500_vm0, %v5367_v60 }
 0x40b   : > { %v7526_v32 = vpop.f32.mrb[28].mxu1  ;;  %7715 = vmatprep.mubr.msk.f32.mxu1 %vm500_vm0, %v5370_v36  ;;  %v5400_v36 = vsel %vm2228_vm6, %v5398_v22, %v5399_v62 }
 0x40c   : > { %v3551_v16 = vpop.f32.mrb[29].mxu1  ;;  %3660 = vrot.lane.b32.xlu1 %v7526_v32, %s8299_s30 }
 0x40d   : > { %3658 = vrot.lane.b32.xlu0 %v3551_v16, %s8299_s30  ;;  %v5405_v16 = vsel %vm2228_vm6, %v5403_v7, %v5404_v42 }
 0x40e   : > { %7716 = vmatmul.mubr.msk.f32.gmra.mrb[134].mxu1 %vm500_vm0, %v5372_v9  ;;  %v5407_v9 = vsel %vm2228_vm6, %v5404_v42, %v5406_v56 }
 0x40f   : > { %7718 = vmatprep.mubr.msk.f32.mxu1 %vm500_vm0, %v5375_v6 }
 0x411   : > { %v7529_v20 = vpop.f32.mrb[30].mxu1 }
 0x412   : > { %3664 = vrot.lane.b32.xlu1 %v7529_v20, %s8299_s30  ;;  %v3561_v51 = vpop.f32.mrb[31].mxu1  ;;  %7719 = vmatmul.mubr.msk.f32.gmra.mrb[136].mxu1 %vm500_vm0, %v5377_v37  ;;  %v5415_v37 = vsel %vm2228_vm6, %v5413_v0, %v5414_v47 }
 0x413   : > { %3662 = vrot.lane.b32.xlu0 %v3561_v51, %s8299_s30  ;;  %7721 = vmatprep.mubr.msk.f32.mxu1 %vm500_vm0, %v5380_v40  ;;  %v5417_v40 = vsel %vm2228_vm6, %v5414_v47, %v5416_v12 }
 0x415   : > { %v7540_v27 = vpop.f32.mrb[32].mxu1 }
 0x416   : > { %4154 = vrot.lane.b32.xlu1 %v7540_v27, %s8299_s30  ;;  %v3961_v54 = vpop.f32.mrb[33].mxu1  ;;  %7722 = vmatmul.mubr.msk.f32.gmra.mrb[138].mxu1 %vm500_vm0, %v5382_v53  ;;  %v5422_v27 = vsel %vm2228_vm6, %v5419_v48, %v5421_v59 }
 0x417   : > { %4152 = vrot.lane.b32.xlu0 %v3961_v54, %s8299_s30  ;;  %7724 = vmatprep.mubr.msk.f32.mxu1 %vm500_vm0, %v5385_v43  ;;  %v5425_v54 = vsel %vm2228_vm6, %v5423_v33, %v5424_v58 }
 0x419   : > { %v7543_v30 = vpop.f32.mrb[34].mxu1 }
 0x41a   : > { %4158 = vrot.lane.b32.xlu1 %v7543_v30, %s8299_s30  ;;  %v3971_v61 = vpop.f32.mrb[35].mxu1  ;;  %7725 = vmatmul.mubr.msk.f32.gmra.mrb[140].mxu1 %vm500_vm0, %v5387_v39  ;;  %v5432_v30 = vsel %vm2228_vm6, %v5429_v15, %v5431_v55 }
 0x41b   : > { %4156 = vrot.lane.b32.xlu0 %v3971_v61, %s8299_s30  ;;  %7727 = vmatprep.mubr.msk.f32.mxu1 %vm500_vm0, %v5390_v24 }
 0x41d   : > { %v7546_v14 = vpop.f32.mrb[36].mxu1 }
 0x41e   : > { %4162 = vrot.lane.b32.xlu1 %v7546_v14, %s8299_s30  ;;  %v3981_v34 = vpop.f32.mrb[37].mxu1  ;;  %7728 = vmatmul.mubr.msk.f32.gmra.mrb[142].mxu1 %vm500_vm0, %v5392_v35 }
 0x41f   : > { %4160 = vrot.lane.b32.xlu0 %v3981_v34, %s8299_s30  ;;  %7730 = vmatprep.mubr.msk.f32.mxu1 %vm500_vm0, %v5395_v5 }
 0x421   : > { %v7549_v52 = vpop.f32.mrb[38].mxu1 }
 0x422   : > { %4166 = vrot.lane.b32.xlu1 %v7549_v52, %s8299_s30  ;;  %v3991_v60 = vpop.f32.mrb[39].mxu1  ;;  %7731 = vmatmul.mubr.msk.f32.gmra.mrb[144].mxu1 %vm500_vm0, %v5397_v23 }
 0x423   : > { %4164 = vrot.lane.b32.xlu0 %v3991_v60, %s8299_s30  ;;  %7733 = vmatprep.mubr.msk.f32.mxu1 %vm500_vm0, %v5400_v36 }
 0x425   : > { %v7552_v31 = vpop.f32.mrb[40].mxu1 }
 0x426   : > { %4170 = vrot.lane.b32.xlu1 %v7552_v31, %s8299_s30  ;;  %v4001_v32 = vpop.f32.mrb[41].mxu1  ;;  %7734 = vmatmul.mubr.msk.f32.gmra.mrb[146].mxu1 %vm500_vm0, %v5402_v45 }
 0x427   : > { %4168 = vrot.lane.b32.xlu0 %v4001_v32, %s8299_s30  ;;  %7736 = vmatprep.mubr.msk.f32.mxu1 %vm500_vm0, %v5405_v16 }
 0x429   : > { %v7555_v10 = vpop.f32.mrb[42].mxu1 }
 0x42a   : > { %4174 = vrot.lane.b32.xlu1 %v7555_v10, %s8299_s30  ;;  %v4011_v6 = vpop.f32.mrb[43].mxu1  ;;  %7737 = vmatmul.mubr.msk.f32.gmra.mrb[148].mxu1 %vm500_vm0, %v5407_v9 }
 0x42b   : > { %4172 = vrot.lane.b32.xlu0 %v4011_v6, %s8299_s30  ;;  %7739 = vmatprep.mubr.msk.f32.mxu1 %vm500_vm0, %v5410_v44 }
 0x42d   : > { %v7558_v25 = vpop.f32.mrb[44].mxu1 }
 0x42e   : > { %4178 = vrot.lane.b32.xlu1 %v7558_v25, %s8299_s30  ;;  %v4021_v20 = vpop.f32.mrb[45].mxu1  ;;  %7740 = vmatmul.mubr.msk.f32.gmra.mrb[150].mxu1 %vm500_vm0, %v5412_v13 }
 0x42f   : > { %4176 = vrot.lane.b32.xlu0 %v4021_v20, %s8299_s30  ;;  %7742 = vmatprep.mubr.msk.f32.mxu1 %vm500_vm0, %v5415_v37 }
 0x431   : > { %v7561_v51 = vpop.f32.mrb[46].mxu1 }
 0x432   : > { %4182 = vrot.lane.b32.xlu1 %v7561_v51, %s8299_s30  ;;  %v4031_v1 = vpop.f32.mrb[47].mxu1  ;;  %7743 = vmatmul.mubr.msk.f32.gmra.mrb[152].mxu1 %vm500_vm0, %v5417_v40 }
 0x433   : > { %4180 = vrot.lane.b32.xlu0 %v4031_v1, %s8299_s30  ;;  %7745 = vmatprep.mubr.msk.f32.mxu1 %vm500_vm0, %v5420_v57 }
 0x435   : > { %v7564_v17 = vpop.f32.mrb[48].mxu1 }
 0x436   : > { %4186 = vrot.lane.b32.xlu1 %v7564_v17, %s8299_s30  ;;  %v4041_v53 = vpop.f32.mrb[49].mxu1  ;;  %7746 = vmatmul.mubr.msk.f32.gmra.mrb[154].mxu1 %vm500_vm0, %v5422_v27 }
 0x437   : > { %4184 = vrot.lane.b32.xlu0 %v4041_v53, %s8299_s30  ;;  %7748 = vmatprep.mubr.msk.f32.mxu1 %vm500_vm0, %v5425_v54 }
 0x439   : > { %v7567_v43 = vpop.f32.mrb[50].mxu1 }
 0x43a   : > { %4190 = vrot.lane.b32.xlu1 %v7567_v43, %s8299_s30  ;;  %v4051_v19 = vpop.f32.mrb[51].mxu1  ;;  %7749 = vmatmul.mubr.msk.f32.gmra.mrb[156].mxu1 %vm500_vm0, %v5427_v38 }
 0x43b   : > { %4188 = vrot.lane.b32.xlu0 %v4051_v19, %s8299_s30  ;;  %7751 = vmatprep.mubr.msk.f32.mxu1 %vm500_vm0, %v5430_v28 }
 0x43d   : > { %v7570_v49 = vpop.f32.mrb[52].mxu1 }
 0x43e   : > { %4194 = vrot.lane.b32.xlu1 %v7570_v49, %s8299_s30  ;;  %v4061_v8 = vpop.f32.mrb[53].mxu1  ;;  %7752 = vmatmul.mubr.msk.f32.gmra.mrb[158].mxu1 %vm500_vm0, %v5432_v30 }
 0x43f   : > { %4192 = vrot.lane.b32.xlu0 %v4061_v8, %s8299_s30 }
 0x441   : > { %v7573_v4 = vpop.f32.mrb[54].mxu1 }
 0x442   : > { %4198 = vrot.lane.b32.xlu1 %v7573_v4, %s8299_s30  ;;  %v4071_v39 = vpop.f32.mrb[55].mxu1 }
 0x443   : > { %4196 = vrot.lane.b32.xlu0 %v4071_v39, %s8299_s30  ;;  %v10665_v61 = vpop.permute.xlu1 %3604 }
 0x444   : > { %v10667_v24 = vpop.permute.xlu0 %3602 }
 0x445   : > { %v7576_v3 = vpop.f32.mrb[56].mxu1 }
 0x446   : > { %4202 = vrot.lane.b32.xlu1 %v7576_v3, %s8299_s30  ;;  %v4081_v18 = vpop.f32.mrb[57].mxu1 }
 0x447   : > { %4200 = vrot.lane.b32.xlu0 %v4081_v18, %s8299_s30  ;;  %v10671_v41 = vpop.permute.xlu1 %3608 }
 0x448   : > { %v10673_v14 = vpop.permute.xlu0 %3606 }
 0x449   : > { %v7579_v35 = vpop.f32.mrb[58].mxu1 }
 0x44a   : > { %4206 = vrot.lane.b32.xlu1 %v7579_v35, %s8299_s30  ;;  %v4091_v34 = vpop.f32.mrb[59].mxu1 }
 0x44b   : > { %4204 = vrot.lane.b32.xlu0 %v4091_v34, %s8299_s30  ;;  %v10677_v5 = vpop.permute.xlu1 %3612 }
 0x44c   : > { %v10679_v22 = vpop.permute.xlu0 %3610 }
 0x44d   : > { %v7582_v62 = vpop.f32.mrb[60].mxu1 }
 0x44e   : > { %4210 = vrot.lane.b32.xlu1 %v7582_v62, %s8299_s30  ;;  %v4101_v46 = vpop.f32.mrb[61].mxu1 }
 0x44f   : > { %4208 = vrot.lane.b32.xlu0 %v4101_v46, %s8299_s30 }
 0x451   : > { %v7585_v52 = vpop.f32.mrb[62].mxu1  ;;  %v10683_v23 = vpop.permute.xlu1 %3616 }
 0x452   : > { %4214 = vrot.lane.b32.xlu1 %v7585_v52, %s8299_s30  ;;  %v4111_v60 = vpop.f32.mrb[63].mxu1  ;;  %v10686_v36 = vpop.permute.xlu0 %3614 }
 0x453   : > { %4212 = vrot.lane.b32.xlu0 %v4111_v60, %s8299_s30 }
 0x455   : > { %v7596_v7 = vpop.f32.mrb[64].mxu1  ;;  %v10689_v42 = vpop.permute.xlu1 %3620 }
 0x456   : > { %4688 = vrot.lane.b32.xlu1 %v7596_v7, %s8299_s30  ;;  %v4495_v56 = vpop.f32.mrb[65].mxu1  ;;  %v10692_v31 = vpop.permute.xlu0 %3618 }
 0x457   : > { %4686 = vrot.lane.b32.xlu0 %v4495_v56, %s8299_s30 }
 0x459   : > { %v7599_v45 = vpop.f32.mrb[66].mxu1  ;;  %v10695_v32 = vpop.permute.xlu1 %3624 }
 0x45a   : > { %4692 = vrot.lane.b32.xlu1 %v7599_v45, %s8299_s30  ;;  %v4505_v16 = vpop.f32.mrb[67].mxu1  ;;  %v10698_v11 = vpop.permute.xlu0 %3622 }
 0x45b   : > { %4690 = vrot.lane.b32.xlu0 %v4505_v16, %s8299_s30 }
 0x45d   : > { %v7602_v21 = vpop.f32.mrb[68].mxu1  ;;  %v10701_v2 = vpop.permute.xlu1 %3628 }
 0x45e   : > { %4696 = vrot.lane.b32.xlu1 %v7602_v21, %s8299_s30  ;;  %v4515_v10 = vpop.f32.mrb[69].mxu1  ;;  %v10704_v9 = vpop.permute.xlu0 %3626 }
 0x45f   : > { %4694 = vrot.lane.b32.xlu0 %v4515_v10, %s8299_s30 }
 0x461   : > { %v7605_v6 = vpop.f32.mrb[70].mxu1  ;;  %v10707_v44 = vpop.permute.xlu1 %3632 }
 0x462   : > { %11568 = vst [vmem:[#allocation65_spill] sm:$0xff] %v10707_v44  ;;  %4700 = vrot.lane.b32.xlu1 %v7605_v6, %s8299_s30  ;;  %v4525_v0 = vpop.f32.mrb[71].mxu1  ;;  %v10710_v47 = vpop.permute.xlu0 %3630 }
 0x463   : > { %11569 = vst [vmem:[#allocation66_spill] sm:$0xff] %v10710_v47  ;;  %4698 = vrot.lane.b32.xlu0 %v4525_v0, %s8299_s30 }
 0x465   : > { %v7608_v12 = vpop.f32.mrb[72].mxu1  ;;  %v10713_v25 = vpop.permute.xlu1 %3636 }
 0x466   : > { %11570 = vst [vmem:[#allocation67_spill] sm:$0xff] %v10713_v25  ;;  %4704 = vrot.lane.b32.xlu1 %v7608_v12, %s8299_s30  ;;  %v4535_v13 = vpop.f32.mrb[73].mxu1  ;;  %v10716_v20 = vpop.permute.xlu0 %3634 }
 0x467   : > { %11571 = vst [vmem:[#allocation68_spill] sm:$0xff] %v10716_v20  ;;  %4702 = vrot.lane.b32.xlu0 %v4535_v13, %s8299_s30 }
 0x469   : > { %v7611_v37 = vpop.f32.mrb[74].mxu1 }
 0x46a   : > { %v10719_v26 = vpop.permute.xlu1 %3640  ;;  %4708 = vrot.lane.b32.xlu1 %v7611_v37, %s8299_s30  ;;  %v4545_v48 = vpop.f32.mrb[75].mxu1 }
 0x46b   : > { %11572 = vst [vmem:[#allocation69_spill] sm:$0xff] %v10719_v26  ;;  %4706 = vrot.lane.b32.xlu0 %v4545_v48, %s8299_s30  ;;  %v10723_v59 = vpop.permute.xlu0 %3638 }
 0x46c   : > { %11573 = vst [vmem:[#allocation70_spill] sm:$0xff] %v10723_v59 }
 0x46d   : > { %v7614_v51 = vpop.f32.mrb[76].mxu1 }
 0x46e   : > { %v10725_v40 = vpop.permute.xlu1 %3644  ;;  %4712 = vrot.lane.b32.xlu1 %v7614_v51, %s8299_s30  ;;  %v4555_v1 = vpop.f32.mrb[77].mxu1 }
 0x46f   : > { %11574 = vst [vmem:[#allocation71_spill] sm:$0xff] %v10725_v40  ;;  %4710 = vrot.lane.b32.xlu0 %v4555_v1, %s8299_s30  ;;  %v10729_v57 = vpop.permute.xlu0 %3642 }
 0x470   : > { %11575 = vst [vmem:[#allocation72_spill] sm:$0xff] %v10729_v57 }
 0x471   : > { %v7617_v33 = vpop.f32.mrb[78].mxu1 }
 0x472   : > { %v10731_v58 = vpop.permute.xlu1 %3648  ;;  %4716 = vrot.lane.b32.xlu1 %v7617_v33, %s8299_s30  ;;  %v4565_v63 = vpop.f32.mrb[79].mxu1 }
 0x473   : > { %11576 = vst [vmem:[#allocation73_spill] sm:$0xff] %v10731_v58  ;;  %4714 = vrot.lane.b32.xlu0 %v4565_v63, %s8299_s30  ;;  %v10735_v17 = vpop.permute.xlu0 %3646 }
 0x474   : > { %11577 = vst [vmem:[#allocation74_spill] sm:$0xff] %v10735_v17 }
 0x475   : > { %v7620_v27 = vpop.f32.mrb[80].mxu1 }
 0x476   : > { %v10737_v53 = vpop.permute.xlu1 %3652  ;;  %4720 = vrot.lane.b32.xlu1 %v7620_v27, %s8299_s30  ;;  %v4575_v54 = vpop.f32.mrb[81].mxu1 }
 0x477   : > { %11578 = vst [vmem:[#allocation75_spill] sm:$0xff] %v10737_v53  ;;  %4718 = vrot.lane.b32.xlu0 %v4575_v54, %s8299_s30  ;;  %v10741_v15 = vpop.permute.xlu0 %3650 }
 0x478   : > { %11579 = vst [vmem:[#allocation76_spill] sm:$0xff] %v10741_v15 }
 0x479   : > { %v7623_v50 = vpop.f32.mrb[82].mxu1 }
 0x47a   : > { %v10743_v55 = vpop.permute.xlu1 %3656  ;;  %4724 = vrot.lane.b32.xlu1 %v7623_v50, %s8299_s30  ;;  %v4585_v43 = vpop.f32.mrb[83].mxu1 }
 0x47b   : > { %11580 = vst [vmem:[#allocation77_spill] sm:$0xff] %v10743_v55  ;;  %4722 = vrot.lane.b32.xlu0 %v4585_v43, %s8299_s30  ;;  %v10747_v38 = vpop.permute.xlu0 %3654 }
 0x47c   : > { %11581 = vst [vmem:[#allocation78_spill] sm:$0xff] %v10747_v38 }
 0x47d   : > { %v7626_v19 = vpop.f32.mrb[84].mxu1 }
 0x47e   : > { %4728 = vrot.lane.b32.xlu1 %v7626_v19, %s8299_s30  ;;  %v4595_v28 = vpop.f32.mrb[85].mxu1  ;;  %v10751_v49 = vpop.permute.xlu1 %3660 }
 0x47f   : > { %4726 = vrot.lane.b32.xlu0 %v4595_v28, %s8299_s30  ;;  %11582 = vst [vmem:[#allocation79_spill] sm:$0xff] %v10751_v49  ;;  %v10753_v30 = vpop.permute.xlu0 %3658 }
 0x480   : > { %11583 = vst [vmem:[#allocation80_spill] sm:$0xff] %v10753_v30 }
 0x481   : > { %v7629_v8 = vpop.f32.mrb[86].mxu1 }
 0x482   : > { %4732 = vrot.lane.b32.xlu1 %v7629_v8, %s8299_s30  ;;  %v4605_v4 = vpop.f32.mrb[87].mxu1 }
 0x483   : > { %4730 = vrot.lane.b32.xlu0 %v4605_v4, %s8299_s30 }
 0x484   : > { %v10757_v39 = vpop.permute.xlu1 %3664 }
 0x485   : > { %11584 = vst [vmem:[#allocation81_spill] sm:$0xff] %v10757_v39  ;;  %v7632_v3 = vpop.f32.mrb[88].mxu1  ;;  %v10759_v18 = vpop.permute.xlu0 %3662 }
 0x486   : > { %11585 = vst [vmem:[#allocation82_spill] sm:$0xff] %v10759_v18  ;;  %4736 = vrot.lane.b32.xlu1 %v7632_v3, %s8299_s30  ;;  %v4615_v35 = vpop.f32.mrb[89].mxu1 }
 0x487   : > { %4734 = vrot.lane.b32.xlu0 %v4615_v35, %s8299_s30 }
 0x488   : > { %v10763_v34 = vpop.permute.xlu1 %4154 }
 0x489   : > { %v7635_v62 = vpop.f32.mrb[90].mxu1  ;;  %v10765_v46 = vpop.permute.xlu0 %4152 }
 0x48a   : > { %4740 = vrot.lane.b32.xlu1 %v7635_v62, %s8299_s30  ;;  %v4625_v52 = vpop.f32.mrb[91].mxu1 }
 0x48b   : > { %4738 = vrot.lane.b32.xlu0 %v4625_v52, %s8299_s30 }
 0x48c   : > { %v10769_v60 = vpop.permute.xlu1 %4158 }
 0x48d   : > { %v7638_v7 = vpop.f32.mrb[92].mxu1  ;;  %v10771_v56 = vpop.permute.xlu0 %4156 }
 0x48e   : > { %4744 = vrot.lane.b32.xlu1 %v7638_v7, %s8299_s30  ;;  %v4635_v45 = vpop.f32.mrb[93].mxu1 }
 0x48f   : > { %4742 = vrot.lane.b32.xlu0 %v4635_v45, %s8299_s30 }
 0x490   : > { %v10775_v16 = vpop.permute.xlu1 %4162 }
 0x491   : > { %v7641_v21 = vpop.f32.mrb[94].mxu1  ;;  %v10777_v10 = vpop.permute.xlu0 %4160 }
 0x492   : > { %4748 = vrot.lane.b32.xlu1 %v7641_v21, %s8299_s30  ;;  %v4645_v6 = vpop.f32.mrb[95].mxu1 }
 0x493   : > { %4746 = vrot.lane.b32.xlu0 %v4645_v6, %s8299_s30 }
 0x494   : > { %v10781_v0 = vpop.permute.xlu1 %4166 }
 0x495   : > { %v7652_v12 = vpop.f32.mrb[96].mxu1  ;;  %v10783_v13 = vpop.permute.xlu0 %4164 }
 0x496   : > { %5222 = vrot.lane.b32.xlu1 %v7652_v12, %s8299_s30  ;;  %v5029_v37 = vpop.f32.mrb[97].mxu1 }
 0x497   : > { %5220 = vrot.lane.b32.xlu0 %v5029_v37, %s8299_s30 }
 0x498   : > { %v10787_v48 = vpop.permute.xlu1 %4170 }
 0x499   : > { %v7655_v51 = vpop.f32.mrb[98].mxu1  ;;  %v10789_v1 = vpop.permute.xlu0 %4168 }
 0x49a   : > { %5226 = vrot.lane.b32.xlu1 %v7655_v51, %s8299_s30  ;;  %v5039_v33 = vpop.f32.mrb[99].mxu1 }
 0x49b   : > { %5224 = vrot.lane.b32.xlu0 %v5039_v33, %s8299_s30 }
 0x49c   : > { %v10793_v63 = vpop.permute.xlu1 %4174 }
 0x49d   : > { %v7658_v27 = vpop.f32.mrb[100].mxu1  ;;  %v10795_v54 = vpop.permute.xlu0 %4172 }
 0x49e   : > { %5230 = vrot.lane.b32.xlu1 %v7658_v27, %s8299_s30  ;;  %v5049_v50 = vpop.f32.mrb[101].mxu1 }
 0x49f   : > { %5228 = vrot.lane.b32.xlu0 %v5049_v50, %s8299_s30 }
 0x4a0   : > { %v10799_v43 = vpop.permute.xlu1 %4178 }
 0x4a1   : > { %v7661_v19 = vpop.f32.mrb[102].mxu1  ;;  %v10801_v28 = vpop.permute.xlu0 %4176 }
 0x4a2   : > { %5234 = vrot.lane.b32.xlu1 %v7661_v19, %s8299_s30  ;;  %v5059_v8 = vpop.f32.mrb[103].mxu1 }
 0x4a3   : > { %5232 = vrot.lane.b32.xlu0 %v5059_v8, %s8299_s30 }
 0x4a4   : > { %v10805_v4 = vpop.permute.xlu1 %4182 }
 0x4a5   : > { %11586 = vst [vmem:[#allocation83_spill] sm:$0xff] %v10805_v4  ;;  %v7664_v3 = vpop.f32.mrb[104].mxu1  ;;  %v10807_v35 = vpop.permute.xlu0 %4180 }
 0x4a6   : > { %11587 = vst [vmem:[#allocation84_spill] sm:$0xff] %v10807_v35  ;;  %5238 = vrot.lane.b32.xlu1 %v7664_v3, %s8299_s30  ;;  %v5069_v62 = vpop.f32.mrb[105].mxu1 }
 0x4a7   : > { %5236 = vrot.lane.b32.xlu0 %v5069_v62, %s8299_s30 }
 0x4a8   : > { %v10811_v52 = vpop.permute.xlu1 %4186 }
 0x4a9   : > { %11588 = vst [vmem:[#allocation85_spill] sm:$0xff] %v10811_v52  ;;  %v7667_v7 = vpop.f32.mrb[106].mxu1  ;;  %v10813_v45 = vpop.permute.xlu0 %4184 }
 0x4aa   : > { %11589 = vst [vmem:[#allocation86_spill] sm:$0xff] %v10813_v45  ;;  %5242 = vrot.lane.b32.xlu1 %v7667_v7, %s8299_s30  ;;  %v5079_v21 = vpop.f32.mrb[107].mxu1 }
 0x4ab   : > { %5240 = vrot.lane.b32.xlu0 %v5079_v21, %s8299_s30 }
 0x4ac   : > { %v10817_v6 = vpop.permute.xlu1 %4190 }
 0x4ad   : > { %11590 = vst [vmem:[#allocation87_spill] sm:$0xff] %v10817_v6  ;;  %v7670_v12 = vpop.f32.mrb[108].mxu1  ;;  %v10819_v37 = vpop.permute.xlu0 %4188 }
 0x4ae   : > { %11591 = vst [vmem:[#allocation88_spill] sm:$0xff] %v10819_v37  ;;  %5246 = vrot.lane.b32.xlu1 %v7670_v12, %s8299_s30  ;;  %v5089_v51 = vpop.f32.mrb[109].mxu1 }
 0x4af   : > { %5244 = vrot.lane.b32.xlu0 %v5089_v51, %s8299_s30 }
 0x4b0   : > { %v10823_v33 = vpop.permute.xlu1 %4194 }
 0x4b1   : > { %11592 = vst [vmem:[#allocation89_spill] sm:$0xff] %v10823_v33  ;;  %v7673_v27 = vpop.f32.mrb[110].mxu1  ;;  %v10825_v50 = vpop.permute.xlu0 %4192 }
 0x4b2   : > { %11593 = vst [vmem:[#allocation90_spill] sm:$0xff] %v10825_v50  ;;  %5250 = vrot.lane.b32.xlu1 %v7673_v27, %s8299_s30  ;;  %v5099_v19 = vpop.f32.mrb[111].mxu1 }
 0x4b3   : > { %5248 = vrot.lane.b32.xlu0 %v5099_v19, %s8299_s30 }
 0x4b4   : > { %v10829_v8 = vpop.permute.xlu1 %4198 }
 0x4b5   : > { %11594 = vst [vmem:[#allocation91_spill] sm:$0xff] %v10829_v8  ;;  %v7676_v3 = vpop.f32.mrb[112].mxu1  ;;  %v10831_v62 = vpop.permute.xlu0 %4196 }
 0x4b6   : > { %11595 = vst [vmem:[#allocation92_spill] sm:$0xff] %v10831_v62  ;;  %5254 = vrot.lane.b32.xlu1 %v7676_v3, %s8299_s30  ;;  %v5109_v7 = vpop.f32.mrb[113].mxu1 }
 0x4b7   : > { %5252 = vrot.lane.b32.xlu0 %v5109_v7, %s8299_s30 }
 0x4b8   : > { %v10835_v21 = vpop.permute.xlu1 %4202 }
 0x4b9   : > { %11596 = vst [vmem:[#allocation93_spill] sm:$0xff] %v10835_v21  ;;  %v7679_v12 = vpop.f32.mrb[114].mxu1  ;;  %v10837_v51 = vpop.permute.xlu0 %4200 }
 0x4ba   : > { %11597 = vst [vmem:[#allocation94_spill] sm:$0xff] %v10837_v51  ;;  %5258 = vrot.lane.b32.xlu1 %v7679_v12, %s8299_s30  ;;  %v5119_v27 = vpop.f32.mrb[115].mxu1 }
 0x4bb   : > { %5256 = vrot.lane.b32.xlu0 %v5119_v27, %s8299_s30 }
 0x4bc   : > { %v10841_v19 = vpop.permute.xlu1 %4206 }
 0x4bd   : > { %11598 = vst [vmem:[#allocation95_spill] sm:$0xff] %v10841_v19  ;;  %v7682_v18 = vpop.f32.mrb[116].mxu1  ;;  %v10843_v39 = vpop.permute.xlu0 %4204 }
 0x4be   : > { %11599 = vst [vmem:[#allocation96_spill] sm:$0xff] %v10843_v39  ;;  %5262 = vrot.lane.b32.xlu1 %v7682_v18, %s8299_s30  ;;  %v5129_v3 = vpop.f32.mrb[117].mxu1 }
 0x4bf   : > { %5260 = vrot.lane.b32.xlu0 %v5129_v3, %s8299_s30 }
 0x4c0   : > { %v10847_v7 = vpop.permute.xlu1 %4210 }
 0x4c1   : > { %11600 = vst [vmem:[#allocation97_spill] sm:$0xff] %v10847_v7  ;;  %v7685_v30 = vpop.f32.mrb[118].mxu1  ;;  %v10849_v49 = vpop.permute.xlu0 %4208 }
 0x4c2   : > { %11601 = vst [vmem:[#allocation98_spill] sm:$0xff] %v10849_v49  ;;  %5266 = vrot.lane.b32.xlu1 %v7685_v30, %s8299_s30  ;;  %v5139_v12 = vpop.f32.mrb[119].mxu1 }
 0x4c3   : > { %5264 = vrot.lane.b32.xlu0 %v5139_v12, %s8299_s30 }
 0x4c4   : > { %v10853_v27 = vpop.permute.xlu1 %4214 }
 0x4c5   : > { %11602 = vst [vmem:[#allocation99_spill] sm:$0xff] %v10853_v27  ;;  %v7688_v19 = vpop.f32.mrb[120].mxu1  ;;  %v10855_v38 = vpop.permute.xlu0 %4212 }
 0x4c6   : > { %11603 = vst [vmem:[#allocation100_spill] sm:$0xff] %v10855_v38  ;;  %5270 = vrot.lane.b32.xlu1 %v7688_v19, %s8299_s30  ;;  %v5149_v18 = vpop.f32.mrb[121].mxu1 }
 0x4c7   : > { %5268 = vrot.lane.b32.xlu0 %v5149_v18, %s8299_s30 }
 0x4c8   : > { %v10859_v3 = vpop.permute.xlu1 %4688 }
 0x4c9   : > { %v7691_v7 = vpop.f32.mrb[122].mxu1  ;;  %v10861_v39 = vpop.permute.xlu0 %4686 }
 0x4ca   : > { %5274 = vrot.lane.b32.xlu1 %v7691_v7, %s8299_s30  ;;  %v5159_v30 = vpop.f32.mrb[123].mxu1 }
 0x4cb   : > { %5272 = vrot.lane.b32.xlu0 %v5159_v30, %s8299_s30 }
 0x4cc   : > { %v10865_v12 = vpop.permute.xlu1 %4692 }
 0x4cd   : > { %v7694_v27 = vpop.f32.mrb[124].mxu1  ;;  %v10867_v49 = vpop.permute.xlu0 %4690 }
 0x4ce   : > { %5278 = vrot.lane.b32.xlu1 %v7694_v27, %s8299_s30  ;;  %v5169_v19 = vpop.f32.mrb[125].mxu1 }
 0x4cf   : > { %5276 = vrot.lane.b32.xlu0 %v5169_v19, %s8299_s30 }
 0x4d0   : > { %v10871_v18 = vpop.permute.xlu1 %4696 }
 0x4d1   : > { %v7697_v38 = vpop.f32.mrb[126].mxu1  ;;  %v10873_v55 = vpop.permute.xlu0 %4694 }
 0x4d2   : > { %5282 = vrot.lane.b32.xlu1 %v7697_v38, %s8299_s30  ;;  %v5179_v7 = vpop.f32.mrb[127].mxu1 }
 0x4d3   : > { %5280 = vrot.lane.b32.xlu0 %v5179_v7, %s8299_s30 }
 0x4d4   : > { %v10877_v30 = vpop.permute.xlu1 %4700 }
 0x4d5   : > { %v7708_v51 = vpop.f32.mrb[128].mxu1  ;;  %v10879_v21 = vpop.permute.xlu0 %4698 }
 0x4d6   : > { %5756 = vrot.lane.b32.xlu1 %v7708_v51, %s8299_s30  ;;  %v5563_v27 = vpop.f32.mrb[129].mxu1 }
 0x4d7   : > { %5754 = vrot.lane.b32.xlu0 %v5563_v27, %s8299_s30 }
 0x4d8   : > { %v10883_v19 = vpop.permute.xlu1 %4704 }
 0x4d9   : > { %v7711_v15 = vpop.f32.mrb[130].mxu1  ;;  %v10885_v53 = vpop.permute.xlu0 %4702 }
 0x4da   : > { %5760 = vrot.lane.b32.xlu1 %v7711_v15, %s8299_s30  ;;  %v5573_v38 = vpop.f32.mrb[131].mxu1 }
 0x4db   : > { %5758 = vrot.lane.b32.xlu0 %v5573_v38, %s8299_s30 }
 0x4dc   : > { %v10889_v7 = vpop.permute.xlu1 %4708 }
 0x4dd   : > { %v7714_v62 = vpop.f32.mrb[132].mxu1  ;;  %v10891_v8 = vpop.permute.xlu0 %4706 }
 0x4de   : > { %5764 = vrot.lane.b32.xlu1 %v7714_v62, %s8299_s30  ;;  %v5583_v51 = vpop.f32.mrb[133].mxu1 }
 0x4df   : > { %5762 = vrot.lane.b32.xlu0 %v5583_v51, %s8299_s30 }
 0x4e0   : > { %v10895_v27 = vpop.permute.xlu1 %4712 }
 0x4e1   : > { %11604 = vst [vmem:[#allocation101_spill] sm:$0xff] %v10895_v27  ;;  %v7717_v17 = vpop.f32.mrb[134].mxu1  ;;  %v10897_v58 = vpop.permute.xlu0 %4710 }
 0x4e2   : > { %11605 = vst [vmem:[#allocation102_spill] sm:$0xff] %v10897_v58  ;;  %5768 = vrot.lane.b32.xlu1 %v7717_v17, %s8299_s30  ;;  %v5593_v15 = vpop.f32.mrb[135].mxu1 }
 0x4e3   : > { %5766 = vrot.lane.b32.xlu0 %v5593_v15, %s8299_s30 }
 0x4e4   : > { %v10901_v38 = vpop.permute.xlu1 %4716 }
 0x4e5   : > { %11606 = vst [vmem:[#allocation103_spill] sm:$0xff] %v10901_v38  ;;  %v7720_v50 = vpop.f32.mrb[136].mxu1  ;;  %v10903_v33 = vpop.permute.xlu0 %4714 }
 0x4e6   : > { %11607 = vst [vmem:[#allocation104_spill] sm:$0xff] %v10903_v33  ;;  %5772 = vrot.lane.b32.xlu1 %v7720_v50, %s8299_s30  ;;  %v5603_v62 = vpop.f32.mrb[137].mxu1 }
 0x4e7   : > { %5770 = vrot.lane.b32.xlu0 %v5603_v62, %s8299_s30 }
 0x4e8   : > { %v10907_v51 = vpop.permute.xlu1 %4720 }
 0x4e9   : > { %11608 = vst [vmem:[#allocation105_spill] sm:$0xff] %v10907_v51  ;;  %v7723_v57 = vpop.f32.mrb[138].mxu1  ;;  %v10909_v40 = vpop.permute.xlu0 %4718 }
 0x4ea   : > { %11609 = vst [vmem:[#allocation106_spill] sm:$0xff] %v10909_v40  ;;  %5776 = vrot.lane.b32.xlu1 %v7723_v57, %s8299_s30  ;;  %v5613_v17 = vpop.f32.mrb[139].mxu1 }
 0x4eb   : > { %5774 = vrot.lane.b32.xlu0 %v5613_v17, %s8299_s30 }
 0x4ec   : > { %v10913_v15 = vpop.permute.xlu1 %4724 }
 0x4ed   : > { %11610 = vst [vmem:[#allocation107_spill] sm:$0xff] %v10913_v15  ;;  %v7726_v37 = vpop.f32.mrb[140].mxu1  ;;  %v10915_v6 = vpop.permute.xlu0 %4722 }
 0x4ee   : > { %11611 = vst [vmem:[#allocation108_spill] sm:$0xff] %v10915_v6  ;;  %5780 = vrot.lane.b32.xlu1 %v7726_v37, %s8299_s30  ;;  %v5623_v50 = vpop.f32.mrb[141].mxu1 }
 0x4ef   : > { %5778 = vrot.lane.b32.xlu0 %v5623_v50, %s8299_s30 }
 0x4f0   : > { %v10919_v62 = vpop.permute.xlu1 %4728 }
 0x4f1   : > { %11612 = vst [vmem:[#allocation109_spill] sm:$0xff] %v10919_v62  ;;  %v7729_v59 = vpop.f32.mrb[142].mxu1  ;;  %v10921_v51 = vpop.permute.xlu0 %4726 }
 0x4f2   : > { %11613 = vst [vmem:[#allocation110_spill] sm:$0xff] %v10921_v51  ;;  %5784 = vrot.lane.b32.xlu1 %v7729_v59, %s8299_s30  ;;  %v5633_v57 = vpop.f32.mrb[143].mxu1 }
 0x4f3   : > { %5782 = vrot.lane.b32.xlu0 %v5633_v57, %s8299_s30 }
 0x4f4   : > { %v10925_v17 = vpop.permute.xlu1 %4732 }
 0x4f5   : > { %11614 = vst [vmem:[#allocation111_spill] sm:$0xff] %v10925_v17  ;;  %v7732_v15 = vpop.f32.mrb[144].mxu1  ;;  %v10927_v40 = vpop.permute.xlu0 %4730 }
 0x4f6   : > { %11615 = vst [vmem:[#allocation112_spill] sm:$0xff] %v10927_v40  ;;  %5788 = vrot.lane.b32.xlu1 %v7732_v15, %s8299_s30  ;;  %v5643_v37 = vpop.f32.mrb[145].mxu1 }
 0x4f7   : > { %5786 = vrot.lane.b32.xlu0 %v5643_v37, %s8299_s30 }
 0x4f8   : > { %v10931_v50 = vpop.permute.xlu1 %4736 }
 0x4f9   : > { %11616 = vst [vmem:[#allocation113_spill] sm:$0xff] %v10931_v50  ;;  %v7735_v62 = vpop.f32.mrb[146].mxu1  ;;  %v10933_v6 = vpop.permute.xlu0 %4734 }
 0x4fa   : > { %11617 = vst [vmem:[#allocation114_spill] sm:$0xff] %v10933_v6  ;;  %5792 = vrot.lane.b32.xlu1 %v7735_v62, %s8299_s30  ;;  %v5653_v59 = vpop.f32.mrb[147].mxu1 }
 0x4fb   : > { %5790 = vrot.lane.b32.xlu0 %v5653_v59, %s8299_s30 }
 0x4fc   : > { %v10937_v57 = vpop.permute.xlu1 %4740 }
 0x4fd   : > { %11618 = vst [vmem:[#allocation115_spill] sm:$0xff] %v10937_v57  ;;  %v7738_v17 = vpop.f32.mrb[148].mxu1  ;;  %v10939_v51 = vpop.permute.xlu0 %4738 }
 0x4fe   : > { %11619 = vst [vmem:[#allocation116_spill] sm:$0xff] %v10939_v51  ;;  %5796 = vrot.lane.b32.xlu1 %v7738_v17, %s8299_s30  ;;  %v5663_v15 = vpop.f32.mrb[149].mxu1 }
 0x4ff   : > { %5794 = vrot.lane.b32.xlu0 %v5663_v15, %s8299_s30 }
 0x500   : > { %v10943_v37 = vpop.permute.xlu1 %4744 }
 0x501   : > { %11620 = vst [vmem:[#allocation117_spill] sm:$0xff] %v10943_v37  ;;  %v7741_v50 = vpop.f32.mrb[150].mxu1  ;;  %v10945_v40 = vpop.permute.xlu0 %4742 }
 0x502   : > { %11621 = vst [vmem:[#allocation118_spill] sm:$0xff] %v10945_v40  ;;  %5800 = vrot.lane.b32.xlu1 %v7741_v50, %s8299_s30  ;;  %v5673_v62 = vpop.f32.mrb[151].mxu1 }
 0x503   : > { %5798 = vrot.lane.b32.xlu0 %v5673_v62, %s8299_s30 }
 0x504   : > { %v10949_v59 = vpop.permute.xlu1 %4748 }
 0x505   : > { %11622 = vst [vmem:[#allocation119_spill] sm:$0xff] %v10949_v59  ;;  %v7744_v57 = vpop.f32.mrb[152].mxu1  ;;  %v10951_v6 = vpop.permute.xlu0 %4746 }
 0x506   : > { %11623 = vst [vmem:[#allocation120_spill] sm:$0xff] %v10951_v6  ;;  %5804 = vrot.lane.b32.xlu1 %v7744_v57, %s8299_s30  ;;  %v5683_v17 = vpop.f32.mrb[153].mxu1 }
 0x507   : > { %5802 = vrot.lane.b32.xlu0 %v5683_v17, %s8299_s30 }
 0x508   : > { %v5223_v15 = vpop.permute.xlu1 %5222 }
 0x509   : > { %v7747_v37 = vpop.f32.mrb[154].mxu1  ;;  %v5221_v51 = vpop.permute.xlu0 %5220 }
 0x50a   : > { %5808 = vrot.lane.b32.xlu1 %v7747_v37, %s8299_s30  ;;  %v5693_v40 = vpop.f32.mrb[155].mxu1 }
 0x50b   : > { %5806 = vrot.lane.b32.xlu0 %v5693_v40, %s8299_s30 }
 0x50c   : > { %v5227_v50 = vpop.permute.xlu1 %5226 }
 0x50d   : > { %v7750_v62 = vpop.f32.mrb[156].mxu1  ;;  %v5225_v26 = vpop.permute.xlu0 %5224 }
 0x50e   : > { %5812 = vrot.lane.b32.xlu1 %v7750_v62, %s8299_s30  ;;  %v5703_v59 = vpop.f32.mrb[157].mxu1 }
 0x50f   : > { %5810 = vrot.lane.b32.xlu0 %v5703_v59, %s8299_s30 }
 0x510   : > { %v10959_v57 = vpop.permute.xlu1 %5230 }
 0x511   : > { %v7753_v6 = vpop.f32.mrb[158].mxu1  ;;  %v10961_v17 = vpop.permute.xlu0 %5228 }
 0x512   : > { %5816 = vrot.lane.b32.xlu1 %v7753_v6, %s8299_s30  ;;  %v5713_v45 = vpop.f32.mrb[159].mxu1 }
 0x513   : > { %5814 = vrot.lane.b32.xlu0 %v5713_v45, %s8299_s30 }
 0x514   : > { %v10965_v37 = vpop.permute.xlu1 %5234 }
 0x515   : > { %v10967_v40 = vpop.permute.xlu0 %5232 }
 0x518   : > { %v10969_v52 = vpop.permute.xlu1 %5238 }
 0x519   : > { %v10971_v62 = vpop.permute.xlu0 %5236 }
 0x51c   : > { %v10973_v33 = vpop.permute.xlu1 %5242 }
 0x51d   : > { %v10975_v59 = vpop.permute.xlu0 %5240 }
 0x51e   : > { %11624 = vst [vmem:[#allocation121_spill] sm:$0xff] %v10975_v59  ;;  %v11646_v59 = vld [vmem:[#allocation4_spill] sm:$0xff] }
 0x520   : > { %v10977_v20 = vpop.permute.xlu1 %5246 }
 0x521   : > { %11625 = vst [vmem:[#allocation122_spill] sm:$0xff] %v10977_v20  ;;  %v10979_v38 = vpop.permute.xlu0 %5244 }
 0x522   : > { %11626 = vst [vmem:[#allocation123_spill] sm:$0xff] %v10979_v38 }
 0x524   : > { %v10981_v6 = vpop.permute.xlu1 %5250 }
 0x525   : > { %11627 = vst [vmem:[#allocation124_spill] sm:$0xff] %v10981_v6  ;;  %v10983_v25 = vpop.permute.xlu0 %5248 }
 0x526   : > { %11628 = vst [vmem:[#allocation125_spill] sm:$0xff] %v10983_v25 }
 0x528   : > { %v10985_v45 = vpop.permute.xlu1 %5254 }
 0x529   : > { %11629 = vst [vmem:[#allocation126_spill] sm:$0xff] %v10985_v45  ;;  %v10987_v35 = vpop.permute.xlu0 %5252 }
 0x52a   : > { %11630 = vst [vmem:[#allocation127_spill] sm:$0xff] %v10987_v35 }
 0x52c   : > { %v10989_v4 = vpop.permute.xlu1 %5258 }
 0x52d   : > { %11631 = vst [vmem:[#allocation128_spill] sm:$0xff] %v10989_v4  ;;  %v10991_v58 = vpop.permute.xlu0 %5256 }
 0x52e   : > { %11632 = vst [vmem:[#allocation129_spill] sm:$0xff] %v10991_v58  ;;  %v3699_v58 = vadd.f32 %v10665_v61, %v9466_v29  ;;  %v3700_v29 = vadd.f32 %v10673_v14, %v11646_v59 }
 0x530   : > { %v10993_v47 = vpop.permute.xlu1 %5262 }
 0x531   : > { %11633 = vst [vmem:[#allocation130_spill] sm:$0xff] %v10993_v47  ;;  %v10995_v27 = vpop.permute.xlu0 %5260 }
 0x532   : > { %11634 = vst [vmem:[#allocation131_spill] sm:$0xff] %v10995_v27  ;;  %v11642_v27 = vld [vmem:[#allocation2_spill] sm:$0xff] }
 0x534   : > { %v10997_v44 = vpop.permute.xlu1 %5266 }
 0x535   : > { %11635 = vst [vmem:[#allocation132_spill] sm:$0xff] %v10997_v44  ;;  %v10999_v20 = vpop.permute.xlu0 %5264  ;;  %v3698_v44 = vadd.f32 %v10667_v24, %v11642_v27 }
 0x536   : > { %11636 = vst [vmem:[#allocation133_spill] sm:$0xff] %v10999_v20  ;;  %v4249_v20 = vadd.f32 %v10763_v34, %v3699_v58  ;;  %v4250_v58 = vadd.f32 %v10771_v56, %v3700_v29 }
 0x538   : > { %v11001_v38 = vpop.permute.xlu1 %5270  ;;  %v4784_v14 = vadd.f32 %v10867_v49, %v4250_v58 }
 0x539   : > { %11637 = vst [vmem:[#allocation134_spill] sm:$0xff] %v11001_v38  ;;  %v11003_v6 = vpop.permute.xlu0 %5268  ;;  %v4248_v38 = vadd.f32 %v10765_v46, %v3698_v44  ;;  %v11647_v46 = vld [vmem:[#allocation5_spill] sm:$0xff] }
 0x53a   : > { %11638 = vst [vmem:[#allocation135_spill] sm:$0xff] %v11003_v6  ;;  %v11644_v6 = vld [vmem:[#allocation3_spill] sm:$0xff] }
 0x53b   : > { %v4782_v61 = vadd.f32 %v10861_v39, %v4248_v38  ;;  %v5318_v38 = vadd.f32 %v5225_v26, %v4784_v14 }
 0x53c   : > { %v11005_v25 = vpop.permute.xlu1 %5274 }
 0x53d   : > { %11639 = vst [vmem:[#allocation136_spill] sm:$0xff] %v11005_v25  ;;  %v11007_v45 = vpop.permute.xlu0 %5272  ;;  %v3701_v25 = vadd.f32 %v10671_v41, %v11644_v6  ;;  %v5316_v44 = vadd.f32 %v5221_v51, %v4782_v61  ;;  %v11648_v6 = vld [vmem:[#allocation6_spill] sm:$0xff] }
 0x53e   : > { %11640 = vst [vmem:[#allocation137_spill] sm:$0xff] %v11007_v45  ;;  %v4783_v45 = vadd.f32 %v10859_v3, %v4249_v20 }
 0x53f   : > { %v4251_v24 = vadd.f32 %v10769_v60, %v3701_v25 }
 0x540   : > { %v11009_v35 = vpop.permute.xlu1 %5278  ;;  %v5317_v27 = vadd.f32 %v5223_v15, %v4783_v45 }
 0x541   : > { %11641 = vst [vmem:[#allocation138_spill] sm:$0xff] %v11009_v35  ;;  %v11013_v47 = vpop.permute.xlu0 %5276  ;;  %v4785_v41 = vadd.f32 %v10865_v12, %v4251_v24 }
 0x543   : > { %v5319_v60 = vadd.f32 %v5227_v50, %v4785_v41 }
 0x544   : > { %v11019_v4 = vpop.permute.xlu1 %5282 }
 0x545   : > { %11643 = vst [vmem:[#allocation2_spill] sm:$0xff] %v11019_v4  ;;  %v11024_v35 = vpop.permute.xlu0 %5280  ;;  %v3703_v4 = vadd.f32 %v10677_v5, %v11647_v46  ;;  %v11649_v5 = vld [vmem:[#allocation7_spill] sm:$0xff] }
 0x546   : > { %11645 = vst [vmem:[#allocation3_spill] sm:$0xff] %v11024_v35  ;;  %v3702_v35 = vadd.f32 %v10679_v22, %v11648_v6  ;;  %v3705_v12 = vadd.f32 %v10683_v23, %v11649_v5  ;;  %v11650_v22 = vld [vmem:[#allocation8_spill] sm:$0xff] }
 0x547   : > { %v4253_v25 = vadd.f32 %v10775_v16, %v3703_v4  ;;  %v3704_v49 = vadd.f32 %v10686_v36, %v11650_v22  ;;  %v11660_v22 = vld [vmem:[#allocation101_spill] sm:$0xff] }
 0x548   : > { %v5757_v34 = vpop.permute.xlu1 %5756  ;;  %v4252_v56 = vadd.f32 %v10777_v10, %v3702_v35  ;;  %v4255_v4 = vadd.f32 %v10781_v0, %v3705_v12 }
 0x549   : > { %v5851_v20 = vadd.f32 %v5757_v34, %v5317_v27  ;;  %v5755_v3 = vpop.permute.xlu0 %5754  ;;  %v4787_v15 = vadd.f32 %v10871_v18, %v4253_v25  ;;  %v4254_v26 = vadd.f32 %v10783_v13, %v3704_v49  ;;  %v11651_v18 = vld [vmem:[#allocation9_spill] sm:$0xff]  ;;  %v11653_v34 = vld [vmem:[#allocation11_spill] sm:$0xff] }
 0x54a   : > { %v5850_v39 = vadd.f32 %v5755_v3, %v5316_v44  ;;  %v4786_v29 = vadd.f32 %v10873_v55, %v4252_v56  ;;  %v3707_v50 = vadd.f32 %v10689_v42, %v11651_v18  ;;  %v4789_v61 = vadd.f32 %v10877_v30, %v4255_v4  ;;  %v11652_v55 = vld [vmem:[#allocation10_spill] sm:$0xff]  ;;  %v11654_v3 = vld [vmem:[#allocation12_spill] sm:$0xff] }
 0x54b   : > { %8177 = vtanh.f32 %v5851_v20  ;;  %v5321_v10 = vadd.f32 %v10959_v57, %v4787_v15  ;;  %v3706_v27 = vadd.f32 %v10692_v31, %v11652_v55  ;;  %v4788_v0 = vadd.f32 %v10879_v21, %v4254_v26  ;;  %v11661_v4 = vld [vmem:[#allocation18_spill] sm:$0xff]  ;;  %v11667_v55 = vld [vmem:[#allocation123_spill] sm:$0xff] }
 0x54c   : > { %8179 = vtanh.f32 %v5850_v39  ;;  %v5761_v51 = vpop.permute.xlu1 %5760  ;;  %v5320_v35 = vadd.f32 %v10961_v17, %v4786_v29  ;;  %v4257_v58 = vadd.f32 %v10787_v48, %v3707_v50  ;;  %v5323_v13 = vadd.f32 %v10965_v37, %v4789_v61  ;;  %v11663_v26 = vld [vmem:[#allocation102_spill] sm:$0xff] }
 0x54d   : > { %v5853_v59 = vadd.f32 %v5761_v51, %v5319_v60  ;;  %v5759_v45 = vpop.permute.xlu0 %5758  ;;  %v4256_v17 = vadd.f32 %v10789_v1, %v3706_v27  ;;  %v5322_v44 = vadd.f32 %v10967_v40, %v4788_v0  ;;  %v3709_v46 = vadd.f32 %v10695_v32, %v11653_v34  ;;  %v11665_v50 = vld [vmem:[#allocation122_spill] sm:$0xff] }
 0x54e   : > { %v5852_v16 = vadd.f32 %v5759_v45, %v5318_v38  ;;  %v4791_v31 = vadd.f32 %v10883_v19, %v4257_v58  ;;  %v3708_v48 = vadd.f32 %v10698_v11, %v11654_v3  ;;  %v11655_v11 = vld [vmem:[#allocation13_spill] sm:$0xff]  ;;  %v11656_v38 = vld [vmem:[#allocation14_spill] sm:$0xff] }
 0x54f   : > { %8181 = vtanh.f32 %v5853_v59  ;;  %v4790_v37 = vadd.f32 %v10885_v53, %v4256_v17  ;;  %v4259_v1 = vadd.f32 %v10793_v63, %v3709_v46  ;;  %v3711_v53 = vadd.f32 %v10701_v2, %v11655_v11  ;;  %v11659_v45 = vld [vmem:[#allocation65_spill] sm:$0xff] }
 0x550   : > { %8183 = vtanh.f32 %v5852_v16  ;;  %v5765_v23 = vpop.permute.xlu1 %5764  ;;  %v5325_v40 = vadd.f32 %v10969_v52, %v4791_v31  ;;  %v4258_v32 = vadd.f32 %v10795_v54, %v3708_v48  ;;  %v3710_v52 = vadd.f32 %v10704_v9, %v11656_v38  ;;  %v11658_v9 = vld [vmem:[#allocation17_spill] sm:$0xff]  ;;  %v11671_v31 = vld [vmem:[#allocation22_spill] sm:$0xff] }
 0x551   : > { %v5855_v36 = vadd.f32 %v5765_v23, %v5321_v10  ;;  %v5763_v24 = vpop.permute.xlu0 %5762  ;;  %v5324_v19 = vadd.f32 %v10971_v62, %v4790_v37  ;;  %v4793_v25 = vadd.f32 %v10889_v7, %v4259_v1  ;;  %v4261_v54 = vadd.f32 %v10799_v43, %v3711_v53  ;;  %v11657_v7 = vld [vmem:[#allocation121_spill] sm:$0xff]  ;;  %v11675_v1 = vld [vmem:[#allocation124_spill] sm:$0xff] }
 0x552   : > { %v5854_v57 = vadd.f32 %v5763_v24, %v5320_v35  ;;  %v4792_v51 = vadd.f32 %v10891_v8, %v4258_v32  ;;  %v4260_v2 = vadd.f32 %v10801_v28, %v3710_v52  ;;  %v3713_v8 = vadd.f32 %v11659_v45, %v11658_v9  ;;  %v11664_v28 = vld [vmem:[#allocation83_spill] sm:$0xff]  ;;  %v11668_v58 = vld [vmem:[#allocation21_spill] sm:$0xff]  ;;  %v11676_v32 = vld [vmem:[#allocation86_spill] sm:$0xff] }
 0x553   : > { %8185 = vtanh.f32 %v5855_v36  ;;  %v5327_v62 = vadd.f32 %v10973_v33, %v4793_v25  ;;  %v4795_v49 = vadd.f32 %v11660_v22, %v4261_v54  ;;  %v11662_v33 = vld [vmem:[#allocation66_spill] sm:$0xff]  ;;  %v11666_v36 = vld [vmem:[#allocation84_spill] sm:$0xff]  ;;  %v11674_v37 = vld [vmem:[#allocation85_spill] sm:$0xff] }
 0x554   : > { %8187 = vtanh.f32 %v5854_v57  ;;  %v5769_v42 = vpop.permute.xlu1 %5768  ;;  %v5326_v12 = vadd.f32 %v11657_v7, %v4792_v51  ;;  %v3712_v10 = vadd.f32 %v11662_v33, %v11661_v4  ;;  %v4794_v35 = vadd.f32 %v11663_v26, %v4260_v2  ;;  %v11678_v25 = vld [vmem:[#allocation25_spill] sm:$0xff]  ;;  %v11681_v54 = vld [vmem:[#allocation26_spill] sm:$0xff]  ;;  %v11686_v22 = vld [vmem:[#allocation88_spill] sm:$0xff] }
 0x555   : > { %v8178_v30 = vpop.eup %8177  ;;  %v5857_v41 = vadd.f32 %v5769_v42, %v5323_v13  ;;  %v5767_v21 = vpop.permute.xlu0 %5766  ;;  %v4263_v18 = vadd.f32 %v11664_v28, %v3713_v8  ;;  %v5329_v61 = vadd.f32 %v11665_v50, %v4795_v49  ;;  %v11669_v13 = vld [vmem:[#allocation67_spill] sm:$0xff]  ;;  %v11683_v7 = vld [vmem:[#allocation106_spill] sm:$0xff]  ;;  %v11688_v33 = vld [vmem:[#allocation28_spill] sm:$0xff] }
 0x556   : > { %v8180_v20 = vpop.eup %8179  ;;  %v5856_v6 = vadd.f32 %v5767_v21, %v5322_v44  ;;  %6012 = vrot.lane.b32.xlu1 %v8178_v30, %s8299_s30  ;;  %v4262_v24 = vadd.f32 %v11666_v36, %v3712_v10  ;;  %v5328_v27 = vadd.f32 %v11667_v55, %v4794_v35  ;;  %v3715_v17 = vadd.f32 %v11669_v13, %v11668_v58  ;;  %v11670_v44 = vld [vmem:[#allocation103_spill] sm:$0xff]  ;;  %v11685_v45 = vld [vmem:[#allocation126_spill] sm:$0xff]  ;;  %v11692_v36 = vld [vmem:[#allocation72_spill] sm:$0xff] }
 0x557   : > { %8189 = vtanh.f32 %v5857_v41  ;;  %6010 = vrot.lane.b32.xlu0 %v8180_v20, %s8299_s30  ;;  %v4797_v42 = vadd.f32 %v11670_v44, %v4263_v18  ;;  %v11672_v41 = vld [vmem:[#allocation68_spill] sm:$0xff]  ;;  %v11689_v10 = vld [vmem:[#allocation71_spill] sm:$0xff]  ;;  %v11696_v44 = vld [vmem:[#allocation90_spill] sm:$0xff] }
 0x558   : > { %8191 = vtanh.f32 %v5856_v6  ;;  %v5773_v14 = vpop.permute.xlu1 %5772  ;;  %v3714_v21 = vadd.f32 %v11672_v41, %v11671_v31  ;;  %v11673_v20 = vld [vmem:[#allocation104_spill] sm:$0xff]  ;;  %v4265_v6 = vadd.f32 %v11674_v37, %v3715_v17  ;;  %v3719_v26 = vadd.f32 %v11689_v10, %v11688_v33  ;;  %v11690_v35 = vld [vmem:[#allocation107_spill] sm:$0xff] }
 0x559   : > { %v8182_v39 = vpop.eup %8181  ;;  %v5859_v60 = vadd.f32 %v5773_v14, %v5325_v40  ;;  %v5771_v56 = vpop.permute.xlu0 %5770  ;;  %v4796_v3 = vadd.f32 %v11673_v20, %v4262_v24  ;;  %v5331_v40 = vadd.f32 %v11675_v1, %v4797_v42  ;;  %v11677_v14 = vld [vmem:[#allocation125_spill] sm:$0xff]  ;;  %v11693_v55 = vld [vmem:[#allocation108_spill] sm:$0xff] }
 0x55a   : > { %v8184_v63 = vpop.eup %8183  ;;  %v5858_v5 = vadd.f32 %v5771_v56, %v5324_v19  ;;  %6016 = vrot.lane.b32.xlu1 %v8182_v39, %s8299_s30  ;;  %v4264_v19 = vadd.f32 %v11676_v32, %v3714_v21  ;;  %v11695_v13 = vld [vmem:[#allocation128_spill] sm:$0xff]  ;;  %v11699_v21 = vld [vmem:[#allocation73_spill] sm:$0xff]  ;;  %v11702_v32 = vld [vmem:[#allocation74_spill] sm:$0xff] }
 0x55b   : > { %8193 = vtanh.f32 %v5859_v60  ;;  %6014 = vrot.lane.b32.xlu0 %v8184_v63, %s8299_s30  ;;  %v5330_v39 = vadd.f32 %v11677_v14, %v4796_v3  ;;  %v11679_v60 = vld [vmem:[#allocation69_spill] sm:$0xff]  ;;  %v11698_v41 = vld [vmem:[#allocation32_spill] sm:$0xff]  ;;  %v11703_v14 = vld [vmem:[#allocation110_spill] sm:$0xff] }
 0x55c   : > { %8195 = vtanh.f32 %v5858_v5  ;;  %v5777_v15 = vpop.permute.xlu1 %5776  ;;  %v3717_v56 = vadd.f32 %v11679_v60, %v11678_v25  ;;  %v11680_v63 = vld [vmem:[#allocation105_spill] sm:$0xff]  ;;  %v3721_v20 = vadd.f32 %v11699_v21, %v11698_v41  ;;  %v11705_v60 = vld [vmem:[#allocation130_spill] sm:$0xff]  ;;  %v11715_v10 = vld [vmem:[#allocation132_spill] sm:$0xff] }
 0x55d   : > { %v8186_v59 = vpop.eup %8185  ;;  %v5861_v29 = vadd.f32 %v5777_v15, %v5327_v62  ;;  %v5775_v16 = vpop.permute.xlu0 %5774  ;;  %v4799_v38 = vadd.f32 %v11680_v63, %v4265_v6  ;;  %v11682_v62 = vld [vmem:[#allocation70_spill] sm:$0xff]  ;;  %v11700_v3 = vld [vmem:[#allocation109_spill] sm:$0xff]  ;;  %v11706_v63 = vld [vmem:[#allocation92_spill] sm:$0xff] }
 0x55e   : > { %v8188_v43 = vpop.eup %8187  ;;  %v5860_v23 = vadd.f32 %v5775_v16, %v5326_v12  ;;  %6020 = vrot.lane.b32.xlu1 %v8186_v59, %s8299_s30  ;;  %v3716_v2 = vadd.f32 %v11682_v62, %v11681_v54  ;;  %v4798_v12 = vadd.f32 %v11683_v7, %v4264_v19  ;;  %v11684_v59 = vld [vmem:[#allocation87_spill] sm:$0xff]  ;;  %v11708_v62 = vld [vmem:[#allocation36_spill] sm:$0xff]  ;;  %v11725_v21 = vld [vmem:[#allocation134_spill] sm:$0xff] }
 0x55f   : > { %8197 = vtanh.f32 %v5861_v29  ;;  %6018 = vrot.lane.b32.xlu0 %v8188_v43, %s8299_s30  ;;  %v4267_v9 = vadd.f32 %v11684_v59, %v3717_v56  ;;  %v5333_v8 = vadd.f32 %v11685_v45, %v4799_v38  ;;  %v11687_v29 = vld [vmem:[#allocation127_spill] sm:$0xff] }
 0x560   : > { %8199 = vtanh.f32 %v5860_v23  ;;  %v5781_v0 = vpop.permute.xlu1 %5780  ;;  %v4266_v49 = vadd.f32 %v11686_v22, %v3716_v2  ;;  %v5332_v16 = vadd.f32 %v11687_v29, %v4798_v12  ;;  %v11709_v2 = vld [vmem:[#allocation75_spill] sm:$0xff]  ;;  %v11712_v22 = vld [vmem:[#allocation76_spill] sm:$0xff] }
 0x561   : > { %v8190_v57 = vpop.eup %8189  ;;  %v5863_v30 = vadd.f32 %v5781_v0, %v5329_v61  ;;  %v5779_v34 = vpop.permute.xlu0 %5778  ;;  %v4801_v23 = vadd.f32 %v11690_v35, %v4267_v9  ;;  %v11691_v61 = vld [vmem:[#allocation29_spill] sm:$0xff]  ;;  %v3723_v7 = vadd.f32 %v11709_v2, %v11708_v62  ;;  %v11710_v12 = vld [vmem:[#allocation111_spill] sm:$0xff]  ;;  %v11713_v29 = vld [vmem:[#allocation112_spill] sm:$0xff] }
 0x562   : > { %v8192_v46 = vpop.eup %8191  ;;  %v5862_v48 = vadd.f32 %v5779_v34, %v5328_v27  ;;  %6024 = vrot.lane.b32.xlu1 %v8190_v57, %s8299_s30  ;;  %v3718_v24 = vadd.f32 %v11692_v36, %v11691_v61  ;;  %v4800_v27 = vadd.f32 %v11693_v55, %v4266_v49  ;;  %v11694_v57 = vld [vmem:[#allocation89_spill] sm:$0xff]  ;;  %v11716_v35 = vld [vmem:[#allocation94_spill] sm:$0xff]  ;;  %v11718_v36 = vld [vmem:[#allocation40_spill] sm:$0xff] }
 0x563   : > { %8201 = vtanh.f32 %v5863_v30  ;;  %6022 = vrot.lane.b32.xlu0 %v8192_v46, %s8299_s30  ;;  %v4269_v58 = vadd.f32 %v11694_v57, %v3719_v26  ;;  %v5335_v17 = vadd.f32 %v11695_v13, %v4801_v23  ;;  %v11697_v30 = vld [vmem:[#allocation129_spill] sm:$0xff]  ;;  %v11735_v2 = vld [vmem:[#allocation136_spill] sm:$0xff] }
 0x564   : > { %8203 = vtanh.f32 %v5862_v48  ;;  %v5785_v11 = vpop.permute.xlu1 %5784  ;;  %v4268_v42 = vadd.f32 %v11696_v44, %v3718_v24  ;;  %v5334_v34 = vadd.f32 %v11697_v30, %v4800_v27  ;;  %v11719_v24 = vld [vmem:[#allocation77_spill] sm:$0xff]  ;;  %v11722_v44 = vld [vmem:[#allocation78_spill] sm:$0xff] }
 0x565   : > { %v8194_v53 = vpop.eup %8193  ;;  %v5865_v52 = vadd.f32 %v5785_v11, %v5331_v40  ;;  %v5783_v51 = vpop.permute.xlu0 %5782  ;;  %v4803_v48 = vadd.f32 %v11700_v3, %v4269_v58  ;;  %v11701_v40 = vld [vmem:[#allocation33_spill] sm:$0xff]  ;;  %v3725_v55 = vadd.f32 %v11719_v24, %v11718_v36  ;;  %v11723_v30 = vld [vmem:[#allocation114_spill] sm:$0xff]  ;;  %v11726_v3 = vld [vmem:[#allocation96_spill] sm:$0xff] }
 0x566   : > { %v8196_v5 = vpop.eup %8195  ;;  %v5864_v15 = vadd.f32 %v5783_v51, %v5330_v39  ;;  %6028 = vrot.lane.b32.xlu1 %v8194_v53, %s8299_s30  ;;  %v3720_v19 = vadd.f32 %v11702_v32, %v11701_v40  ;;  %v4802_v39 = vadd.f32 %v11703_v14, %v4268_v42  ;;  %v11704_v53 = vld [vmem:[#allocation91_spill] sm:$0xff]  ;;  %v11720_v27 = vld [vmem:[#allocation113_spill] sm:$0xff]  ;;  %v11745_v24 = vld [vmem:[#allocation138_spill] sm:$0xff] }
 0x567   : > { %8205 = vtanh.f32 %v5865_v52  ;;  %6026 = vrot.lane.b32.xlu0 %v8196_v5, %s8299_s30  ;;  %v4271_v25 = vadd.f32 %v11704_v53, %v3721_v20  ;;  %v5337_v56 = vadd.f32 %v11705_v60, %v4803_v48  ;;  %v11707_v52 = vld [vmem:[#allocation131_spill] sm:$0xff] }
 0x568   : > { %8207 = vtanh.f32 %v5864_v15  ;;  %v5789_v43 = vpop.permute.xlu1 %5788  ;;  %v4270_v38 = vadd.f32 %v11706_v63, %v3720_v19  ;;  %v5336_v51 = vadd.f32 %v11707_v52, %v4802_v39  ;;  %v11728_v32 = vld [vmem:[#allocation43_spill] sm:$0xff]  ;;  %v11732_v63 = vld [vmem:[#allocation80_spill] sm:$0xff] }
 0x569   : > { %v8198_v4 = vpop.eup %8197  ;;  %v5867_v28 = vadd.f32 %v5789_v43, %v5333_v8  ;;  %v5787_v18 = vpop.permute.xlu0 %5786  ;;  %v4805_v15 = vadd.f32 %v11710_v12, %v4271_v25  ;;  %v11711_v8 = vld [vmem:[#allocation37_spill] sm:$0xff]  ;;  %v11729_v19 = vld [vmem:[#allocation79_spill] sm:$0xff]  ;;  %v11733_v52 = vld [vmem:[#allocation116_spill] sm:$0xff] }
 0x56a   : > { %v8200_v50 = vpop.eup %8199  ;;  %v5866_v0 = vadd.f32 %v5787_v18, %v5332_v16  ;;  %6032 = vrot.lane.b32.xlu1 %v8198_v4, %s8299_s30  ;;  %v3722_v49 = vadd.f32 %v11712_v22, %v11711_v8  ;;  %v4804_v16 = vadd.f32 %v11713_v29, %v4270_v38  ;;  %v11714_v4 = vld [vmem:[#allocation93_spill] sm:$0xff]  ;;  %v3727_v14 = vadd.f32 %v11729_v19, %v11728_v32  ;;  %v11730_v39 = vld [vmem:[#allocation115_spill] sm:$0xff]  ;;  %v11736_v12 = vld [vmem:[#allocation98_spill] sm:$0xff] }
 0x56b   : > { %8209 = vtanh.f32 %v5867_v28  ;;  %6030 = vrot.lane.b32.xlu0 %v8200_v50, %s8299_s30  ;;  %v4273_v33 = vadd.f32 %v11714_v4, %v3723_v7  ;;  %v5339_v26 = vadd.f32 %v11715_v10, %v4805_v15  ;;  %v11717_v28 = vld [vmem:[#allocation133_spill] sm:$0xff]  ;;  %v11738_v22 = vld [vmem:[#allocation47_spill] sm:$0xff] }
 0x56c   : > { %8211 = vtanh.f32 %v5866_v0  ;;  %v5793_v46 = vpop.permute.xlu1 %5792  ;;  %v4272_v23 = vadd.f32 %v11716_v35, %v3722_v49  ;;  %v5338_v18 = vadd.f32 %v11717_v28, %v4804_v16  ;;  %v11739_v49 = vld [vmem:[#allocation81_spill] sm:$0xff]  ;;  %v11742_v35 = vld [vmem:[#allocation82_spill] sm:$0xff] }
 0x56d   : > { %v8202_v31 = vpop.eup %8201  ;;  %v5869_v37 = vadd.f32 %v5793_v46, %v5335_v17  ;;  %v5791_v6 = vpop.permute.xlu0 %5790  ;;  %v4807_v0 = vadd.f32 %v11720_v27, %v4273_v33  ;;  %v11721_v17 = vld [vmem:[#allocation42_spill] sm:$0xff]  ;;  %v3729_v29 = vadd.f32 %v11739_v49, %v11738_v22  ;;  %v11740_v16 = vld [vmem:[#allocation117_spill] sm:$0xff]  ;;  %v11746_v27 = vld [vmem:[#allocation100_spill] sm:$0xff] }
 0x56e   : > { %v8204_v1 = vpop.eup %8203  ;;  %v5868_v11 = vadd.f32 %v5791_v6, %v5334_v34  ;;  %6036 = vrot.lane.b32.xlu1 %v8202_v31, %s8299_s30  ;;  %v3724_v42 = vadd.f32 %v11722_v44, %v11721_v17  ;;  %v4806_v34 = vadd.f32 %v11723_v30, %v4272_v23  ;;  %v11724_v31 = vld [vmem:[#allocation95_spill] sm:$0xff]  ;;  %v11743_v28 = vld [vmem:[#allocation118_spill] sm:$0xff] }
 0x56f   : > { %8213 = vtanh.f32 %v5869_v37  ;;  %6034 = vrot.lane.b32.xlu0 %v8204_v1, %s8299_s30  ;;  %v4275_v41 = vadd.f32 %v11724_v31, %v3725_v55  ;;  %v5341_v20 = vadd.f32 %v11725_v21, %v4807_v0  ;;  %v11727_v37 = vld [vmem:[#allocation135_spill] sm:$0xff]  ;;  %v11749_v21 = vld [vmem:[#allocation2_spill] sm:$0xff] }
 0x570   : > { %8215 = vtanh.f32 %v5868_v11  ;;  %v5797_v5 = vpop.permute.xlu1 %5796  ;;  %v4274_v48 = vadd.f32 %v11726_v3, %v3724_v42  ;;  %v5340_v6 = vadd.f32 %v11727_v37, %v4806_v34  ;;  %v11747_v17 = vld [vmem:[#allocation119_spill] sm:$0xff] }
 0x571   : > { %v8206_v54 = vpop.eup %8205  ;;  %v5871_v59 = vadd.f32 %v5797_v5, %v5337_v56  ;;  %v5795_v9 = vpop.permute.xlu0 %5794  ;;  %v4809_v11 = vadd.f32 %v11730_v39, %v4275_v41  ;;  %v11731_v56 = vld [vmem:[#allocation45_spill] sm:$0xff]  ;;  %v11750_v3 = vld [vmem:[#allocation3_spill] sm:$0xff] }
 0x572   : > { %v8208_v45 = vpop.eup %8207  ;;  %v5870_v43 = vadd.f32 %v5795_v9, %v5336_v51  ;;  %6040 = vrot.lane.b32.xlu1 %v8206_v54, %s8299_s30  ;;  %v3726_v38 = vadd.f32 %v11732_v63, %v11731_v56  ;;  %v4808_v51 = vadd.f32 %v11733_v52, %v4274_v48  ;;  %v11734_v54 = vld [vmem:[#allocation97_spill] sm:$0xff]  ;;  %v11752_v63 = vld [vmem:[#allocation16_spill] sm:$0xff] }
 0x573   : > { %8217 = vtanh.f32 %v5871_v59  ;;  %6038 = vrot.lane.b32.xlu0 %v8208_v45, %s8299_s30  ;;  %v4277_v62 = vadd.f32 %v11734_v54, %v3727_v14  ;;  %v5343_v7 = vadd.f32 %v11735_v2, %v4809_v11  ;;  %v11737_v59 = vld [vmem:[#allocation137_spill] sm:$0xff]  ;;  %v11753_v2 = vld [vmem:[#allocation19_spill] sm:$0xff] }
 0x574   : > { %8219 = vtanh.f32 %v5870_v43  ;;  %v5801_v50 = vpop.permute.xlu1 %5800  ;;  %v4276_v15 = vadd.f32 %v11736_v12, %v3726_v38  ;;  %v5342_v9 = vadd.f32 %v11737_v59, %v4808_v51  ;;  %v5914_v38 = vsub.f32 1.0, %v11752_v63  ;;  %v8241_v51 = vld [vmem:[%s8463_s6 + $0x8] sm:$0xff]  ;;  %v8242_v12 = vld [vmem:[%s8463_s6] sm:$0xff] }
 0x575   : > { %v8210_v61 = vpop.eup %8209  ;;  %v5873_v57 = vadd.f32 %v5801_v50, %v5339_v26  ;;  %v5799_v58 = vpop.permute.xlu0 %5798  ;;  %v4811_v43 = vadd.f32 %v11740_v16, %v4277_v62  ;;  %v11741_v26 = vld [vmem:[#allocation49_spill] sm:$0xff] }
 0x576   : > { %v8212_v13 = vpop.eup %8211  ;;  %v5872_v46 = vadd.f32 %v5799_v58, %v5338_v18  ;;  %6044 = vrot.lane.b32.xlu1 %v8210_v61, %s8299_s30  ;;  %v3728_v23 = vadd.f32 %v11742_v35, %v11741_v26  ;;  %v4810_v18 = vadd.f32 %v11743_v28, %v4276_v15  ;;  %v11744_v61 = vld [vmem:[#allocation99_spill] sm:$0xff]  ;;  %v5946_v15 = vmul.f32 %v8242_v12, %v5914_v38  ;;  %v8244_v26 = vld [vmem:[%s8463_s6 + $0x10] sm:$0xff]  ;;  %v8250_v38 = vld [vmem:[%s8463_s6 + $0x40] sm:$0xff] }
 0x577   : > { %8221 = vtanh.f32 %v5873_v57  ;;  %6042 = vrot.lane.b32.xlu0 %v8212_v13, %s8299_s30  ;;  %v4279_v36 = vadd.f32 %v11744_v61, %v3729_v29  ;;  %v5345_v55 = vadd.f32 %v11745_v24, %v4811_v43  ;;  %v8243_v29 = vld [vmem:[%s8463_s6 + $0x18] sm:$0xff]  ;;  %v11756_v28 = vld [vmem:[#allocation24_spill] sm:$0xff]  ;;  %v8245_v24 = vld [vmem:[%s8463_s6 + $0x28] sm:$0xff] }
 0x578   : > { %8223 = vtanh.f32 %v5872_v46  ;;  %v5805_v1 = vpop.permute.xlu1 %5804  ;;  %v4278_v0 = vadd.f32 %v11746_v27, %v3728_v23  ;;  %v5344_v57 = vadd.f32 %v11013_v47, %v4810_v18  ;;  %v11748_v46 = vld [vmem:[#allocation120_spill] sm:$0xff]  ;;  %v5918_v18 = vsub.f32 1.0, %v11756_v28  ;;  %v8251_v12 = vld [vmem:[%s8463_s6 + $0x58] sm:$0xff] }
 0x579   : > { %v8214_v40 = vpop.eup %8213  ;;  %v5875_v53 = vadd.f32 %v5805_v1, %v5341_v20  ;;  %v5803_v25 = vpop.permute.xlu0 %5802  ;;  %v4813_v44 = vadd.f32 %v11747_v17, %v4279_v36 }
 0x57a   : > { %v8216_v60 = vpop.eup %8215  ;;  %v5874_v5 = vadd.f32 %v5803_v25, %v5340_v6  ;;  %6048 = vrot.lane.b32.xlu1 %v8214_v40, %s8299_s30  ;;  %v4812_v31 = vadd.f32 %v11748_v46, %v4278_v0 }
 0x57b   : > { %8225 = vtanh.f32 %v5875_v53  ;;  %6046 = vrot.lane.b32.xlu0 %v8216_v60, %s8299_s30  ;;  %v5347_v20 = vadd.f32 %v11749_v21, %v4813_v44  ;;  %v11751_v60 = vld [vmem:[#allocation15_spill] sm:$0xff] }
 0x57c   : > { %8227 = vtanh.f32 %v5874_v5  ;;  %v5809_v45 = vpop.permute.xlu1 %5808  ;;  %v5346_v47 = vadd.f32 %v11750_v3, %v4812_v31  ;;  %v5915_v56 = vsub.f32 1.0, %v11751_v60 }
 0x57d   : > { %v8218_v8 = vpop.eup %8217  ;;  %v5877_v4 = vadd.f32 %v5809_v45, %v5343_v7  ;;  %v5807_v33 = vpop.permute.xlu0 %5806  ;;  %v5917_v7 = vsub.f32 1.0, %v11753_v2 }
 0x57e   : > { %v8220_v10 = vpop.eup %8219  ;;  %v5876_v50 = vadd.f32 %v5807_v33, %v5342_v9  ;;  %6052 = vrot.lane.b32.xlu1 %v8218_v8, %s8299_s30  ;;  %v5947_v5 = vmul.f32 %v8241_v51, %v5915_v56  ;;  %v11754_v9 = vld [vmem:[#allocation20_spill] sm:$0xff]  ;;  %v11755_v33 = vld [vmem:[#allocation23_spill] sm:$0xff] }
 0x57f   : > { %8229 = vtanh.f32 %v5877_v4  ;;  %6050 = vrot.lane.b32.xlu0 %v8220_v10, %s8299_s30  ;;  %v5916_v45 = vsub.f32 1.0, %v11754_v9  ;;  %v5949_v16 = vmul.f32 %v8243_v29, %v5917_v7  ;;  %v5919_v10 = vsub.f32 1.0, %v11755_v33  ;;  %v11761_v56 = vld [vmem:[#allocation35_spill] sm:$0xff] }
 0x580   : > { %8231 = vtanh.f32 %v5876_v50  ;;  %v5813_v58 = vpop.permute.xlu1 %5812 }
 0x581   : > { %v8222_v13 = vpop.eup %8221  ;;  %v5879_v42 = vadd.f32 %v5813_v58, %v5345_v55  ;;  %v5811_v30 = vpop.permute.xlu0 %5810  ;;  %v5948_v35 = vmul.f32 %v8244_v26, %v5916_v45  ;;  %v5951_v55 = vmul.f32 %v8245_v24, %v5919_v10  ;;  %v11763_v45 = vld [vmem:[#allocation39_spill] sm:$0xff] }
 0x582   : > { %v8224_v34 = vpop.eup %8223  ;;  %v5878_v41 = vadd.f32 %v5811_v30, %v5344_v57  ;;  %6056 = vrot.lane.b32.xlu1 %v8222_v13, %s8299_s30  ;;  %v11757_v57 = vld [vmem:[#allocation27_spill] sm:$0xff]  ;;  %v8246_v13 = vld [vmem:[%s8463_s6 + $0x20] sm:$0xff] }
 0x583   : > { %8233 = vtanh.f32 %v5879_v42  ;;  %6054 = vrot.lane.b32.xlu0 %v8224_v34, %s8299_s30  ;;  %v5921_v58 = vsub.f32 1.0, %v11757_v57  ;;  %v5950_v17 = vmul.f32 %v8246_v13, %v5918_v18  ;;  %v11758_v42 = vld [vmem:[#allocation30_spill] sm:$0xff]  ;;  %v8253_v26 = vld [vmem:[%s8463_s6 + $0x68] sm:$0xff]  ;;  %v11765_v18 = vld [vmem:[#allocation44_spill] sm:$0xff] }
 0x584   : > { %8235 = vtanh.f32 %v5878_v41  ;;  %v5817_v48 = vpop.permute.xlu1 %5816  ;;  %v5920_v30 = vsub.f32 1.0, %v11758_v42  ;;  %v8247_v41 = vld [vmem:[%s8463_s6 + $0x38] sm:$0xff] }
 0x585   : > { %v8226_v37 = vpop.eup %8225  ;;  %v5881_v6 = vadd.f32 %v5817_v48, %v5347_v20  ;;  %v5815_v1 = vpop.permute.xlu0 %5814  ;;  %v5953_v21 = vmul.f32 %v8247_v41, %v5921_v58  ;;  %v8255_v13 = vld [vmem:[%s8463_s6 + $0x78] sm:$0xff] }
 0x586   : > { %v8228_v40 = vpop.eup %8227  ;;  %v5880_v32 = vadd.f32 %v5815_v1, %v5346_v47  ;;  %6060 = vrot.lane.b32.xlu1 %v8226_v37, %s8299_s30  ;;  %v11759_v47 = vld [vmem:[#allocation31_spill] sm:$0xff]  ;;  %v8248_v37 = vld [vmem:[%s8463_s6 + $0x30] sm:$0xff] }
 0x587   : > { %8237 = vtanh.f32 %v5881_v6  ;;  %6058 = vrot.lane.b32.xlu0 %v8228_v40, %s8299_s30  ;;  %v5923_v48 = vsub.f32 1.0, %v11759_v47  ;;  %v5952_v6 = vmul.f32 %v8248_v37, %v5920_v30  ;;  %v11760_v40 = vld [vmem:[#allocation34_spill] sm:$0xff]  ;;  %v11767_v30 = vld [vmem:[#allocation48_spill] sm:$0xff]  ;;  %v8257_v37 = vld [vmem:[%s8463_s6 + $0x88] sm:$0xff] }
 0x588   : > { %8239 = vtanh.f32 %v5880_v32  ;;  %v5922_v32 = vsub.f32 1.0, %v11760_v40 }
 0x589   : > { %v8230_v19 = vpop.eup %8229 }
 0x58a   : > { %v8232_v14 = vpop.eup %8231  ;;  %6064 = vrot.lane.b32.xlu1 %v8230_v19, %s8299_s30 }
 0x58b   : > { %6062 = vrot.lane.b32.xlu0 %v8232_v14, %s8299_s30 }
 0x58d   : > { %v8234_v39 = vpop.eup %8233 }
 0x58e   : > { %v8236_v11 = vpop.eup %8235  ;;  %6068 = vrot.lane.b32.xlu1 %v8234_v39, %s8299_s30 }
 0x58f   : > { %6066 = vrot.lane.b32.xlu0 %v8236_v11, %s8299_s30  ;;  %v8249_v11 = vld [vmem:[%s8463_s6 + $0x48] sm:$0xff] }
 0x591   : > { %v8238_v53 = vpop.eup %8237 }
 0x592   : > { %v8240_v25 = vpop.eup %8239  ;;  %6072 = vrot.lane.b32.xlu1 %v8238_v53, %s8299_s30  ;;  %v5955_v53 = vmul.f32 %v8249_v11, %v5923_v48 }
 0x593   : > { %6070 = vrot.lane.b32.xlu0 %v8240_v25, %s8299_s30 }
 0x5c8   : > { %v6013_v52 = vpop.permute.xlu1 %6012 }
 0x5c9   : > { %v6107_v54 = vmul.f32 %v11751_v60, %v6013_v52  ;;  %v6011_v62 = vpop.permute.xlu0 %6010  ;;  %v5954_v52 = vmul.f32 %v8250_v38, %v5922_v32  ;;  %v11769_v32 = vld [vmem:[#allocation51_spill] sm:$0xff]  ;;  %v8259_v38 = vld [vmem:[%s8463_s6 + $0x98] sm:$0xff] }
 0x5ca   : > { %v6106_v59 = vmul.f32 %v11752_v63, %v6011_v62  ;;  %v5925_v63 = vsub.f32 1.0, %v11761_v56 }
 0x5cb   : > { %v6139_v8 = vadd.f32 %v6107_v54, %v5947_v5  ;;  %v11762_v5 = vld [vmem:[#allocation38_spill] sm:$0xff] }
 0x5cc   : > { %v6138_v22 = vadd.f32 %v6106_v59, %v5946_v15  ;;  %v6017_v49 = vpop.permute.xlu1 %6016  ;;  %v5924_v54 = vsub.f32 1.0, %v11762_v5  ;;  %v5957_v15 = vmul.f32 %v8251_v12, %v5925_v63 }
 0x5cd   : > { %6171 = vst.msk [vmem:[%s11214_s10 + $0x8] sm:$0xff] %vm500_vm0, %v6139_v8  ;;  %v6109_v43 = vmul.f32 %v11753_v2, %v6017_v49  ;;  %v6015_v4 = vpop.permute.xlu0 %6014  ;;  %v5927_v8 = vsub.f32 1.0, %v11763_v45 }
 0x5ce   : > { %6170 = vst.msk [vmem:[%s11214_s10] sm:$0xff] %vm500_vm0, %v6138_v22  ;;  %v6108_v23 = vmul.f32 %v11754_v9, %v6015_v4  ;;  %v8252_v22 = vld [vmem:[%s8463_s6 + $0x50] sm:$0xff] }
 0x5cf   : > { %v6141_v50 = vadd.f32 %v6109_v43, %v5949_v16  ;;  %v5956_v49 = vmul.f32 %v8252_v22, %v5924_v54  ;;  %v11764_v16 = vld [vmem:[#allocation41_spill] sm:$0xff]  ;;  %v8261_v22 = vld [vmem:[%s8463_s6 + $0xa8] sm:$0xff] }
 0x5d0   : > { %v6140_v61 = vadd.f32 %v6108_v23, %v5948_v35  ;;  %v6021_v36 = vpop.permute.xlu1 %6020  ;;  %v5926_v43 = vsub.f32 1.0, %v11764_v16  ;;  %v5959_v35 = vmul.f32 %v8253_v26, %v5927_v8  ;;  %v11771_v54 = vld [vmem:[#allocation53_spill] sm:$0xff] }
 0x5d1   : > { %6173 = vst.msk [vmem:[%s11214_s10 + $0x18] sm:$0xff] %vm500_vm0, %v6141_v50  ;;  %v6111_v27 = vmul.f32 %v11755_v33, %v6021_v36  ;;  %v6019_v0 = vpop.permute.xlu0 %6018  ;;  %v5929_v50 = vsub.f32 1.0, %v11765_v18 }
 0x5d2   : > { %6172 = vst.msk [vmem:[%s11214_s10 + $0x10] sm:$0xff] %vm500_vm0, %v6140_v61  ;;  %v6110_v44 = vmul.f32 %v11756_v28, %v6019_v0  ;;  %v8254_v61 = vld [vmem:[%s8463_s6 + $0x60] sm:$0xff] }
 0x5d3   : > { %v6143_v34 = vadd.f32 %v6111_v27, %v5951_v55  ;;  %v5958_v36 = vmul.f32 %v8254_v61, %v5926_v43  ;;  %v11766_v55 = vld [vmem:[#allocation46_spill] sm:$0xff]  ;;  %v11773_v43 = vld [vmem:[#allocation55_spill] sm:$0xff]  ;;  %v8263_v61 = vld [vmem:[%s8463_s6 + $0xb8] sm:$0xff] }
 0x5d4   : > { %v6142_v46 = vadd.f32 %v6110_v44, %v5950_v17  ;;  %v6025_v31 = vpop.permute.xlu1 %6024  ;;  %v5928_v27 = vsub.f32 1.0, %v11766_v55  ;;  %v5961_v17 = vmul.f32 %v8255_v13, %v5929_v50 }
 0x5d5   : > { %6175 = vst.msk [vmem:[%s11214_s10 + $0x28] sm:$0xff] %vm500_vm0, %v6143_v34  ;;  %v6113_v20 = vmul.f32 %v11757_v57, %v6025_v31  ;;  %v6023_v3 = vpop.permute.xlu0 %6022  ;;  %v5931_v34 = vsub.f32 1.0, %v11767_v30 }
 0x5d6   : > { %6174 = vst.msk [vmem:[%s11214_s10 + $0x20] sm:$0xff] %vm500_vm0, %v6142_v46  ;;  %v6112_v1 = vmul.f32 %v11758_v42, %v6023_v3  ;;  %v8256_v46 = vld [vmem:[%s8463_s6 + $0x70] sm:$0xff] }
 0x5d7   : > { %v6145_v19 = vadd.f32 %v6113_v20, %v5953_v21  ;;  %v5960_v31 = vmul.f32 %v8256_v46, %v5928_v27  ;;  %v11768_v21 = vld [vmem:[#allocation50_spill] sm:$0xff]  ;;  %v11775_v27 = vld [vmem:[#allocation57_spill] sm:$0xff]  ;;  %v8265_v46 = vld [vmem:[%s8463_s6 + $0xc8] sm:$0xff] }
 0x5d8   : > { %v6144_v14 = vadd.f32 %v6112_v1, %v5952_v6  ;;  %v6029_v39 = vpop.permute.xlu1 %6028  ;;  %v5930_v20 = vsub.f32 1.0, %v11768_v21  ;;  %v5963_v6 = vmul.f32 %v8257_v37, %v5931_v34 }
 0x5d9   : > { %6177 = vst.msk [vmem:[%s11214_s10 + $0x38] sm:$0xff] %vm500_vm0, %v6145_v19  ;;  %v6115_v25 = vmul.f32 %v11759_v47, %v6029_v39  ;;  %v6027_v60 = vpop.permute.xlu0 %6026  ;;  %v5933_v19 = vsub.f32 1.0, %v11769_v32 }
 0x5da   : > { %6176 = vst.msk [vmem:[%s11214_s10 + $0x30] sm:$0xff] %vm500_vm0, %v6144_v14  ;;  %v6114_v51 = vmul.f32 %v11760_v40, %v6027_v60  ;;  %v8258_v14 = vld [vmem:[%s8463_s6 + $0x80] sm:$0xff] }
 0x5db   : > { %v6147_v62 = vadd.f32 %v6115_v25, %v5955_v53  ;;  %v5962_v39 = vmul.f32 %v8258_v14, %v5930_v20  ;;  %v11770_v53 = vld [vmem:[#allocation52_spill] sm:$0xff]  ;;  %v11777_v20 = vld [vmem:[#allocation59_spill] sm:$0xff]  ;;  %v8267_v14 = vld [vmem:[%s8463_s6 + $0xd8] sm:$0xff] }
 0x5dc   : > { %v6146_v2 = vadd.f32 %v6114_v51, %v5954_v52  ;;  %v6033_v7 = vpop.permute.xlu1 %6032  ;;  %v5932_v25 = vsub.f32 1.0, %v11770_v53  ;;  %v5965_v52 = vmul.f32 %v8259_v38, %v5933_v19 }
 0x5dd   : > { %6179 = vst.msk [vmem:[%s11214_s10 + $0x48] sm:$0xff] %vm500_vm0, %v6147_v62  ;;  %v6117_v59 = vmul.f32 %v11761_v56, %v6033_v7  ;;  %v6031_v9 = vpop.permute.xlu0 %6030  ;;  %v5935_v62 = vsub.f32 1.0, %v11771_v54 }
 0x5de   : > { %6178 = vst.msk [vmem:[%s11214_s10 + $0x40] sm:$0xff] %vm500_vm0, %v6146_v2  ;;  %v6116_v29 = vmul.f32 %v11762_v5, %v6031_v9  ;;  %v8260_v2 = vld [vmem:[%s8463_s6 + $0x90] sm:$0xff] }
 0x5df   : > { %v6149_v4 = vadd.f32 %v6117_v59, %v5957_v15  ;;  %v5964_v7 = vmul.f32 %v8260_v2, %v5932_v25  ;;  %v11772_v15 = vld [vmem:[#allocation54_spill] sm:$0xff]  ;;  %v11779_v25 = vld [vmem:[#allocation61_spill] sm:$0xff]  ;;  %v8269_v2 = vld [vmem:[%s8463_s6 + $0xe8] sm:$0xff] }
 0x5e0   : > { %v6148_v33 = vadd.f32 %v6116_v29, %v5956_v49  ;;  %v6037_v10 = vpop.permute.xlu1 %6036  ;;  %v5934_v59 = vsub.f32 1.0, %v11772_v15  ;;  %v5967_v49 = vmul.f32 %v8261_v22, %v5935_v62 }
 0x5e1   : > { %6181 = vst.msk [vmem:[%s11214_s10 + $0x58] sm:$0xff] %vm500_vm0, %v6149_v4  ;;  %v6119_v23 = vmul.f32 %v11763_v45, %v6037_v10  ;;  %v6035_v28 = vpop.permute.xlu0 %6034  ;;  %v5937_v4 = vsub.f32 1.0, %v11773_v43 }
 0x5e2   : > { %6180 = vst.msk [vmem:[%s11214_s10 + $0x50] sm:$0xff] %vm500_vm0, %v6148_v33  ;;  %v6118_v24 = vmul.f32 %v11764_v16, %v6035_v28  ;;  %v8262_v33 = vld [vmem:[%s8463_s6 + $0xa0] sm:$0xff] }
 0x5e3   : > { %v6151_v0 = vadd.f32 %v6119_v23, %v5959_v35  ;;  %v5966_v10 = vmul.f32 %v8262_v33, %v5934_v59  ;;  %v11774_v35 = vld [vmem:[#allocation56_spill] sm:$0xff]  ;;  %v11781_v59 = vld [vmem:[#allocation63_spill] sm:$0xff]  ;;  %v8271_v33 = vld [vmem:[%s8463_s6 + $0xf8] sm:$0xff] }
 0x5e4   : > { %v6150_v57 = vadd.f32 %v6118_v24, %v5958_v36  ;;  %v6041_v58 = vpop.permute.xlu1 %6040  ;;  %v5936_v23 = vsub.f32 1.0, %v11774_v35  ;;  %v5969_v36 = vmul.f32 %v8263_v61, %v5937_v4 }
 0x5e5   : > { %6183 = vst.msk [vmem:[%s11214_s10 + $0x68] sm:$0xff] %vm500_vm0, %v6151_v0  ;;  %v6121_v44 = vmul.f32 %v11765_v18, %v6041_v58  ;;  %v6039_v42 = vpop.permute.xlu0 %6038  ;;  %v5939_v0 = vsub.f32 1.0, %v11775_v27 }
 0x5e6   : > { %6182 = vst.msk [vmem:[%s11214_s10 + $0x60] sm:$0xff] %vm500_vm0, %v6150_v57  ;;  %v6120_v41 = vmul.f32 %v11766_v55, %v6039_v42  ;;  %v8264_v57 = vld [vmem:[%s8463_s6 + $0xb0] sm:$0xff] }
 0x5e7   : > { %v6153_v3 = vadd.f32 %v6121_v44, %v5961_v17  ;;  %v5968_v58 = vmul.f32 %v8264_v57, %v5936_v23  ;;  %v11776_v17 = vld [vmem:[#allocation58_spill] sm:$0xff]  ;;  %v8272_v23 = vld [vmem:[%s8463_s6 + $0xf0] sm:$0xff] }
 0x5e8   : > { %v6152_v47 = vadd.f32 %v6120_v41, %v5960_v31  ;;  %v6045_v48 = vpop.permute.xlu1 %6044  ;;  %v5938_v44 = vsub.f32 1.0, %v11776_v17  ;;  %v5971_v31 = vmul.f32 %v8265_v46, %v5939_v0 }
 0x5e9   : > { %6185 = vst.msk [vmem:[%s11214_s10 + $0x78] sm:$0xff] %vm500_vm0, %v6153_v3  ;;  %v6123_v1 = vmul.f32 %v11767_v30, %v6045_v48  ;;  %v6043_v40 = vpop.permute.xlu0 %6042  ;;  %v5941_v3 = vsub.f32 1.0, %v11777_v20 }
 0x5ea   : > { %6184 = vst.msk [vmem:[%s11214_s10 + $0x70] sm:$0xff] %vm500_vm0, %v6152_v47  ;;  %v6122_v11 = vmul.f32 %v11768_v21, %v6043_v40  ;;  %v8266_v47 = vld [vmem:[%s8463_s6 + $0xc0] sm:$0xff] }
 0x5eb   : > { %v6155_v60 = vadd.f32 %v6123_v1, %v5963_v6  ;;  %v5970_v48 = vmul.f32 %v8266_v47, %v5938_v44  ;;  %v11778_v6 = vld [vmem:[#allocation60_spill] sm:$0xff] }
 0x5ec   : > { %v6154_v56 = vadd.f32 %v6122_v11, %v5962_v39  ;;  %v6049_v63 = vpop.permute.xlu1 %6048  ;;  %v5940_v1 = vsub.f32 1.0, %v11778_v6  ;;  %v5973_v39 = vmul.f32 %v8267_v14, %v5941_v3 }
 0x5ed   : > { %6187 = vst.msk [vmem:[%s11214_s10 + $0x88] sm:$0xff] %vm500_vm0, %v6155_v60  ;;  %v6125_v51 = vmul.f32 %v11769_v32, %v6049_v63  ;;  %v6047_v5 = vpop.permute.xlu0 %6046  ;;  %v5943_v60 = vsub.f32 1.0, %v11779_v25 }
 0x5ee   : > { %6186 = vst.msk [vmem:[%s11214_s10 + $0x80] sm:$0xff] %vm500_vm0, %v6154_v56  ;;  %v6124_v12 = vmul.f32 %v11770_v53, %v6047_v5  ;;  %v8268_v56 = vld [vmem:[%s8463_s6 + $0xd0] sm:$0xff] }
 0x5ef   : > { %v6157_v9 = vadd.f32 %v6125_v51, %v5965_v52  ;;  %v5972_v63 = vmul.f32 %v8268_v56, %v5940_v1  ;;  %v11780_v52 = vld [vmem:[#allocation62_spill] sm:$0xff] }
 0x5f0   : > { %v6156_v45 = vadd.f32 %v6124_v12, %v5964_v7  ;;  %v6053_v8 = vpop.permute.xlu1 %6052  ;;  %v5942_v51 = vsub.f32 1.0, %v11780_v52  ;;  %v5975_v7 = vmul.f32 %v8269_v2, %v5943_v60 }
 0x5f1   : > { %6189 = vst.msk [vmem:[%s11214_s10 + $0x98] sm:$0xff] %vm500_vm0, %v6157_v9  ;;  %v6127_v29 = vmul.f32 %v11771_v54, %v6053_v8  ;;  %v6051_v16 = vpop.permute.xlu0 %6050  ;;  %v5945_v9 = vsub.f32 1.0, %v11781_v59 }
 0x5f2   : > { %6188 = vst.msk [vmem:[%s11214_s10 + $0x90] sm:$0xff] %vm500_vm0, %v6156_v45  ;;  %v6126_v26 = vmul.f32 %v11772_v15, %v6051_v16  ;;  %v8270_v45 = vld [vmem:[%s8463_s6 + $0xe0] sm:$0xff] }
 0x5f3   : > { %v6159_v28 = vadd.f32 %v6127_v29, %v5967_v49  ;;  %v5974_v8 = vmul.f32 %v8270_v45, %v5942_v51  ;;  %v11782_v49 = vld [vmem:[#allocation64_spill] sm:$0xff] }
 0x5f4   : > { %v6158_v18 = vadd.f32 %v6126_v26, %v5966_v10  ;;  %v6057_v50 = vpop.permute.xlu1 %6056  ;;  %v5944_v29 = vsub.f32 1.0, %v11782_v49  ;;  %v5977_v10 = vmul.f32 %v8271_v33, %v5945_v9 }
 0x5f5   : > { %6191 = vst.msk [vmem:[%s11214_s10 + $0xa8] sm:$0xff] %vm500_vm0, %v6159_v28  ;;  %v6129_v24 = vmul.f32 %v11773_v43, %v6057_v50  ;;  %v6055_v55 = vpop.permute.xlu0 %6054 }
 0x5f6   : > { %6190 = vst.msk [vmem:[%s11214_s10 + $0xa0] sm:$0xff] %vm500_vm0, %v6158_v18  ;;  %v6128_v13 = vmul.f32 %v11774_v35, %v6055_v55  ;;  %v5976_v28 = vmul.f32 %v8272_v23, %v5944_v29 }
 0x5f7   : > { %v6161_v42 = vadd.f32 %v6129_v24, %v5969_v36 }
 0x5f8   : > { %v6160_v30 = vadd.f32 %v6128_v13, %v5968_v58  ;;  %v6061_v34 = vpop.permute.xlu1 %6060 }
 0x5f9   : > { %6193 = vst.msk [vmem:[%s11214_s10 + $0xb8] sm:$0xff] %vm500_vm0, %v6161_v42  ;;  %v6131_v41 = vmul.f32 %v11775_v27, %v6061_v34  ;;  %v6059_v21 = vpop.permute.xlu0 %6058 }
 0x5fa   : > { %6192 = vst.msk [vmem:[%s11214_s10 + $0xb0] sm:$0xff] %vm500_vm0, %v6160_v30  ;;  %v6130_v37 = vmul.f32 %v11776_v17, %v6059_v21 }
 0x5fb   : > { %v6163_v40 = vadd.f32 %v6131_v41, %v5971_v31 }
 0x5fc   : > { %v6162_v32 = vadd.f32 %v6130_v37, %v5970_v48  ;;  %v6065_v19 = vpop.permute.xlu1 %6064 }
 0x5fd   : > { %6195 = vst.msk [vmem:[%s11214_s10 + $0xc8] sm:$0xff] %vm500_vm0, %v6163_v40  ;;  %v6133_v11 = vmul.f32 %v11777_v20, %v6065_v19  ;;  %v6063_v53 = vpop.permute.xlu0 %6062 }
 0x5fe   : > { %6194 = vst.msk [vmem:[%s11214_s10 + $0xc0] sm:$0xff] %vm500_vm0, %v6162_v32  ;;  %v6132_v38 = vmul.f32 %v11778_v6, %v6063_v53 }
 0x5ff   : > { %v6165_v5 = vadd.f32 %v6133_v11, %v5973_v39 }
 0x600   : > { %v6164_v54 = vadd.f32 %v6132_v38, %v5972_v63  ;;  %v6069_v62 = vpop.permute.xlu1 %6068 }
 0x601   : > { %6197 = vst.msk [vmem:[%s11214_s10 + $0xd8] sm:$0xff] %vm500_vm0, %v6165_v5  ;;  %v6135_v12 = vmul.f32 %v11779_v25, %v6069_v62  ;;  %v6067_v15 = vpop.permute.xlu0 %6066 }
 0x602   : > { %6196 = vst.msk [vmem:[%s11214_s10 + $0xd0] sm:$0xff] %vm500_vm0, %v6164_v54  ;;  %v6134_v22 = vmul.f32 %v11780_v52, %v6067_v15 }
 0x603   : > { %v6167_v16 = vadd.f32 %v6135_v12, %v5975_v7 }
 0x604   : > { %v6166_v43 = vadd.f32 %v6134_v22, %v5974_v8  ;;  %v6073_v4 = vpop.permute.xlu1 %6072 }
 0x605   : > { %6199 = vst.msk [vmem:[%s11214_s10 + $0xe8] sm:$0xff] %vm500_vm0, %v6167_v16  ;;  %v6137_v26 = vmul.f32 %v11781_v59, %v6073_v4  ;;  %v6071_v35 = vpop.permute.xlu0 %6070 }
 0x606   : > { %6198 = vst.msk [vmem:[%s11214_s10 + $0xe0] sm:$0xff] %vm500_vm0, %v6166_v43  ;;  %v6136_v18 = vmul.f32 %v11782_v49, %v6071_v35 }
 0x607   : > { %v6169_v50 = vadd.f32 %v6137_v26, %v5977_v10 }
 0x608   : > { %v6168_v61 = vadd.f32 %v6136_v18, %v5976_v28 }
 0x609   : > { %6201 = vst.msk [vmem:[%s11214_s10 + $0xf8] sm:$0xff] %vm500_vm0, %v6169_v50 }
 0x60a   : > { %6200 = vst.msk [vmem:[%s11214_s10 + $0xf0] sm:$0xff] %vm500_vm0, %v6168_v61 }
 0x60b PF: > { %s15_s20 = sadd.s32 1, %s8295_s20   ;;  %s11783_s18 = smov %s8291_s19 }
 0x60c   : > { %p12_p5 = scmp.ge.s32.totalorder %s15_s20, 4   ;;  %s11784_s19 = smov %s11786_s21 }
 0x60e   :  { %14 = sbr.rel (!%p12_p5) target bundleno = 2 (0x2), region = 81 }

</bundles_post_ra>
